<compile_context>
chip_gen: v7x
topology: tpu7x:2x2x1
jax: 0.10.0
libtpu: 0.0.40
codegen_flags: <defaults>
</compile_context>

<pallas_src>
import jax
import jax.numpy as jnp
from jax.experimental import pallas as pl
from jax.experimental.pallas import tpu as pltpu


# ----------------------------------------------------------------------------
# Small helpers
# ----------------------------------------------------------------------------
def _ceil_to(a, m):
    return (a + m - 1) // m * m


def _pick_kt(kp, max_kt=8192):
    """Largest 128-granular K tile <= max_kt that divides kp (kp % 128 == 0)."""
    if kp <= max_kt:
        return kp
    for cand in range(max_kt, 127, -128):
        if kp % cand == 0:
            return cand
    return 128


def _pick_oct(ocp):
    """OC tile (multiple of 128). >1 tile whenever possible so the 'parallel'
    OC grid axis can engage both v7x TensorCores; harmless on v5e/v6e."""
    for cand in (256, 128):
        if ocp > cand and ocp % cand == 0:
            return cand
    return ocp


def _live_axis(size, k, stride, pad_lo, pad_hi):
    """Output size and per-tap liveness along one spatial axis.  A tap is dead
    if, for every output position, it only ever reads zero padding."""
    o = (size + pad_lo + pad_hi - k) // stride + 1
    live = tuple(
        any(pad_lo <= oy * stride + t < pad_lo + size for oy in range(o))
        for t in range(k))
    return o, live


def _conv_geom(h, w, kh, kw, stride, pad_h, pad_w):
    oh, live_h = _live_axis(h, kh, stride, *pad_h)
    ow, live_w = _live_axis(w, kw, stride, *pad_w)
    taps = tuple((i, j) for i in range(kh) if live_h[i]
                 for j in range(kw) if live_w[j])
    return dict(stride=stride, pad_h=pad_h, pad_w=pad_w,
                oh=oh, ow=ow, taps=taps)


def _im2col(x, geom):
    """x: [N,H,W,C] -> [N*OH*OW, T*C], statically-live taps only (order = taps)."""
    n, h, w, c = x.shape
    s = geom["stride"]
    oh, ow = geom["oh"], geom["ow"]
    xpad = jnp.pad(x, ((0, 0), geom["pad_h"], geom["pad_w"], (0, 0)))
    patches = [xpad[:, i:i + s * oh:s, j:j + s * ow:s, :]
               for i, j in geom["taps"]]
    col = patches[0] if len(patches) == 1 else jnp.concatenate(patches, axis=-1)
    # TODO(synk): for large images, replace this XLA-side patch extraction with
    # an in-kernel gather to avoid materializing the T-fold patch matrix.
    return col.reshape(n * oh * ow, len(geom["taps"]) * c)


# ----------------------------------------------------------------------------
# Fused GEMM kernel:  out = epilogue(x @ w)
# ----------------------------------------------------------------------------
def _make_gemm_kernel(n_k, has_bias, has_bn, has_add, relu, tanh, m_real, eps):
    def epilogue(y, b_ref, g_ref, bt_ref, a_ref):
        if has_bn:
            # Padded rows of the accumulator are exactly zero, so block-wide
            # sums divided by m_real give exact per-channel batch statistics
            # (biased variance, eps=1e-5 -> torch BatchNorm in training mode).
            inv_m = jnp.float32(1.0 / m_real)
            s1 = jnp.sum(y, axis=0, keepdims=True) * inv_m
            s2 = jnp.sum(y * y, axis=0, keepdims=True) * inv_m
            var = jnp.maximum(s2 - s1 * s1, 0.0)
            y = (y - s1) * jax.lax.rsqrt(var + jnp.float32(eps))
            y = y * g_ref[...] + bt_ref[...]
        elif has_bias:
            y = y + b_ref[...]
        if has_add:
            y = y + a_ref[...].astype(jnp.float32)
        if relu:
            y = jnp.maximum(y, 0.0)
        if tanh:
            y = jnp.tanh(y)
        return y

    def kernel(*refs):
        x_ref, w_ref = refs[0], refs[1]
        idx = 2
        b_ref = g_ref = bt_ref = a_ref = None
        if has_bias:
            b_ref = refs[idx]
            idx += 1
        if has_bn:
            g_ref, bt_ref = refs[idx], refs[idx + 1]
            idx += 2
        if has_add:
            a_ref = refs[idx]
            idx += 1
        o_ref, acc_ref = refs[idx], refs[idx + 1]

        if n_k == 1:
            acc = jnp.dot(x_ref[...], w_ref[...],
                          preferred_element_type=jnp.float32)
            o_ref[...] = epilogue(acc, b_ref, g_ref, bt_ref,
                                  a_ref).astype(o_ref.dtype)
        else:
            k = pl.program_id(1)

            @pl.when(k == 0)
            def _():
                acc_ref[...] = jnp.zeros_like(acc_ref)

            acc_ref[...] += jnp.dot(x_ref[...], w_ref[...],
                                    preferred_element_type=jnp.float32)

            @pl.when(k == pl.num_programs(1) - 1)
            def _():
                o_ref[...] = epilogue(acc_ref[...], b_ref, g_ref, bt_ref,
                                      a_ref).astype(o_ref.dtype)

    return kernel


def pallas_gemm_fused(col, layer, *, addend=None, relu=False, tanh=False,
                      out_dtype=jnp.bfloat16, eps=1e-5):
    """col: [M, K] (bf16), layer['w']: pre-packed [Kp, OCp] bf16.
    Returns epilogue(col @ w)[:M, :oc] in out_dtype."""
    m, kr = col.shape
    wp = layer["w"]
    kp, ocp = wp.shape
    oc = layer["oc"]
    assert kr == layer["k"], (kr, layer["k"])

    mp = _ceil_to(max(m, 16), 16)              # bf16 sublane packing
    kt = _pick_kt(kp)
    n_k = kp // kt
    oct_ = _pick_oct(ocp)
    n_oc = ocp // oct_

    xp = col.astype(jnp.bfloat16)
    if (mp, kp) != (m, kr):
        xp = jnp.zeros((mp, kp), jnp.bfloat16).at[:m, :kr].set(xp)

    has_bias = layer["bias"] is not None
    has_bn = layer["gamma"] is not None
    has_add = addend is not None

    inputs = [xp, wp]
    in_specs = [pl.BlockSpec((mp, kt), lambda j, k: (0, k)),
                pl.BlockSpec((kt, oct_), lambda j, k: (k, j))]
    vec_spec = pl.BlockSpec((1, oct_), lambda j, k: (0, j))
    if has_bias:
        inputs.append(layer["bias"])
        in_specs.append(vec_spec)
    if has_bn:
        inputs += [layer["gamma"], layer["beta"]]
        in_specs += [vec_spec, vec_spec]
    if has_add:
        ap = jnp.zeros((mp, ocp), jnp.bfloat16).at[:m, :oc].set(
            addend.astype(jnp.bfloat16))
        inputs.append(ap)
        in_specs.append(pl.BlockSpec((mp, oct_), lambda j, k: (0, j)))

    kernel = _make_gemm_kernel(n_k, has_bias, has_bn, has_add, relu, tanh,
                               m, eps)
    out = pl.pallas_call(
        kernel,
        out_shape=jax.ShapeDtypeStruct((mp, ocp), out_dtype),
        grid=(n_oc, n_k),
        in_specs=in_specs,
        out_specs=pl.BlockSpec((mp, oct_), lambda j, k: (0, j)),
        scratch_shapes=[pltpu.VMEM((mp, oct_), jnp.float32)],
        compiler_params=pltpu.CompilerParams(
            dimension_semantics=("parallel", "arbitrary"),
            vmem_limit_bytes=32 * 1024 * 1024),
    )(*inputs)
    return out[:m, :oc]


# ----------------------------------------------------------------------------
# One-time weight packing (hoisted out of forward)
# ----------------------------------------------------------------------------
def _pad_wmat(wmat):
    k, oc = wmat.shape
    kp = _ceil_to(max(k, 128), 128)
    ocp = _ceil_to(max(oc, 128), 128)
    wp = jnp.zeros((kp, ocp), jnp.bfloat16).at[:k, :oc].set(
        wmat.astype(jnp.bfloat16))
    return wp, k, oc


def _pad_row(v, ocp):
    return jnp.zeros((1, ocp), jnp.float32).at[0, :v.shape[0]].set(
        v.astype(jnp.float32))


def _prep_conv(w, bias, hw, k, stride, pad, *, gamma=None, beta=None,
               relu=False):
    """Pack a Conv2d (w: [OC, IC, k, k]) for the fused GEMM at input size hw."""
    geom = _conv_geom(hw[0], hw[1], k, k, stride, (pad, pad), (pad, pad))
    slices = [w[:, :, i, j].T for i, j in geom["taps"]]          # each [IC, OC]
    wmat = slices[0] if len(slices) == 1 else jnp.concatenate(slices, axis=0)
    wp, kr, oc = _pad_wmat(wmat)
    ocp = wp.shape[1]
    layer = dict(geom=geom, w=wp, k=kr, oc=oc, relu=relu,
                 bias=None, gamma=None, beta=None, subpix=None)
    if gamma is not None:
        # Conv bias feeding BatchNorm cancels exactly -> skipped (identical).
        layer["gamma"] = _pad_row(gamma, ocp)
        layer["beta"] = _pad_row(beta, ocp)
    elif bias is not None:
        layer["bias"] = _pad_row(bias, ocp)
    return layer


def _prep_convt(wt, bias, hw, k, stride, pad):
    """Pack a stride>1 ConvTranspose2d (wt: [IC, OC, k, k]) via the sub-pixel
    decomposition (valid when k = q*stride and 2*pad = k - stride): a stride-1
    conv with a q x q kernel producing s*s*OC channels + pixel shuffle."""
    s = stride
    q = k // s
    assert k == q * s and 2 * pad == k - s
    ic, oc = wt.shape[0], wt.shape[1]
    w6 = wt.reshape(ic, oc, q, s, q, s)                      # [ic,oc,di,rh,dj,rw]
    wsub = jnp.flip(w6, axis=(2, 4)).transpose(2, 4, 0, 3, 5, 1)  # [ti,tj,ic,rh,rw,oc]
    geom = _conv_geom(hw[0], hw[1], q, q, 1, (q - 1, 1), (q - 1, 1))
    slices = [wsub[i, j].reshape(ic, s * s * oc) for i, j in geom["taps"]]
    wmat = slices[0] if len(slices) == 1 else jnp.concatenate(slices, axis=0)
    wp, kr, _ = _pad_wmat(wmat)
    layer = dict(geom=geom, w=wp, k=kr, oc=s * s * oc, relu=False,
                 bias=_pad_row(jnp.tile(bias, s * s), wp.shape[1]),
                 gamma=None, beta=None,
                 subpix=dict(s=s, pad=pad, oc=oc,
                             out_h=hw[0] * s, out_w=hw[1] * s))
    return layer


# ----------------------------------------------------------------------------
# Layer application (NHWC bf16 activations throughout)
# ----------------------------------------------------------------------------
def _apply_conv(x, layer, *, addend=None, tanh=False, out_dtype=jnp.bfloat16):
    n = x.shape[0]
    g = layer["geom"]
    col = _im2col(x, g)
    add2d = None if addend is None else addend.reshape(-1, layer["oc"])
    out = pallas_gemm_fused(col, layer, addend=add2d, relu=layer["relu"],
                            tanh=tanh, out_dtype=out_dtype)
    return out.reshape(n, g["oh"], g["ow"], layer["oc"])


def _apply_convt(x, layer, *, tanh=False, out_dtype=jnp.bfloat16):
    n = x.shape[0]
    g, sp = layer["geom"], layer["subpix"]
    col = _im2col(x, g)
    y = pallas_gemm_fused(col, layer, tanh=tanh, out_dtype=out_dtype)
    s, oc, pad = sp["s"], sp["oc"], sp["pad"]
    bh, bw = g["oh"], g["ow"]
    y = y.reshape(n, bh, bw, s, s, oc).transpose(0, 1, 3, 2, 4, 5)
    y = y.reshape(n, bh * s, bw * s, oc)
    return y[:, pad:pad + sp["out_h"], pad:pad + sp["out_w"], :]


# ----------------------------------------------------------------------------
# Parameters (deterministic synthetic init) and forward pass
# ----------------------------------------------------------------------------
def init_params(key):
    keys = iter(jax.random.split(key, 64))

    def conv_p(oc, ic, k):
        w = jax.random.normal(next(keys), (oc, ic, k, k), jnp.float32) * 0.05
        b = jax.random.normal(next(keys), (oc,), jnp.float32) * 0.05
        return {"w": w, "b": b}

    def convt_p(ic, oc, k):
        w = jax.random.normal(next(keys), (ic, oc, k, k), jnp.float32) * 0.05
        b = jax.random.normal(next(keys), (oc,), jnp.float32) * 0.05
        return {"w": w, "b": b}

    def bn_p(c):
        g = 1.0 + 0.01 * jax.random.normal(next(keys), (c,), jnp.float32)
        b = 0.01 * jax.random.normal(next(keys), (c,), jnp.float32)
        return {"gamma": g, "beta": b}

    return {
        "c1": conv_p(64, 3, 3),    "bn1": bn_p(64),
        "c2": conv_p(128, 64, 3),  "bn2": bn_p(128),
        "c3": conv_p(256, 128, 3), "bn3": bn_p(256),
        "c4": conv_p(512, 256, 3), "bn4": bn_p(512),
        "c5": conv_p(512, 512, 3), "bn5": bn_p(512),
        "c6": conv_p(512, 512, 7), "bn6": bn_p(512),
        "c7": conv_p(512, 512, 1), "bn7": bn_p(512),
        "up5_conv": conv_p(3, 512, 1),
        "up5_ct": convt_p(3, 3, 4),
        "score4": convt_p(512, 3, 1),
        "score3": convt_p(256, 3, 1),
        "up4": convt_p(3, 3, 4),
        "up": convt_p(3, 3, 16),
    }


def prepare_params(raw, h, w):
    """One-time packing of every weight into a GEMM-ready, bf16, lane-padded
    layout for a fixed input spatial size (runs once, outside forward)."""
    pp = {}
    cur = (h, w)
    cfg = [("c1", "bn1", 3, 2, 1), ("c2", "bn2", 3, 2, 1),
           ("c3", "bn3", 3, 2, 1), ("c4", "bn4", 3, 2, 1),
           ("c5", "bn5", 3, 2, 1), ("c6", "bn6", 7, 1, 3),
           ("c7", "bn7", 1, 1, 0)]
    sizes = {}
    for name, bn, k, s, pad in cfg:
        pp[name] = _prep_conv(raw[name]["w"], None, cur, k, s, pad,
                              gamma=raw[bn]["gamma"], beta=raw[bn]["beta"],
                              relu=True)
        cur = (pp[name]["geom"]["oh"], pp[name]["geom"]["ow"])
        sizes[name] = cur
    s3, s4, s7 = sizes["c3"], sizes["c4"], sizes["c7"]

    pp["up5_conv"] = _prep_conv(raw["up5_conv"]["w"], raw["up5_conv"]["b"],
                                s7, 1, 1, 0)
    pp["up5_ct"] = _prep_convt(raw["up5_ct"]["w"], raw["up5_ct"]["b"],
                               s7, 4, 2, 1)
    # ConvTranspose2d with k=1, s=1, p=0 == 1x1 conv with swapped channel dims.
    pp["score4"] = _prep_conv(jnp.transpose(raw["score4"]["w"], (1, 0, 2, 3)),
                              raw["score4"]["b"], s4, 1, 1, 0)
    pp["score3"] = _prep_conv(jnp.transpose(raw["score3"]["w"], (1, 0, 2, 3)),
                              raw["score3"]["b"], s3, 1, 1, 0)
    pp["up4"] = _prep_convt(raw["up4"]["w"], raw["up4"]["b"], s4, 4, 2, 1)
    pp["up"] = _prep_convt(raw["up"]["w"], raw["up"]["b"], s3, 16, 8, 4)
    return pp


def forward(x_nchw, pp):
    x = jnp.transpose(x_nchw, (0, 2, 3, 1)).astype(jnp.bfloat16)  # NCHW->NHWC once

    x1 = _apply_conv(x, pp["c1"])
    x2 = _apply_conv(x1, pp["c2"])
    x3 = _apply_conv(x2, pp["c3"])
    x4 = _apply_conv(x3, pp["c4"])
    x5 = _apply_conv(x4, pp["c5"])
    x6 = _apply_conv(x5, pp["c6"])
    x7 = _apply_conv(x6, pp["c7"])

    # upscore_pool5 = 1x1 conv (512->3) then ConvTranspose(3,3,4,2,1)
    pool5 = _apply_conv(x7, pp["up5_conv"])
    pool5 = _apply_convt(pool5, pp["up5_ct"])

    # pool4 = score_pool4(x4) + pool5   (skip-add fused into the score GEMM)
    pool4 = _apply_conv(x4, pp["score4"], addend=pool5)
    pool4 = _apply_convt(pool4, pp["up4"])

    # pool = score_pool3(x3) + upscore_pool4(pool4)   (skip-add fused)
    pool = _apply_conv(x3, pp["score3"], addend=pool4)

    # upscore_pool = ConvTranspose(3,3,16,8,4) with tanh fused in the epilogue
    out = _apply_convt(pool, pp["up"], tanh=True, out_dtype=jnp.float32)
    return jnp.transpose(out, (0, 3, 1, 2))                       # back to NCHW


if __name__ == "__main__":
    key = jax.random.PRNGKey(0)
    k_x, k_p = jax.random.split(key)
    # batch=2, channels=3 (fixed by the module), spatial=32 so five stride-2
    # downsamples reach 1x1 before the 7x7 conv.
    N, H, W = 2, 32, 32
    x = jax.random.normal(k_x, (N, 3, H, W), jnp.float32)

    raw = init_params(k_p)
    packed = prepare_params(raw, H, W)   # one-time weight packing, not per call

    fwd = jax.jit(lambda inp: forward(inp, packed))
    out = jax.block_until_ready(fwd(x))

    assert out.shape == (N, 3, H, W), out.shape
    assert bool(jnp.all(jnp.isfinite(out)))
    print("KERNEL_OK")
</pallas_src>

<mosaic_0001>
module attributes {stable_mosaic.version = 11 : i64} {
  func.func @kernel(%arg0: i32, %arg1: i32, %arg2: memref<512x128xbf16, #tpu.memory_space<vmem>>, %arg3: memref<128x128xbf16, #tpu.memory_space<vmem>>, %arg4: memref<1x128xf32, #tpu.memory_space<vmem>>, %arg5: memref<1x128xf32, #tpu.memory_space<vmem>>, %arg6: memref<512x128xbf16, #tpu.memory_space<vmem>>, %arg7: memref<512x128xf32, #tpu.memory_space<vmem>>) attributes {dimension_semantics = [#tpu.dimension_semantics<parallel>, #tpu.dimension_semantics<arbitrary>], iteration_bounds = array<i64: 1, 1>, scalar_prefetch = 0 : i64, scratch_operands = 1 : i64, tpu.core_type = #tpu.core_type<tc>, window_params = [{transform_indices = @transform_0, window_bounds = array<i64: 512, 128>}, {transform_indices = @transform_1, window_bounds = array<i64: 128, 128>}, {transform_indices = @transform_2, window_bounds = array<i64: 1, 128>}, {transform_indices = @transform_3, window_bounds = array<i64: 1, 128>}, {transform_indices = @transform_4, window_bounds = array<i64: 512, 128>}]} {
    %c0 = arith.constant 0 : index
    %c0_0 = arith.constant 0 : index
    %0 = vector.load %arg2[%c0, %c0_0] : memref<512x128xbf16, #tpu.memory_space<vmem>>, vector<512x128xbf16>
    %c0_1 = arith.constant 0 : index
    %c0_2 = arith.constant 0 : index
    %1 = vector.load %arg3[%c0_1, %c0_2] : memref<128x128xbf16, #tpu.memory_space<vmem>>, vector<128x128xbf16>
    %cst = arith.constant dense<0.000000e+00> : vector<512x128xf32>
    %2 = tpu.matmul %0, %1, %cst {dimension_numbers = #tpu.dot_dimension_numbers<[1], [0], [0], [1], [0, 0, 1, 1], [], []>} : vector<512x128xbf16>, vector<128x128xbf16>, vector<512x128xf32> -> vector<512x128xf32>
    %cst_3 = arith.constant dense<0.000000e+00> : vector<128xf32>
    %3 = vector.multi_reduction <add>, %2, %cst_3 [0] : vector<512x128xf32> to vector<128xf32>
    %4 = vector.shape_cast %3 : vector<128xf32> to vector<1x128xf32>
    %cst_4 = arith.constant 0.001953125 : f32
    %5 = vector.broadcast %cst_4 : f32 to vector<1x128xf32>
    %6 = arith.mulf %4, %5 : vector<1x128xf32>
    %7 = arith.mulf %2, %2 : vector<512x128xf32>
    %cst_5 = arith.constant dense<0.000000e+00> : vector<128xf32>
    %8 = vector.multi_reduction <add>, %7, %cst_5 [0] : vector<512x128xf32> to vector<128xf32>
    %9 = vector.shape_cast %8 : vector<128xf32> to vector<1x128xf32>
    %cst_6 = arith.constant 0.001953125 : f32
    %10 = vector.broadcast %cst_6 : f32 to vector<1x128xf32>
    %11 = arith.mulf %9, %10 : vector<1x128xf32>
    %12 = arith.mulf %6, %6 : vector<1x128xf32>
    %13 = arith.subf %11, %12 : vector<1x128xf32>
    %cst_7 = arith.constant 0.000000e+00 : f32
    %14 = vector.broadcast %cst_7 : f32 to vector<1x128xf32>
    %15 = arith.maximumf %13, %14 : vector<1x128xf32>
    %16 = vector.broadcast %6 : vector<1x128xf32> to vector<512x128xf32>
    %17 = arith.subf %2, %16 : vector<512x128xf32>
    %cst_8 = arith.constant 9.99999974E-6 : f32
    %18 = vector.broadcast %cst_8 : f32 to vector<1x128xf32>
    %19 = arith.addf %15, %18 : vector<1x128xf32>
    %20 = math.rsqrt %19 : vector<1x128xf32>
    %21 = vector.broadcast %20 : vector<1x128xf32> to vector<512x128xf32>
    %22 = arith.mulf %17, %21 : vector<512x128xf32>
    %c0_9 = arith.constant 0 : index
    %c0_10 = arith.constant 0 : index
    %23 = vector.load %arg4[%c0_9, %c0_10] : memref<1x128xf32, #tpu.memory_space<vmem>>, vector<1x128xf32>
    %24 = vector.broadcast %23 : vector<1x128xf32> to vector<512x128xf32>
    %25 = arith.mulf %22, %24 : vector<512x128xf32>
    %c0_11 = arith.constant 0 : index
    %c0_12 = arith.constant 0 : index
    %26 = vector.load %arg5[%c0_11, %c0_12] : memref<1x128xf32, #tpu.memory_space<vmem>>, vector<1x128xf32>
    %27 = vector.broadcast %26 : vector<1x128xf32> to vector<512x128xf32>
    %28 = arith.addf %25, %27 : vector<512x128xf32>
    %cst_13 = arith.constant 0.000000e+00 : f32
    %29 = vector.broadcast %cst_13 : f32 to vector<512x128xf32>
    %30 = arith.maximumf %28, %29 : vector<512x128xf32>
    %31 = arith.truncf %30 : vector<512x128xf32> to vector<512x128xbf16>
    %c0_14 = arith.constant 0 : index
    %c0_15 = arith.constant 0 : index
    %32 = vector.load %arg6[%c0_14, %c0_15] : memref<512x128xbf16, #tpu.memory_space<vmem>>, vector<512x128xbf16>
    tpu.vector_store %arg6[%c0_14, %c0_15], %31 {strides = array<i32>} : memref<512x128xbf16, #tpu.memory_space<vmem>>, vector<512x128xbf16>,
    return
  }
  func.func @transform_0(%arg0: i32, %arg1: i32) -> (i32, i32) {
    %c0_i32 = arith.constant 0 : i32
    %c0_i32_0 = arith.constant 0 : i32
    return %c0_i32, %arg1 : i32, i32
  }
  func.func @transform_1(%arg0: i32, %arg1: i32) -> (i32, i32) {
    %c0_i32 = arith.constant 0 : i32
    return %arg1, %arg0 : i32, i32
  }
  func.func @transform_2(%arg0: i32, %arg1: i32) -> (i32, i32) {
    %c0_i32 = arith.constant 0 : i32
    %c0_i32_0 = arith.constant 0 : i32
    return %c0_i32, %arg0 : i32, i32
  }
  func.func @transform_3(%arg0: i32, %arg1: i32) -> (i32, i32) {
    %c0_i32 = arith.constant 0 : i32
    %c0_i32_0 = arith.constant 0 : i32
    return %c0_i32, %arg0 : i32, i32
  }
  func.func @transform_4(%arg0: i32, %arg1: i32) -> (i32, i32) {
    %c0_i32 = arith.constant 0 : i32
    %c0_i32_0 = arith.constant 0 : i32
    return %c0_i32, %arg0 : i32, i32
  }
}

module attributes {stable_mosaic.version = 11 : i64} {
  func.func @kernel(%arg0: i32, %arg1: i32, %arg2: memref<128x640xbf16, #tpu.memory_space<vmem>>, %arg3: memref<640x128xbf16, #tpu.memory_space<vmem>>, %arg4: memref<1x128xf32, #tpu.memory_space<vmem>>, %arg5: memref<1x128xf32, #tpu.memory_space<vmem>>, %arg6: memref<128x128xbf16, #tpu.memory_space<vmem>>, %arg7: memref<128x128xf32, #tpu.memory_space<vmem>>) attributes {dimension_semantics = [#tpu.dimension_semantics<parallel>, #tpu.dimension_semantics<arbitrary>], iteration_bounds = array<i64: 1, 1>, scalar_prefetch = 0 : i64, scratch_operands = 1 : i64, tpu.core_type = #tpu.core_type<tc>, window_params = [{transform_indices = @transform_0, window_bounds = array<i64: 128, 640>}, {transform_indices = @transform_1, window_bounds = array<i64: 640, 128>}, {transform_indices = @transform_2, window_bounds = array<i64: 1, 128>}, {transform_indices = @transform_3, window_bounds = array<i64: 1, 128>}, {transform_indices = @transform_4, window_bounds = array<i64: 128, 128>}]} {
    %c0 = arith.constant 0 : index
    %c0_0 = arith.constant 0 : index
    %0 = vector.load %arg2[%c0, %c0_0] : memref<128x640xbf16, #tpu.memory_space<vmem>>, vector<128x640xbf16>
    %c0_1 = arith.constant 0 : index
    %c0_2 = arith.constant 0 : index
    %1 = vector.load %arg3[%c0_1, %c0_2] : memref<640x128xbf16, #tpu.memory_space<vmem>>, vector<640x128xbf16>
    %cst = arith.constant dense<0.000000e+00> : vector<128x128xf32>
    %2 = tpu.matmul %0, %1, %cst {dimension_numbers = #tpu.dot_dimension_numbers<[1], [0], [0], [1], [0, 0, 1, 1], [], []>} : vector<128x640xbf16>, vector<640x128xbf16>, vector<128x128xf32> -> vector<128x128xf32>
    %cst_3 = arith.constant dense<0.000000e+00> : vector<128xf32>
    %3 = vector.multi_reduction <add>, %2, %cst_3 [0] : vector<128x128xf32> to vector<128xf32>
    %4 = vector.shape_cast %3 : vector<128xf32> to vector<1x128xf32>
    %cst_4 = arith.constant 7.812500e-03 : f32
    %5 = vector.broadcast %cst_4 : f32 to vector<1x128xf32>
    %6 = arith.mulf %4, %5 : vector<1x128xf32>
    %7 = arith.mulf %2, %2 : vector<128x128xf32>
    %cst_5 = arith.constant dense<0.000000e+00> : vector<128xf32>
    %8 = vector.multi_reduction <add>, %7, %cst_5 [0] : vector<128x128xf32> to vector<128xf32>
    %9 = vector.shape_cast %8 : vector<128xf32> to vector<1x128xf32>
    %cst_6 = arith.constant 7.812500e-03 : f32
    %10 = vector.broadcast %cst_6 : f32 to vector<1x128xf32>
    %11 = arith.mulf %9, %10 : vector<1x128xf32>
    %12 = arith.mulf %6, %6 : vector<1x128xf32>
    %13 = arith.subf %11, %12 : vector<1x128xf32>
    %cst_7 = arith.constant 0.000000e+00 : f32
    %14 = vector.broadcast %cst_7 : f32 to vector<1x128xf32>
    %15 = arith.maximumf %13, %14 : vector<1x128xf32>
    %16 = vector.broadcast %6 : vector<1x128xf32> to vector<128x128xf32>
    %17 = arith.subf %2, %16 : vector<128x128xf32>
    %cst_8 = arith.constant 9.99999974E-6 : f32
    %18 = vector.broadcast %cst_8 : f32 to vector<1x128xf32>
    %19 = arith.addf %15, %18 : vector<1x128xf32>
    %20 = math.rsqrt %19 : vector<1x128xf32>
    %21 = vector.broadcast %20 : vector<1x128xf32> to vector<128x128xf32>
    %22 = arith.mulf %17, %21 : vector<128x128xf32>
    %c0_9 = arith.constant 0 : index
    %c0_10 = arith.constant 0 : index
    %23 = vector.load %arg4[%c0_9, %c0_10] : memref<1x128xf32, #tpu.memory_space<vmem>>, vector<1x128xf32>
    %24 = vector.broadcast %23 : vector<1x128xf32> to vector<128x128xf32>
    %25 = arith.mulf %22, %24 : vector<128x128xf32>
    %c0_11 = arith.constant 0 : index
    %c0_12 = arith.constant 0 : index
    %26 = vector.load %arg5[%c0_11, %c0_12] : memref<1x128xf32, #tpu.memory_space<vmem>>, vector<1x128xf32>
    %27 = vector.broadcast %26 : vector<1x128xf32> to vector<128x128xf32>
    %28 = arith.addf %25, %27 : vector<128x128xf32>
    %cst_13 = arith.constant 0.000000e+00 : f32
    %29 = vector.broadcast %cst_13 : f32 to vector<128x128xf32>
    %30 = arith.maximumf %28, %29 : vector<128x128xf32>
    %31 = arith.truncf %30 : vector<128x128xf32> to vector<128x128xbf16>
    %c0_14 = arith.constant 0 : index
    %c0_15 = arith.constant 0 : index
    %32 = vector.load %arg6[%c0_14, %c0_15] : memref<128x128xbf16, #tpu.memory_space<vmem>>, vector<128x128xbf16>
    tpu.vector_store %arg6[%c0_14, %c0_15], %31 {strides = array<i32>} : memref<128x128xbf16, #tpu.memory_space<vmem>>, vector<128x128xbf16>,
    return
  }
  func.func @transform_0(%arg0: i32, %arg1: i32) -> (i32, i32) {
    %c0_i32 = arith.constant 0 : i32
    %c0_i32_0 = arith.constant 0 : i32
    return %c0_i32, %arg1 : i32, i32
  }
  func.func @transform_1(%arg0: i32, %arg1: i32) -> (i32, i32) {
    %c0_i32 = arith.constant 0 : i32
    return %arg1, %arg0 : i32, i32
  }
  func.func @transform_2(%arg0: i32, %arg1: i32) -> (i32, i32) {
    %c0_i32 = arith.constant 0 : i32
    %c0_i32_0 = arith.constant 0 : i32
    return %c0_i32, %arg0 : i32, i32
  }
  func.func @transform_3(%arg0: i32, %arg1: i32) -> (i32, i32) {
    %c0_i32 = arith.constant 0 : i32
    %c0_i32_0 = arith.constant 0 : i32
    return %c0_i32, %arg0 : i32, i32
  }
  func.func @transform_4(%arg0: i32, %arg1: i32) -> (i32, i32) {
    %c0_i32 = arith.constant 0 : i32
    %c0_i32_0 = arith.constant 0 : i32
    return %c0_i32, %arg0 : i32, i32
  }
}

module attributes {stable_mosaic.version = 11 : i64} {
  func.func @kernel(%arg0: i32, %arg1: i32, %arg2: memref<32x1152xbf16, #tpu.memory_space<vmem>>, %arg3: memref<1152x128xbf16, #tpu.memory_space<vmem>>, %arg4: memref<1x128xf32, #tpu.memory_space<vmem>>, %arg5: memref<1x128xf32, #tpu.memory_space<vmem>>, %arg6: memref<32x128xbf16, #tpu.memory_space<vmem>>, %arg7: memref<32x128xf32, #tpu.memory_space<vmem>>) attributes {dimension_semantics = [#tpu.dimension_semantics<parallel>, #tpu.dimension_semantics<arbitrary>], iteration_bounds = array<i64: 2, 1>, scalar_prefetch = 0 : i64, scratch_operands = 1 : i64, tpu.core_type = #tpu.core_type<tc>, window_params = [{transform_indices = @transform_0, window_bounds = array<i64: 32, 1152>}, {transform_indices = @transform_1, window_bounds = array<i64: 1152, 128>}, {transform_indices = @transform_2, window_bounds = array<i64: 1, 128>}, {transform_indices = @transform_3, window_bounds = array<i64: 1, 128>}, {transform_indices = @transform_4, window_bounds = array<i64: 32, 128>}]} {
    %c0 = arith.constant 0 : index
    %c0_0 = arith.constant 0 : index
    %0 = vector.load %arg2[%c0, %c0_0] : memref<32x1152xbf16, #tpu.memory_space<vmem>>, vector<32x1152xbf16>
    %c0_1 = arith.constant 0 : index
    %c0_2 = arith.constant 0 : index
    %1 = vector.load %arg3[%c0_1, %c0_2] : memref<1152x128xbf16, #tpu.memory_space<vmem>>, vector<1152x128xbf16>
    %cst = arith.constant dense<0.000000e+00> : vector<32x128xf32>
    %2 = tpu.matmul %0, %1, %cst {dimension_numbers = #tpu.dot_dimension_numbers<[1], [0], [0], [1], [0, 0, 1, 1], [], []>} : vector<32x1152xbf16>, vector<1152x128xbf16>, vector<32x128xf32> -> vector<32x128xf32>
    %cst_3 = arith.constant dense<0.000000e+00> : vector<128xf32>
    %3 = vector.multi_reduction <add>, %2, %cst_3 [0] : vector<32x128xf32> to vector<128xf32>
    %4 = vector.shape_cast %3 : vector<128xf32> to vector<1x128xf32>
    %cst_4 = arith.constant 3.125000e-02 : f32
    %5 = vector.broadcast %cst_4 : f32 to vector<1x128xf32>
    %6 = arith.mulf %4, %5 : vector<1x128xf32>
    %7 = arith.mulf %2, %2 : vector<32x128xf32>
    %cst_5 = arith.constant dense<0.000000e+00> : vector<128xf32>
    %8 = vector.multi_reduction <add>, %7, %cst_5 [0] : vector<32x128xf32> to vector<128xf32>
    %9 = vector.shape_cast %8 : vector<128xf32> to vector<1x128xf32>
    %cst_6 = arith.constant 3.125000e-02 : f32
    %10 = vector.broadcast %cst_6 : f32 to vector<1x128xf32>
    %11 = arith.mulf %9, %10 : vector<1x128xf32>
    %12 = arith.mulf %6, %6 : vector<1x128xf32>
    %13 = arith.subf %11, %12 : vector<1x128xf32>
    %cst_7 = arith.constant 0.000000e+00 : f32
    %14 = vector.broadcast %cst_7 : f32 to vector<1x128xf32>
    %15 = arith.maximumf %13, %14 : vector<1x128xf32>
    %16 = vector.broadcast %6 : vector<1x128xf32> to vector<32x128xf32>
    %17 = arith.subf %2, %16 : vector<32x128xf32>
    %cst_8 = arith.constant 9.99999974E-6 : f32
    %18 = vector.broadcast %cst_8 : f32 to vector<1x128xf32>
    %19 = arith.addf %15, %18 : vector<1x128xf32>
    %20 = math.rsqrt %19 : vector<1x128xf32>
    %21 = vector.broadcast %20 : vector<1x128xf32> to vector<32x128xf32>
    %22 = arith.mulf %17, %21 : vector<32x128xf32>
    %c0_9 = arith.constant 0 : index
    %c0_10 = arith.constant 0 : index
    %23 = vector.load %arg4[%c0_9, %c0_10] : memref<1x128xf32, #tpu.memory_space<vmem>>, vector<1x128xf32>
    %24 = vector.broadcast %23 : vector<1x128xf32> to vector<32x128xf32>
    %25 = arith.mulf %22, %24 : vector<32x128xf32>
    %c0_11 = arith.constant 0 : index
    %c0_12 = arith.constant 0 : index
    %26 = vector.load %arg5[%c0_11, %c0_12] : memref<1x128xf32, #tpu.memory_space<vmem>>, vector<1x128xf32>
    %27 = vector.broadcast %26 : vector<1x128xf32> to vector<32x128xf32>
    %28 = arith.addf %25, %27 : vector<32x128xf32>
    %cst_13 = arith.constant 0.000000e+00 : f32
    %29 = vector.broadcast %cst_13 : f32 to vector<32x128xf32>
    %30 = arith.maximumf %28, %29 : vector<32x128xf32>
    %31 = arith.truncf %30 : vector<32x128xf32> to vector<32x128xbf16>
    %c0_14 = arith.constant 0 : index
    %c0_15 = arith.constant 0 : index
    %32 = vector.load %arg6[%c0_14, %c0_15] : memref<32x128xbf16, #tpu.memory_space<vmem>>, vector<32x128xbf16>
    tpu.vector_store %arg6[%c0_14, %c0_15], %31 {strides = array<i32>} : memref<32x128xbf16, #tpu.memory_space<vmem>>, vector<32x128xbf16>,
    return
  }
  func.func @transform_0(%arg0: i32, %arg1: i32) -> (i32, i32) {
    %c0_i32 = arith.constant 0 : i32
    %c0_i32_0 = arith.constant 0 : i32
    return %c0_i32, %arg1 : i32, i32
  }
  func.func @transform_1(%arg0: i32, %arg1: i32) -> (i32, i32) {
    %c0_i32 = arith.constant 0 : i32
    return %arg1, %arg0 : i32, i32
  }
  func.func @transform_2(%arg0: i32, %arg1: i32) -> (i32, i32) {
    %c0_i32 = arith.constant 0 : i32
    %c0_i32_0 = arith.constant 0 : i32
    return %c0_i32, %arg0 : i32, i32
  }
  func.func @transform_3(%arg0: i32, %arg1: i32) -> (i32, i32) {
    %c0_i32 = arith.constant 0 : i32
    %c0_i32_0 = arith.constant 0 : i32
    return %c0_i32, %arg0 : i32, i32
  }
  func.func @transform_4(%arg0: i32, %arg1: i32) -> (i32, i32) {
    %c0_i32 = arith.constant 0 : i32
    %c0_i32_0 = arith.constant 0 : i32
    return %c0_i32, %arg0 : i32, i32
  }
}

module attributes {stable_mosaic.version = 11 : i64} {
  func.func @kernel(%arg0: i32, %arg1: i32, %arg2: memref<16x2304xbf16, #tpu.memory_space<vmem>>, %arg3: memref<2304x256xbf16, #tpu.memory_space<vmem>>, %arg4: memref<1x256xf32, #tpu.memory_space<vmem>>, %arg5: memref<1x256xf32, #tpu.memory_space<vmem>>, %arg6: memref<16x256xbf16, #tpu.memory_space<vmem>>, %arg7: memref<16x256xf32, #tpu.memory_space<vmem>>) attributes {dimension_semantics = [#tpu.dimension_semantics<parallel>, #tpu.dimension_semantics<arbitrary>], iteration_bounds = array<i64: 2, 1>, scalar_prefetch = 0 : i64, scratch_operands = 1 : i64, tpu.core_type = #tpu.core_type<tc>, window_params = [{transform_indices = @transform_0, window_bounds = array<i64: 16, 2304>}, {transform_indices = @transform_1, window_bounds = array<i64: 2304, 256>}, {transform_indices = @transform_2, window_bounds = array<i64: 1, 256>}, {transform_indices = @transform_3, window_bounds = array<i64: 1, 256>}, {transform_indices = @transform_4, window_bounds = array<i64: 16, 256>}]} {
    %c0 = arith.constant 0 : index
    %c0_0 = arith.constant 0 : index
    %0 = vector.load %arg2[%c0, %c0_0] : memref<16x2304xbf16, #tpu.memory_space<vmem>>, vector<16x2304xbf16>
    %c0_1 = arith.constant 0 : index
    %c0_2 = arith.constant 0 : index
    %1 = vector.load %arg3[%c0_1, %c0_2] : memref<2304x256xbf16, #tpu.memory_space<vmem>>, vector<2304x256xbf16>
    %cst = arith.constant dense<0.000000e+00> : vector<16x256xf32>
    %2 = tpu.matmul %0, %1, %cst {dimension_numbers = #tpu.dot_dimension_numbers<[1], [0], [0], [1], [0, 0, 1, 1], [], []>} : vector<16x2304xbf16>, vector<2304x256xbf16>, vector<16x256xf32> -> vector<16x256xf32>
    %cst_3 = arith.constant dense<0.000000e+00> : vector<256xf32>
    %3 = vector.multi_reduction <add>, %2, %cst_3 [0] : vector<16x256xf32> to vector<256xf32>
    %4 = vector.shape_cast %3 : vector<256xf32> to vector<1x256xf32>
    %cst_4 = arith.constant 1.250000e-01 : f32
    %5 = vector.broadcast %cst_4 : f32 to vector<1x256xf32>
    %6 = arith.mulf %4, %5 : vector<1x256xf32>
    %7 = arith.mulf %2, %2 : vector<16x256xf32>
    %cst_5 = arith.constant dense<0.000000e+00> : vector<256xf32>
    %8 = vector.multi_reduction <add>, %7, %cst_5 [0] : vector<16x256xf32> to vector<256xf32>
    %9 = vector.shape_cast %8 : vector<256xf32> to vector<1x256xf32>
    %cst_6 = arith.constant 1.250000e-01 : f32
    %10 = vector.broadcast %cst_6 : f32 to vector<1x256xf32>
    %11 = arith.mulf %9, %10 : vector<1x256xf32>
    %12 = arith.mulf %6, %6 : vector<1x256xf32>
    %13 = arith.subf %11, %12 : vector<1x256xf32>
    %cst_7 = arith.constant 0.000000e+00 : f32
    %14 = vector.broadcast %cst_7 : f32 to vector<1x256xf32>
    %15 = arith.maximumf %13, %14 : vector<1x256xf32>
    %16 = vector.broadcast %6 : vector<1x256xf32> to vector<16x256xf32>
    %17 = arith.subf %2, %16 : vector<16x256xf32>
    %cst_8 = arith.constant 9.99999974E-6 : f32
    %18 = vector.broadcast %cst_8 : f32 to vector<1x256xf32>
    %19 = arith.addf %15, %18 : vector<1x256xf32>
    %20 = math.rsqrt %19 : vector<1x256xf32>
    %21 = vector.broadcast %20 : vector<1x256xf32> to vector<16x256xf32>
    %22 = arith.mulf %17, %21 : vector<16x256xf32>
    %c0_9 = arith.constant 0 : index
    %c0_10 = arith.constant 0 : index
    %23 = vector.load %arg4[%c0_9, %c0_10] : memref<1x256xf32, #tpu.memory_space<vmem>>, vector<1x256xf32>
    %24 = vector.broadcast %23 : vector<1x256xf32> to vector<16x256xf32>
    %25 = arith.mulf %22, %24 : vector<16x256xf32>
    %c0_11 = arith.constant 0 : index
    %c0_12 = arith.constant 0 : index
    %26 = vector.load %arg5[%c0_11, %c0_12] : memref<1x256xf32, #tpu.memory_space<vmem>>, vector<1x256xf32>
    %27 = vector.broadcast %26 : vector<1x256xf32> to vector<16x256xf32>
    %28 = arith.addf %25, %27 : vector<16x256xf32>
    %cst_13 = arith.constant 0.000000e+00 : f32
    %29 = vector.broadcast %cst_13 : f32 to vector<16x256xf32>
    %30 = arith.maximumf %28, %29 : vector<16x256xf32>
    %31 = arith.truncf %30 : vector<16x256xf32> to vector<16x256xbf16>
    %c0_14 = arith.constant 0 : index
    %c0_15 = arith.constant 0 : index
    %32 = vector.load %arg6[%c0_14, %c0_15] : memref<16x256xbf16, #tpu.memory_space<vmem>>, vector<16x256xbf16>
    tpu.vector_store %arg6[%c0_14, %c0_15], %31 {strides = array<i32>} : memref<16x256xbf16, #tpu.memory_space<vmem>>, vector<16x256xbf16>,
    return
  }
  func.func @transform_0(%arg0: i32, %arg1: i32) -> (i32, i32) {
    %c0_i32 = arith.constant 0 : i32
    %c0_i32_0 = arith.constant 0 : i32
    return %c0_i32, %arg1 : i32, i32
  }
  func.func @transform_1(%arg0: i32, %arg1: i32) -> (i32, i32) {
    %c0_i32 = arith.constant 0 : i32
    return %arg1, %arg0 : i32, i32
  }
  func.func @transform_2(%arg0: i32, %arg1: i32) -> (i32, i32) {
    %c0_i32 = arith.constant 0 : i32
    %c0_i32_0 = arith.constant 0 : i32
    return %c0_i32, %arg0 : i32, i32
  }
  func.func @transform_3(%arg0: i32, %arg1: i32) -> (i32, i32) {
    %c0_i32 = arith.constant 0 : i32
    %c0_i32_0 = arith.constant 0 : i32
    return %c0_i32, %arg0 : i32, i32
  }
  func.func @transform_4(%arg0: i32, %arg1: i32) -> (i32, i32) {
    %c0_i32 = arith.constant 0 : i32
    %c0_i32_0 = arith.constant 0 : i32
    return %c0_i32, %arg0 : i32, i32
  }
}

module attributes {stable_mosaic.version = 11 : i64} {
  func.func @kernel(%arg0: i32, %arg1: i32, %arg2: memref<16x2048xbf16, #tpu.memory_space<vmem>>, %arg3: memref<2048x256xbf16, #tpu.memory_space<vmem>>, %arg4: memref<1x256xf32, #tpu.memory_space<vmem>>, %arg5: memref<1x256xf32, #tpu.memory_space<vmem>>, %arg6: memref<16x256xbf16, #tpu.memory_space<vmem>>, %arg7: memref<16x256xf32, #tpu.memory_space<vmem>>) attributes {dimension_semantics = [#tpu.dimension_semantics<parallel>, #tpu.dimension_semantics<arbitrary>], iteration_bounds = array<i64: 2, 1>, scalar_prefetch = 0 : i64, scratch_operands = 1 : i64, tpu.core_type = #tpu.core_type<tc>, window_params = [{transform_indices = @transform_0, window_bounds = array<i64: 16, 2048>}, {transform_indices = @transform_1, window_bounds = array<i64: 2048, 256>}, {transform_indices = @transform_2, window_bounds = array<i64: 1, 256>}, {transform_indices = @transform_3, window_bounds = array<i64: 1, 256>}, {transform_indices = @transform_4, window_bounds = array<i64: 16, 256>}]} {
    %c0 = arith.constant 0 : index
    %c0_0 = arith.constant 0 : index
    %0 = vector.load %arg2[%c0, %c0_0] : memref<16x2048xbf16, #tpu.memory_space<vmem>>, vector<16x2048xbf16>
    %c0_1 = arith.constant 0 : index
    %c0_2 = arith.constant 0 : index
    %1 = vector.load %arg3[%c0_1, %c0_2] : memref<2048x256xbf16, #tpu.memory_space<vmem>>, vector<2048x256xbf16>
    %cst = arith.constant dense<0.000000e+00> : vector<16x256xf32>
    %2 = tpu.matmul %0, %1, %cst {dimension_numbers = #tpu.dot_dimension_numbers<[1], [0], [0], [1], [0, 0, 1, 1], [], []>} : vector<16x2048xbf16>, vector<2048x256xbf16>, vector<16x256xf32> -> vector<16x256xf32>
    %cst_3 = arith.constant dense<0.000000e+00> : vector<256xf32>
    %3 = vector.multi_reduction <add>, %2, %cst_3 [0] : vector<16x256xf32> to vector<256xf32>
    %4 = vector.shape_cast %3 : vector<256xf32> to vector<1x256xf32>
    %cst_4 = arith.constant 5.000000e-01 : f32
    %5 = vector.broadcast %cst_4 : f32 to vector<1x256xf32>
    %6 = arith.mulf %4, %5 : vector<1x256xf32>
    %7 = arith.mulf %2, %2 : vector<16x256xf32>
    %cst_5 = arith.constant dense<0.000000e+00> : vector<256xf32>
    %8 = vector.multi_reduction <add>, %7, %cst_5 [0] : vector<16x256xf32> to vector<256xf32>
    %9 = vector.shape_cast %8 : vector<256xf32> to vector<1x256xf32>
    %cst_6 = arith.constant 5.000000e-01 : f32
    %10 = vector.broadcast %cst_6 : f32 to vector<1x256xf32>
    %11 = arith.mulf %9, %10 : vector<1x256xf32>
    %12 = arith.mulf %6, %6 : vector<1x256xf32>
    %13 = arith.subf %11, %12 : vector<1x256xf32>
    %cst_7 = arith.constant 0.000000e+00 : f32
    %14 = vector.broadcast %cst_7 : f32 to vector<1x256xf32>
    %15 = arith.maximumf %13, %14 : vector<1x256xf32>
    %16 = vector.broadcast %6 : vector<1x256xf32> to vector<16x256xf32>
    %17 = arith.subf %2, %16 : vector<16x256xf32>
    %cst_8 = arith.constant 9.99999974E-6 : f32
    %18 = vector.broadcast %cst_8 : f32 to vector<1x256xf32>
    %19 = arith.addf %15, %18 : vector<1x256xf32>
    %20 = math.rsqrt %19 : vector<1x256xf32>
    %21 = vector.broadcast %20 : vector<1x256xf32> to vector<16x256xf32>
    %22 = arith.mulf %17, %21 : vector<16x256xf32>
    %c0_9 = arith.constant 0 : index
    %c0_10 = arith.constant 0 : index
    %23 = vector.load %arg4[%c0_9, %c0_10] : memref<1x256xf32, #tpu.memory_space<vmem>>, vector<1x256xf32>
    %24 = vector.broadcast %23 : vector<1x256xf32> to vector<16x256xf32>
    %25 = arith.mulf %22, %24 : vector<16x256xf32>
    %c0_11 = arith.constant 0 : index
    %c0_12 = arith.constant 0 : index
    %26 = vector.load %arg5[%c0_11, %c0_12] : memref<1x256xf32, #tpu.memory_space<vmem>>, vector<1x256xf32>
    %27 = vector.broadcast %26 : vector<1x256xf32> to vector<16x256xf32>
    %28 = arith.addf %25, %27 : vector<16x256xf32>
    %cst_13 = arith.constant 0.000000e+00 : f32
    %29 = vector.broadcast %cst_13 : f32 to vector<16x256xf32>
    %30 = arith.maximumf %28, %29 : vector<16x256xf32>
    %31 = arith.truncf %30 : vector<16x256xf32> to vector<16x256xbf16>
    %c0_14 = arith.constant 0 : index
    %c0_15 = arith.constant 0 : index
    %32 = vector.load %arg6[%c0_14, %c0_15] : memref<16x256xbf16, #tpu.memory_space<vmem>>, vector<16x256xbf16>
    tpu.vector_store %arg6[%c0_14, %c0_15], %31 {strides = array<i32>} : memref<16x256xbf16, #tpu.memory_space<vmem>>, vector<16x256xbf16>,
    return
  }
  func.func @transform_0(%arg0: i32, %arg1: i32) -> (i32, i32) {
    %c0_i32 = arith.constant 0 : i32
    %c0_i32_0 = arith.constant 0 : i32
    return %c0_i32, %arg1 : i32, i32
  }
  func.func @transform_1(%arg0: i32, %arg1: i32) -> (i32, i32) {
    %c0_i32 = arith.constant 0 : i32
    return %arg1, %arg0 : i32, i32
  }
  func.func @transform_2(%arg0: i32, %arg1: i32) -> (i32, i32) {
    %c0_i32 = arith.constant 0 : i32
    %c0_i32_0 = arith.constant 0 : i32
    return %c0_i32, %arg0 : i32, i32
  }
  func.func @transform_3(%arg0: i32, %arg1: i32) -> (i32, i32) {
    %c0_i32 = arith.constant 0 : i32
    %c0_i32_0 = arith.constant 0 : i32
    return %c0_i32, %arg0 : i32, i32
  }
  func.func @transform_4(%arg0: i32, %arg1: i32) -> (i32, i32) {
    %c0_i32 = arith.constant 0 : i32
    %c0_i32_0 = arith.constant 0 : i32
    return %c0_i32, %arg0 : i32, i32
  }
}

module attributes {stable_mosaic.version = 11 : i64} {
  func.func @kernel(%arg0: i32, %arg1: i32, %arg2: memref<16x512xbf16, #tpu.memory_space<vmem>>, %arg3: memref<512x256xbf16, #tpu.memory_space<vmem>>, %arg4: memref<1x256xf32, #tpu.memory_space<vmem>>, %arg5: memref<1x256xf32, #tpu.memory_space<vmem>>, %arg6: memref<16x256xbf16, #tpu.memory_space<vmem>>, %arg7: memref<16x256xf32, #tpu.memory_space<vmem>>) attributes {dimension_semantics = [#tpu.dimension_semantics<parallel>, #tpu.dimension_semantics<arbitrary>], iteration_bounds = array<i64: 2, 1>, scalar_prefetch = 0 : i64, scratch_operands = 1 : i64, tpu.core_type = #tpu.core_type<tc>, window_params = [{transform_indices = @transform_0, window_bounds = array<i64: 16, 512>}, {transform_indices = @transform_1, window_bounds = array<i64: 512, 256>}, {transform_indices = @transform_2, window_bounds = array<i64: 1, 256>}, {transform_indices = @transform_3, window_bounds = array<i64: 1, 256>}, {transform_indices = @transform_4, window_bounds = array<i64: 16, 256>}]} {
    %c0 = arith.constant 0 : index
    %c0_0 = arith.constant 0 : index
    %0 = vector.load %arg2[%c0, %c0_0] : memref<16x512xbf16, #tpu.memory_space<vmem>>, vector<16x512xbf16>
    %c0_1 = arith.constant 0 : index
    %c0_2 = arith.constant 0 : index
    %1 = vector.load %arg3[%c0_1, %c0_2] : memref<512x256xbf16, #tpu.memory_space<vmem>>, vector<512x256xbf16>
    %cst = arith.constant dense<0.000000e+00> : vector<16x256xf32>
    %2 = tpu.matmul %0, %1, %cst {dimension_numbers = #tpu.dot_dimension_numbers<[1], [0], [0], [1], [0, 0, 1, 1], [], []>} : vector<16x512xbf16>, vector<512x256xbf16>, vector<16x256xf32> -> vector<16x256xf32>
    %cst_3 = arith.constant dense<0.000000e+00> : vector<256xf32>
    %3 = vector.multi_reduction <add>, %2, %cst_3 [0] : vector<16x256xf32> to vector<256xf32>
    %4 = vector.shape_cast %3 : vector<256xf32> to vector<1x256xf32>
    %cst_4 = arith.constant 5.000000e-01 : f32
    %5 = vector.broadcast %cst_4 : f32 to vector<1x256xf32>
    %6 = arith.mulf %4, %5 : vector<1x256xf32>
    %7 = arith.mulf %2, %2 : vector<16x256xf32>
    %cst_5 = arith.constant dense<0.000000e+00> : vector<256xf32>
    %8 = vector.multi_reduction <add>, %7, %cst_5 [0] : vector<16x256xf32> to vector<256xf32>
    %9 = vector.shape_cast %8 : vector<256xf32> to vector<1x256xf32>
    %cst_6 = arith.constant 5.000000e-01 : f32
    %10 = vector.broadcast %cst_6 : f32 to vector<1x256xf32>
    %11 = arith.mulf %9, %10 : vector<1x256xf32>
    %12 = arith.mulf %6, %6 : vector<1x256xf32>
    %13 = arith.subf %11, %12 : vector<1x256xf32>
    %cst_7 = arith.constant 0.000000e+00 : f32
    %14 = vector.broadcast %cst_7 : f32 to vector<1x256xf32>
    %15 = arith.maximumf %13, %14 : vector<1x256xf32>
    %16 = vector.broadcast %6 : vector<1x256xf32> to vector<16x256xf32>
    %17 = arith.subf %2, %16 : vector<16x256xf32>
    %cst_8 = arith.constant 9.99999974E-6 : f32
    %18 = vector.broadcast %cst_8 : f32 to vector<1x256xf32>
    %19 = arith.addf %15, %18 : vector<1x256xf32>
    %20 = math.rsqrt %19 : vector<1x256xf32>
    %21 = vector.broadcast %20 : vector<1x256xf32> to vector<16x256xf32>
    %22 = arith.mulf %17, %21 : vector<16x256xf32>
    %c0_9 = arith.constant 0 : index
    %c0_10 = arith.constant 0 : index
    %23 = vector.load %arg4[%c0_9, %c0_10] : memref<1x256xf32, #tpu.memory_space<vmem>>, vector<1x256xf32>
    %24 = vector.broadcast %23 : vector<1x256xf32> to vector<16x256xf32>
    %25 = arith.mulf %22, %24 : vector<16x256xf32>
    %c0_11 = arith.constant 0 : index
    %c0_12 = arith.constant 0 : index
    %26 = vector.load %arg5[%c0_11, %c0_12] : memref<1x256xf32, #tpu.memory_space<vmem>>, vector<1x256xf32>
    %27 = vector.broadcast %26 : vector<1x256xf32> to vector<16x256xf32>
    %28 = arith.addf %25, %27 : vector<16x256xf32>
    %cst_13 = arith.constant 0.000000e+00 : f32
    %29 = vector.broadcast %cst_13 : f32 to vector<16x256xf32>
    %30 = arith.maximumf %28, %29 : vector<16x256xf32>
    %31 = arith.truncf %30 : vector<16x256xf32> to vector<16x256xbf16>
    %c0_14 = arith.constant 0 : index
    %c0_15 = arith.constant 0 : index
    %32 = vector.load %arg6[%c0_14, %c0_15] : memref<16x256xbf16, #tpu.memory_space<vmem>>, vector<16x256xbf16>
    tpu.vector_store %arg6[%c0_14, %c0_15], %31 {strides = array<i32>} : memref<16x256xbf16, #tpu.memory_space<vmem>>, vector<16x256xbf16>,
    return
  }
  func.func @transform_0(%arg0: i32, %arg1: i32) -> (i32, i32) {
    %c0_i32 = arith.constant 0 : i32
    %c0_i32_0 = arith.constant 0 : i32
    return %c0_i32, %arg1 : i32, i32
  }
  func.func @transform_1(%arg0: i32, %arg1: i32) -> (i32, i32) {
    %c0_i32 = arith.constant 0 : i32
    return %arg1, %arg0 : i32, i32
  }
  func.func @transform_2(%arg0: i32, %arg1: i32) -> (i32, i32) {
    %c0_i32 = arith.constant 0 : i32
    %c0_i32_0 = arith.constant 0 : i32
    return %c0_i32, %arg0 : i32, i32
  }
  func.func @transform_3(%arg0: i32, %arg1: i32) -> (i32, i32) {
    %c0_i32 = arith.constant 0 : i32
    %c0_i32_0 = arith.constant 0 : i32
    return %c0_i32, %arg0 : i32, i32
  }
  func.func @transform_4(%arg0: i32, %arg1: i32) -> (i32, i32) {
    %c0_i32 = arith.constant 0 : i32
    %c0_i32_0 = arith.constant 0 : i32
    return %c0_i32, %arg0 : i32, i32
  }
}

module attributes {stable_mosaic.version = 11 : i64} {
  func.func @kernel(%arg0: i32, %arg1: i32, %arg2: memref<16x512xbf16, #tpu.memory_space<vmem>>, %arg3: memref<512x128xbf16, #tpu.memory_space<vmem>>, %arg4: memref<1x128xf32, #tpu.memory_space<vmem>>, %arg5: memref<16x128xbf16, #tpu.memory_space<vmem>>, %arg6: memref<16x128xf32, #tpu.memory_space<vmem>>) attributes {dimension_semantics = [#tpu.dimension_semantics<parallel>, #tpu.dimension_semantics<arbitrary>], iteration_bounds = array<i64: 1, 1>, scalar_prefetch = 0 : i64, scratch_operands = 1 : i64, tpu.core_type = #tpu.core_type<tc>, window_params = [{transform_indices = @transform_0, window_bounds = array<i64: 16, 512>}, {transform_indices = @transform_1, window_bounds = array<i64: 512, 128>}, {transform_indices = @transform_2, window_bounds = array<i64: 1, 128>}, {transform_indices = @transform_3, window_bounds = array<i64: 16, 128>}]} {
    %c0 = arith.constant 0 : index
    %c0_0 = arith.constant 0 : index
    %0 = vector.load %arg2[%c0, %c0_0] : memref<16x512xbf16, #tpu.memory_space<vmem>>, vector<16x512xbf16>
    %c0_1 = arith.constant 0 : index
    %c0_2 = arith.constant 0 : index
    %1 = vector.load %arg3[%c0_1, %c0_2] : memref<512x128xbf16, #tpu.memory_space<vmem>>, vector<512x128xbf16>
    %cst = arith.constant dense<0.000000e+00> : vector<16x128xf32>
    %2 = tpu.matmul %0, %1, %cst {dimension_numbers = #tpu.dot_dimension_numbers<[1], [0], [0], [1], [0, 0, 1, 1], [], []>} : vector<16x512xbf16>, vector<512x128xbf16>, vector<16x128xf32> -> vector<16x128xf32>
    %c0_3 = arith.constant 0 : index
    %c0_4 = arith.constant 0 : index
    %3 = vector.load %arg4[%c0_3, %c0_4] : memref<1x128xf32, #tpu.memory_space<vmem>>, vector<1x128xf32>
    %4 = vector.broadcast %3 : vector<1x128xf32> to vector<16x128xf32>
    %5 = arith.addf %2, %4 : vector<16x128xf32>
    %6 = arith.truncf %5 : vector<16x128xf32> to vector<16x128xbf16>
    %c0_5 = arith.constant 0 : index
    %c0_6 = arith.constant 0 : index
    %7 = vector.load %arg5[%c0_5, %c0_6] : memref<16x128xbf16, #tpu.memory_space<vmem>>, vector<16x128xbf16>
    tpu.vector_store %arg5[%c0_5, %c0_6], %6 {strides = array<i32>} : memref<16x128xbf16, #tpu.memory_space<vmem>>, vector<16x128xbf16>,
    return
  }
  func.func @transform_0(%arg0: i32, %arg1: i32) -> (i32, i32) {
    %c0_i32 = arith.constant 0 : i32
    %c0_i32_0 = arith.constant 0 : i32
    return %c0_i32, %arg1 : i32, i32
  }
  func.func @transform_1(%arg0: i32, %arg1: i32) -> (i32, i32) {
    %c0_i32 = arith.constant 0 : i32
    return %arg1, %arg0 : i32, i32
  }
  func.func @transform_2(%arg0: i32, %arg1: i32) -> (i32, i32) {
    %c0_i32 = arith.constant 0 : i32
    %c0_i32_0 = arith.constant 0 : i32
    return %c0_i32, %arg0 : i32, i32
  }
  func.func @transform_3(%arg0: i32, %arg1: i32) -> (i32, i32) {
    %c0_i32 = arith.constant 0 : i32
    %c0_i32_0 = arith.constant 0 : i32
    return %c0_i32, %arg0 : i32, i32
  }
}

module attributes {stable_mosaic.version = 11 : i64} {
  func.func @kernel(%arg0: i32, %arg1: i32, %arg2: memref<16x128xbf16, #tpu.memory_space<vmem>>, %arg3: memref<128x128xbf16, #tpu.memory_space<vmem>>, %arg4: memref<1x128xf32, #tpu.memory_space<vmem>>, %arg5: memref<16x128xbf16, #tpu.memory_space<vmem>>, %arg6: memref<16x128xf32, #tpu.memory_space<vmem>>) attributes {dimension_semantics = [#tpu.dimension_semantics<parallel>, #tpu.dimension_semantics<arbitrary>], iteration_bounds = array<i64: 1, 1>, scalar_prefetch = 0 : i64, scratch_operands = 1 : i64, tpu.core_type = #tpu.core_type<tc>, window_params = [{transform_indices = @transform_0, window_bounds = array<i64: 16, 128>}, {transform_indices = @transform_1, window_bounds = array<i64: 128, 128>}, {transform_indices = @transform_2, window_bounds = array<i64: 1, 128>}, {transform_indices = @transform_3, window_bounds = array<i64: 16, 128>}]} {
    %c0 = arith.constant 0 : index
    %c0_0 = arith.constant 0 : index
    %0 = vector.load %arg2[%c0, %c0_0] : memref<16x128xbf16, #tpu.memory_space<vmem>>, vector<16x128xbf16>
    %c0_1 = arith.constant 0 : index
    %c0_2 = arith.constant 0 : index
    %1 = vector.load %arg3[%c0_1, %c0_2] : memref<128x128xbf16, #tpu.memory_space<vmem>>, vector<128x128xbf16>
    %cst = arith.constant dense<0.000000e+00> : vector<16x128xf32>
    %2 = tpu.matmul %0, %1, %cst {dimension_numbers = #tpu.dot_dimension_numbers<[1], [0], [0], [1], [0, 0, 1, 1], [], []>} : vector<16x128xbf16>, vector<128x128xbf16>, vector<16x128xf32> -> vector<16x128xf32>
    %c0_3 = arith.constant 0 : index
    %c0_4 = arith.constant 0 : index
    %3 = vector.load %arg4[%c0_3, %c0_4] : memref<1x128xf32, #tpu.memory_space<vmem>>, vector<1x128xf32>
    %4 = vector.broadcast %3 : vector<1x128xf32> to vector<16x128xf32>
    %5 = arith.addf %2, %4 : vector<16x128xf32>
    %6 = arith.truncf %5 : vector<16x128xf32> to vector<16x128xbf16>
    %c0_5 = arith.constant 0 : index
    %c0_6 = arith.constant 0 : index
    %7 = vector.load %arg5[%c0_5, %c0_6] : memref<16x128xbf16, #tpu.memory_space<vmem>>, vector<16x128xbf16>
    tpu.vector_store %arg5[%c0_5, %c0_6], %6 {strides = array<i32>} : memref<16x128xbf16, #tpu.memory_space<vmem>>, vector<16x128xbf16>,
    return
  }
  func.func @transform_0(%arg0: i32, %arg1: i32) -> (i32, i32) {
    %c0_i32 = arith.constant 0 : i32
    %c0_i32_0 = arith.constant 0 : i32
    return %c0_i32, %arg1 : i32, i32
  }
  func.func @transform_1(%arg0: i32, %arg1: i32) -> (i32, i32) {
    %c0_i32 = arith.constant 0 : i32
    return %arg1, %arg0 : i32, i32
  }
  func.func @transform_2(%arg0: i32, %arg1: i32) -> (i32, i32) {
    %c0_i32 = arith.constant 0 : i32
    %c0_i32_0 = arith.constant 0 : i32
    return %c0_i32, %arg0 : i32, i32
  }
  func.func @transform_3(%arg0: i32, %arg1: i32) -> (i32, i32) {
    %c0_i32 = arith.constant 0 : i32
    %c0_i32_0 = arith.constant 0 : i32
    return %c0_i32, %arg0 : i32, i32
  }
}

module attributes {stable_mosaic.version = 11 : i64} {
  func.func @kernel(%arg0: i32, %arg1: i32, %arg2: memref<16x512xbf16, #tpu.memory_space<vmem>>, %arg3: memref<512x128xbf16, #tpu.memory_space<vmem>>, %arg4: memref<1x128xf32, #tpu.memory_space<vmem>>, %arg5: memref<16x128xbf16, #tpu.memory_space<vmem>>, %arg6: memref<16x128xbf16, #tpu.memory_space<vmem>>, %arg7: memref<16x128xf32, #tpu.memory_space<vmem>>) attributes {dimension_semantics = [#tpu.dimension_semantics<parallel>, #tpu.dimension_semantics<arbitrary>], iteration_bounds = array<i64: 1, 1>, scalar_prefetch = 0 : i64, scratch_operands = 1 : i64, tpu.core_type = #tpu.core_type<tc>, window_params = [{transform_indices = @transform_0, window_bounds = array<i64: 16, 512>}, {transform_indices = @transform_1, window_bounds = array<i64: 512, 128>}, {transform_indices = @transform_2, window_bounds = array<i64: 1, 128>}, {transform_indices = @transform_3, window_bounds = array<i64: 16, 128>}, {transform_indices = @transform_4, window_bounds = array<i64: 16, 128>}]} {
    %c0 = arith.constant 0 : index
    %c0_0 = arith.constant 0 : index
    %0 = vector.load %arg2[%c0, %c0_0] : memref<16x512xbf16, #tpu.memory_space<vmem>>, vector<16x512xbf16>
    %c0_1 = arith.constant 0 : index
    %c0_2 = arith.constant 0 : index
    %1 = vector.load %arg3[%c0_1, %c0_2] : memref<512x128xbf16, #tpu.memory_space<vmem>>, vector<512x128xbf16>
    %cst = arith.constant dense<0.000000e+00> : vector<16x128xf32>
    %2 = tpu.matmul %0, %1, %cst {dimension_numbers = #tpu.dot_dimension_numbers<[1], [0], [0], [1], [0, 0, 1, 1], [], []>} : vector<16x512xbf16>, vector<512x128xbf16>, vector<16x128xf32> -> vector<16x128xf32>
    %c0_3 = arith.constant 0 : index
    %c0_4 = arith.constant 0 : index
    %3 = vector.load %arg4[%c0_3, %c0_4] : memref<1x128xf32, #tpu.memory_space<vmem>>, vector<1x128xf32>
    %4 = vector.broadcast %3 : vector<1x128xf32> to vector<16x128xf32>
    %5 = arith.addf %2, %4 : vector<16x128xf32>
    %c0_5 = arith.constant 0 : index
    %c0_6 = arith.constant 0 : index
    %6 = vector.load %arg5[%c0_5, %c0_6] : memref<16x128xbf16, #tpu.memory_space<vmem>>, vector<16x128xbf16>
    %7 = arith.extf %6 : vector<16x128xbf16> to vector<16x128xf32>
    %8 = arith.addf %5, %7 : vector<16x128xf32>
    %9 = arith.truncf %8 : vector<16x128xf32> to vector<16x128xbf16>
    %c0_7 = arith.constant 0 : index
    %c0_8 = arith.constant 0 : index
    %10 = vector.load %arg6[%c0_7, %c0_8] : memref<16x128xbf16, #tpu.memory_space<vmem>>, vector<16x128xbf16>
    tpu.vector_store %arg6[%c0_7, %c0_8], %9 {strides = array<i32>} : memref<16x128xbf16, #tpu.memory_space<vmem>>, vector<16x128xbf16>,
    return
  }
  func.func @transform_0(%arg0: i32, %arg1: i32) -> (i32, i32) {
    %c0_i32 = arith.constant 0 : i32
    %c0_i32_0 = arith.constant 0 : i32
    return %c0_i32, %arg1 : i32, i32
  }
  func.func @transform_1(%arg0: i32, %arg1: i32) -> (i32, i32) {
    %c0_i32 = arith.constant 0 : i32
    return %arg1, %arg0 : i32, i32
  }
  func.func @transform_2(%arg0: i32, %arg1: i32) -> (i32, i32) {
    %c0_i32 = arith.constant 0 : i32
    %c0_i32_0 = arith.constant 0 : i32
    return %c0_i32, %arg0 : i32, i32
  }
  func.func @transform_3(%arg0: i32, %arg1: i32) -> (i32, i32) {
    %c0_i32 = arith.constant 0 : i32
    %c0_i32_0 = arith.constant 0 : i32
    return %c0_i32, %arg0 : i32, i32
  }
  func.func @transform_4(%arg0: i32, %arg1: i32) -> (i32, i32) {
    %c0_i32 = arith.constant 0 : i32
    %c0_i32_0 = arith.constant 0 : i32
    return %c0_i32, %arg0 : i32, i32
  }
}

module attributes {stable_mosaic.version = 11 : i64} {
  func.func @kernel(%arg0: i32, %arg1: i32, %arg2: memref<32x128xbf16, #tpu.memory_space<vmem>>, %arg3: memref<128x128xbf16, #tpu.memory_space<vmem>>, %arg4: memref<1x128xf32, #tpu.memory_space<vmem>>, %arg5: memref<32x128xbf16, #tpu.memory_space<vmem>>, %arg6: memref<32x128xf32, #tpu.memory_space<vmem>>) attributes {dimension_semantics = [#tpu.dimension_semantics<parallel>, #tpu.dimension_semantics<arbitrary>], iteration_bounds = array<i64: 1, 1>, scalar_prefetch = 0 : i64, scratch_operands = 1 : i64, tpu.core_type = #tpu.core_type<tc>, window_params = [{transform_indices = @transform_0, window_bounds = array<i64: 32, 128>}, {transform_indices = @transform_1, window_bounds = array<i64: 128, 128>}, {transform_indices = @transform_2, window_bounds = array<i64: 1, 128>}, {transform_indices = @transform_3, window_bounds = array<i64: 32, 128>}]} {
    %c0 = arith.constant 0 : index
    %c0_0 = arith.constant 0 : index
    %0 = vector.load %arg2[%c0, %c0_0] : memref<32x128xbf16, #tpu.memory_space<vmem>>, vector<32x128xbf16>
    %c0_1 = arith.constant 0 : index
    %c0_2 = arith.constant 0 : index
    %1 = vector.load %arg3[%c0_1, %c0_2] : memref<128x128xbf16, #tpu.memory_space<vmem>>, vector<128x128xbf16>
    %cst = arith.constant dense<0.000000e+00> : vector<32x128xf32>
    %2 = tpu.matmul %0, %1, %cst {dimension_numbers = #tpu.dot_dimension_numbers<[1], [0], [0], [1], [0, 0, 1, 1], [], []>} : vector<32x128xbf16>, vector<128x128xbf16>, vector<32x128xf32> -> vector<32x128xf32>
    %c0_3 = arith.constant 0 : index
    %c0_4 = arith.constant 0 : index
    %3 = vector.load %arg4[%c0_3, %c0_4] : memref<1x128xf32, #tpu.memory_space<vmem>>, vector<1x128xf32>
    %4 = vector.broadcast %3 : vector<1x128xf32> to vector<32x128xf32>
    %5 = arith.addf %2, %4 : vector<32x128xf32>
    %6 = arith.truncf %5 : vector<32x128xf32> to vector<32x128xbf16>
    %c0_5 = arith.constant 0 : index
    %c0_6 = arith.constant 0 : index
    %7 = vector.load %arg5[%c0_5, %c0_6] : memref<32x128xbf16, #tpu.memory_space<vmem>>, vector<32x128xbf16>
    tpu.vector_store %arg5[%c0_5, %c0_6], %6 {strides = array<i32>} : memref<32x128xbf16, #tpu.memory_space<vmem>>, vector<32x128xbf16>,
    return
  }
  func.func @transform_0(%arg0: i32, %arg1: i32) -> (i32, i32) {
    %c0_i32 = arith.constant 0 : i32
    %c0_i32_0 = arith.constant 0 : i32
    return %c0_i32, %arg1 : i32, i32
  }
  func.func @transform_1(%arg0: i32, %arg1: i32) -> (i32, i32) {
    %c0_i32 = arith.constant 0 : i32
    return %arg1, %arg0 : i32, i32
  }
  func.func @transform_2(%arg0: i32, %arg1: i32) -> (i32, i32) {
    %c0_i32 = arith.constant 0 : i32
    %c0_i32_0 = arith.constant 0 : i32
    return %c0_i32, %arg0 : i32, i32
  }
  func.func @transform_3(%arg0: i32, %arg1: i32) -> (i32, i32) {
    %c0_i32 = arith.constant 0 : i32
    %c0_i32_0 = arith.constant 0 : i32
    return %c0_i32, %arg0 : i32, i32
  }
}

module attributes {stable_mosaic.version = 11 : i64} {
  func.func @kernel(%arg0: i32, %arg1: i32, %arg2: memref<32x256xbf16, #tpu.memory_space<vmem>>, %arg3: memref<256x128xbf16, #tpu.memory_space<vmem>>, %arg4: memref<1x128xf32, #tpu.memory_space<vmem>>, %arg5: memref<32x128xbf16, #tpu.memory_space<vmem>>, %arg6: memref<32x128xbf16, #tpu.memory_space<vmem>>, %arg7: memref<32x128xf32, #tpu.memory_space<vmem>>) attributes {dimension_semantics = [#tpu.dimension_semantics<parallel>, #tpu.dimension_semantics<arbitrary>], iteration_bounds = array<i64: 1, 1>, scalar_prefetch = 0 : i64, scratch_operands = 1 : i64, tpu.core_type = #tpu.core_type<tc>, window_params = [{transform_indices = @transform_0, window_bounds = array<i64: 32, 256>}, {transform_indices = @transform_1, window_bounds = array<i64: 256, 128>}, {transform_indices = @transform_2, window_bounds = array<i64: 1, 128>}, {transform_indices = @transform_3, window_bounds = array<i64: 32, 128>}, {transform_indices = @transform_4, window_bounds = array<i64: 32, 128>}]} {
    %c0 = arith.constant 0 : index
    %c0_0 = arith.constant 0 : index
    %0 = vector.load %arg2[%c0, %c0_0] : memref<32x256xbf16, #tpu.memory_space<vmem>>, vector<32x256xbf16>
    %c0_1 = arith.constant 0 : index
    %c0_2 = arith.constant 0 : index
    %1 = vector.load %arg3[%c0_1, %c0_2] : memref<256x128xbf16, #tpu.memory_space<vmem>>, vector<256x128xbf16>
    %cst = arith.constant dense<0.000000e+00> : vector<32x128xf32>
    %2 = tpu.matmul %0, %1, %cst {dimension_numbers = #tpu.dot_dimension_numbers<[1], [0], [0], [1], [0, 0, 1, 1], [], []>} : vector<32x256xbf16>, vector<256x128xbf16>, vector<32x128xf32> -> vector<32x128xf32>
    %c0_3 = arith.constant 0 : index
    %c0_4 = arith.constant 0 : index
    %3 = vector.load %arg4[%c0_3, %c0_4] : memref<1x128xf32, #tpu.memory_space<vmem>>, vector<1x128xf32>
    %4 = vector.broadcast %3 : vector<1x128xf32> to vector<32x128xf32>
    %5 = arith.addf %2, %4 : vector<32x128xf32>
    %c0_5 = arith.constant 0 : index
    %c0_6 = arith.constant 0 : index
    %6 = vector.load %arg5[%c0_5, %c0_6] : memref<32x128xbf16, #tpu.memory_space<vmem>>, vector<32x128xbf16>
    %7 = arith.extf %6 : vector<32x128xbf16> to vector<32x128xf32>
    %8 = arith.addf %5, %7 : vector<32x128xf32>
    %9 = arith.truncf %8 : vector<32x128xf32> to vector<32x128xbf16>
    %c0_7 = arith.constant 0 : index
    %c0_8 = arith.constant 0 : index
    %10 = vector.load %arg6[%c0_7, %c0_8] : memref<32x128xbf16, #tpu.memory_space<vmem>>, vector<32x128xbf16>
    tpu.vector_store %arg6[%c0_7, %c0_8], %9 {strides = array<i32>} : memref<32x128xbf16, #tpu.memory_space<vmem>>, vector<32x128xbf16>,
    return
  }
  func.func @transform_0(%arg0: i32, %arg1: i32) -> (i32, i32) {
    %c0_i32 = arith.constant 0 : i32
    %c0_i32_0 = arith.constant 0 : i32
    return %c0_i32, %arg1 : i32, i32
  }
  func.func @transform_1(%arg0: i32, %arg1: i32) -> (i32, i32) {
    %c0_i32 = arith.constant 0 : i32
    return %arg1, %arg0 : i32, i32
  }
  func.func @transform_2(%arg0: i32, %arg1: i32) -> (i32, i32) {
    %c0_i32 = arith.constant 0 : i32
    %c0_i32_0 = arith.constant 0 : i32
    return %c0_i32, %arg0 : i32, i32
  }
  func.func @transform_3(%arg0: i32, %arg1: i32) -> (i32, i32) {
    %c0_i32 = arith.constant 0 : i32
    %c0_i32_0 = arith.constant 0 : i32
    return %c0_i32, %arg0 : i32, i32
  }
  func.func @transform_4(%arg0: i32, %arg1: i32) -> (i32, i32) {
    %c0_i32 = arith.constant 0 : i32
    %c0_i32_0 = arith.constant 0 : i32
    return %c0_i32, %arg0 : i32, i32
  }
}

module attributes {stable_mosaic.version = 11 : i64} {
  func.func @kernel(%arg0: i32, %arg1: i32, %arg2: memref<64x128xbf16, #tpu.memory_space<vmem>>, %arg3: memref<128x128xbf16, #tpu.memory_space<vmem>>, %arg4: memref<1x128xf32, #tpu.memory_space<vmem>>, %arg5: memref<64x128xf32, #tpu.memory_space<vmem>>, %arg6: memref<64x128xf32, #tpu.memory_space<vmem>>) attributes {dimension_semantics = [#tpu.dimension_semantics<parallel>, #tpu.dimension_semantics<arbitrary>], iteration_bounds = array<i64: 2, 1>, scalar_prefetch = 0 : i64, scratch_operands = 1 : i64, tpu.core_type = #tpu.core_type<tc>, window_params = [{transform_indices = @transform_0, window_bounds = array<i64: 64, 128>}, {transform_indices = @transform_1, window_bounds = array<i64: 128, 128>}, {transform_indices = @transform_2, window_bounds = array<i64: 1, 128>}, {transform_indices = @transform_3, window_bounds = array<i64: 64, 128>}]} {
    %c0 = arith.constant 0 : index
    %c0_0 = arith.constant 0 : index
    %0 = vector.load %arg2[%c0, %c0_0] : memref<64x128xbf16, #tpu.memory_space<vmem>>, vector<64x128xbf16>
    %c0_1 = arith.constant 0 : index
    %c0_2 = arith.constant 0 : index
    %1 = vector.load %arg3[%c0_1, %c0_2] : memref<128x128xbf16, #tpu.memory_space<vmem>>, vector<128x128xbf16>
    %cst = arith.constant dense<0.000000e+00> : vector<64x128xf32>
    %2 = tpu.matmul %0, %1, %cst {dimension_numbers = #tpu.dot_dimension_numbers<[1], [0], [0], [1], [0, 0, 1, 1], [], []>} : vector<64x128xbf16>, vector<128x128xbf16>, vector<64x128xf32> -> vector<64x128xf32>
    %c0_3 = arith.constant 0 : index
    %c0_4 = arith.constant 0 : index
    %3 = vector.load %arg4[%c0_3, %c0_4] : memref<1x128xf32, #tpu.memory_space<vmem>>, vector<1x128xf32>
    %4 = vector.broadcast %3 : vector<1x128xf32> to vector<64x128xf32>
    %5 = arith.addf %2, %4 : vector<64x128xf32>
    %6 = math.tanh %5 : vector<64x128xf32>
    %c0_5 = arith.constant 0 : index
    %c0_6 = arith.constant 0 : index
    %7 = vector.load %arg5[%c0_5, %c0_6] : memref<64x128xf32, #tpu.memory_space<vmem>>, vector<64x128xf32>
    tpu.vector_store %arg5[%c0_5, %c0_6], %6 {strides = array<i32>} : memref<64x128xf32, #tpu.memory_space<vmem>>, vector<64x128xf32>,
    return
  }
  func.func @transform_0(%arg0: i32, %arg1: i32) -> (i32, i32) {
    %c0_i32 = arith.constant 0 : i32
    %c0_i32_0 = arith.constant 0 : i32
    return %c0_i32, %arg1 : i32, i32
  }
  func.func @transform_1(%arg0: i32, %arg1: i32) -> (i32, i32) {
    %c0_i32 = arith.constant 0 : i32
    return %arg1, %arg0 : i32, i32
  }
  func.func @transform_2(%arg0: i32, %arg1: i32) -> (i32, i32) {
    %c0_i32 = arith.constant 0 : i32
    %c0_i32_0 = arith.constant 0 : i32
    return %c0_i32, %arg0 : i32, i32
  }
  func.func @transform_3(%arg0: i32, %arg1: i32) -> (i32, i32) {
    %c0_i32 = arith.constant 0 : i32
    %c0_i32_0 = arith.constant 0 : i32
    return %c0_i32, %arg0 : i32, i32
  }
}

</mosaic_0001>

<bundles_post_ra>
// kernel: _lambda_.13
= control target key start
LH: loop header
LB: loop body
LE: loop exit
PB: predicated region body
PF: predicated region fallthrough
CT: control target
= control target key end

     0   :  { %s3708_s1 = inlined_call_operand.vmem [shape: bf16[128,128], index: 1, kind: input, shape index: {}]   ;;  %s3709_s0 = inlined_call_operand.vmem [shape: bf16[512,128], index: 0, kind: input, shape index: {}]   ;;  %s3710_s2 = inlined_call_operand.vmem [shape: f32[1,128], index: 2, kind: input, shape index: {}]   ;;  %s3711_s3 = inlined_call_operand.vmem [shape: f32[1,128], index: 3, kind: input, shape index: {}]   ;;  %s3712_s4 = inlined_call_operand.vmem [shape: bf16[512,128], index: 4, kind: output, shape index: {}]  }
   0x1   :  { %v1991_v0 = vld [vmem:[%s3708_s1] sm:$0xff]   ;;  %v1992_v1 = vld [vmem:[%s3708_s1 + $0x8] sm:$0xff]   ;;  %v1993_v2 = vld [vmem:[%s3708_s1 + $0x10] sm:$0xff]  }
   0x2   :  { %1895 = vmatprep.subr.bf16.mxu0 %v1991_v0  ;;  %1975 = vmatprep.subr.bf16.mxu1 %v1991_v0  ;;  %v1994_v3 = vld [vmem:[%s3708_s1 + $0x18] sm:$0xff]   ;;  %v1999_v4 = vld [vmem:[%s3709_s0] sm:$0xff]   ;;  %v1996_v6 = vld [vmem:[%s3708_s1 + $0x28] sm:$0xff]  }
   0x3   :  { %1896 = vmatpush3.bf16.msra.mxu0 %v1991_v0  ;;  %1983 = vmatpush3.bf16.msra.mxu1 %v1991_v0  ;;  %v1995_v5 = vld [vmem:[%s3708_s1 + $0x20] sm:$0xff]   ;;  %v1997_v7 = vld [vmem:[%s3708_s1 + $0x30] sm:$0xff]   ;;  %v1998_v8 = vld [vmem:[%s3708_s1 + $0x38] sm:$0xff]  }
   0x4   :  { %1897 = vmatprep.subr.bf16.mxu0 %v1992_v1  ;;  %1976 = vmatprep.subr.bf16.mxu1 %v1992_v1  ;;  %v2015_v9 = vld [vmem:[%s3709_s0 + $0x80] sm:$0xff]   ;;  %v2000_v10 = vld [vmem:[%s3709_s0 + $0x8] sm:$0xff]   ;;  %v2001_v11 = vld [vmem:[%s3709_s0 + $0x10] sm:$0xff]  }
   0x5   :  { %1911 = vmatprep.mubr.bf16.mxu0 %v1999_v4  ;;  %1943 = vmatprep.mubr.bf16.mxu1 %v2015_v9  ;;  %v2016_v12 = vld [vmem:[%s3709_s0 + $0x88] sm:$0xff]   ;;  %v2017_v13 = vld [vmem:[%s3709_s0 + $0x90] sm:$0xff]   ;;  %v2002_v14 = vld [vmem:[%s3709_s0 + $0x18] sm:$0xff]  }
   0x6   :  { %v2003_v15 = vld [vmem:[%s3709_s0 + $0x20] sm:$0xff]   ;;  %v2018_v16 = vld [vmem:[%s3709_s0 + $0x98] sm:$0xff]   ;;  %v2004_v18 = vld [vmem:[%s3709_s0 + $0x28] sm:$0xff]  }
   0x7   :  { %1898 = vmatpush3.bf16.msra.mxu0 %v1992_v1  ;;  %1984 = vmatpush3.bf16.msra.mxu1 %v1992_v1  ;;  %v2019_v17 = vld [vmem:[%s3709_s0 + $0xa0] sm:$0xff]   ;;  %v2020_v19 = vld [vmem:[%s3709_s0 + $0xa8] sm:$0xff]   ;;  %v2005_v20 = vld [vmem:[%s3709_s0 + $0x30] sm:$0xff]  }
   0x8   :  { %1899 = vmatprep.subr.bf16.mxu0 %v1993_v2  ;;  %1977 = vmatprep.subr.bf16.mxu1 %v1993_v2  ;;  %v2021_v21 = vld [vmem:[%s3709_s0 + $0xb0] sm:$0xff]   ;;  %v2006_v22 = vld [vmem:[%s3709_s0 + $0x38] sm:$0xff]   ;;  %v2007_v24 = vld [vmem:[%s3709_s0 + $0x40] sm:$0xff]  }
   0x9   :  { %v2022_v23 = vld [vmem:[%s3709_s0 + $0xb8] sm:$0xff]   ;;  %v2023_v25 = vld [vmem:[%s3709_s0 + $0xc0] sm:$0xff]   ;;  %v2008_v26 = vld [vmem:[%s3709_s0 + $0x48] sm:$0xff]  }
   0xa   :  { %v2024_v27 = vld [vmem:[%s3709_s0 + $0xc8] sm:$0xff]   ;;  %v2009_v28 = vld [vmem:[%s3709_s0 + $0x50] sm:$0xff]   ;;  %v2010_v30 = vld [vmem:[%s3709_s0 + $0x58] sm:$0xff]  }
   0xb   :  { %1900 = vmatpush3.bf16.msra.mxu0 %v1993_v2  ;;  %1985 = vmatpush3.bf16.msra.mxu1 %v1993_v2  ;;  %v2025_v29 = vld [vmem:[%s3709_s0 + $0xd0] sm:$0xff]   ;;  %v2026_v31 = vld [vmem:[%s3709_s0 + $0xd8] sm:$0xff]   ;;  %v2011_v32 = vld [vmem:[%s3709_s0 + $0x60] sm:$0xff]  }
   0xc   :  { %1901 = vmatprep.subr.bf16.mxu0 %v1994_v3  ;;  %1978 = vmatprep.subr.bf16.mxu1 %v1994_v3  ;;  %v2027_v33 = vld [vmem:[%s3709_s0 + $0xe0] sm:$0xff]   ;;  %v2012_v34 = vld [vmem:[%s3709_s0 + $0x68] sm:$0xff]   ;;  %v2013_v36 = vld [vmem:[%s3709_s0 + $0x70] sm:$0xff]  }
   0xd   :  { %v2028_v35 = vld [vmem:[%s3709_s0 + $0xe8] sm:$0xff]   ;;  %v2029_v37 = vld [vmem:[%s3709_s0 + $0xf0] sm:$0xff]   ;;  %v2014_v38 = vld [vmem:[%s3709_s0 + $0x78] sm:$0xff]  }
   0xe   :  { %v2030_v39 = vld [vmem:[%s3709_s0 + $0xf8] sm:$0xff]  }
   0xf   :  { %1902 = vmatpush3.bf16.msra.mxu0 %v1994_v3  ;;  %1986 = vmatpush3.bf16.msra.mxu1 %v1994_v3 }
  0x10   :  { %1903 = vmatprep.subr.bf16.mxu0 %v1995_v5  ;;  %1979 = vmatprep.subr.bf16.mxu1 %v1995_v5 }
  0x13   :  { %1904 = vmatpush3.bf16.msra.mxu0 %v1995_v5  ;;  %1987 = vmatpush3.bf16.msra.mxu1 %v1995_v5 }
  0x14   :  { %1905 = vmatprep.subr.bf16.mxu0 %v1996_v6  ;;  %1980 = vmatprep.subr.bf16.mxu1 %v1996_v6 }
  0x17   :  { %1906 = vmatpush3.bf16.msra.mxu0 %v1996_v6  ;;  %1988 = vmatpush3.bf16.msra.mxu1 %v1996_v6 }
  0x18   :  { %1907 = vmatprep.subr.bf16.mxu0 %v1997_v7  ;;  %1981 = vmatprep.subr.bf16.mxu1 %v1997_v7 }
  0x1b   :  { %1908 = vmatpush3.bf16.msra.mxu0 %v1997_v7  ;;  %1989 = vmatpush3.bf16.msra.mxu1 %v1997_v7 }
  0x1c   :  { %1909 = vmatprep.subr.bf16.mxu0 %v1998_v8  ;;  %1982 = vmatprep.subr.bf16.mxu1 %v1998_v8 }
  0x1f   :  { %1910 = vmatpush3.bf16.msra.mxu0 %v1998_v8  ;;  %1990 = vmatpush3.bf16.msra.mxu1 %v1998_v8 }
  0x22   :  { %1912 = vmatmul.mubr.bf16.vlgmr.msra.gmra.mrb[0].mxu0 %v2000_v10  ;;  %1944 = vmatmul.mubr.bf16.vlgmr.msra.gmra.mrb[0].mxu1 %v2016_v12 }
  0x23   :  { %1915 = vmatprep.mubr.bf16.mxu0 %v2001_v11  ;;  %1947 = vmatprep.mubr.bf16.mxu1 %v2017_v13 }
  0x2a   :  { %1916 = vmatmul.mubr.bf16.gmra.mrb[4].mxu0 %v2002_v14  ;;  %1948 = vmatmul.mubr.bf16.gmra.mrb[4].mxu1 %v2018_v16 }
  0x2b   :  { %1919 = vmatprep.mubr.bf16.mxu0 %v2003_v15  ;;  %1951 = vmatprep.mubr.bf16.mxu1 %v2019_v17 }
  0x32   :  { %1920 = vmatmul.mubr.bf16.gmra.mrb[8].mxu0 %v2004_v18  ;;  %1952 = vmatmul.mubr.bf16.gmra.mrb[8].mxu1 %v2020_v19 }
  0x33   :  { %1923 = vmatprep.mubr.bf16.mxu0 %v2005_v20  ;;  %1955 = vmatprep.mubr.bf16.mxu1 %v2021_v21 }
  0x3a   :  { %1924 = vmatmul.mubr.bf16.gmra.mrb[12].mxu0 %v2006_v22  ;;  %1956 = vmatmul.mubr.bf16.gmra.mrb[12].mxu1 %v2022_v23 }
  0x3b   :  { %1927 = vmatprep.mubr.bf16.mxu0 %v2007_v24  ;;  %1959 = vmatprep.mubr.bf16.mxu1 %v2023_v25 }
  0x42   :  { %1928 = vmatmul.mubr.bf16.gmra.mrb[16].mxu0 %v2008_v26  ;;  %1960 = vmatmul.mubr.bf16.gmra.mrb[16].mxu1 %v2024_v27 }
  0x43   :  { %1931 = vmatprep.mubr.bf16.mxu0 %v2009_v28  ;;  %1963 = vmatprep.mubr.bf16.mxu1 %v2025_v29 }
  0x4a   :  { %1932 = vmatmul.mubr.bf16.gmra.mrb[20].mxu0 %v2010_v30  ;;  %1964 = vmatmul.mubr.bf16.gmra.mrb[20].mxu1 %v2026_v31 }
  0x4b   :  { %1935 = vmatprep.mubr.bf16.mxu0 %v2011_v32  ;;  %1967 = vmatprep.mubr.bf16.mxu1 %v2027_v33 }
  0x52   :  { %1936 = vmatmul.mubr.bf16.gmra.mrb[24].mxu0 %v2012_v34  ;;  %1968 = vmatmul.mubr.bf16.gmra.mrb[24].mxu1 %v2028_v35 }
  0x53   :  { %1939 = vmatprep.mubr.bf16.mxu0 %v2013_v36  ;;  %1971 = vmatprep.mubr.bf16.mxu1 %v2029_v37 }
  0x5a   :  { %1940 = vmatmul.mubr.bf16.gmra.mrb[28].mxu0 %v2014_v38  ;;  %1972 = vmatmul.mubr.bf16.gmra.mrb[28].mxu1 %v2030_v39 }
  0xf5   :  { %v2178_v40 = vpop.f32.mrb[0].mxu0  ;;  %v2180_v41 = vpop.f32.mrb[0].mxu1 }
  0xf6   :  { %v2182_v42 = vpop.f32.mrb[1].mxu0  ;;  %v2184_v43 = vpop.f32.mrb[1].mxu1  ;;  %v699_v51 = vmul.f32 %v2178_v40, %v2178_v40 }
  0xf7   :  { %v2186_v44 = vpop.f32.mrb[2].mxu0  ;;  %v2188_v45 = vpop.f32.mrb[2].mxu1  ;;  %v697_v48 = vmul.f32 %v2182_v42, %v2182_v42 }
  0xf8   :  { %v2190_v46 = vpop.f32.mrb[3].mxu0  ;;  %v2192_v47 = vpop.f32.mrb[3].mxu1  ;;  %v700_v54 = vmul.f32 %v2186_v44, %v2186_v44 }
  0xf9   :  { %v627_v49 = vadd.f32 %v2190_v46, %v2182_v42  ;;  %v698_v50 = vmul.f32 %v2190_v46, %v2190_v46 }
  0xfb   :  { %v628_v52 = vadd.f32 %v2178_v40, %v627_v49  ;;  %v761_v53 = vadd.f32 %v698_v50, %v697_v48 }
  0xfd   :  { %v762_v55 = vadd.f32 %v761_v53, %v699_v51  ;;  %v2205_v56 = vpop.f32.mrb[4].mxu0  ;;  %v629_v57 = vadd.f32 %v2186_v44, %v628_v52  ;;  %v2208_v58 = vpop.f32.mrb[4].mxu1 }
  0xfe   :  { %v2210_v59 = vpop.f32.mrb[5].mxu0  ;;  %v2212_v60 = vpop.f32.mrb[5].mxu1  ;;  %v703_v7 = vmul.f32 %v2205_v56, %v2205_v56 }
  0xff   :  { %v630_v61 = vadd.f32 %v629_v57, %v2210_v59  ;;  %v701_v62 = vmul.f32 %v2210_v59, %v2210_v59  ;;  %v763_v63 = vadd.f32 %v762_v55, %v700_v54  ;;  %v2217_v0 = vpop.f32.mrb[6].mxu0  ;;  %v2219_v1 = vpop.f32.mrb[6].mxu1 }
 0x100   :  { %v2221_v2 = vpop.f32.mrb[7].mxu0  ;;  %v2223_v3 = vpop.f32.mrb[7].mxu1  ;;  %v704_v10 = vmul.f32 %v2217_v0, %v2217_v0 }
 0x101   :  { %v764_v4 = vadd.f32 %v763_v63, %v701_v62  ;;  %v631_v5 = vadd.f32 %v630_v61, %v2221_v2  ;;  %v702_v6 = vmul.f32 %v2221_v2, %v2221_v2 }
 0x103   :  { %v632_v8 = vadd.f32 %v2205_v56, %v631_v5  ;;  %v765_v9 = vadd.f32 %v764_v4, %v702_v6 }
 0x105   :  { %v766_v11 = vadd.f32 %v765_v9, %v703_v7  ;;  %v2233_v12 = vpop.f32.mrb[8].mxu0  ;;  %v633_v13 = vadd.f32 %v2217_v0, %v632_v8  ;;  %v2236_v14 = vpop.f32.mrb[8].mxu1 }
 0x106   :  { %v2238_v15 = vpop.f32.mrb[9].mxu0  ;;  %v2240_v16 = vpop.f32.mrb[9].mxu1  ;;  %v707_v27 = vmul.f32 %v2233_v12, %v2233_v12 }
 0x107   :  { %v634_v17 = vadd.f32 %v633_v13, %v2238_v15  ;;  %v705_v18 = vmul.f32 %v2238_v15, %v2238_v15  ;;  %v767_v19 = vadd.f32 %v766_v11, %v704_v10  ;;  %v2245_v20 = vpop.f32.mrb[10].mxu0  ;;  %v2247_v21 = vpop.f32.mrb[10].mxu1 }
 0x108   :  { %v2249_v22 = vpop.f32.mrb[11].mxu0  ;;  %v2251_v23 = vpop.f32.mrb[11].mxu1  ;;  %v708_v30 = vmul.f32 %v2245_v20, %v2245_v20 }
 0x109   :  { %v768_v24 = vadd.f32 %v767_v19, %v705_v18  ;;  %v635_v25 = vadd.f32 %v634_v17, %v2249_v22  ;;  %v706_v26 = vmul.f32 %v2249_v22, %v2249_v22 }
 0x10b   :  { %v636_v28 = vadd.f32 %v2233_v12, %v635_v25  ;;  %v769_v29 = vadd.f32 %v768_v24, %v706_v26 }
 0x10d   :  { %v770_v31 = vadd.f32 %v769_v29, %v707_v27  ;;  %v2261_v32 = vpop.f32.mrb[12].mxu0  ;;  %v637_v33 = vadd.f32 %v2245_v20, %v636_v28  ;;  %v2264_v34 = vpop.f32.mrb[12].mxu1 }
 0x10e   :  { %v2266_v35 = vpop.f32.mrb[13].mxu0  ;;  %v2268_v36 = vpop.f32.mrb[13].mxu1  ;;  %v711_v55 = vmul.f32 %v2261_v32, %v2261_v32 }
 0x10f   :  { %v638_v37 = vadd.f32 %v637_v33, %v2266_v35  ;;  %v709_v38 = vmul.f32 %v2266_v35, %v2266_v35  ;;  %v771_v39 = vadd.f32 %v770_v31, %v708_v30  ;;  %v2273_v48 = vpop.f32.mrb[14].mxu0  ;;  %v2275_v49 = vpop.f32.mrb[14].mxu1 }
 0x110   :  { %3766 = vst [vmem:[#allocation3_spill] sm:$0xff] %v2273_v48  ;;  %v2277_v50 = vpop.f32.mrb[15].mxu0  ;;  %v2279_v51 = vpop.f32.mrb[15].mxu1  ;;  %v712_v62 = vmul.f32 %v2273_v48, %v2273_v48 }
 0x111   :  { %v772_v52 = vadd.f32 %v771_v39, %v709_v38  ;;  %v639_v53 = vadd.f32 %v638_v37, %v2277_v50  ;;  %v710_v54 = vmul.f32 %v2277_v50, %v2277_v50 }
 0x113   :  { %v640_v57 = vadd.f32 %v2261_v32, %v639_v53  ;;  %v773_v61 = vadd.f32 %v772_v52, %v710_v54 }
 0x115   :  { %v774_v63 = vadd.f32 %v773_v61, %v711_v55  ;;  %v2289_v4 = vpop.f32.mrb[16].mxu0  ;;  %v641_v5 = vadd.f32 %v2273_v48, %v640_v57  ;;  %v2292_v6 = vpop.f32.mrb[16].mxu1  ;;  %v730_v48 = vmul.f32 %v2192_v47, %v2192_v47 }
 0x116   :  { %3767 = vst [vmem:[#allocation4_spill] sm:$0xff] %v2289_v4  ;;  %3768 = vst [vmem:[#allocation5_spill] sm:$0xff] %v2292_v6  ;;  %v2294_v7 = vpop.f32.mrb[17].mxu0  ;;  %v2296_v8 = vpop.f32.mrb[17].mxu1  ;;  %v715_v27 = vmul.f32 %v2289_v4, %v2289_v4 }
 0x117   :  { %3769 = vst [vmem:[#allocation6_spill] sm:$0xff] %v2294_v7  ;;  %v642_v9 = vadd.f32 %v641_v5, %v2294_v7  ;;  %v713_v10 = vmul.f32 %v2294_v7, %v2294_v7  ;;  %v775_v11 = vadd.f32 %v774_v63, %v712_v62  ;;  %v2301_v13 = vpop.f32.mrb[18].mxu0  ;;  %v2303_v17 = vpop.f32.mrb[18].mxu1 }
 0x118   :  { %3770 = vst [vmem:[#allocation7_spill] sm:$0xff] %v2301_v13  ;;  %3771 = vst [vmem:[#allocation8_spill] sm:$0xff] %v2303_v17  ;;  %v2305_v18 = vpop.f32.mrb[19].mxu0  ;;  %v2307_v19 = vpop.f32.mrb[19].mxu1  ;;  %v716_v30 = vmul.f32 %v2301_v13, %v2301_v13 }
 0x119   :  { %3772 = vst [vmem:[#allocation9_spill] sm:$0xff] %v2305_v18  ;;  %3773 = vst [vmem:[#allocation10_spill] sm:$0xff] %v2307_v19  ;;  %v776_v24 = vadd.f32 %v775_v11, %v713_v10  ;;  %v643_v25 = vadd.f32 %v642_v9, %v2305_v18  ;;  %v714_v26 = vmul.f32 %v2305_v18, %v2305_v18 }
 0x11b   :  { %v644_v28 = vadd.f32 %v2289_v4, %v643_v25  ;;  %v777_v29 = vadd.f32 %v776_v24, %v714_v26 }
 0x11d   :  { %v778_v31 = vadd.f32 %v777_v29, %v715_v27  ;;  %v2317_v33 = vpop.f32.mrb[20].mxu0  ;;  %v645_v37 = vadd.f32 %v2301_v13, %v644_v28  ;;  %v2320_v38 = vpop.f32.mrb[20].mxu1 }
 0x11e   :  { %3774 = vst [vmem:[#allocation11_spill] sm:$0xff] %v2317_v33  ;;  %3775 = vst [vmem:[#allocation12_spill] sm:$0xff] %v2320_v38  ;;  %v2322_v39 = vpop.f32.mrb[21].mxu0  ;;  %v2324_v52 = vpop.f32.mrb[21].mxu1  ;;  %v719_v11 = vmul.f32 %v2317_v33, %v2317_v33 }
 0x11f   :  { %3776 = vst [vmem:[#allocation13_spill] sm:$0xff] %v2322_v39  ;;  %3777 = vst [vmem:[#allocation14_spill] sm:$0xff] %v2324_v52  ;;  %v646_v53 = vadd.f32 %v645_v37, %v2322_v39  ;;  %v717_v54 = vmul.f32 %v2322_v39, %v2322_v39  ;;  %v779_v55 = vadd.f32 %v778_v31, %v716_v30  ;;  %v2329_v57 = vpop.f32.mrb[22].mxu0  ;;  %v2331_v61 = vpop.f32.mrb[22].mxu1 }
 0x120   :  { %3778 = vst [vmem:[#allocation15_spill] sm:$0xff] %v2329_v57  ;;  %v2333_v62 = vpop.f32.mrb[23].mxu0  ;;  %v2335_v63 = vpop.f32.mrb[23].mxu1  ;;  %v720_v26 = vmul.f32 %v2329_v57, %v2329_v57 }
 0x121   :  { %3779 = vst [vmem:[#allocation16_spill] sm:$0xff] %v2333_v62  ;;  %3780 = vst [vmem:[#allocation17_spill] sm:$0xff] %v2335_v63  ;;  %v780_v5 = vadd.f32 %v779_v55, %v717_v54  ;;  %v647_v9 = vadd.f32 %v646_v53, %v2333_v62  ;;  %v718_v10 = vmul.f32 %v2333_v62, %v2333_v62 }
 0x123   :  { %v648_v24 = vadd.f32 %v2317_v33, %v647_v9  ;;  %v781_v25 = vadd.f32 %v780_v5, %v718_v10 }
 0x125   :  { %v782_v27 = vadd.f32 %v781_v25, %v719_v11  ;;  %v2345_v28 = vpop.f32.mrb[24].mxu0  ;;  %v649_v29 = vadd.f32 %v2329_v57, %v648_v24  ;;  %v2348_v30 = vpop.f32.mrb[24].mxu1 }
 0x126   :  { %3781 = vst [vmem:[#allocation18_spill] sm:$0xff] %v2345_v28  ;;  %3782 = vst [vmem:[#allocation19_spill] sm:$0xff] %v2348_v30  ;;  %v2350_v31 = vpop.f32.mrb[25].mxu0  ;;  %v2352_v37 = vpop.f32.mrb[25].mxu1 }
 0x127   :  { %3783 = vst [vmem:[#allocation20_spill] sm:$0xff] %v2350_v31  ;;  %3784 = vst [vmem:[#allocation21_spill] sm:$0xff] %v2352_v37  ;;  %v650_v53 = vadd.f32 %v649_v29, %v2350_v31  ;;  %v721_v54 = vmul.f32 %v2350_v31, %v2350_v31  ;;  %v783_v55 = vadd.f32 %v782_v27, %v720_v26  ;;  %v2357_v5 = vpop.f32.mrb[26].mxu0  ;;  %v2359_v9 = vpop.f32.mrb[26].mxu1 }
 0x128   :  { %3785 = vst [vmem:[#allocation22_spill] sm:$0xff] %v2357_v5  ;;  %3786 = vst [vmem:[#allocation23_spill] sm:$0xff] %v2359_v9  ;;  %v2361_v10 = vpop.f32.mrb[27].mxu0  ;;  %v2363_v11 = vpop.f32.mrb[27].mxu1  ;;  %v723_v29 = vmul.f32 %v2345_v28, %v2345_v28  ;;  %v724_v27 = vmul.f32 %v2357_v5, %v2357_v5 }
 0x129   :  { %3787 = vst [vmem:[#allocation24_spill] sm:$0xff] %v2361_v10  ;;  %3788 = vst [vmem:[#allocation25_spill] sm:$0xff] %v2363_v11  ;;  %v784_v24 = vadd.f32 %v783_v55, %v721_v54  ;;  %v651_v25 = vadd.f32 %v650_v53, %v2361_v10  ;;  %v722_v57 = vmul.f32 %v2361_v10, %v2361_v10 }
 0x12b   :  { %v652_v31 = vadd.f32 %v2345_v28, %v651_v25  ;;  %v785_v26 = vadd.f32 %v784_v24, %v722_v57 }
 0x12d   :  { %v786_v33 = vadd.f32 %v785_v26, %v723_v29  ;;  %v2373_v62 = vpop.f32.mrb[28].mxu0  ;;  %v653_v39 = vadd.f32 %v2357_v5, %v652_v31  ;;  %v2376_v54 = vpop.f32.mrb[28].mxu1 }
 0x12e   :  { %v2378_v53 = vpop.f32.mrb[29].mxu0  ;;  %v2380_v55 = vpop.f32.mrb[29].mxu1 }
 0x12f   :  { %3789 = vst [vmem:[#allocation26_spill] sm:$0xff] %v2378_v53  ;;  %3790 = vst [vmem:[#allocation27_spill] sm:$0xff] %v2380_v55  ;;  %v654_v10 = vadd.f32 %v653_v39, %v2378_v53  ;;  %v725_v25 = vmul.f32 %v2378_v53, %v2378_v53  ;;  %v787_v57 = vadd.f32 %v786_v33, %v724_v27  ;;  %v2385_v24 = vpop.f32.mrb[30].mxu0  ;;  %v2387_v28 = vpop.f32.mrb[30].mxu1 }
 0x130   :  { %v2389_v29 = vpop.f32.mrb[31].mxu0  ;;  %v2391_v26 = vpop.f32.mrb[31].mxu1  ;;  %v727_v39 = vmul.f32 %v2373_v62, %v2373_v62  ;;  %v728_v27 = vmul.f32 %v2385_v24, %v2385_v24 }
 0x131   :  { %3791 = vst [vmem:[#allocation28_spill] sm:$0xff] %v2389_v29  ;;  %3792 = vst [vmem:[#allocation29_spill] sm:$0xff] %v2391_v26  ;;  %v788_v31 = vadd.f32 %v787_v57, %v725_v25  ;;  %v655_v5 = vadd.f32 %v654_v10, %v2389_v29  ;;  %v726_v13 = vmul.f32 %v2389_v29, %v2389_v29 }
 0x132   :  { %v729_v25 = vmul.f32 %v2184_v43, %v2184_v43 }
 0x133   :  { %v656_v53 = vadd.f32 %v2373_v62, %v655_v5  ;;  %v789_v33 = vadd.f32 %v788_v31, %v726_v13  ;;  %v731_v13 = vmul.f32 %v2180_v41, %v2180_v41 }
 0x135   :  { %v790_v4 = vadd.f32 %v789_v33, %v727_v39  ;;  %v657_v18 = vadd.f32 %v2385_v24, %v656_v53  ;;  %v732_v53 = vmul.f32 %v2188_v45, %v2188_v45 }
 0x137   :  { %v658_v10 = vadd.f32 %v657_v18, %v2184_v43  ;;  %v791_v57 = vadd.f32 %v790_v4, %v728_v27  ;;  %v733_v4 = vmul.f32 %v2212_v60, %v2212_v60 }
 0x139   :  { %v792_v7 = vadd.f32 %v791_v57, %v729_v25  ;;  %v659_v29 = vadd.f32 %v658_v10, %v2192_v47  ;;  %v734_v57 = vmul.f32 %v2223_v3, %v2223_v3 }
 0x13b   :  { %v660_v5 = vadd.f32 %v2180_v41, %v659_v29  ;;  %v793_v31 = vadd.f32 %v792_v7, %v730_v48  ;;  %v735_v48 = vmul.f32 %v2208_v58, %v2208_v58 }
 0x13d   :  { %v794_v39 = vadd.f32 %v793_v31, %v731_v13  ;;  %v661_v33 = vadd.f32 %v2188_v45, %v660_v5  ;;  %v736_v13 = vmul.f32 %v2219_v1, %v2219_v1 }
 0x13f   :  { %v662_v18 = vadd.f32 %v661_v33, %v2212_v60  ;;  %v795_v27 = vadd.f32 %v794_v39, %v732_v53  ;;  %v737_v53 = vmul.f32 %v2240_v16, %v2240_v16 }
 0x141   :  { %v796_v25 = vadd.f32 %v795_v27, %v733_v4  ;;  %v663_v10 = vadd.f32 %v662_v18, %v2223_v3  ;;  %v738_v27 = vmul.f32 %v2251_v23, %v2251_v23 }
 0x143   :  { %v664_v7 = vadd.f32 %v2208_v58, %v663_v10  ;;  %v797_v29 = vadd.f32 %v796_v25, %v734_v57  ;;  %v739_v25 = vmul.f32 %v2236_v14, %v2236_v14 }
 0x145   :  { %v798_v5 = vadd.f32 %v797_v29, %v735_v48  ;;  %v665_v31 = vadd.f32 %v2219_v1, %v664_v7  ;;  %v740_v48 = vmul.f32 %v2247_v21, %v2247_v21 }
 0x147   :  { %v666_v39 = vadd.f32 %v665_v31, %v2240_v16  ;;  %v799_v33 = vadd.f32 %v798_v5, %v736_v13  ;;  %v741_v13 = vmul.f32 %v2268_v36, %v2268_v36 }
 0x149   :  { %v800_v4 = vadd.f32 %v799_v33, %v737_v53  ;;  %v667_v18 = vadd.f32 %v666_v39, %v2251_v23  ;;  %v742_v33 = vmul.f32 %v2279_v51, %v2279_v51 }
 0x14b   :  { %v668_v10 = vadd.f32 %v2236_v14, %v667_v18  ;;  %v801_v57 = vadd.f32 %v800_v4, %v738_v27  ;;  %v743_v4 = vmul.f32 %v2264_v34, %v2264_v34 }
 0x14d   :  { %v802_v7 = vadd.f32 %v801_v57, %v739_v25  ;;  %v669_v29 = vadd.f32 %v2247_v21, %v668_v10  ;;  %v744_v25 = vmul.f32 %v2275_v49, %v2275_v49 }
 0x14f   :  { %v670_v5 = vadd.f32 %v669_v29, %v2268_v36  ;;  %v803_v31 = vadd.f32 %v802_v7, %v740_v48  ;;  %v745_v48 = vmul.f32 %v2296_v8, %v2296_v8 }
 0x151   :  { %v804_v53 = vadd.f32 %v803_v31, %v741_v13  ;;  %v671_v39 = vadd.f32 %v670_v5, %v2279_v51  ;;  %v746_v31 = vmul.f32 %v2307_v19, %v2307_v19 }
 0x153   :  { %v672_v18 = vadd.f32 %v2264_v34, %v671_v39  ;;  %v805_v27 = vadd.f32 %v804_v53, %v742_v33  ;;  %v747_v53 = vmul.f32 %v2292_v6, %v2292_v6 }
 0x155   :  { %v806_v10 = vadd.f32 %v805_v27, %v743_v4  ;;  %v673_v57 = vadd.f32 %v2275_v49, %v672_v18  ;;  %v748_v4 = vmul.f32 %v2303_v17, %v2303_v17 }
 0x157   :  { %v674_v7 = vadd.f32 %v673_v57, %v2296_v8  ;;  %v807_v29 = vadd.f32 %v806_v10, %v744_v25  ;;  %v749_v25 = vmul.f32 %v2324_v52, %v2324_v52 }
 0x159   :  { %v808_v13 = vadd.f32 %v807_v29, %v745_v48  ;;  %v675_v5 = vadd.f32 %v674_v7, %v2307_v19  ;;  %v750_v29 = vmul.f32 %v2335_v63, %v2335_v63 }
 0x15b   :  { %v676_v39 = vadd.f32 %v2292_v6, %v675_v5  ;;  %v809_v33 = vadd.f32 %v808_v13, %v746_v31  ;;  %v751_v13 = vmul.f32 %v2320_v38, %v2320_v38 }
 0x15d   :  { %v810_v18 = vadd.f32 %v809_v33, %v747_v53  ;;  %v677_v27 = vadd.f32 %v2303_v17, %v676_v39  ;;  %v752_v53 = vmul.f32 %v2331_v61, %v2331_v61 }
 0x15f   :  { %v678_v10 = vadd.f32 %v677_v27, %v2324_v52  ;;  %v811_v57 = vadd.f32 %v810_v18, %v748_v4  ;;  %v753_v4 = vmul.f32 %v2352_v37, %v2352_v37 }
 0x161   :  { %v812_v48 = vadd.f32 %v811_v57, %v749_v25  ;;  %v679_v7 = vadd.f32 %v678_v10, %v2335_v63  ;;  %v754_v57 = vmul.f32 %v2363_v11, %v2363_v11 }
 0x163   :  { %v680_v5 = vadd.f32 %v2320_v38, %v679_v7  ;;  %v813_v31 = vadd.f32 %v812_v48, %v750_v29  ;;  %v755_v48 = vmul.f32 %v2348_v30, %v2348_v30 }
 0x165   :  { %v814_v39 = vadd.f32 %v813_v31, %v751_v13  ;;  %v681_v33 = vadd.f32 %v2331_v61, %v680_v5  ;;  %v756_v13 = vmul.f32 %v2359_v9, %v2359_v9 }
 0x167   :  { %v682_v18 = vadd.f32 %v681_v33, %v2352_v37  ;;  %v815_v27 = vadd.f32 %v814_v39, %v752_v53  ;;  %v757_v53 = vmul.f32 %v2380_v55, %v2380_v55 }
 0x169   :  { %v816_v25 = vadd.f32 %v815_v27, %v753_v4  ;;  %v683_v10 = vadd.f32 %v682_v18, %v2363_v11  ;;  %v758_v27 = vmul.f32 %v2391_v26, %v2391_v26 }
 0x16b   :  { %v684_v7 = vadd.f32 %v2348_v30, %v683_v10  ;;  %v817_v29 = vadd.f32 %v816_v25, %v754_v57  ;;  %v759_v25 = vmul.f32 %v2376_v54, %v2376_v54 }
 0x16d   :  { %v818_v5 = vadd.f32 %v817_v29, %v755_v48  ;;  %v685_v31 = vadd.f32 %v2359_v9, %v684_v7  ;;  %v760_v48 = vmul.f32 %v2387_v28, %v2387_v28 }
 0x16f   :  { %v686_v39 = vadd.f32 %v685_v31, %v2380_v55  ;;  %v819_v33 = vadd.f32 %v818_v5, %v756_v13 }
 0x171   :  { %v820_v4 = vadd.f32 %v819_v33, %v757_v53  ;;  %v687_v18 = vadd.f32 %v686_v39, %v2391_v26 }
 0x173   :  { %v688_v10 = vadd.f32 %v2376_v54, %v687_v18  ;;  %v821_v57 = vadd.f32 %v820_v4, %v758_v27 }
 0x175   :  { %v689_v7 = vadd.f32 %v2387_v28, %v688_v10  ;;  %v822_v29 = vadd.f32 %v821_v57, %v759_v25  ;;  %v3812_v57 = vld [vmem:[#allocation27_spill] sm:$0xff]  ;;  %v3813_v25 = vld [vmem:[#allocation29_spill] sm:$0xff] }
 0x177   :  { %v690_v31 = vrot.slane %v689_v7, 4  ;;  %v823_v13 = vadd.f32 %v822_v29, %v760_v48  ;;  %v3801_v29 = vld [vmem:[#allocation15_spill] sm:$0xff] }
 0x178   :  { %v3811_v48 = vld [vmem:[#allocation23_spill] sm:$0xff] }
 0x179   :  { %v691_v5 = vadd.f32 %v690_v31, %v689_v7  ;;  %v824_v53 = vrot.slane %v823_v13, 4  ;;  %v3795_v31 = vld [vmem:[#allocation9_spill] sm:$0xff]  ;;  %v3802_v7 = vld [vmem:[#allocation20_spill] sm:$0xff] }
 0x17b   :  { %v692_v39 = vrot.slane %v691_v5, 2  ;;  %v825_v33 = vadd.f32 %v824_v53, %v823_v13  ;;  %v3796_v13 = vld [vmem:[#allocation4_spill] sm:$0xff] }
 0x17d   :  { %v693_v55 = vadd.f32 %v692_v39, %v691_v5  ;;  %v826_v26 = vrot.slane %v825_v33, 2  ;;  %v3804_v5 = vld [vmem:[#allocation18_spill] sm:$0xff] }
 0x17f   :  { %v694_v9 = vrot.slane %v693_v55, 1  ;;  %v827_v30 = vadd.f32 %v826_v26, %v825_v33  ;;  %v3803_v26 = vld [vmem:[#allocation24_spill] sm:$0xff] }
 0x181   :  { %v695_v11 = vadd.f32 %v694_v9, %v693_v55  ;;  %v828_v37 = vrot.slane %v827_v30, 1  ;;  %v3805_v55 = vld [vmem:[#allocation22_spill] sm:$0xff]  ;;  %v3810_v9 = vld [vmem:[#allocation19_spill] sm:$0xff] }
 0x183   :  { %v2498_v18 = vmul.f32 0.001953125, %v695_v11  ;;  %v829_v4 = vadd.f32 %v828_v37, %v827_v30  ;;  %v3806_v30 = vld [vmem:[#allocation26_spill] sm:$0xff]  ;;  %v3807_v11 = vld [vmem:[#allocation28_spill] sm:$0xff] }
 0x185   :  { %v830_v27 = vmul.f32 0.001953125, %v829_v4  ;;  %v831_v10 = vmul.f32 %v2498_v18, %v2498_v18  ;;  %v3793_v4 = vld [vmem:[#allocation3_spill] sm:$0xff]  ;;  %v3814_v17 = vsub.f32 %v2182_v42, %v2498_v18  ;;  %v3815_v63 = vsub.f32 %v2190_v46, %v2498_v18 }
 0x186   :  { %v3816_v39 = vsub.f32 %v2178_v40, %v2498_v18 }
 0x187   :  { %v832_v37 = vsub.f32 %v830_v27, %v831_v10  ;;  %v3794_v10 = vld [vmem:[#allocation6_spill] sm:$0xff]  ;;  %v3809_v27 = vld [vmem:[#allocation25_spill] sm:$0xff] }
 0x189   :  { %v833_v53 = vmax.f32 %v832_v37, 0.0  ;;  %v3797_v37 = vld [vmem:[#allocation7_spill] sm:$0xff] }
 0x18b   :  { %v898_v33 = vadd.f32 1e-05, %v833_v53 }
 0x18d   :  { %2031 = vrsqrt.f32 %v898_v33  ;;  %v3817_v33 = vsub.f32 %v2186_v44, %v2498_v18 }
 0x197   :  { %v2630_v6 = vpop.eup %2031 }
 0x198   :  { %v2636_v52 = vmul.f32 %v2630_v6, %v3814_v17  ;;  %v2642_v38 = vmul.f32 %v2630_v6, %v3815_v63  ;;  %v2648_v53 = vmul.f32 %v2630_v6, %v3816_v39  ;;  %v2654_v42 = vmul.f32 %v2630_v6, %v3817_v33 }
 0x199   :  { %v3818_v17 = vsub.f32 %v2210_v59, %v2498_v18  ;;  %v3819_v63 = vsub.f32 %v2221_v2, %v2498_v18  ;;  %v3820_v39 = vsub.f32 %v2205_v56, %v2498_v18  ;;  %v3821_v33 = vsub.f32 %v2217_v0, %v2498_v18 }
 0x19b   :  { %v2660_v46 = vmul.f32 %v2630_v6, %v3818_v17  ;;  %v2666_v40 = vmul.f32 %v2630_v6, %v3819_v63  ;;  %v2672_v44 = vmul.f32 %v2630_v6, %v3820_v39  ;;  %v2678_v59 = vmul.f32 %v2630_v6, %v3821_v33 }
 0x19c   :  { %v3822_v17 = vsub.f32 %v2238_v15, %v2498_v18  ;;  %v3823_v63 = vsub.f32 %v2249_v22, %v2498_v18  ;;  %v3824_v39 = vsub.f32 %v2233_v12, %v2498_v18  ;;  %v3825_v33 = vsub.f32 %v2245_v20, %v2498_v18 }
 0x19e   :  { %v2684_v2 = vmul.f32 %v2630_v6, %v3822_v17  ;;  %v2690_v56 = vmul.f32 %v2630_v6, %v3823_v63  ;;  %v2696_v0 = vmul.f32 %v2630_v6, %v3824_v39  ;;  %v2702_v15 = vmul.f32 %v2630_v6, %v3825_v33 }
 0x19f   :  { %v3826_v17 = vsub.f32 %v2266_v35, %v2498_v18  ;;  %v3827_v63 = vsub.f32 %v2277_v50, %v2498_v18  ;;  %v3828_v39 = vsub.f32 %v2261_v32, %v2498_v18  ;;  %v3829_v33 = vsub.f32 %v3793_v4, %v2498_v18 }
 0x1a1   :  { %v2708_v22 = vmul.f32 %v2630_v6, %v3826_v17  ;;  %v2714_v12 = vmul.f32 %v2630_v6, %v3827_v63  ;;  %v2720_v20 = vmul.f32 %v2630_v6, %v3828_v39  ;;  %v2726_v35 = vmul.f32 %v2630_v6, %v3829_v33 }
 0x1a2   :  { %v3830_v17 = vsub.f32 %v3794_v10, %v2498_v18  ;;  %v3831_v63 = vsub.f32 %v3795_v31, %v2498_v18  ;;  %v3833_v39 = vsub.f32 %v3796_v13, %v2498_v18  ;;  %v3835_v33 = vsub.f32 %v3797_v37, %v2498_v18 }
 0x1a4   :  { %v2732_v50 = vmul.f32 %v2630_v6, %v3830_v17  ;;  %v2738_v32 = vmul.f32 %v2630_v6, %v3831_v63  ;;  %v2744_v4 = vmul.f32 %v2630_v6, %v3833_v39  ;;  %v2750_v10 = vmul.f32 %v2630_v6, %v3835_v33  ;;  %v3836_v17 = vld [vmem:[#allocation13_spill] sm:$0xff]  ;;  %v3838_v63 = vld [vmem:[#allocation16_spill] sm:$0xff]  ;;  %v3840_v39 = vld [vmem:[#allocation11_spill] sm:$0xff] }
 0x1a5   :  { %v3837_v19 = vsub.f32 %v3836_v17, %v2498_v18  ;;  %v3842_v33 = vsub.f32 %v3801_v29, %v2498_v18 }
 0x1a6   :  { %3832 = vst [vmem:[#allocation3_spill] sm:$0xff] %v2738_v32  ;;  %3834 = vst [vmem:[#allocation6_spill] sm:$0xff] %v2744_v4  ;;  %v3839_v32 = vsub.f32 %v3838_v63, %v2498_v18  ;;  %v3841_v4 = vsub.f32 %v3840_v39, %v2498_v18 }
 0x1a7   :  { %v2756_v31 = vmul.f32 %v2630_v6, %v3837_v19  ;;  %v2774_v17 = vmul.f32 %v2630_v6, %v3842_v33  ;;  %v3843_v19 = vsub.f32 %v3802_v7, %v2498_v18  ;;  %v3846_v33 = vsub.f32 %v3805_v55, %v2498_v18 }
 0x1a8   :  { %v2762_v13 = vmul.f32 %v2630_v6, %v3839_v32  ;;  %v2768_v37 = vmul.f32 %v2630_v6, %v3841_v4  ;;  %v3844_v32 = vsub.f32 %v3803_v26, %v2498_v18  ;;  %v3845_v4 = vsub.f32 %v3804_v5, %v2498_v18 }
 0x1a9   :  { %v2780_v63 = vmul.f32 %v2630_v6, %v3843_v19  ;;  %v2798_v7 = vmul.f32 %v2630_v6, %v3846_v33  ;;  %v3847_v19 = vsub.f32 %v3806_v30, %v2498_v18  ;;  %v3850_v33 = vsub.f32 %v2385_v24, %v2498_v18 }
 0x1aa   :  { %v2786_v39 = vmul.f32 %v2630_v6, %v3844_v32  ;;  %v2792_v29 = vmul.f32 %v2630_v6, %v3845_v4  ;;  %v3848_v32 = vsub.f32 %v3807_v11, %v2498_v18  ;;  %v3849_v4 = vsub.f32 %v2373_v62, %v2498_v18 }
 0x1ab   :  { %v2804_v26 = vmul.f32 %v2630_v6, %v3847_v19  ;;  %v2822_v30 = vmul.f32 %v2630_v6, %v3850_v33  ;;  %v3851_v19 = vsub.f32 %v2184_v43, %v2498_v18  ;;  %v3854_v33 = vsub.f32 %v2188_v45, %v2498_v18 }
 0x1ac   :  { %v2810_v5 = vmul.f32 %v2630_v6, %v3848_v32  ;;  %v2816_v55 = vmul.f32 %v2630_v6, %v3849_v4  ;;  %v3852_v32 = vsub.f32 %v2192_v47, %v2498_v18  ;;  %v3853_v4 = vsub.f32 %v2180_v41, %v2498_v18 }
 0x1ad   :  { %v2828_v11 = vmul.f32 %v2630_v6, %v3851_v19  ;;  %v2846_v43 = vmul.f32 %v2630_v6, %v3854_v33  ;;  %v3855_v19 = vsub.f32 %v2212_v60, %v2498_v18  ;;  %v3858_v33 = vsub.f32 %v2219_v1, %v2498_v18 }
 0x1ae   :  { %v2834_v62 = vmul.f32 %v2630_v6, %v3852_v32  ;;  %v2840_v24 = vmul.f32 %v2630_v6, %v3853_v4  ;;  %v3856_v32 = vsub.f32 %v2223_v3, %v2498_v18  ;;  %v3857_v4 = vsub.f32 %v2208_v58, %v2498_v18 }
 0x1af   :  { %v2852_v47 = vmul.f32 %v2630_v6, %v3855_v19  ;;  %v2870_v60 = vmul.f32 %v2630_v6, %v3858_v33  ;;  %v3859_v19 = vsub.f32 %v2240_v16, %v2498_v18  ;;  %v3862_v33 = vsub.f32 %v2247_v21, %v2498_v18 }
 0x1b0   :  { %v2858_v41 = vmul.f32 %v2630_v6, %v3856_v32  ;;  %v2864_v45 = vmul.f32 %v2630_v6, %v3857_v4  ;;  %v3860_v32 = vsub.f32 %v2251_v23, %v2498_v18  ;;  %v3861_v4 = vsub.f32 %v2236_v14, %v2498_v18 }
 0x1b1   :  { %v2876_v3 = vmul.f32 %v2630_v6, %v3859_v19  ;;  %v2894_v16 = vmul.f32 %v2630_v6, %v3862_v33  ;;  %v3863_v19 = vsub.f32 %v2268_v36, %v2498_v18  ;;  %v3868_v33 = vsub.f32 %v2275_v49, %v2498_v18 }
 0x1b2   :  { %v2882_v58 = vmul.f32 %v2630_v6, %v3860_v32  ;;  %v2888_v1 = vmul.f32 %v2630_v6, %v3861_v4  ;;  %v3864_v32 = vsub.f32 %v2279_v51, %v2498_v18  ;;  %v3866_v4 = vsub.f32 %v2264_v34, %v2498_v18 }
 0x1b3   :  { %v2900_v23 = vmul.f32 %v2630_v6, %v3863_v19  ;;  %v2918_v36 = vmul.f32 %v2630_v6, %v3868_v33  ;;  %v3870_v19 = vsub.f32 %v2296_v8, %v2498_v18  ;;  %v3878_v33 = vld [vmem:[#allocation8_spill] sm:$0xff] }
 0x1b4   :  { %v2906_v14 = vmul.f32 %v2630_v6, %v3864_v32  ;;  %v2912_v21 = vmul.f32 %v2630_v6, %v3866_v4  ;;  %v3872_v32 = vld [vmem:[#allocation10_spill] sm:$0xff]  ;;  %v3875_v4 = vld [vmem:[#allocation5_spill] sm:$0xff] }
 0x1b5   :  { %3869 = vst [vmem:[#allocation7_spill] sm:$0xff] %v2918_v36  ;;  %v2924_v51 = vmul.f32 %v2630_v6, %v3870_v19  ;;  %v3879_v36 = vsub.f32 %v3878_v33, %v2498_v18  ;;  %v3880_v19 = vld [vmem:[#allocation14_spill] sm:$0xff] }
 0x1b6   :  { %3865 = vst [vmem:[#allocation9_spill] sm:$0xff] %v2906_v14  ;;  %3867 = vst [vmem:[#allocation4_spill] sm:$0xff] %v2912_v21  ;;  %v3873_v14 = vsub.f32 %v3872_v32, %v2498_v18  ;;  %v3876_v21 = vsub.f32 %v3875_v4, %v2498_v18 }
 0x1b7   :  { %3871 = vst [vmem:[#allocation15_spill] sm:$0xff] %v2924_v51  ;;  %v2942_v8 = vmul.f32 %v2630_v6, %v3879_v36  ;;  %v3881_v51 = vsub.f32 %v3880_v19, %v2498_v18  ;;  %v3887_v36 = vsub.f32 %v2331_v61, %v2498_v18  ;;  %v3892_v61 = vsub.f32 %v3810_v9, %v2498_v18 }
 0x1b8   :  { %v2930_v34 = vmul.f32 %v2630_v6, %v3873_v14  ;;  %v2936_v49 = vmul.f32 %v2630_v6, %v3876_v21  ;;  %v3882_v14 = vld [vmem:[#allocation17_spill] sm:$0xff]  ;;  %v3885_v21 = vld [vmem:[#allocation12_spill] sm:$0xff] }
 0x1b9   :  { %v2948_v32 = vmul.f32 %v2630_v6, %v3881_v51  ;;  %v2966_v19 = vmul.f32 %v2630_v6, %v3887_v36  ;;  %v2971_v51 = vld [vmem:[%s3710_s2] ss:$0 sm:$0xff]  ;;  %v2989_v36 = vmul.f32 %v2630_v6, %v3892_v61  ;;  %v3896_v61 = vsub.f32 %v2376_v54, %v2498_v18 }
 0x1ba   :  { %3874 = vst [vmem:[#allocation20_spill] sm:$0xff] %v2930_v34  ;;  %3877 = vst [vmem:[#allocation24_spill] sm:$0xff] %v2936_v49  ;;  %v3883_v34 = vsub.f32 %v3882_v14, %v2498_v18  ;;  %v3886_v49 = vsub.f32 %v3885_v21, %v2498_v18  ;;  %v3889_v14 = vld [vmem:[#allocation21_spill] sm:$0xff]  ;;  %v3031_v54 = vmul.f32 %v2971_v51, %v2648_v53 }
 0x1bb   :  { %3888 = vst [vmem:[#allocation22_spill] sm:$0xff] %v2966_v19  ;;  %v3893_v19 = vsub.f32 %v3811_v48, %v2498_v18  ;;  %v3013_v48 = vmul.f32 %v2630_v6, %v3896_v61  ;;  %v3059_v53 = vmul.f32 %v2971_v51, %v2690_v56  ;;  %v3087_v56 = vmul.f32 %v2971_v51, %v2732_v50 }
 0x1bc   :  { %v2954_v4 = vmul.f32 %v2630_v6, %v3883_v34  ;;  %v2960_v33 = vmul.f32 %v2630_v6, %v3886_v49  ;;  %v3890_v34 = vsub.f32 %v3889_v14, %v2498_v18  ;;  %v3891_v49 = vsub.f32 %v3809_v27, %v2498_v18 }
 0x1bd   :  { %v2995_v14 = vmul.f32 %v2630_v6, %v3893_v19  ;;  %v3897_v19 = vsub.f32 %v2387_v28, %v2498_v18  ;;  %v3051_v28 = vmul.f32 %v2971_v51, %v2678_v59  ;;  %v3079_v59 = vmul.f32 %v2971_v51, %v2720_v20 }
 0x1be   :  { %3884 = vst [vmem:[#allocation18_spill] sm:$0xff] %v2954_v4  ;;  %v2977_v4 = vmul.f32 %v2630_v6, %v3890_v34  ;;  %v2983_v21 = vmul.f32 %v2630_v6, %v3891_v49  ;;  %v3894_v34 = vsub.f32 %v3812_v57, %v2498_v18  ;;  %v3895_v49 = vsub.f32 %v3813_v25, %v2498_v18 }
 0x1bf   :  { %v3019_v57 = vmul.f32 %v2630_v6, %v3897_v19  ;;  %v3027_v25 = vmul.f32 %v2971_v51, %v2642_v38  ;;  %v3047_v38 = vmul.f32 %v2971_v51, %v2672_v44  ;;  %v3055_v18 = vmul.f32 %v2971_v51, %v2684_v2 }
 0x1c0   :  { %v3001_v27 = vmul.f32 %v2630_v6, %v3894_v34  ;;  %v3007_v9 = vmul.f32 %v2630_v6, %v3895_v49  ;;  %v3023_v34 = vmul.f32 %v2971_v51, %v2636_v52  ;;  %v3035_v49 = vmul.f32 %v2971_v51, %v2654_v42 }
 0x1c1   :  { %v3039_v6 = vmul.f32 %v2971_v51, %v2660_v46  ;;  %v3043_v52 = vmul.f32 %v2971_v51, %v2666_v40  ;;  %v3063_v42 = vmul.f32 %v2971_v51, %v2696_v0  ;;  %v3067_v46 = vmul.f32 %v2971_v51, %v2702_v15  ;;  %v3898_v0 = vld [vmem:[#allocation3_spill] sm:$0xff] }
 0x1c2   :  { %v3071_v40 = vmul.f32 %v2971_v51, %v2708_v22  ;;  %v3075_v44 = vmul.f32 %v2971_v51, %v2714_v12  ;;  %v3083_v2 = vmul.f32 %v2971_v51, %v2726_v35  ;;  %v3091_v15 = vmul.f32 %v2971_v51, %v3898_v0  ;;  %v3899_v22 = vld [vmem:[#allocation6_spill] sm:$0xff]  ;;  %v3904_v0 = vld [vmem:[#allocation9_spill] sm:$0xff] }
 0x1c3   :  { %v3095_v12 = vmul.f32 %v2971_v51, %v3899_v22  ;;  %v3099_v20 = vmul.f32 %v2971_v51, %v2750_v10  ;;  %v3103_v35 = vmul.f32 %v2971_v51, %v2756_v31  ;;  %v3107_v50 = vmul.f32 %v2971_v51, %v2762_v13  ;;  %v3905_v22 = vld [vmem:[#allocation4_spill] sm:$0xff] }
 0x1c4   :  { %v3111_v61 = vmul.f32 %v2971_v51, %v2768_v37  ;;  %v3115_v19 = vmul.f32 %v2971_v51, %v2774_v17  ;;  %v3119_v10 = vmul.f32 %v2971_v51, %v2780_v63  ;;  %v3123_v31 = vmul.f32 %v2971_v51, %v2786_v39 }
 0x1c5   :  { %v3127_v13 = vmul.f32 %v2971_v51, %v2792_v29  ;;  %v3131_v37 = vmul.f32 %v2971_v51, %v2798_v7  ;;  %v3135_v17 = vmul.f32 %v2971_v51, %v2804_v26  ;;  %v3139_v63 = vmul.f32 %v2971_v51, %v2810_v5 }
 0x1c6   :  { %v3143_v39 = vmul.f32 %v2971_v51, %v2816_v55  ;;  %v3147_v29 = vmul.f32 %v2971_v51, %v2822_v30  ;;  %v3151_v7 = vmul.f32 %v2971_v51, %v2828_v11  ;;  %v3155_v26 = vmul.f32 %v2971_v51, %v2834_v62 }
 0x1c7   :  { %v3159_v5 = vmul.f32 %v2971_v51, %v2840_v24  ;;  %v3163_v55 = vmul.f32 %v2971_v51, %v2846_v43  ;;  %v3167_v30 = vmul.f32 %v2971_v51, %v2852_v47  ;;  %v3171_v11 = vmul.f32 %v2971_v51, %v2858_v41 }
 0x1c8   :  { %v3175_v62 = vmul.f32 %v2971_v51, %v2864_v45  ;;  %v3179_v24 = vmul.f32 %v2971_v51, %v2870_v60  ;;  %v3183_v43 = vmul.f32 %v2971_v51, %v2876_v3  ;;  %v3187_v47 = vmul.f32 %v2971_v51, %v2882_v58 }
 0x1c9   :  { %v3191_v41 = vmul.f32 %v2971_v51, %v2888_v1  ;;  %v3195_v45 = vmul.f32 %v2971_v51, %v2894_v16  ;;  %v3199_v60 = vmul.f32 %v2971_v51, %v2900_v23  ;;  %v3203_v3 = vmul.f32 %v2971_v51, %v3904_v0 }
 0x1ca   :  { %3900 = vst [vmem:[#allocation26_spill] sm:$0xff] %v3187_v47  ;;  %v3207_v58 = vmul.f32 %v2971_v51, %v3905_v22  ;;  %v3906_v47 = vld [vmem:[#allocation7_spill] sm:$0xff]  ;;  %v3227_v22 = vmul.f32 %v2971_v51, %v2942_v8 }
 0x1cb   :  { %3901 = vst [vmem:[#allocation28_spill] sm:$0xff] %v3191_v41  ;;  %3902 = vst [vmem:[#allocation25_spill] sm:$0xff] %v3195_v45  ;;  %v3211_v1 = vmul.f32 %v2971_v51, %v3906_v47  ;;  %v3908_v41 = vld [vmem:[#allocation15_spill] sm:$0xff]  ;;  %v3909_v45 = vld [vmem:[#allocation20_spill] sm:$0xff]  ;;  %v3231_v47 = vmul.f32 %v2971_v51, %v2948_v32  ;;  %v3252_v32 = vmul.f32 %v2971_v51, %v2977_v4 }
 0x1cc   :  { %3903 = vst [vmem:[#allocation19_spill] sm:$0xff] %v3199_v60  ;;  %v3215_v16 = vmul.f32 %v2971_v51, %v3908_v41  ;;  %v3219_v23 = vmul.f32 %v2971_v51, %v3909_v45  ;;  %v3911_v60 = vld [vmem:[#allocation24_spill] sm:$0xff]  ;;  %v3239_v45 = vmul.f32 %v2971_v51, %v2960_v33  ;;  %v3248_v8 = vld [vmem:[%s3711_s3] ss:$0 sm:$0xff]  ;;  %v3260_v33 = vmul.f32 %v2971_v51, %v2989_v36 }
 0x1cd   :  { %3907 = vst [vmem:[#allocation23_spill] sm:$0xff] %v3211_v1  ;;  %v3223_v0 = vmul.f32 %v2971_v51, %v3911_v60  ;;  %v3912_v1 = vld [vmem:[#allocation18_spill] sm:$0xff]  ;;  %v3272_v4 = vmul.f32 %v2971_v51, %v3007_v9  ;;  %v3280_v36 = vmul.f32 %v2971_v51, %v3019_v57  ;;  %v3292_v9 = vadd.f32 %v3248_v8, %v3031_v54 }
 0x1ce   :  { %3910 = vst [vmem:[#allocation27_spill] sm:$0xff] %v3219_v23  ;;  %v3235_v41 = vmul.f32 %v2971_v51, %v3912_v1  ;;  %v3913_v23 = vld [vmem:[#allocation22_spill] sm:$0xff]  ;;  %v3256_v1 = vmul.f32 %v2971_v51, %v2983_v21  ;;  %v3276_v21 = vmul.f32 %v2971_v51, %v3013_v48  ;;  %v3296_v48 = vadd.f32 %v3248_v8, %v3035_v49 }
 0x1cf   :  { %v3243_v60 = vmul.f32 %v2971_v51, %v3913_v23  ;;  %v3264_v23 = vmul.f32 %v2971_v51, %v2995_v14  ;;  %v3284_v14 = vadd.f32 %v3248_v8, %v3023_v34  ;;  %3917 = vst [vmem:[#allocation11_spill] sm:$0xff] %v3292_v9  ;;  %v3304_v57 = vadd.f32 %v3248_v8, %v3043_v52 }
 0x1d0   :  { %3918 = vst [vmem:[#allocation10_spill] sm:$0xff] %v3296_v48  ;;  %v3308_v34 = vadd.f32 %v3248_v8, %v3047_v38  ;;  %v3316_v54 = vadd.f32 %v3248_v8, %v3055_v18  ;;  %v3320_v49 = vadd.f32 %v3248_v8, %v3059_v53  ;;  %v3328_v52 = vadd.f32 %v3248_v8, %v3067_v46 }
 0x1d1   :  { %3914 = vst [vmem:[#allocation29_spill] sm:$0xff] %v3243_v60  ;;  %v3268_v60 = vmul.f32 %v2971_v51, %v3001_v27  ;;  %3915 = vst [vmem:[#allocation13_spill] sm:$0xff] %v3284_v14  ;;  %v3288_v27 = vadd.f32 %v3248_v8, %v3027_v25  ;;  %v3300_v51 = vadd.f32 %v3248_v8, %v3039_v6 }
 0x1d2   :  { %v3312_v25 = vadd.f32 %v3248_v8, %v3051_v28  ;;  %v3324_v6 = vadd.f32 %v3248_v8, %v3063_v42  ;;  %v3332_v38 = vadd.f32 %v3248_v8, %v3071_v40  ;;  %v3336_v28 = vadd.f32 %v3248_v8, %v3075_v44 }
 0x1d3   :  { %3916 = vst [vmem:[#allocation16_spill] sm:$0xff] %v3288_v27  ;;  %3919 = vst [vmem:[#allocation5_spill] sm:$0xff] %v3300_v51  ;;  %v3340_v18 = vadd.f32 %v3248_v8, %v3079_v59  ;;  %v3344_v53 = vadd.f32 %v3248_v8, %v3083_v2  ;;  %v3348_v42 = vadd.f32 %v3248_v8, %v3087_v56 }
 0x1d4   :  { %v3352_v46 = vadd.f32 %v3248_v8, %v3091_v15  ;;  %v3356_v40 = vadd.f32 %v3248_v8, %v3095_v12  ;;  %v3360_v44 = vadd.f32 %v3248_v8, %v3099_v20  ;;  %v3364_v59 = vadd.f32 %v3248_v8, %v3103_v35 }
 0x1d5   :  { %v3368_v2 = vadd.f32 %v3248_v8, %v3107_v50  ;;  %v3372_v56 = vadd.f32 %v3248_v8, %v3111_v61  ;;  %v3376_v15 = vadd.f32 %v3248_v8, %v3115_v19  ;;  %v3380_v12 = vadd.f32 %v3248_v8, %v3119_v10 }
 0x1d6   :  { %v3384_v20 = vadd.f32 %v3248_v8, %v3123_v31  ;;  %v3388_v35 = vadd.f32 %v3248_v8, %v3127_v13  ;;  %v3392_v50 = vadd.f32 %v3248_v8, %v3131_v37  ;;  %v3396_v61 = vadd.f32 %v3248_v8, %v3135_v17 }
 0x1d7   :  { %v3400_v19 = vadd.f32 %v3248_v8, %v3139_v63  ;;  %v3404_v10 = vadd.f32 %v3248_v8, %v3143_v39  ;;  %v3408_v31 = vadd.f32 %v3248_v8, %v3147_v29  ;;  %v3412_v13 = vadd.f32 %v3248_v8, %v3151_v7 }
 0x1d8   :  { %v3416_v37 = vadd.f32 %v3248_v8, %v3155_v26  ;;  %v3420_v17 = vadd.f32 %v3248_v8, %v3159_v5  ;;  %v3424_v63 = vadd.f32 %v3248_v8, %v3163_v55  ;;  %v3428_v39 = vadd.f32 %v3248_v8, %v3167_v30  ;;  %v3923_v55 = vld [vmem:[#allocation26_spill] sm:$0xff] }
 0x1d9   :  { %v3432_v29 = vadd.f32 %v3248_v8, %v3171_v11  ;;  %v3436_v7 = vadd.f32 %v3248_v8, %v3175_v62  ;;  %v3440_v26 = vadd.f32 %v3248_v8, %v3179_v24  ;;  %v3444_v5 = vadd.f32 %v3248_v8, %v3183_v43 }
 0x1da   :  { %3920 = vst [vmem:[#allocation8_spill] sm:$0xff] %v3428_v39  ;;  %v3448_v30 = vadd.f32 %v3248_v8, %v3923_v55  ;;  %v3925_v39 = vld [vmem:[#allocation28_spill] sm:$0xff]  ;;  %v3464_v43 = vadd.f32 %v3248_v8, %v3203_v3  ;;  %v3468_v55 = vadd.f32 %v3248_v8, %v3207_v58  ;;  %v3484_v3 = vadd.f32 %v3248_v8, %v3223_v0 }
 0x1db   :  { %3921 = vst [vmem:[#allocation14_spill] sm:$0xff] %v3432_v29  ;;  %3922 = vst [vmem:[#allocation17_spill] sm:$0xff] %v3436_v7  ;;  %v3452_v11 = vadd.f32 %v3248_v8, %v3925_v39  ;;  %v3926_v29 = vld [vmem:[#allocation25_spill] sm:$0xff]  ;;  %v3928_v7 = vld [vmem:[#allocation19_spill] sm:$0xff]  ;;  %v3488_v58 = vadd.f32 %v3248_v8, %v3227_v22  ;;  %v3508_v22 = vadd.f32 %v3248_v8, %v3252_v32 }
 0x1dc   :  { %3924 = vst [vmem:[#allocation12_spill] sm:$0xff] %v3448_v30  ;;  %v3456_v62 = vadd.f32 %v3248_v8, %v3926_v29  ;;  %v3460_v24 = vadd.f32 %v3248_v8, %v3928_v7  ;;  %v3929_v30 = vld [vmem:[#allocation23_spill] sm:$0xff]  ;;  %v3476_v29 = vadd.f32 %v3248_v8, %v3215_v16  ;;  %v3496_v16 = vadd.f32 %v3248_v8, %v3235_v41 }
 0x1dd   :  { %v3472_v39 = vadd.f32 %v3248_v8, %v3929_v30  ;;  %v3492_v30 = vadd.f32 %v3248_v8, %v3231_v47  ;;  %v3512_v47 = vadd.f32 %v3248_v8, %v3256_v1  ;;  %v3516_v41 = vadd.f32 %v3248_v8, %v3260_v33 }
 0x1de   :  { %3927 = vst [vmem:[#allocation21_spill] sm:$0xff] %v3456_v62  ;;  %v3930_v62 = vld [vmem:[#allocation27_spill] sm:$0xff]  ;;  %v3528_v32 = vadd.f32 %v3248_v8, %v3272_v4  ;;  %v3532_v1 = vadd.f32 %v3248_v8, %v3276_v21  ;;  %v3536_v33 = vadd.f32 %v3248_v8, %v3280_v36  ;;  %v1111_v4 = vmax.f32 %v3304_v57, 0.0 }
 0x1df   :  { %v3480_v7 = vadd.f32 %v3248_v8, %v3930_v62  ;;  %v3500_v62 = vadd.f32 %v3248_v8, %v3239_v45  ;;  %3933 = vst [vmem:[#allocation6_spill] sm:$0xff] %v3516_v41  ;;  %v3520_v45 = vadd.f32 %v3248_v8, %v3264_v23  ;;  %v1113_v21 = vmax.f32 %v3312_v25, 0.0 }
 0x1e0   :  { %3936 = vst [vmem:[#allocation7_spill] sm:$0xff] %v3528_v32  ;;  %3937 = vst [vmem:[#allocation15_spill] sm:$0xff] %v3532_v1  ;;  %v1112_v32 = vmax.f32 %v3308_v34, 0.0  ;;  %v1114_v1 = vmax.f32 %v3316_v54, 0.0  ;;  %v1116_v36 = vmax.f32 %v3324_v6, 0.0  ;;  %v1117_v23 = vmax.f32 %v3328_v52, 0.0 }
 0x1e1   :  { %3931 = vst [vmem:[#allocation3_spill] sm:$0xff] %v3480_v7  ;;  %v3932_v7 = vld [vmem:[#allocation29_spill] sm:$0xff]  ;;  %3934 = vst [vmem:[#allocation9_spill] sm:$0xff] %v3520_v45  ;;  %v1118_v45 = vmax.f32 %v3332_v38, 0.0  ;;  %v1121_v57 = vmax.f32 %v3344_v53, 0.0  ;;  %v1122_v34 = vmax.f32 %v3348_v42, 0.0 }
 0x1e2   :  { %v3504_v0 = vadd.f32 %v3248_v8, %v3932_v7  ;;  %v3524_v7 = vadd.f32 %v3248_v8, %v3268_v60  ;;  %3938 = vst [vmem:[#allocation20_spill] sm:$0xff] %v3536_v33  ;;  %v1115_v8 = vmax.f32 %v3320_v49, 0.0  ;;  %v1119_v60 = vmax.f32 %v3336_v28, 0.0  ;;  %v3939_v41 = vld [vmem:[#allocation8_spill] sm:$0xff]  ;;  %v3940_v51 = vld [vmem:[#allocation14_spill] sm:$0xff]  ;;  %v3941_v48 = vld [vmem:[#allocation17_spill] sm:$0xff] }
 0x1e3   :  { %v1123_v25 = vmax.f32 %v3352_v46, 0.0  ;;  %v1124_v54 = vmax.f32 %v3356_v40, 0.0  ;;  %v1125_v49 = vmax.f32 %v3360_v44, 0.0  ;;  %v1126_v6 = vmax.f32 %v3364_v59, 0.0  ;;  %v3942_v9 = vld [vmem:[#allocation12_spill] sm:$0xff] }
 0x1e4   :  { %3935 = vst [vmem:[#allocation4_spill] sm:$0xff] %v3524_v7  ;;  %v1120_v7 = vmax.f32 %v3340_v18, 0.0  ;;  %v1127_v52 = vmax.f32 %v3368_v2, 0.0  ;;  %v1128_v38 = vmax.f32 %v3372_v56, 0.0  ;;  %v1129_v28 = vmax.f32 %v3376_v15, 0.0 }
 0x1e5   :  { %v1130_v18 = vmax.f32 %v3380_v12, 0.0  ;;  %v1131_v53 = vmax.f32 %v3384_v20, 0.0  ;;  %v1132_v42 = vmax.f32 %v3388_v35, 0.0  ;;  %v1133_v46 = vmax.f32 %v3392_v50, 0.0  ;;  %v3943_v27 = vld [vmem:[#allocation21_spill] sm:$0xff] }
 0x1e6   :  { %v1134_v40 = vmax.f32 %v3396_v61, 0.0  ;;  %v1135_v44 = vmax.f32 %v3400_v19, 0.0  ;;  %v1136_v59 = vmax.f32 %v3404_v10, 0.0  ;;  %v1137_v2 = vmax.f32 %v3408_v31, 0.0  ;;  %v3945_v33 = vld [vmem:[#allocation6_spill] sm:$0xff] }
 0x1e7   :  { %v1138_v56 = vmax.f32 %v3412_v13, 0.0  ;;  %v1139_v15 = vmax.f32 %v3416_v37, 0.0  ;;  %v1140_v12 = vmax.f32 %v3420_v17, 0.0  ;;  %v1141_v20 = vmax.f32 %v3424_v63, 0.0 }
 0x1e8   :  { %v1142_v35 = vmax.f32 %v3939_v41, 0.0  ;;  %v1143_v50 = vmax.f32 %v3940_v51, 0.0  ;;  %v1144_v61 = vmax.f32 %v3941_v48, 0.0  ;;  %v1145_v19 = vmax.f32 %v3440_v26, 0.0  ;;  %v3944_v14 = vld [vmem:[#allocation3_spill] sm:$0xff] }
 0x1e9   :  { %v1146_v10 = vmax.f32 %v3444_v5, 0.0  ;;  %v1147_v31 = vmax.f32 %v3942_v9, 0.0  ;;  %v1148_v13 = vmax.f32 %v3452_v11, 0.0  ;;  %v1149_v37 = vmax.f32 %v3943_v27, 0.0 }
 0x1ea   :  { %v1150_v17 = vmax.f32 %v3460_v24, 0.0  ;;  %v1151_v63 = vmax.f32 %v3464_v43, 0.0  ;;  %v1152_v41 = vmax.f32 %v3468_v55, 0.0  ;;  %v1153_v51 = vmax.f32 %v3472_v39, 0.0 }
 0x1eb   :  { %v1154_v48 = vmax.f32 %v3476_v29, 0.0  ;;  %v1155_v26 = vmax.f32 %v3944_v14, 0.0  ;;  %v1156_v5 = vmax.f32 %v3484_v3, 0.0  ;;  %v1157_v9 = vmax.f32 %v3488_v58, 0.0  ;;  %v3946_v14 = vld [vmem:[#allocation9_spill] sm:$0xff]  ;;  %v3947_v58 = vld [vmem:[#allocation4_spill] sm:$0xff] }
 0x1ec   :  { %v1158_v11 = vmax.f32 %v3492_v30, 0.0  ;;  %v1159_v27 = vmax.f32 %v3496_v16, 0.0  ;;  %v1160_v24 = vmax.f32 %v3500_v62, 0.0  ;;  %v1161_v43 = vmax.f32 %v3504_v0, 0.0  ;;  %v3948_v16 = vld [vmem:[#allocation7_spill] sm:$0xff] }
 0x1ed   :  { %v1162_v55 = vmax.f32 %v3508_v22, 0.0  ;;  %v1163_v39 = vmax.f32 %v3512_v47, 0.0  ;;  %v1164_v29 = vmax.f32 %v3945_v33, 0.0  ;;  %v1165_v3 = vmax.f32 %v3946_v14, 0.0  ;;  %v3949_v0 = vld [vmem:[#allocation15_spill] sm:$0xff]  ;;  %v3950_v47 = vld [vmem:[#allocation20_spill] sm:$0xff] }
 0x1ee   :  { %v1166_v30 = vmax.f32 %v3947_v58, 0.0  ;;  %v1167_v62 = vmax.f32 %v3948_v16, 0.0  ;;  %v1168_v22 = vmax.f32 %v3949_v0, 0.0  ;;  %v1169_v33 = vmax.f32 %v3950_v47, 0.0  ;;  %v3951_v14 = vld [vmem:[#allocation13_spill] sm:$0xff]  ;;  %v3953_v16 = vld [vmem:[#allocation16_spill] sm:$0xff] }
 0x1ef   :  { %v3952_v58 = vmax.f32 %v3951_v14, 0.0  ;;  %v3954_v0 = vmax.f32 %v3953_v16, 0.0  ;;  %v3955_v14 = vld [vmem:[#allocation11_spill] sm:$0xff] }
 0x1f0   :  { %v3956_v16 = vmax.f32 %v3955_v14, 0.0 }
 0x1f1   :  { %v1667_v47 = vpack.c.bf16 %v3954_v0, %v3952_v58  ;;  %v3957_v0 = vld [vmem:[#allocation10_spill] sm:$0xff] }
 0x1f2   :  { %v3958_v58 = vmax.f32 %v3957_v0, 0.0  ;;  %v3959_v0 = vld [vmem:[#allocation5_spill] sm:$0xff] }
 0x1f3   :  { %1668 = vst [vmem:[%s3712_s4] sm:$0xff] %v1667_v47  }
 0x1f4   :  { %v1672_v14 = vpack.c.bf16 %v3958_v58, %v3956_v16  ;;  %v3960_v16 = vmax.f32 %v3959_v0, 0.0  ;;  %v1682_v0 = vpack.c.bf16 %v1113_v21, %v1112_v32  ;;  %v1697_v21 = vpack.c.bf16 %v1119_v60, %v1118_v45 }
 0x1f5   :  { %v1702_v32 = vpack.c.bf16 %v1121_v57, %v1120_v7  ;;  %v1717_v45 = vpack.c.bf16 %v1127_v52, %v1126_v6  ;;  %v1722_v7 = vpack.c.bf16 %v1129_v28, %v1128_v38  ;;  %v1727_v60 = vpack.c.bf16 %v1131_v53, %v1130_v18 }
 0x1f6   :  { %v1677_v58 = vpack.c.bf16 %v1111_v4, %v3960_v16  ;;  %v1687_v4 = vpack.c.bf16 %v1115_v8, %v1114_v1  ;;  %v1692_v16 = vpack.c.bf16 %v1117_v23, %v1116_v36  ;;  %1824 = vst [vmem:[%s3712_s4 + $0x8] sm:$0xff] %v1672_v14   ;;  %1826 = vst [vmem:[%s3712_s4 + $0x18] sm:$0xff] %v1682_v0  }
 0x1f7   :  { %v1707_v1 = vpack.c.bf16 %v1123_v25, %v1122_v34  ;;  %v1712_v23 = vpack.c.bf16 %v1125_v49, %v1124_v54  ;;  %1829 = vst [vmem:[%s3712_s4 + $0x30] sm:$0xff] %v1697_v21   ;;  %1830 = vst [vmem:[%s3712_s4 + $0x38] sm:$0xff] %v1702_v32   ;;  %v1732_v8 = vpack.c.bf16 %v1133_v46, %v1132_v42 }
 0x1f8   :  { %1825 = vst [vmem:[%s3712_s4 + $0x10] sm:$0xff] %v1677_v58   ;;  %1827 = vst [vmem:[%s3712_s4 + $0x20] sm:$0xff] %v1687_v4   ;;  %v1737_v36 = vpack.c.bf16 %v1135_v44, %v1134_v40  ;;  %v1742_v57 = vpack.c.bf16 %v1137_v2, %v1136_v59  ;;  %v1747_v34 = vpack.c.bf16 %v1139_v15, %v1138_v56 }
 0x1f9   :  { %1828 = vst [vmem:[%s3712_s4 + $0x28] sm:$0xff] %v1692_v16   ;;  %1831 = vst [vmem:[%s3712_s4 + $0x40] sm:$0xff] %v1707_v1   ;;  %v1752_v25 = vpack.c.bf16 %v1141_v20, %v1140_v12  ;;  %v1757_v54 = vpack.c.bf16 %v1143_v50, %v1142_v35  ;;  %v1762_v49 = vpack.c.bf16 %v1145_v19, %v1144_v61 }
 0x1fa   :  { %1832 = vst [vmem:[%s3712_s4 + $0x48] sm:$0xff] %v1712_v23   ;;  %1833 = vst [vmem:[%s3712_s4 + $0x50] sm:$0xff] %v1717_v45   ;;  %v1767_v6 = vpack.c.bf16 %v1147_v31, %v1146_v10  ;;  %v1772_v52 = vpack.c.bf16 %v1149_v37, %v1148_v13  ;;  %v1777_v38 = vpack.c.bf16 %v1151_v63, %v1150_v17 }
 0x1fb   :  { %1834 = vst [vmem:[%s3712_s4 + $0x58] sm:$0xff] %v1722_v7   ;;  %1835 = vst [vmem:[%s3712_s4 + $0x60] sm:$0xff] %v1727_v60   ;;  %v1782_v28 = vpack.c.bf16 %v1153_v51, %v1152_v41  ;;  %v1787_v18 = vpack.c.bf16 %v1155_v26, %v1154_v48  ;;  %v1792_v53 = vpack.c.bf16 %v1157_v9, %v1156_v5 }
 0x1fc   :  { %1836 = vst [vmem:[%s3712_s4 + $0x68] sm:$0xff] %v1732_v8   ;;  %1837 = vst [vmem:[%s3712_s4 + $0x70] sm:$0xff] %v1737_v36   ;;  %v1797_v42 = vpack.c.bf16 %v1159_v27, %v1158_v11  ;;  %v1802_v46 = vpack.c.bf16 %v1161_v43, %v1160_v24  ;;  %v1807_v40 = vpack.c.bf16 %v1163_v39, %v1162_v55 }
 0x1fd   :  { %1838 = vst [vmem:[%s3712_s4 + $0x78] sm:$0xff] %v1742_v57   ;;  %1839 = vst [vmem:[%s3712_s4 + $0x80] sm:$0xff] %v1747_v34   ;;  %v1812_v44 = vpack.c.bf16 %v1165_v3, %v1164_v29  ;;  %v1817_v59 = vpack.c.bf16 %v1167_v62, %v1166_v30  ;;  %v1822_v2 = vpack.c.bf16 %v1169_v33, %v1168_v22 }
 0x1fe   :  { %1840 = vst [vmem:[%s3712_s4 + $0x88] sm:$0xff] %v1752_v25   ;;  %1841 = vst [vmem:[%s3712_s4 + $0x90] sm:$0xff] %v1757_v54  }
 0x1ff   :  { %1842 = vst [vmem:[%s3712_s4 + $0x98] sm:$0xff] %v1762_v49   ;;  %1843 = vst [vmem:[%s3712_s4 + $0xa0] sm:$0xff] %v1767_v6  }
 0x200   :  { %1844 = vst [vmem:[%s3712_s4 + $0xa8] sm:$0xff] %v1772_v52   ;;  %1845 = vst [vmem:[%s3712_s4 + $0xb0] sm:$0xff] %v1777_v38  }
 0x201   :  { %1846 = vst [vmem:[%s3712_s4 + $0xb8] sm:$0xff] %v1782_v28   ;;  %1847 = vst [vmem:[%s3712_s4 + $0xc0] sm:$0xff] %v1787_v18  }
 0x202   :  { %1848 = vst [vmem:[%s3712_s4 + $0xc8] sm:$0xff] %v1792_v53   ;;  %1849 = vst [vmem:[%s3712_s4 + $0xd0] sm:$0xff] %v1797_v42  }
 0x203   :  { %1850 = vst [vmem:[%s3712_s4 + $0xd8] sm:$0xff] %v1802_v46   ;;  %1851 = vst [vmem:[%s3712_s4 + $0xe0] sm:$0xff] %v1807_v40  }
 0x204   :  { %1852 = vst [vmem:[%s3712_s4 + $0xe8] sm:$0xff] %v1812_v44   ;;  %1853 = vst [vmem:[%s3712_s4 + $0xf0] sm:$0xff] %v1817_v59  }
 0x205   :  { %1854 = vst [vmem:[%s3712_s4 + $0xf8] sm:$0xff] %v1822_v2  }

// kernel: _lambda_.14
= control target key start
LH: loop header
LB: loop body
LE: loop exit
PB: predicated region body
PF: predicated region fallthrough
CT: control target
= control target key end

     0   :  { %s1994_s1 = inlined_call_operand.vmem [shape: bf16[640,128], index: 1, kind: input, shape index: {}]   ;;  %s1995_s0 = inlined_call_operand.vmem [shape: bf16[128,640], index: 0, kind: input, shape index: {}]   ;;  %s1996_s2 = inlined_call_operand.vmem [shape: f32[1,128], index: 2, kind: input, shape index: {}]   ;;  %s1997_s3 = inlined_call_operand.vmem [shape: f32[1,128], index: 3, kind: input, shape index: {}]   ;;  %s1998_s4 = inlined_call_operand.vmem [shape: bf16[128,128], index: 4, kind: output, shape index: {}]  }
   0x1   :  { %v1481_v0 = vld [vmem:[%s1994_s1 + $0x40] sm:$0xff]   ;;  %v1485_v4 = vld [vmem:[%s1994_s1 + $0x48] sm:$0xff]   ;;  %v1489_v8 = vld [vmem:[%s1994_s1 + $0x50] sm:$0xff]  }
   0x2   :  { %v1482_v1 = vld [vmem:[%s1994_s1 + $0xc0] sm:$0xff]   ;;  %1289 = vmatprep.subr.bf16.mxu0 %v1481_v0  ;;  %v1486_v5 = vld [vmem:[%s1994_s1 + $0xc8] sm:$0xff]   ;;  %v1490_v9 = vld [vmem:[%s1994_s1 + $0xd0] sm:$0xff]  }
   0x3   :  { %v1483_v2 = vld [vmem:[%s1994_s1] sm:$0xff]   ;;  %1353 = vmatprep.subr.bf16.mxu1 %v1482_v1  ;;  %v1487_v6 = vld [vmem:[%s1994_s1 + $0x8] sm:$0xff]   ;;  %v1491_v10 = vld [vmem:[%s1994_s1 + $0x10] sm:$0xff]  }
   0x4   :  { %v1484_v3 = vld [vmem:[%s1994_s1 + $0x80] sm:$0xff]   ;;  %1290 = vmatpush3.bf16.msra.mxu0 %v1483_v2  ;;  %v1488_v7 = vld [vmem:[%s1994_s1 + $0x88] sm:$0xff]   ;;  %v1492_v11 = vld [vmem:[%s1994_s1 + $0x90] sm:$0xff]  }
   0x5   :  { %1354 = vmatpush3.bf16.msra.mxu1 %v1484_v3  ;;  %1291 = vmatprep.subr.bf16.mxu0 %v1485_v4  ;;  %v1493_v12 = vld [vmem:[%s1994_s1 + $0x58] sm:$0xff]   ;;  %v1497_v16 = vld [vmem:[%s1994_s1 + $0x60] sm:$0xff]   ;;  %v1501_v20 = vld [vmem:[%s1994_s1 + $0x68] sm:$0xff]  }
   0x6   :  { %1355 = vmatprep.subr.bf16.mxu1 %v1486_v5  ;;  %v1494_v13 = vld [vmem:[%s1994_s1 + $0xd8] sm:$0xff]   ;;  %v1498_v17 = vld [vmem:[%s1994_s1 + $0xe0] sm:$0xff]   ;;  %v1502_v21 = vld [vmem:[%s1994_s1 + $0xe8] sm:$0xff]  }
   0x7   :  { %v1495_v14 = vld [vmem:[%s1994_s1 + $0x18] sm:$0xff]   ;;  %v1499_v18 = vld [vmem:[%s1994_s1 + $0x20] sm:$0xff]   ;;  %v1503_v22 = vld [vmem:[%s1994_s1 + $0x28] sm:$0xff]  }
   0x8   :  { %1292 = vmatpush3.bf16.msra.mxu0 %v1487_v6  ;;  %v1496_v15 = vld [vmem:[%s1994_s1 + $0x98] sm:$0xff]   ;;  %v1500_v19 = vld [vmem:[%s1994_s1 + $0xa0] sm:$0xff]   ;;  %v1504_v23 = vld [vmem:[%s1994_s1 + $0xa8] sm:$0xff]  }
   0x9   :  { %1356 = vmatpush3.bf16.msra.mxu1 %v1488_v7  ;;  %1293 = vmatprep.subr.bf16.mxu0 %v1489_v8  ;;  %v1505_v24 = vld [vmem:[%s1994_s1 + $0x70] sm:$0xff]   ;;  %v1509_v28 = vld [vmem:[%s1994_s1 + $0x78] sm:$0xff]   ;;  %v1518_v35 = vld [vmem:[%s1995_s0 + $0xc] ss:$20 sps:$4 sm:$0xff]  }
   0xa   :  { %1357 = vmatprep.subr.bf16.mxu1 %v1490_v9  ;;  %v1506_v25 = vld [vmem:[%s1994_s1 + $0xf0] sm:$0xff]   ;;  %v1510_v29 = vld [vmem:[%s1994_s1 + $0xf8] sm:$0xff]   ;;  %v1519_v36 = vld [vmem:[%s1994_s1 + $0x100] sm:$0xff]   ;;  %723 = vmatprep.mubr.bf16.mxu1 %v1518_v35 }
   0xb   :  { %v1507_v26 = vld [vmem:[%s1994_s1 + $0x30] sm:$0xff]   ;;  %v1511_v30 = vld [vmem:[%s1994_s1 + $0x38] sm:$0xff]   ;;  %v1520_v37 = vld [vmem:[%s1995_s0 + $0x2c] ss:$20 sps:$4 sm:$0xff]  }
   0xc   :  { %1294 = vmatpush3.bf16.msra.mxu0 %v1491_v10  ;;  %v1508_v27 = vld [vmem:[%s1994_s1 + $0xb0] sm:$0xff]   ;;  %v1512_v31 = vld [vmem:[%s1994_s1 + $0xb8] sm:$0xff]   ;;  %v1526_v39 = vld [vmem:[%s1994_s1 + $0x108] sm:$0xff]  }
   0xd   :  { %1358 = vmatpush3.bf16.msra.mxu1 %v1492_v11  ;;  %1295 = vmatprep.subr.bf16.mxu0 %v1493_v12  ;;  %v1513_v32 = vld [vmem:[%s1995_s0] ss:$20 sps:$4 sm:$0xff]   ;;  %v1515_v33 = vld [vmem:[%s1995_s0 + $0x4] ss:$20 sps:$4 sm:$0xff]   ;;  %v1516_v34 = vld [vmem:[%s1995_s0 + $0x8] ss:$20 sps:$4 sm:$0xff]  }
   0xe   :  { %1359 = vmatprep.subr.bf16.mxu1 %v1494_v13  ;;  %626 = vmatprep.mubr.bf16.mxu0 %v1515_v33  ;;  %v1522_v38 = vld [vmem:[%s1995_s0 + $0x34] ss:$20 sps:$4 sm:$0xff]   ;;  %v1525_v41 = vld [vmem:[%s1995_s0 + $0x30] ss:$20 sps:$4 sm:$0xff]   ;;  %v1540_v45 = vld [vmem:[%s1994_s1 + $0x118] sm:$0xff]  }
   0xf   :  { %v1524_v40 = vld [vmem:[%s1995_s0 + $0x28] ss:$20 sps:$4 sm:$0xff]   ;;  %v1533_v44 = vld [vmem:[%s1994_s1 + $0x110] sm:$0xff]   ;;  %v1532_v47 = vld [vmem:[%s1995_s0 + $0x58] ss:$20 sps:$4 sm:$0xff]  }
  0x10   :  { %1296 = vmatpush3.bf16.msra.mxu0 %v1495_v14  ;;  %v1527_v42 = vld [vmem:[%s1995_s0 + $0x54] ss:$20 sps:$4 sm:$0xff]   ;;  %v1529_v43 = vld [vmem:[%s1995_s0 + $0x5c] ss:$20 sps:$4 sm:$0xff]   ;;  %v1536_v49 = vld [vmem:[%s1995_s0 + $0x84] ss:$20 sps:$4 sm:$0xff]  }
  0x11   :  { %1360 = vmatpush3.bf16.msra.mxu1 %v1496_v15  ;;  %1297 = vmatprep.subr.bf16.mxu0 %v1497_v16  ;;  %v1531_v46 = vld [vmem:[%s1995_s0 + $0x50] ss:$20 sps:$4 sm:$0xff]   ;;  %v1554_v51 = vld [vmem:[%s1994_s1 + $0x128] sm:$0xff]   ;;  %v1539_v53 = vld [vmem:[%s1995_s0 + $0x80] ss:$20 sps:$4 sm:$0xff]  }
  0x12   :  { %1361 = vmatprep.subr.bf16.mxu1 %v1498_v17  ;;  %v1534_v48 = vld [vmem:[%s1995_s0 + $0x7c] ss:$20 sps:$4 sm:$0xff]   ;;  %v1547_v50 = vld [vmem:[%s1994_s1 + $0x120] sm:$0xff]   ;;  %v1538_v52 = vld [vmem:[%s1995_s0 + $0x78] ss:$20 sps:$4 sm:$0xff]  }
  0x13   :  { %v1541_v54 = vld [vmem:[%s1995_s0 + $0xa4] ss:$20 sps:$4 sm:$0xff]   ;;  %v1561_v55 = vld [vmem:[%s1994_s1 + $0x130] sm:$0xff]   ;;  %v1543_v56 = vld [vmem:[%s1995_s0 + $0xac] ss:$20 sps:$4 sm:$0xff]  }
  0x14   :  { %1298 = vmatpush3.bf16.msra.mxu0 %v1499_v18  ;;  %v1568_v57 = vld [vmem:[%s1994_s1 + $0x138] sm:$0xff]   ;;  %v1545_v58 = vld [vmem:[%s1995_s0 + $0xa0] ss:$20 sps:$4 sm:$0xff]   ;;  %v1553_v63 = vld [vmem:[%s1995_s0 + $0xd0] ss:$20 sps:$4 sm:$0xff]  }
  0x15   :  { %1362 = vmatpush3.bf16.msra.mxu1 %v1500_v19  ;;  %1299 = vmatprep.subr.bf16.mxu0 %v1501_v20  ;;  %v1546_v59 = vld [vmem:[%s1995_s0 + $0xa8] ss:$20 sps:$4 sm:$0xff]   ;;  %v1548_v60 = vld [vmem:[%s1995_s0 + $0xcc] ss:$20 sps:$4 sm:$0xff]   ;;  %v1559_v2 = vld [vmem:[%s1995_s0 + $0xf0] ss:$20 sps:$4 sm:$0xff]  }
  0x16   :  { %1363 = vmatprep.subr.bf16.mxu1 %v1502_v21  ;;  %v1550_v61 = vld [vmem:[%s1995_s0 + $0xd4] ss:$20 sps:$4 sm:$0xff]   ;;  %v1557_v1 = vld [vmem:[%s1995_s0 + $0xfc] ss:$20 sps:$4 sm:$0xff]   ;;  %v1560_v3 = vld [vmem:[%s1995_s0 + $0xf8] ss:$20 sps:$4 sm:$0xff]  }
  0x17   :  { %v1552_v62 = vld [vmem:[%s1995_s0 + $0xc8] ss:$20 sps:$4 sm:$0xff]   ;;  %v1564_v5 = vld [vmem:[%s1995_s0 + $0x124] ss:$20 sps:$4 sm:$0xff]   ;;  %v1567_v7 = vld [vmem:[%s1995_s0 + $0x120] ss:$20 sps:$4 sm:$0xff]  }
  0x18   :  { %1300 = vmatpush3.bf16.msra.mxu0 %v1503_v22  ;;  %v1555_v0 = vld [vmem:[%s1995_s0 + $0xf4] ss:$20 sps:$4 sm:$0xff]   ;;  %v1562_v4 = vld [vmem:[%s1995_s0 + $0x11c] ss:$20 sps:$4 sm:$0xff]   ;;  %v1566_v6 = vld [vmem:[%s1995_s0 + $0x118] ss:$20 sps:$4 sm:$0xff]  }
  0x19   :  { %1364 = vmatpush3.bf16.msra.mxu1 %v1504_v23  ;;  %1301 = vmatprep.subr.bf16.mxu0 %v1505_v24  ;;  %v1569_v8 = vld [vmem:[%s1995_s0 + $0x10] ss:$20 sps:$4 sm:$0xff]   ;;  %v1571_v10 = vld [vmem:[%s1995_s0 + $0x38] ss:$20 sps:$4 sm:$0xff]   ;;  %v1573_v12 = vld [vmem:[%s1995_s0 + $0x60] ss:$20 sps:$4 sm:$0xff]  }
  0x1a   :  { %1365 = vmatprep.subr.bf16.mxu1 %v1506_v25  ;;  %v1570_v9 = vld [vmem:[%s1995_s0 + $0xb0] ss:$20 sps:$4 sm:$0xff]   ;;  %v1572_v11 = vld [vmem:[%s1995_s0 + $0xd8] ss:$20 sps:$4 sm:$0xff]   ;;  %v1574_v13 = vld [vmem:[%s1995_s0 + $0x100] ss:$20 sps:$4 sm:$0xff]  }
  0x1b   :  { %v1575_v14 = vld [vmem:[%s1995_s0 + $0x88] ss:$20 sps:$4 sm:$0xff]  }
  0x1c   :  { %1302 = vmatpush3.bf16.msra.mxu0 %v1507_v26  ;;  %v1576_v15 = vld [vmem:[%s1995_s0 + $0x128] ss:$20 sps:$4 sm:$0xff]  }
  0x1d   :  { %1366 = vmatpush3.bf16.msra.mxu1 %v1508_v27  ;;  %1303 = vmatprep.subr.bf16.mxu0 %v1509_v28 }
  0x1e   :  { %1367 = vmatprep.subr.bf16.mxu1 %v1510_v29 }
  0x20   :  { %1304 = vmatpush3.bf16.msra.mxu0 %v1511_v30 }
  0x21   :  { %1368 = vmatpush3.bf16.msra.mxu1 %v1512_v31  ;;  %1433 = vmatprep.subr.bf16.mxu0 %v1519_v36 }
  0x22   :  { %1465 = vmatprep.subr.bf16.mxu1 %v1519_v36 }
  0x23   :  { %627 = vmatmul.mubr.bf16.vlgmr.msra.gmra.mrb[0].mxu0 %v1513_v32 }
  0x24   :  { %724 = vmatmul.mubr.bf16.vlgmr.msra.gmra.mrb[0].mxu1 %v1516_v34  ;;  %1434 = vmatpush3.bf16.msra.mxu0 %v1519_v36 }
  0x25   :  { %634 = vmatprep.mubr.bf16.mxu0 %v1520_v37  ;;  %731 = vmatprep.mubr.bf16.mxu1 %v1522_v38 }
  0x26   :  { %1473 = vmatpush3.bf16.msra.mxu1 %v1519_v36  ;;  %1435 = vmatprep.subr.bf16.mxu0 %v1526_v39 }
  0x27   :  { %1466 = vmatprep.subr.bf16.mxu1 %v1526_v39 }
  0x28   :  { %1436 = vmatpush3.bf16.msra.mxu0 %v1526_v39 }
  0x29   :  { %1437 = vmatprep.subr.bf16.mxu0 %v1533_v44 }
  0x2a   :  { %1474 = vmatpush3.bf16.msra.mxu1 %v1526_v39 }
  0x2b   :  { %635 = vmatmul.mubr.bf16.gmra.mrb[4].mxu0 %v1524_v40  ;;  %1467 = vmatprep.subr.bf16.mxu1 %v1533_v44 }
  0x2c   :  { %732 = vmatmul.mubr.bf16.gmra.mrb[4].mxu1 %v1525_v41  ;;  %642 = vmatprep.mubr.bf16.mxu0 %v1527_v42 }
  0x2d   :  { %739 = vmatprep.mubr.bf16.mxu1 %v1529_v43  ;;  %1438 = vmatpush3.bf16.msra.mxu0 %v1533_v44 }
  0x2e   :  { %1439 = vmatprep.subr.bf16.mxu0 %v1540_v45  ;;  %1475 = vmatpush3.bf16.msra.mxu1 %v1533_v44 }
  0x2f   :  { %1468 = vmatprep.subr.bf16.mxu1 %v1540_v45 }
  0x31   :  { %1440 = vmatpush3.bf16.msra.mxu0 %v1540_v45 }
  0x32   :  { %1441 = vmatprep.subr.bf16.mxu0 %v1547_v50  ;;  %1476 = vmatpush3.bf16.msra.mxu1 %v1540_v45 }
  0x33   :  { %643 = vmatmul.mubr.bf16.gmra.mrb[8].mxu0 %v1531_v46  ;;  %1469 = vmatprep.subr.bf16.mxu1 %v1547_v50 }
  0x34   :  { %740 = vmatmul.mubr.bf16.gmra.mrb[8].mxu1 %v1532_v47  ;;  %650 = vmatprep.mubr.bf16.mxu0 %v1534_v48 }
  0x35   :  { %747 = vmatprep.mubr.bf16.mxu1 %v1536_v49  ;;  %1442 = vmatpush3.bf16.msra.mxu0 %v1547_v50 }
  0x36   :  { %1443 = vmatprep.subr.bf16.mxu0 %v1554_v51  ;;  %1477 = vmatpush3.bf16.msra.mxu1 %v1547_v50 }
  0x37   :  { %1470 = vmatprep.subr.bf16.mxu1 %v1554_v51 }
  0x39   :  { %1444 = vmatpush3.bf16.msra.mxu0 %v1554_v51 }
  0x3a   :  { %1445 = vmatprep.subr.bf16.mxu0 %v1561_v55  ;;  %1478 = vmatpush3.bf16.msra.mxu1 %v1554_v51 }
  0x3b   :  { %651 = vmatmul.mubr.bf16.gmra.mrb[12].mxu0 %v1538_v52  ;;  %1471 = vmatprep.subr.bf16.mxu1 %v1561_v55 }
  0x3c   :  { %748 = vmatmul.mubr.bf16.gmra.mrb[12].mxu1 %v1539_v53  ;;  %658 = vmatprep.mubr.bf16.mxu0 %v1541_v54 }
  0x3d   :  { %755 = vmatprep.mubr.bf16.mxu1 %v1543_v56  ;;  %1446 = vmatpush3.bf16.msra.mxu0 %v1561_v55 }
  0x3e   :  { %1447 = vmatprep.subr.bf16.mxu0 %v1568_v57  ;;  %1479 = vmatpush3.bf16.msra.mxu1 %v1561_v55 }
  0x3f   :  { %1472 = vmatprep.subr.bf16.mxu1 %v1568_v57 }
  0x41   :  { %1448 = vmatpush3.bf16.msra.mxu0 %v1568_v57 }
  0x42   :  { %1480 = vmatpush3.bf16.msra.mxu1 %v1568_v57 }
  0x43   :  { %659 = vmatmul.mubr.bf16.gmra.mrb[16].mxu0 %v1545_v58 }
  0x44   :  { %756 = vmatmul.mubr.bf16.gmra.mrb[16].mxu1 %v1546_v59  ;;  %666 = vmatprep.mubr.bf16.mxu0 %v1548_v60 }
  0x45   :  { %763 = vmatprep.mubr.bf16.mxu1 %v1550_v61 }
  0x4b   :  { %667 = vmatmul.mubr.bf16.gmra.mrb[20].mxu0 %v1552_v62 }
  0x4c   :  { %764 = vmatmul.mubr.bf16.gmra.mrb[20].mxu1 %v1553_v63  ;;  %674 = vmatprep.mubr.bf16.mxu0 %v1555_v0 }
  0x4d   :  { %771 = vmatprep.mubr.bf16.mxu1 %v1557_v1 }
  0x53   :  { %675 = vmatmul.mubr.bf16.gmra.mrb[24].mxu0 %v1559_v2 }
  0x54   :  { %772 = vmatmul.mubr.bf16.gmra.mrb[24].mxu1 %v1560_v3  ;;  %682 = vmatprep.mubr.bf16.mxu0 %v1562_v4 }
  0x55   :  { %779 = vmatprep.mubr.bf16.mxu1 %v1564_v5 }
  0x5b   :  { %683 = vmatmul.mubr.bf16.gmra.mrb[28].mxu0 %v1566_v6 }
  0x5c   :  { %780 = vmatmul.mubr.bf16.gmra.mrb[28].mxu1 %v1567_v7  ;;  %1449 = vmatprep.mubr.bf16.mxu0 %v1569_v8 }
  0x5d   :  { %1457 = vmatprep.mubr.bf16.mxu1 %v1570_v9 }
  0x63   :  { %1450 = vmatmul.mubr.bf16.vlgmr.msra.gmra.mrb[32].mxu0 %v1571_v10 }
  0x64   :  { %1458 = vmatmul.mubr.bf16.vlgmr.msra.gmra.mrb[32].mxu1 %v1572_v11  ;;  %1453 = vmatprep.mubr.bf16.mxu0 %v1573_v12 }
  0x65   :  { %1461 = vmatprep.mubr.bf16.mxu1 %v1574_v13 }
  0x6b   :  { %1454 = vmatmul.mubr.bf16.gmra.mrb[36].mxu0 %v1575_v14 }
  0x6c   :  { %1462 = vmatmul.mubr.bf16.gmra.mrb[36].mxu1 %v1576_v15 }
  0xf6   :  { %v1305_v16 = vpop.f32.mrb[0].mxu0 }
  0xf7   :  { %v1369_v17 = vpop.f32.mrb[0].mxu1  ;;  %v1306_v18 = vpop.f32.mrb[1].mxu0 }
  0xf8   :  { %v1307_v19 = vadd.f32 %v1306_v18, %v1305_v16  ;;  %v1370_v20 = vpop.f32.mrb[1].mxu1  ;;  %v1308_v21 = vpop.f32.mrb[2].mxu0 }
  0xf9   :  { %v1371_v22 = vadd.f32 %v1370_v20, %v1369_v17  ;;  %v1372_v23 = vpop.f32.mrb[2].mxu1  ;;  %v1309_v24 = vpop.f32.mrb[3].mxu0 }
  0xfa   :  { %v1310_v25 = vadd.f32 %v1309_v24, %v1308_v21  ;;  %v1373_v26 = vpop.f32.mrb[3].mxu1 }
  0xfb   :  { %v1374_v27 = vadd.f32 %v1373_v26, %v1372_v23  ;;  %v1844_v28 = vadd.f32 %v1371_v22, %v1307_v19 }
  0xfd   :  { %v1846_v29 = vadd.f32 %v1374_v27, %v1310_v25 }
  0xfe   :  { %v1311_v30 = vpop.f32.mrb[4].mxu0 }
  0xff   :  { %v1375_v31 = vpop.f32.mrb[4].mxu1  ;;  %v1312_v32 = vpop.f32.mrb[5].mxu0 }
 0x100   :  { %v1313_v33 = vadd.f32 %v1312_v32, %v1311_v30  ;;  %v1376_v34 = vpop.f32.mrb[5].mxu1  ;;  %v1314_v35 = vpop.f32.mrb[6].mxu0 }
 0x101   :  { %v1377_v36 = vadd.f32 %v1376_v34, %v1375_v31  ;;  %v1378_v37 = vpop.f32.mrb[6].mxu1  ;;  %v1315_v38 = vpop.f32.mrb[7].mxu0 }
 0x102   :  { %v1316_v39 = vadd.f32 %v1315_v38, %v1314_v35  ;;  %v1379_v40 = vpop.f32.mrb[7].mxu1 }
 0x103   :  { %v1380_v41 = vadd.f32 %v1379_v40, %v1378_v37  ;;  %v1848_v42 = vadd.f32 %v1377_v36, %v1313_v33 }
 0x105   :  { %v1850_v43 = vadd.f32 %v1380_v41, %v1316_v39 }
 0x106   :  { %v1317_v44 = vpop.f32.mrb[8].mxu0 }
 0x107   :  { %v1381_v45 = vpop.f32.mrb[8].mxu1  ;;  %v1318_v46 = vpop.f32.mrb[9].mxu0 }
 0x108   :  { %v1319_v47 = vadd.f32 %v1318_v46, %v1317_v44  ;;  %v1382_v48 = vpop.f32.mrb[9].mxu1  ;;  %v1320_v49 = vpop.f32.mrb[10].mxu0 }
 0x109   :  { %v1383_v50 = vadd.f32 %v1382_v48, %v1381_v45  ;;  %v1384_v51 = vpop.f32.mrb[10].mxu1  ;;  %v1321_v52 = vpop.f32.mrb[11].mxu0 }
 0x10a   :  { %v1322_v53 = vadd.f32 %v1321_v52, %v1320_v49  ;;  %v1385_v54 = vpop.f32.mrb[11].mxu1 }
 0x10b   :  { %v1386_v55 = vadd.f32 %v1385_v54, %v1384_v51  ;;  %v1852_v56 = vadd.f32 %v1383_v50, %v1319_v47 }
 0x10d   :  { %v1854_v57 = vadd.f32 %v1386_v55, %v1322_v53 }
 0x10e   :  { %v1323_v58 = vpop.f32.mrb[12].mxu0 }
 0x10f   :  { %v1387_v59 = vpop.f32.mrb[12].mxu1  ;;  %v1324_v60 = vpop.f32.mrb[13].mxu0 }
 0x110   :  { %v1325_v61 = vadd.f32 %v1324_v60, %v1323_v58  ;;  %v1388_v62 = vpop.f32.mrb[13].mxu1  ;;  %v1326_v63 = vpop.f32.mrb[14].mxu0 }
 0x111   :  { %v1389_v0 = vadd.f32 %v1388_v62, %v1387_v59  ;;  %v1390_v1 = vpop.f32.mrb[14].mxu1  ;;  %v1327_v2 = vpop.f32.mrb[15].mxu0 }
 0x112   :  { %v1328_v3 = vadd.f32 %v1327_v2, %v1326_v63  ;;  %v1391_v4 = vpop.f32.mrb[15].mxu1 }
 0x113   :  { %v1392_v5 = vadd.f32 %v1391_v4, %v1390_v1  ;;  %v1856_v6 = vadd.f32 %v1389_v0, %v1325_v61 }
 0x115   :  { %v1858_v7 = vadd.f32 %v1392_v5, %v1328_v3 }
 0x116   :  { %v1329_v8 = vpop.f32.mrb[16].mxu0 }
 0x117   :  { %v1393_v9 = vpop.f32.mrb[16].mxu1  ;;  %v1330_v10 = vpop.f32.mrb[17].mxu0 }
 0x118   :  { %v1331_v11 = vadd.f32 %v1330_v10, %v1329_v8  ;;  %v1394_v12 = vpop.f32.mrb[17].mxu1  ;;  %v1332_v13 = vpop.f32.mrb[18].mxu0 }
 0x119   :  { %v1395_v14 = vadd.f32 %v1394_v12, %v1393_v9  ;;  %v1396_v15 = vpop.f32.mrb[18].mxu1  ;;  %v1333_v16 = vpop.f32.mrb[19].mxu0 }
 0x11a   :  { %v1334_v17 = vadd.f32 %v1333_v16, %v1332_v13  ;;  %v1397_v18 = vpop.f32.mrb[19].mxu1 }
 0x11b   :  { %v1398_v19 = vadd.f32 %v1397_v18, %v1396_v15  ;;  %v758_v20 = vadd.f32 %v1395_v14, %v1331_v11 }
 0x11d   :  { %v761_v21 = vadd.f32 %v1398_v19, %v1334_v17 }
 0x11e   :  { %v1335_v22 = vpop.f32.mrb[20].mxu0 }
 0x11f   :  { %v1399_v23 = vpop.f32.mrb[20].mxu1  ;;  %v1336_v24 = vpop.f32.mrb[21].mxu0 }
 0x120   :  { %v1337_v25 = vadd.f32 %v1336_v24, %v1335_v22  ;;  %v1400_v26 = vpop.f32.mrb[21].mxu1  ;;  %v1338_v27 = vpop.f32.mrb[22].mxu0 }
 0x121   :  { %v1401_v30 = vadd.f32 %v1400_v26, %v1399_v23  ;;  %v1402_v31 = vpop.f32.mrb[22].mxu1  ;;  %v1339_v32 = vpop.f32.mrb[23].mxu0 }
 0x122   :  { %v1340_v33 = vadd.f32 %v1339_v32, %v1338_v27  ;;  %v1403_v34 = vpop.f32.mrb[23].mxu1 }
 0x123   :  { %v1404_v35 = vadd.f32 %v1403_v34, %v1402_v31  ;;  %v766_v36 = vadd.f32 %v1401_v30, %v1337_v25 }
 0x125   :  { %v769_v37 = vadd.f32 %v1404_v35, %v1340_v33 }
 0x126   :  { %v1341_v38 = vpop.f32.mrb[24].mxu0 }
 0x127   :  { %v1405_v39 = vpop.f32.mrb[24].mxu1  ;;  %v1342_v40 = vpop.f32.mrb[25].mxu0 }
 0x128   :  { %v1343_v41 = vadd.f32 %v1342_v40, %v1341_v38  ;;  %v1406_v44 = vpop.f32.mrb[25].mxu1  ;;  %v1344_v45 = vpop.f32.mrb[26].mxu0 }
 0x129   :  { %v1407_v46 = vadd.f32 %v1406_v44, %v1405_v39  ;;  %v1408_v47 = vpop.f32.mrb[26].mxu1  ;;  %v1345_v48 = vpop.f32.mrb[27].mxu0 }
 0x12a   :  { %v1346_v49 = vadd.f32 %v1345_v48, %v1344_v45  ;;  %v1409_v50 = vpop.f32.mrb[27].mxu1 }
 0x12b   :  { %v1410_v51 = vadd.f32 %v1409_v50, %v1408_v47  ;;  %v774_v52 = vadd.f32 %v1407_v46, %v1343_v41 }
 0x12d   :  { %v777_v53 = vadd.f32 %v1410_v51, %v1346_v49 }
 0x12e   :  { %v1347_v54 = vpop.f32.mrb[28].mxu0 }
 0x12f   :  { %v1411_v55 = vpop.f32.mrb[28].mxu1  ;;  %v1348_v58 = vpop.f32.mrb[29].mxu0 }
 0x130   :  { %v1349_v59 = vadd.f32 %v1348_v58, %v1347_v54  ;;  %v1412_v60 = vpop.f32.mrb[29].mxu1  ;;  %v1350_v61 = vpop.f32.mrb[30].mxu0 }
 0x131   :  { %v1413_v62 = vadd.f32 %v1412_v60, %v1411_v55  ;;  %v1414_v63 = vpop.f32.mrb[30].mxu1  ;;  %v1351_v0 = vpop.f32.mrb[31].mxu0 }
 0x132   :  { %v1352_v1 = vadd.f32 %v1351_v0, %v1350_v61  ;;  %v1415_v2 = vpop.f32.mrb[31].mxu1 }
 0x133   :  { %v1416_v3 = vadd.f32 %v1415_v2, %v1414_v63  ;;  %v782_v4 = vadd.f32 %v1413_v62, %v1349_v59 }
 0x135   :  { %v785_v5 = vadd.f32 %v1416_v3, %v1352_v1 }
 0x136   :  { %v1451_v8 = vpop.f32.mrb[32].mxu0 }
 0x137   :  { %v1861_v9 = vadd.f32 %v1451_v8, %v1848_v42  ;;  %v1459_v10 = vpop.f32.mrb[32].mxu1  ;;  %v822_v11 = vpop.f32.mrb[33].mxu0 }
 0x138   :  { %v1863_v12 = vadd.f32 %v1459_v10, %v766_v36  ;;  %v1866_v13 = vadd.f32 %v822_v11, %v1844_v28  ;;  %v854_v14 = vpop.f32.mrb[33].mxu1  ;;  %v1452_v15 = vpop.f32.mrb[34].mxu0 }
 0x139   :  { %v1868_v16 = vadd.f32 %v854_v14, %v758_v20  ;;  %v1871_v17 = vadd.f32 %v1452_v15, %v1850_v43  ;;  %v1460_v18 = vpop.f32.mrb[34].mxu1  ;;  %v825_v19 = vpop.f32.mrb[35].mxu0  ;;  %v909_v25 = vmul.f32 %v1861_v9, %v1861_v9 }
 0x13a   :  { %v1873_v22 = vadd.f32 %v1460_v18, %v769_v37  ;;  %v1876_v42 = vadd.f32 %v825_v19, %v1846_v29  ;;  %v857_v23 = vpop.f32.mrb[35].mxu1  ;;  %v907_v28 = vmul.f32 %v1866_v13, %v1866_v13  ;;  %v917_v1 = vmul.f32 %v1863_v12, %v1863_v12 }
 0x13b   :  { %v1878_v24 = vadd.f32 %v857_v23, %v761_v21  ;;  %v910_v21 = vmul.f32 %v1871_v17, %v1871_v17 }
 0x13c   :  { %v885_v20 = vadd.f32 %v1876_v42, %v1866_v13  ;;  %v908_v43 = vmul.f32 %v1876_v42, %v1876_v42 }
 0x13d   :  { %v916_v62 = vmul.f32 %v1878_v24, %v1878_v24 }
 0x13e   :  { %v886_v26 = vadd.f32 %v885_v20, %v1861_v9  ;;  %v923_v27 = vadd.f32 %v908_v43, %v907_v28  ;;  %v1455_v29 = vpop.f32.mrb[36].mxu0 }
 0x13f   :  { %v1892_v30 = vadd.f32 %v1455_v29, %v1856_v6  ;;  %v1463_v31 = vpop.f32.mrb[36].mxu1  ;;  %v838_v32 = vpop.f32.mrb[37].mxu0 }
 0x140   :  { %v924_v33 = vadd.f32 %v923_v27, %v909_v25  ;;  %v1894_v34 = vadd.f32 %v1463_v31, %v782_v4  ;;  %v1897_v35 = vadd.f32 %v838_v32, %v1852_v56  ;;  %v887_v36 = vadd.f32 %v886_v26, %v1871_v17  ;;  %v870_v37 = vpop.f32.mrb[37].mxu1  ;;  %v1456_v38 = vpop.f32.mrb[38].mxu0 }
 0x141   :  { %v1900_v39 = vadd.f32 %v870_v37, %v774_v52  ;;  %v1903_v40 = vadd.f32 %v1456_v38, %v1858_v7  ;;  %v1464_v41 = vpop.f32.mrb[38].mxu1  ;;  %v841_v6 = vpop.f32.mrb[39].mxu0  ;;  %v913_v52 = vmul.f32 %v1892_v30, %v1892_v30  ;;  %v918_v4 = vmul.f32 %v1873_v22, %v1873_v22 }
 0x142   :  { %v888_v44 = vadd.f32 %v887_v36, %v1897_v35  ;;  %v911_v45 = vmul.f32 %v1897_v35, %v1897_v35  ;;  %v925_v46 = vadd.f32 %v924_v33, %v910_v21  ;;  %v873_v47 = vpop.f32.mrb[39].mxu1  ;;  %v1908_v56 = vadd.f32 %v1464_v41, %v785_v5 }
 0x143   :  { %v1911_v48 = vadd.f32 %v841_v6, %v1854_v57  ;;  %v1913_v50 = vadd.f32 %v873_v47, %v777_v53  ;;  %v914_v58 = vmul.f32 %v1903_v40, %v1903_v40  ;;  %v915_v53 = vmul.f32 %v1868_v16, %v1868_v16 }
 0x144   :  { %v926_v49 = vadd.f32 %v925_v46, %v911_v45  ;;  %v919_v10 = vmul.f32 %v1900_v39, %v1900_v39  ;;  %v921_v23 = vmul.f32 %v1894_v34, %v1894_v34  ;;  %v922_v43 = vmul.f32 %v1908_v56, %v1908_v56 }
 0x145   :  { %v889_v7 = vadd.f32 %v888_v44, %v1911_v48  ;;  %v912_v51 = vmul.f32 %v1911_v48, %v1911_v48  ;;  %v920_v18 = vmul.f32 %v1913_v50, %v1913_v50 }
 0x147   :  { %v890_v54 = vadd.f32 %v889_v7, %v1892_v30  ;;  %v927_v55 = vadd.f32 %v926_v49, %v912_v51 }
 0x149   :  { %v891_v57 = vadd.f32 %v890_v54, %v1903_v40  ;;  %v928_v59 = vadd.f32 %v927_v55, %v913_v52 }
 0x14b   :  { %v892_v60 = vadd.f32 %v891_v57, %v1868_v16  ;;  %v929_v61 = vadd.f32 %v928_v59, %v914_v58 }
 0x14d   :  { %v930_v63 = vadd.f32 %v929_v61, %v915_v53  ;;  %v893_v0 = vadd.f32 %v892_v60, %v1878_v24 }
 0x14f   :  { %v894_v2 = vadd.f32 %v893_v0, %v1863_v12  ;;  %v931_v3 = vadd.f32 %v930_v63, %v916_v62 }
 0x151   :  { %v895_v5 = vadd.f32 %v894_v2, %v1873_v22  ;;  %v932_v8 = vadd.f32 %v931_v3, %v917_v1 }
 0x153   :  { %v896_v11 = vadd.f32 %v895_v5, %v1900_v39  ;;  %v933_v14 = vadd.f32 %v932_v8, %v918_v4 }
 0x155   :  { %v897_v15 = vadd.f32 %v896_v11, %v1913_v50  ;;  %v934_v19 = vadd.f32 %v933_v14, %v919_v10 }
 0x157   :  { %v898_v28 = vadd.f32 %v897_v15, %v1894_v34  ;;  %v935_v20 = vadd.f32 %v934_v19, %v920_v18 }
 0x159   :  { %v899_v25 = vadd.f32 %v898_v28, %v1908_v56  ;;  %v936_v26 = vadd.f32 %v935_v20, %v921_v23 }
 0x15b   :  { %v900_v27 = vrot.slane %v899_v25, 4  ;;  %v937_v29 = vadd.f32 %v936_v26, %v922_v43  ;;  %v1209_v43 = vld [vmem:[%s1997_s3] ss:$0 sm:$0xff] }
 0x15d   :  { %v901_v21 = vadd.f32 %v900_v27, %v899_v25  ;;  %v938_v31 = vrot.slane %v937_v29, 4 }
 0x15f   :  { %v902_v32 = vrot.slane %v901_v21, 2  ;;  %v939_v33 = vadd.f32 %v938_v31, %v937_v29 }
 0x161   :  { %v903_v36 = vadd.f32 %v902_v32, %v901_v21  ;;  %v940_v37 = vrot.slane %v939_v33, 2 }
 0x163   :  { %v904_v38 = vrot.slane %v903_v36, 1  ;;  %v941_v41 = vadd.f32 %v940_v37, %v939_v33 }
 0x165   :  { %v905_v6 = vadd.f32 %v904_v38, %v903_v36  ;;  %v942_v44 = vrot.slane %v941_v41, 1 }
 0x167   :  { %v906_v45 = vmul.f32 0.0078125, %v905_v6  ;;  %v943_v46 = vadd.f32 %v942_v44, %v941_v41 }
 0x169   :  { %v944_v47 = vmul.f32 0.0078125, %v943_v46  ;;  %v945_v49 = vmul.f32 %v906_v45, %v906_v45  ;;  %v948_v7 = vsub.f32 %v1866_v13, %v906_v45  ;;  %v949_v51 = vsub.f32 %v1876_v42, %v906_v45 }
 0x16a   :  { %v950_v52 = vsub.f32 %v1861_v9, %v906_v45  ;;  %v951_v54 = vsub.f32 %v1871_v17, %v906_v45  ;;  %v952_v55 = vsub.f32 %v1897_v35, %v906_v45  ;;  %v953_v58 = vsub.f32 %v1911_v48, %v906_v45 }
 0x16b   :  { %v946_v57 = vsub.f32 %v944_v47, %v945_v49  ;;  %v954_v59 = vsub.f32 %v1892_v30, %v906_v45  ;;  %v955_v53 = vsub.f32 %v1903_v40, %v906_v45  ;;  %v956_v60 = vsub.f32 %v1868_v16, %v906_v45 }
 0x16c   :  { %v957_v61 = vsub.f32 %v1878_v24, %v906_v45  ;;  %v958_v13 = vsub.f32 %v1863_v12, %v906_v45  ;;  %v959_v42 = vsub.f32 %v1873_v22, %v906_v45  ;;  %v960_v9 = vsub.f32 %v1900_v39, %v906_v45  ;;  %v1208_v39 = vld [vmem:[%s1996_s2] ss:$0 sm:$0xff] }
 0x16d   :  { %v947_v17 = vmax.f32 %v946_v57, 0.0  ;;  %v961_v35 = vsub.f32 %v1913_v50, %v906_v45  ;;  %v962_v48 = vsub.f32 %v1894_v34, %v906_v45  ;;  %v963_v62 = vsub.f32 %v1908_v56, %v906_v45 }
 0x16f   :  { %v964_v30 = vadd.f32 1e-05, %v947_v17 }
 0x171   :  { %1577 = vrsqrt.f32 %v964_v30 }
 0x17b   :  { %v1578_v40 = vpop.eup %1577 }
 0x17c   :  { %v966_v63 = vmul.f32 %v1578_v40, %v948_v7  ;;  %v967_v16 = vmul.f32 %v1578_v40, %v949_v51  ;;  %v968_v0 = vmul.f32 %v1578_v40, %v950_v52  ;;  %v969_v24 = vmul.f32 %v1578_v40, %v951_v54 }
 0x17d   :  { %v970_v1 = vmul.f32 %v1578_v40, %v952_v55  ;;  %v971_v12 = vmul.f32 %v1578_v40, %v953_v58  ;;  %v972_v2 = vmul.f32 %v1578_v40, %v954_v59  ;;  %v973_v22 = vmul.f32 %v1578_v40, %v955_v53 }
 0x17e   :  { %v974_v50 = vmul.f32 %v1578_v40, %v956_v60  ;;  %v975_v3 = vmul.f32 %v1578_v40, %v957_v61  ;;  %v976_v34 = vmul.f32 %v1578_v40, %v958_v13  ;;  %v977_v4 = vmul.f32 %v1578_v40, %v959_v42 }
 0x17f   :  { %v978_v56 = vmul.f32 %v1578_v40, %v960_v9  ;;  %v979_v5 = vmul.f32 %v1578_v40, %v961_v35  ;;  %v980_v8 = vmul.f32 %v1578_v40, %v962_v48  ;;  %v981_v10 = vmul.f32 %v1578_v40, %v963_v62 }
 0x180   :  { %v989_v11 = vmul.f32 %v1208_v39, %v966_v63  ;;  %v990_v14 = vmul.f32 %v1208_v39, %v967_v16  ;;  %v991_v15 = vmul.f32 %v1208_v39, %v968_v0  ;;  %v992_v18 = vmul.f32 %v1208_v39, %v969_v24 }
 0x181   :  { %v993_v19 = vmul.f32 %v1208_v39, %v970_v1  ;;  %v994_v23 = vmul.f32 %v1208_v39, %v971_v12  ;;  %v995_v28 = vmul.f32 %v1208_v39, %v972_v2  ;;  %v996_v20 = vmul.f32 %v1208_v39, %v973_v22 }
 0x182   :  { %v997_v25 = vmul.f32 %v1208_v39, %v974_v50  ;;  %v998_v26 = vmul.f32 %v1208_v39, %v975_v3  ;;  %v999_v27 = vmul.f32 %v1208_v39, %v976_v34  ;;  %v1000_v29 = vmul.f32 %v1208_v39, %v977_v4 }
 0x183   :  { %v1001_v21 = vmul.f32 %v1208_v39, %v978_v56  ;;  %v1002_v31 = vmul.f32 %v1208_v39, %v979_v5  ;;  %v1003_v32 = vmul.f32 %v1208_v39, %v980_v8  ;;  %v1004_v33 = vmul.f32 %v1208_v39, %v981_v10 }
 0x184   :  { %v1012_v36 = vadd.f32 %v1209_v43, %v989_v11  ;;  %v1013_v37 = vadd.f32 %v1209_v43, %v990_v14  ;;  %v1014_v38 = vadd.f32 %v1209_v43, %v991_v15  ;;  %v1015_v41 = vadd.f32 %v1209_v43, %v992_v18 }
 0x185   :  { %v1016_v6 = vadd.f32 %v1209_v43, %v993_v19  ;;  %v1017_v44 = vadd.f32 %v1209_v43, %v994_v23  ;;  %v1018_v45 = vadd.f32 %v1209_v43, %v995_v28  ;;  %v1019_v46 = vadd.f32 %v1209_v43, %v996_v20 }
 0x186   :  { %v1020_v47 = vadd.f32 %v1209_v43, %v997_v25  ;;  %v1021_v49 = vadd.f32 %v1209_v43, %v998_v26  ;;  %v1022_v7 = vadd.f32 %v1209_v43, %v999_v27  ;;  %v1023_v51 = vadd.f32 %v1209_v43, %v1000_v29 }
 0x187   :  { %v1024_v52 = vadd.f32 %v1209_v43, %v1001_v21  ;;  %v1025_v54 = vadd.f32 %v1209_v43, %v1002_v31  ;;  %v1026_v55 = vadd.f32 %v1209_v43, %v1003_v32  ;;  %v1027_v58 = vadd.f32 %v1209_v43, %v1004_v33 }
 0x188   :  { %v1028_v57 = vmax.f32 %v1012_v36, 0.0  ;;  %v1029_v59 = vmax.f32 %v1013_v37, 0.0  ;;  %v1030_v53 = vmax.f32 %v1014_v38, 0.0  ;;  %v1031_v60 = vmax.f32 %v1015_v41, 0.0 }
 0x189   :  { %v1032_v61 = vmax.f32 %v1016_v6, 0.0  ;;  %v1033_v13 = vmax.f32 %v1017_v44, 0.0  ;;  %v1034_v42 = vmax.f32 %v1018_v45, 0.0  ;;  %v1035_v9 = vmax.f32 %v1019_v46, 0.0 }
 0x18a   :  { %v1036_v17 = vmax.f32 %v1020_v47, 0.0  ;;  %v1037_v35 = vmax.f32 %v1021_v49, 0.0  ;;  %v1038_v48 = vmax.f32 %v1022_v7, 0.0  ;;  %v1039_v62 = vmax.f32 %v1023_v51, 0.0 }
 0x18b   :  { %v1040_v30 = vmax.f32 %v1024_v52, 0.0  ;;  %v1041_v40 = vmax.f32 %v1025_v54, 0.0  ;;  %v1042_v63 = vmax.f32 %v1026_v55, 0.0  ;;  %v1043_v16 = vmax.f32 %v1027_v58, 0.0 }
 0x18c   :  { %v1245_v0 = vpack.c.bf16 %v1029_v59, %v1028_v57  ;;  %v1250_v24 = vpack.c.bf16 %v1031_v60, %v1030_v53  ;;  %v1255_v1 = vpack.c.bf16 %v1033_v13, %v1032_v61  ;;  %v1260_v12 = vpack.c.bf16 %v1035_v9, %v1034_v42 }
 0x18d   :  { %v1265_v2 = vpack.c.bf16 %v1037_v35, %v1036_v17  ;;  %v1270_v22 = vpack.c.bf16 %v1039_v62, %v1038_v48  ;;  %v1275_v39 = vpack.c.bf16 %v1041_v40, %v1040_v30  ;;  %v1280_v50 = vpack.c.bf16 %v1043_v16, %v1042_v63 }
 0x18e   :  { %1246 = vst [vmem:[%s1998_s4] sm:$0xff] %v1245_v0   ;;  %1282 = vst [vmem:[%s1998_s4 + $0x8] sm:$0xff] %v1250_v24  }
 0x18f   :  { %1283 = vst [vmem:[%s1998_s4 + $0x10] sm:$0xff] %v1255_v1   ;;  %1284 = vst [vmem:[%s1998_s4 + $0x18] sm:$0xff] %v1260_v12  }
 0x190   :  { %1285 = vst [vmem:[%s1998_s4 + $0x20] sm:$0xff] %v1265_v2   ;;  %1286 = vst [vmem:[%s1998_s4 + $0x28] sm:$0xff] %v1270_v22  }
 0x191   :  { %1287 = vst [vmem:[%s1998_s4 + $0x30] sm:$0xff] %v1275_v39   ;;  %1288 = vst [vmem:[%s1998_s4 + $0x38] sm:$0xff] %v1280_v50  }

// kernel: _lambda_.15
= control target key start
LH: loop header
LB: loop body
LE: loop exit
PB: predicated region body
PF: predicated region fallthrough
CT: control target
= control target key end

     0   :  { %s2522_s15 = smov 0   ;;  %s2524_s16 = smov 0   ;;  %s3026_s0 = inlined_call_operand.vmem [shape: bf16[32,1152], index: 0, kind: input, shape index: {}]   ;;  %s3027_s1 = inlined_call_operand.vmem [shape: bf16[1152,256], index: 1, kind: input, shape index: {}]   ;;  %s3028_s2 = inlined_call_operand.vmem [shape: f32[1,256], index: 2, kind: input, shape index: {}]   ;;  %s3029_s3 = inlined_call_operand.vmem [shape: f32[1,256], index: 3, kind: input, shape index: {}]   ;;  %s3030_s4 = inlined_call_operand.vmem [shape: bf16[32,256], index: 4, kind: output, shape index: {}]  }
   0x1   :  { %s2526_s17 = smov 0   ;;  %s2528_s18 = smov 0  }
   0x2   :  { %s2530_s19 = smov 0  }
   0x3 LB: > { %s26_s20 = sadd.s32 1, %s2491_s18  ;;  %s2050_s21 = sadd.s32 4294967295, %s2495_s19   ;;  %s2495_s19 = sphi %s2530_s19, %s14_s19   ;;  %s2491_s18 = sphi %s2528_s18, %s3035_s18   ;;  %s2487_s17 = sphi %s2526_s17, %s3034_s17   ;;  %s2483_s16 = sphi %s2524_s16, %s3033_s16   ;;  %s2479_s15 = sphi %s2522_s15, %s3032_s15  }
   0x4   : > { %p28_p0 = scmp.ge.s32.totalorder %s26_s20, 2  ;;  %p68_p1 = scmp.ne.s32.totalorder %s2483_s16, %s2479_s15 }
   0x5   : > { %p69_p2 = scmp.eq.s32.totalorder %s2495_s19, 0  ;;  %p150_p4 = scmp.eq.s32.totalorder %s2050_s21, 1 }
   0x6   : > { %s3037_s20 = smov (%p28_p0, %s26_s20), 0  ;;  %s61_s23 = sadd.s32 1, %s2483_s16 }
   0x7   : > { %p70_p3 = por %p69_p2, %p68_p1  ;;  %s57_s22 = ssub.s32 %s2491_s18, %s3037_s20 }
   0x8   : > { %p59_p5 = scmp.eq.s32.totalorder %s57_s22, 0  ;;  %p2557_p6 = por %p150_p4, %p68_p1 }
   0x9   : > { %p2054_p7 = scmp.ge.s32.totalorder %s2495_s19, 2 }
   0xa   : > { %s2562_s25 = scalar_select %p59_p5, %s2483_s16, %s61_s23  }
   0xb   : > { %181 = sbr.rel (%p2054_p7) target bundleno = 118 (0x76), region = 20 }
  0x12   : > { %184 = sbr.rel (!%p70_p3) target bundleno = 118 (0x76), region = 24  ;;  %s186_s26 = sand.u32 (%p70_p3), 1, %s2483_s16  }
  0x13   : > { %s2055_s27 = sshll.u32 (%p70_p3), %s2491_s18, 2  ;;  %s2315_s28 = smul.u32 (%p70_p3), 576, %s186_s26 }
  0x14   : > { %s2570_s5 = scalar_lea.vmem (%p70_p3), %s3027_s1, %s2055_s27 }
  0x15   : > { %v209_v0 = vld [vmem:[%s2570_s5] sm:$0xf] (%p70_p3)  ;;  %v211_v1 = vld [vmem:[%s2570_s5 + $0x8] sm:$0xf] (%p70_p3)  ;;  %v213_v2 = vld [vmem:[%s2570_s5 + $0x10] sm:$0xf] (%p70_p3) }
  0x16   : > { %v215_v3 = vld [vmem:[%s2570_s5 + $0x18] sm:$0xf] (%p70_p3)  ;;  %v217_v4 = vld [vmem:[%s2570_s5 + $0x20] sm:$0xf] (%p70_p3)  ;;  %s2577_s6 = scalar_lea.vmem (%p70_p3), [#allocation3], %s2315_s28 }
  0x17   : > { %210 = vst [vmem:[%s2577_s6] sm:$0xf] (%p70_p3), %v209_v0  ;;  %212 = vst [vmem:[%s2577_s6 + $0x4] sm:$0xf] (%p70_p3), %v211_v1  ;;  %v219_v5 = vld [vmem:[%s2570_s5 + $0x28] sm:$0xf] (%p70_p3) }
  0x18   : > { %214 = vst [vmem:[%s2577_s6 + $0x8] sm:$0xf] (%p70_p3), %v213_v2  ;;  %216 = vst [vmem:[%s2577_s6 + $0xc] sm:$0xf] (%p70_p3), %v215_v3  ;;  %v221_v6 = vld [vmem:[%s2570_s5 + $0x30] sm:$0xf] (%p70_p3) }
  0x19   : > { %218 = vst [vmem:[%s2577_s6 + $0x10] sm:$0xf] %v217_v4  ;;  %v223_v7 = vld [vmem:[%s2570_s5 + $0x38] sm:$0xf]  ;;  %220 = vst [vmem:[%s2577_s6 + $0x14] sm:$0xf] %v219_v5 }
  0x1a   : > { %222 = vst [vmem:[%s2577_s6 + $0x18] sm:$0xf] %v221_v6  ;;  %224 = vst [vmem:[%s2577_s6 + $0x1c] sm:$0xf] %v223_v7  ;;  %v225_v8 = vld [vmem:[%s2570_s5 + $0x40] sm:$0xf] }
  0x1b   : > { %v227_v9 = vld [vmem:[%s2570_s5 + $0x48] sm:$0xf]  ;;  %v229_v10 = vld [vmem:[%s2570_s5 + $0x50] sm:$0xf]  ;;  %226 = vst [vmem:[%s2577_s6 + $0x20] sm:$0xf] %v225_v8 }
  0x1c   : > { %228 = vst [vmem:[%s2577_s6 + $0x24] sm:$0xf] %v227_v9  ;;  %230 = vst [vmem:[%s2577_s6 + $0x28] sm:$0xf] %v229_v10  ;;  %v231_v11 = vld [vmem:[%s2570_s5 + $0x58] sm:$0xf] }
  0x1d   : > { %v233_v12 = vld [vmem:[%s2570_s5 + $0x60] sm:$0xf]  ;;  %v235_v13 = vld [vmem:[%s2570_s5 + $0x68] sm:$0xf]  ;;  %232 = vst [vmem:[%s2577_s6 + $0x2c] sm:$0xf] %v231_v11 }
  0x1e   : > { %234 = vst [vmem:[%s2577_s6 + $0x30] sm:$0xf] %v233_v12  ;;  %236 = vst [vmem:[%s2577_s6 + $0x34] sm:$0xf] %v235_v13  ;;  %v237_v14 = vld [vmem:[%s2570_s5 + $0x70] sm:$0xf] }
  0x1f   : > { %v239_v15 = vld [vmem:[%s2570_s5 + $0x78] sm:$0xf]  ;;  %v241_v16 = vld [vmem:[%s2570_s5 + $0x80] sm:$0xf]  ;;  %238 = vst [vmem:[%s2577_s6 + $0x38] sm:$0xf] %v237_v14 }
  0x20   : > { %240 = vst [vmem:[%s2577_s6 + $0x3c] sm:$0xf] %v239_v15  ;;  %242 = vst [vmem:[%s2577_s6 + $0x40] sm:$0xf] %v241_v16  ;;  %v243_v17 = vld [vmem:[%s2570_s5 + $0x88] sm:$0xf] }
  0x21   : > { %v245_v18 = vld [vmem:[%s2570_s5 + $0x90] sm:$0xf]  ;;  %v247_v19 = vld [vmem:[%s2570_s5 + $0x98] sm:$0xf]  ;;  %244 = vst [vmem:[%s2577_s6 + $0x44] sm:$0xf] %v243_v17 }
  0x22   : > { %246 = vst [vmem:[%s2577_s6 + $0x48] sm:$0xf] %v245_v18  ;;  %248 = vst [vmem:[%s2577_s6 + $0x4c] sm:$0xf] %v247_v19  ;;  %v249_v20 = vld [vmem:[%s2570_s5 + $0xa0] sm:$0xf] }
  0x23   : > { %v251_v21 = vld [vmem:[%s2570_s5 + $0xa8] sm:$0xf]  ;;  %v253_v22 = vld [vmem:[%s2570_s5 + $0xb0] sm:$0xf]  ;;  %250 = vst [vmem:[%s2577_s6 + $0x50] sm:$0xf] %v249_v20 }
  0x24   : > { %252 = vst [vmem:[%s2577_s6 + $0x54] sm:$0xf] %v251_v21  ;;  %254 = vst [vmem:[%s2577_s6 + $0x58] sm:$0xf] %v253_v22  ;;  %v255_v23 = vld [vmem:[%s2570_s5 + $0xb8] sm:$0xf] }
  0x25   : > { %v257_v24 = vld [vmem:[%s2570_s5 + $0xc0] sm:$0xf]  ;;  %v259_v25 = vld [vmem:[%s2570_s5 + $0xc8] sm:$0xf]  ;;  %256 = vst [vmem:[%s2577_s6 + $0x5c] sm:$0xf] %v255_v23 }
  0x26   : > { %258 = vst [vmem:[%s2577_s6 + $0x60] sm:$0xf] %v257_v24  ;;  %260 = vst [vmem:[%s2577_s6 + $0x64] sm:$0xf] %v259_v25  ;;  %v261_v26 = vld [vmem:[%s2570_s5 + $0xd0] sm:$0xf] }
  0x27   : > { %v263_v27 = vld [vmem:[%s2570_s5 + $0xd8] sm:$0xf]  ;;  %v265_v28 = vld [vmem:[%s2570_s5 + $0xe0] sm:$0xf]  ;;  %262 = vst [vmem:[%s2577_s6 + $0x68] sm:$0xf] %v261_v26 }
  0x28   : > { %264 = vst [vmem:[%s2577_s6 + $0x6c] sm:$0xf] %v263_v27  ;;  %266 = vst [vmem:[%s2577_s6 + $0x70] sm:$0xf] %v265_v28  ;;  %v267_v29 = vld [vmem:[%s2570_s5 + $0xe8] sm:$0xf] }
  0x29   : > { %v269_v30 = vld [vmem:[%s2570_s5 + $0xf0] sm:$0xf]  ;;  %v271_v31 = vld [vmem:[%s2570_s5 + $0xf8] sm:$0xf]  ;;  %268 = vst [vmem:[%s2577_s6 + $0x74] sm:$0xf] %v267_v29 }
  0x2a   : > { %270 = vst [vmem:[%s2577_s6 + $0x78] sm:$0xf] %v269_v30  ;;  %272 = vst [vmem:[%s2577_s6 + $0x7c] sm:$0xf] %v271_v31  ;;  %v273_v32 = vld [vmem:[%s2570_s5 + $0x100] sm:$0xf] }
  0x2b   : > { %v275_v33 = vld [vmem:[%s2570_s5 + $0x108] sm:$0xf]  ;;  %v277_v34 = vld [vmem:[%s2570_s5 + $0x110] sm:$0xf]  ;;  %274 = vst [vmem:[%s2577_s6 + $0x80] sm:$0xf] %v273_v32 }
  0x2c   : > { %276 = vst [vmem:[%s2577_s6 + $0x84] sm:$0xf] %v275_v33  ;;  %278 = vst [vmem:[%s2577_s6 + $0x88] sm:$0xf] %v277_v34  ;;  %v279_v35 = vld [vmem:[%s2570_s5 + $0x118] sm:$0xf] }
  0x2d   : > { %v281_v36 = vld [vmem:[%s2570_s5 + $0x120] sm:$0xf]  ;;  %v283_v37 = vld [vmem:[%s2570_s5 + $0x128] sm:$0xf]  ;;  %280 = vst [vmem:[%s2577_s6 + $0x8c] sm:$0xf] %v279_v35 }
  0x2e   : > { %282 = vst [vmem:[%s2577_s6 + $0x90] sm:$0xf] %v281_v36  ;;  %284 = vst [vmem:[%s2577_s6 + $0x94] sm:$0xf] %v283_v37  ;;  %v285_v38 = vld [vmem:[%s2570_s5 + $0x130] sm:$0xf] }
  0x2f   : > { %v287_v39 = vld [vmem:[%s2570_s5 + $0x138] sm:$0xf]  ;;  %v289_v40 = vld [vmem:[%s2570_s5 + $0x140] sm:$0xf]  ;;  %286 = vst [vmem:[%s2577_s6 + $0x98] sm:$0xf] %v285_v38 }
  0x30   : > { %288 = vst [vmem:[%s2577_s6 + $0x9c] sm:$0xf] %v287_v39  ;;  %290 = vst [vmem:[%s2577_s6 + $0xa0] sm:$0xf] %v289_v40  ;;  %v291_v41 = vld [vmem:[%s2570_s5 + $0x148] sm:$0xf] }
  0x31   : > { %v293_v42 = vld [vmem:[%s2570_s5 + $0x150] sm:$0xf]  ;;  %v295_v43 = vld [vmem:[%s2570_s5 + $0x158] sm:$0xf]  ;;  %292 = vst [vmem:[%s2577_s6 + $0xa4] sm:$0xf] %v291_v41 }
  0x32   : > { %294 = vst [vmem:[%s2577_s6 + $0xa8] sm:$0xf] %v293_v42  ;;  %296 = vst [vmem:[%s2577_s6 + $0xac] sm:$0xf] %v295_v43  ;;  %v297_v44 = vld [vmem:[%s2570_s5 + $0x160] sm:$0xf] }
  0x33   : > { %v299_v45 = vld [vmem:[%s2570_s5 + $0x168] sm:$0xf]  ;;  %v301_v46 = vld [vmem:[%s2570_s5 + $0x170] sm:$0xf]  ;;  %298 = vst [vmem:[%s2577_s6 + $0xb0] sm:$0xf] %v297_v44 }
  0x34   : > { %300 = vst [vmem:[%s2577_s6 + $0xb4] sm:$0xf] %v299_v45  ;;  %302 = vst [vmem:[%s2577_s6 + $0xb8] sm:$0xf] %v301_v46  ;;  %v303_v47 = vld [vmem:[%s2570_s5 + $0x178] sm:$0xf] }
  0x35   : > { %v305_v48 = vld [vmem:[%s2570_s5 + $0x180] sm:$0xf]  ;;  %v307_v49 = vld [vmem:[%s2570_s5 + $0x188] sm:$0xf]  ;;  %304 = vst [vmem:[%s2577_s6 + $0xbc] sm:$0xf] %v303_v47 }
  0x36   : > { %306 = vst [vmem:[%s2577_s6 + $0xc0] sm:$0xf] %v305_v48  ;;  %308 = vst [vmem:[%s2577_s6 + $0xc4] sm:$0xf] %v307_v49  ;;  %v309_v50 = vld [vmem:[%s2570_s5 + $0x190] sm:$0xf] }
  0x37   : > { %v311_v51 = vld [vmem:[%s2570_s5 + $0x198] sm:$0xf]  ;;  %v313_v52 = vld [vmem:[%s2570_s5 + $0x1a0] sm:$0xf]  ;;  %310 = vst [vmem:[%s2577_s6 + $0xc8] sm:$0xf] %v309_v50 }
  0x38   : > { %312 = vst [vmem:[%s2577_s6 + $0xcc] sm:$0xf] %v311_v51  ;;  %314 = vst [vmem:[%s2577_s6 + $0xd0] sm:$0xf] %v313_v52  ;;  %v315_v53 = vld [vmem:[%s2570_s5 + $0x1a8] sm:$0xf] }
  0x39   : > { %v317_v54 = vld [vmem:[%s2570_s5 + $0x1b0] sm:$0xf]  ;;  %v319_v55 = vld [vmem:[%s2570_s5 + $0x1b8] sm:$0xf]  ;;  %316 = vst [vmem:[%s2577_s6 + $0xd4] sm:$0xf] %v315_v53 }
  0x3a   : > { %318 = vst [vmem:[%s2577_s6 + $0xd8] sm:$0xf] %v317_v54  ;;  %320 = vst [vmem:[%s2577_s6 + $0xdc] sm:$0xf] %v319_v55  ;;  %v321_v56 = vld [vmem:[%s2570_s5 + $0x1c0] sm:$0xf] }
  0x3b   : > { %v323_v57 = vld [vmem:[%s2570_s5 + $0x1c8] sm:$0xf]  ;;  %v325_v58 = vld [vmem:[%s2570_s5 + $0x1d0] sm:$0xf]  ;;  %322 = vst [vmem:[%s2577_s6 + $0xe0] sm:$0xf] %v321_v56 }
  0x3c   : > { %324 = vst [vmem:[%s2577_s6 + $0xe4] sm:$0xf] %v323_v57  ;;  %326 = vst [vmem:[%s2577_s6 + $0xe8] sm:$0xf] %v325_v58  ;;  %v327_v59 = vld [vmem:[%s2570_s5 + $0x1d8] sm:$0xf] }
  0x3d   : > { %v329_v60 = vld [vmem:[%s2570_s5 + $0x1e0] sm:$0xf]  ;;  %v331_v61 = vld [vmem:[%s2570_s5 + $0x1e8] sm:$0xf]  ;;  %328 = vst [vmem:[%s2577_s6 + $0xec] sm:$0xf] %v327_v59 }
  0x3e   : > { %330 = vst [vmem:[%s2577_s6 + $0xf0] sm:$0xf] %v329_v60  ;;  %332 = vst [vmem:[%s2577_s6 + $0xf4] sm:$0xf] %v331_v61  ;;  %v333_v62 = vld [vmem:[%s2570_s5 + $0x1f0] sm:$0xf] }
  0x3f   : > { %v335_v63 = vld [vmem:[%s2570_s5 + $0x1f8] sm:$0xf]  ;;  %v337_v0 = vld [vmem:[%s2570_s5 + $0x200] sm:$0xf]  ;;  %334 = vst [vmem:[%s2577_s6 + $0xf8] sm:$0xf] %v333_v62 }
  0x40   : > { %336 = vst [vmem:[%s2577_s6 + $0xfc] sm:$0xf] %v335_v63  ;;  %338 = vst [vmem:[%s2577_s6 + $0x100] sm:$0xf] %v337_v0  ;;  %v339_v1 = vld [vmem:[%s2570_s5 + $0x208] sm:$0xf] }
  0x41   : > { %v341_v2 = vld [vmem:[%s2570_s5 + $0x210] sm:$0xf]  ;;  %v343_v3 = vld [vmem:[%s2570_s5 + $0x218] sm:$0xf]  ;;  %340 = vst [vmem:[%s2577_s6 + $0x104] sm:$0xf] %v339_v1 }
  0x42   : > { %342 = vst [vmem:[%s2577_s6 + $0x108] sm:$0xf] %v341_v2  ;;  %344 = vst [vmem:[%s2577_s6 + $0x10c] sm:$0xf] %v343_v3  ;;  %v345_v4 = vld [vmem:[%s2570_s5 + $0x220] sm:$0xf] }
  0x43   : > { %v347_v5 = vld [vmem:[%s2570_s5 + $0x228] sm:$0xf]  ;;  %v349_v6 = vld [vmem:[%s2570_s5 + $0x230] sm:$0xf]  ;;  %346 = vst [vmem:[%s2577_s6 + $0x110] sm:$0xf] %v345_v4 }
  0x44   : > { %348 = vst [vmem:[%s2577_s6 + $0x114] sm:$0xf] %v347_v5  ;;  %350 = vst [vmem:[%s2577_s6 + $0x118] sm:$0xf] %v349_v6  ;;  %v351_v7 = vld [vmem:[%s2570_s5 + $0x238] sm:$0xf] }
  0x45   : > { %v353_v8 = vld [vmem:[%s2570_s5 + $0x240] sm:$0xf]  ;;  %v355_v9 = vld [vmem:[%s2570_s5 + $0x248] sm:$0xf]  ;;  %352 = vst [vmem:[%s2577_s6 + $0x11c] sm:$0xf] %v351_v7 }
  0x46   : > { %354 = vst [vmem:[%s2577_s6 + $0x120] sm:$0xf] %v353_v8  ;;  %356 = vst [vmem:[%s2577_s6 + $0x124] sm:$0xf] %v355_v9  ;;  %v357_v10 = vld [vmem:[%s2570_s5 + $0x250] sm:$0xf] }
  0x47   : > { %v359_v11 = vld [vmem:[%s2570_s5 + $0x258] sm:$0xf]  ;;  %v361_v12 = vld [vmem:[%s2570_s5 + $0x260] sm:$0xf]  ;;  %358 = vst [vmem:[%s2577_s6 + $0x128] sm:$0xf] %v357_v10 }
  0x48   : > { %360 = vst [vmem:[%s2577_s6 + $0x12c] sm:$0xf] %v359_v11  ;;  %362 = vst [vmem:[%s2577_s6 + $0x130] sm:$0xf] %v361_v12  ;;  %v363_v13 = vld [vmem:[%s2570_s5 + $0x268] sm:$0xf] }
  0x49   : > { %v365_v14 = vld [vmem:[%s2570_s5 + $0x270] sm:$0xf]  ;;  %v367_v15 = vld [vmem:[%s2570_s5 + $0x278] sm:$0xf]  ;;  %364 = vst [vmem:[%s2577_s6 + $0x134] sm:$0xf] %v363_v13 }
  0x4a   : > { %366 = vst [vmem:[%s2577_s6 + $0x138] sm:$0xf] %v365_v14  ;;  %368 = vst [vmem:[%s2577_s6 + $0x13c] sm:$0xf] %v367_v15  ;;  %v369_v16 = vld [vmem:[%s2570_s5 + $0x280] sm:$0xf] }
  0x4b   : > { %v371_v17 = vld [vmem:[%s2570_s5 + $0x288] sm:$0xf]  ;;  %v373_v18 = vld [vmem:[%s2570_s5 + $0x290] sm:$0xf]  ;;  %370 = vst [vmem:[%s2577_s6 + $0x140] sm:$0xf] %v369_v16 }
  0x4c   : > { %372 = vst [vmem:[%s2577_s6 + $0x144] sm:$0xf] %v371_v17  ;;  %374 = vst [vmem:[%s2577_s6 + $0x148] sm:$0xf] %v373_v18  ;;  %v375_v19 = vld [vmem:[%s2570_s5 + $0x298] sm:$0xf] }
  0x4d   : > { %v377_v20 = vld [vmem:[%s2570_s5 + $0x2a0] sm:$0xf]  ;;  %v379_v21 = vld [vmem:[%s2570_s5 + $0x2a8] sm:$0xf]  ;;  %376 = vst [vmem:[%s2577_s6 + $0x14c] sm:$0xf] %v375_v19 }
  0x4e   : > { %378 = vst [vmem:[%s2577_s6 + $0x150] sm:$0xf] %v377_v20  ;;  %380 = vst [vmem:[%s2577_s6 + $0x154] sm:$0xf] %v379_v21  ;;  %v381_v22 = vld [vmem:[%s2570_s5 + $0x2b0] sm:$0xf] }
  0x4f   : > { %v383_v23 = vld [vmem:[%s2570_s5 + $0x2b8] sm:$0xf]  ;;  %v385_v24 = vld [vmem:[%s2570_s5 + $0x2c0] sm:$0xf]  ;;  %382 = vst [vmem:[%s2577_s6 + $0x158] sm:$0xf] %v381_v22 }
  0x50   : > { %384 = vst [vmem:[%s2577_s6 + $0x15c] sm:$0xf] %v383_v23  ;;  %386 = vst [vmem:[%s2577_s6 + $0x160] sm:$0xf] %v385_v24  ;;  %v387_v25 = vld [vmem:[%s2570_s5 + $0x2c8] sm:$0xf] }
  0x51   : > { %v389_v26 = vld [vmem:[%s2570_s5 + $0x2d0] sm:$0xf]  ;;  %v391_v27 = vld [vmem:[%s2570_s5 + $0x2d8] sm:$0xf]  ;;  %388 = vst [vmem:[%s2577_s6 + $0x164] sm:$0xf] %v387_v25 }
  0x52   : > { %390 = vst [vmem:[%s2577_s6 + $0x168] sm:$0xf] %v389_v26  ;;  %392 = vst [vmem:[%s2577_s6 + $0x16c] sm:$0xf] %v391_v27  ;;  %v393_v28 = vld [vmem:[%s2570_s5 + $0x2e0] sm:$0xf] }
  0x53   : > { %v395_v29 = vld [vmem:[%s2570_s5 + $0x2e8] sm:$0xf]  ;;  %v397_v30 = vld [vmem:[%s2570_s5 + $0x2f0] sm:$0xf]  ;;  %394 = vst [vmem:[%s2577_s6 + $0x170] sm:$0xf] %v393_v28 }
  0x54   : > { %396 = vst [vmem:[%s2577_s6 + $0x174] sm:$0xf] %v395_v29  ;;  %398 = vst [vmem:[%s2577_s6 + $0x178] sm:$0xf] %v397_v30  ;;  %v399_v31 = vld [vmem:[%s2570_s5 + $0x2f8] sm:$0xf] }
  0x55   : > { %v401_v32 = vld [vmem:[%s2570_s5 + $0x300] sm:$0xf]  ;;  %v403_v33 = vld [vmem:[%s2570_s5 + $0x308] sm:$0xf]  ;;  %400 = vst [vmem:[%s2577_s6 + $0x17c] sm:$0xf] %v399_v31 }
  0x56   : > { %402 = vst [vmem:[%s2577_s6 + $0x180] sm:$0xf] %v401_v32  ;;  %404 = vst [vmem:[%s2577_s6 + $0x184] sm:$0xf] %v403_v33  ;;  %v405_v34 = vld [vmem:[%s2570_s5 + $0x310] sm:$0xf] }
  0x57   : > { %v407_v35 = vld [vmem:[%s2570_s5 + $0x318] sm:$0xf]  ;;  %v409_v36 = vld [vmem:[%s2570_s5 + $0x320] sm:$0xf]  ;;  %406 = vst [vmem:[%s2577_s6 + $0x188] sm:$0xf] %v405_v34 }
  0x58   : > { %408 = vst [vmem:[%s2577_s6 + $0x18c] sm:$0xf] %v407_v35  ;;  %410 = vst [vmem:[%s2577_s6 + $0x190] sm:$0xf] %v409_v36  ;;  %v411_v37 = vld [vmem:[%s2570_s5 + $0x328] sm:$0xf] }
  0x59   : > { %v413_v38 = vld [vmem:[%s2570_s5 + $0x330] sm:$0xf]  ;;  %v415_v39 = vld [vmem:[%s2570_s5 + $0x338] sm:$0xf]  ;;  %412 = vst [vmem:[%s2577_s6 + $0x194] sm:$0xf] %v411_v37 }
  0x5a   : > { %414 = vst [vmem:[%s2577_s6 + $0x198] sm:$0xf] %v413_v38  ;;  %416 = vst [vmem:[%s2577_s6 + $0x19c] sm:$0xf] %v415_v39  ;;  %v417_v40 = vld [vmem:[%s2570_s5 + $0x340] sm:$0xf] }
  0x5b   : > { %v419_v41 = vld [vmem:[%s2570_s5 + $0x348] sm:$0xf]  ;;  %v421_v42 = vld [vmem:[%s2570_s5 + $0x350] sm:$0xf]  ;;  %418 = vst [vmem:[%s2577_s6 + $0x1a0] sm:$0xf] %v417_v40 }
  0x5c   : > { %420 = vst [vmem:[%s2577_s6 + $0x1a4] sm:$0xf] %v419_v41  ;;  %422 = vst [vmem:[%s2577_s6 + $0x1a8] sm:$0xf] %v421_v42  ;;  %v423_v43 = vld [vmem:[%s2570_s5 + $0x358] sm:$0xf] }
  0x5d   : > { %v425_v44 = vld [vmem:[%s2570_s5 + $0x360] sm:$0xf]  ;;  %v427_v45 = vld [vmem:[%s2570_s5 + $0x368] sm:$0xf]  ;;  %424 = vst [vmem:[%s2577_s6 + $0x1ac] sm:$0xf] %v423_v43 }
  0x5e   : > { %426 = vst [vmem:[%s2577_s6 + $0x1b0] sm:$0xf] %v425_v44  ;;  %428 = vst [vmem:[%s2577_s6 + $0x1b4] sm:$0xf] %v427_v45  ;;  %v429_v46 = vld [vmem:[%s2570_s5 + $0x370] sm:$0xf] }
  0x5f   : > { %v431_v47 = vld [vmem:[%s2570_s5 + $0x378] sm:$0xf]  ;;  %v433_v48 = vld [vmem:[%s2570_s5 + $0x380] sm:$0xf]  ;;  %430 = vst [vmem:[%s2577_s6 + $0x1b8] sm:$0xf] %v429_v46 }
  0x60   : > { %432 = vst [vmem:[%s2577_s6 + $0x1bc] sm:$0xf] %v431_v47  ;;  %434 = vst [vmem:[%s2577_s6 + $0x1c0] sm:$0xf] %v433_v48  ;;  %v435_v49 = vld [vmem:[%s2570_s5 + $0x388] sm:$0xf] }
  0x61   : > { %v437_v50 = vld [vmem:[%s2570_s5 + $0x390] sm:$0xf]  ;;  %v439_v51 = vld [vmem:[%s2570_s5 + $0x398] sm:$0xf]  ;;  %436 = vst [vmem:[%s2577_s6 + $0x1c4] sm:$0xf] %v435_v49 }
  0x62   : > { %438 = vst [vmem:[%s2577_s6 + $0x1c8] sm:$0xf] %v437_v50  ;;  %440 = vst [vmem:[%s2577_s6 + $0x1cc] sm:$0xf] %v439_v51  ;;  %v441_v52 = vld [vmem:[%s2570_s5 + $0x3a0] sm:$0xf] }
  0x63   : > { %v443_v53 = vld [vmem:[%s2570_s5 + $0x3a8] sm:$0xf]  ;;  %v445_v54 = vld [vmem:[%s2570_s5 + $0x3b0] sm:$0xf]  ;;  %442 = vst [vmem:[%s2577_s6 + $0x1d0] sm:$0xf] %v441_v52 }
  0x64   : > { %444 = vst [vmem:[%s2577_s6 + $0x1d4] sm:$0xf] %v443_v53  ;;  %446 = vst [vmem:[%s2577_s6 + $0x1d8] sm:$0xf] %v445_v54  ;;  %v447_v55 = vld [vmem:[%s2570_s5 + $0x3b8] sm:$0xf] }
  0x65   : > { %v449_v56 = vld [vmem:[%s2570_s5 + $0x3c0] sm:$0xf]  ;;  %v451_v57 = vld [vmem:[%s2570_s5 + $0x3c8] sm:$0xf]  ;;  %448 = vst [vmem:[%s2577_s6 + $0x1dc] sm:$0xf] %v447_v55 }
  0x66   : > { %450 = vst [vmem:[%s2577_s6 + $0x1e0] sm:$0xf] %v449_v56  ;;  %452 = vst [vmem:[%s2577_s6 + $0x1e4] sm:$0xf] %v451_v57  ;;  %v453_v58 = vld [vmem:[%s2570_s5 + $0x3d0] sm:$0xf] }
  0x67   : > { %v455_v59 = vld [vmem:[%s2570_s5 + $0x3d8] sm:$0xf]  ;;  %v457_v60 = vld [vmem:[%s2570_s5 + $0x3e0] sm:$0xf]  ;;  %454 = vst [vmem:[%s2577_s6 + $0x1e8] sm:$0xf] %v453_v58 }
  0x68   : > { %456 = vst [vmem:[%s2577_s6 + $0x1ec] sm:$0xf] %v455_v59  ;;  %458 = vst [vmem:[%s2577_s6 + $0x1f0] sm:$0xf] %v457_v60  ;;  %v459_v61 = vld [vmem:[%s2570_s5 + $0x3e8] sm:$0xf] }
  0x69   : > { %v461_v62 = vld [vmem:[%s2570_s5 + $0x3f0] sm:$0xf]  ;;  %v463_v63 = vld [vmem:[%s2570_s5 + $0x3f8] sm:$0xf]  ;;  %460 = vst [vmem:[%s2577_s6 + $0x1f4] sm:$0xf] %v459_v61 }
  0x6a   : > { %462 = vst [vmem:[%s2577_s6 + $0x1f8] sm:$0xf] %v461_v62  ;;  %464 = vst [vmem:[%s2577_s6 + $0x1fc] sm:$0xf] %v463_v63  ;;  %v465_v0 = vld [vmem:[%s2570_s5 + $0x400] sm:$0xf] }
  0x6b   : > { %v467_v1 = vld [vmem:[%s2570_s5 + $0x408] sm:$0xf]  ;;  %v469_v2 = vld [vmem:[%s2570_s5 + $0x410] sm:$0xf]  ;;  %466 = vst [vmem:[%s2577_s6 + $0x200] sm:$0xf] %v465_v0 }
  0x6c   : > { %468 = vst [vmem:[%s2577_s6 + $0x204] sm:$0xf] %v467_v1  ;;  %470 = vst [vmem:[%s2577_s6 + $0x208] sm:$0xf] %v469_v2  ;;  %v471_v3 = vld [vmem:[%s2570_s5 + $0x418] sm:$0xf] }
  0x6d   : > { %v473_v4 = vld [vmem:[%s2570_s5 + $0x420] sm:$0xf]  ;;  %v475_v5 = vld [vmem:[%s2570_s5 + $0x428] sm:$0xf]  ;;  %472 = vst [vmem:[%s2577_s6 + $0x20c] sm:$0xf] %v471_v3 }
  0x6e   : > { %474 = vst [vmem:[%s2577_s6 + $0x210] sm:$0xf] %v473_v4  ;;  %476 = vst [vmem:[%s2577_s6 + $0x214] sm:$0xf] %v475_v5  ;;  %v477_v6 = vld [vmem:[%s2570_s5 + $0x430] sm:$0xf] }
  0x6f   : > { %v479_v7 = vld [vmem:[%s2570_s5 + $0x438] sm:$0xf]  ;;  %v481_v8 = vld [vmem:[%s2570_s5 + $0x440] sm:$0xf]  ;;  %478 = vst [vmem:[%s2577_s6 + $0x218] sm:$0xf] %v477_v6 }
  0x70   : > { %480 = vst [vmem:[%s2577_s6 + $0x21c] sm:$0xf] %v479_v7  ;;  %482 = vst [vmem:[%s2577_s6 + $0x220] sm:$0xf] %v481_v8  ;;  %v483_v9 = vld [vmem:[%s2570_s5 + $0x448] sm:$0xf] }
  0x71   : > { %v485_v10 = vld [vmem:[%s2570_s5 + $0x450] sm:$0xf]  ;;  %v487_v11 = vld [vmem:[%s2570_s5 + $0x458] sm:$0xf]  ;;  %484 = vst [vmem:[%s2577_s6 + $0x224] sm:$0xf] %v483_v9 }
  0x72   : > { %486 = vst [vmem:[%s2577_s6 + $0x228] sm:$0xf] %v485_v10  ;;  %488 = vst [vmem:[%s2577_s6 + $0x22c] sm:$0xf] %v487_v11  ;;  %v489_v12 = vld [vmem:[%s2570_s5 + $0x460] sm:$0xf] }
  0x73   : > { %v491_v13 = vld [vmem:[%s2570_s5 + $0x468] sm:$0xf]  ;;  %v493_v14 = vld [vmem:[%s2570_s5 + $0x470] sm:$0xf]  ;;  %490 = vst [vmem:[%s2577_s6 + $0x230] sm:$0xf] %v489_v12 }
  0x74   : > { %492 = vst [vmem:[%s2577_s6 + $0x234] sm:$0xf] %v491_v13  ;;  %494 = vst [vmem:[%s2577_s6 + $0x238] sm:$0xf] %v493_v14  ;;  %v495_v15 = vld [vmem:[%s2570_s5 + $0x478] sm:$0xf] }
  0x75   : > { %496 = vst [vmem:[%s2577_s6 + $0x23c] sm:$0xf] %v495_v15 }
  0x76 PF: > { %p2056_p8 = scmp.ge.s32.totalorder %s2495_s19, 1  ;;  %p818_p9 = scmp.lt.s32.totalorder %s2495_s19, 3 }
  0x78   : > { %p819_p10 = pnand %p2056_p8, %p818_p9 }
  0x79   : > { %s825_s7 = sand.u32 (!%p819_p10), 1, %s2479_s15   ;;  %v2391_v16 = vld [vmem:[%s3026_s0 + $0x4] ss:$36 sps:$4 sm:$0xff] (!%p819_p10)   ;;  %v2394_v17 = vld [vmem:[%s3026_s0 + $0xc] ss:$36 sps:$4 sm:$0xff] (!%p819_p10)   ;;  %p867_p11 = scmp.lt.s32.totalorder (!%p819_p10), %s2487_s17, 1 }
  0x7a   : > { %822 = sbr.rel (%p819_p10) target bundleno = 500 (0x1f4), region = 73  ;;  %1594 = vmatprep.mubr.bf16.mxu0 (!%p819_p10), %v2391_v16  ;;  %1643 = vmatprep.mubr.bf16.mxu1 (!%p819_p10), %v2394_v17  ;;  %v2389_v48 = vld [vmem:[%s3026_s0] ss:$36 sps:$4 sm:$0xff] (!%p819_p10)   ;;  %v2392_v50 = vld [vmem:[%s3026_s0 + $0x8] ss:$36 sps:$4 sm:$0xff] (!%p819_p10)   ;;  %s2057_s28 = sshll.u32 (!%p819_p10), %s825_s7, 4 }
  0x7b   : > { %s2316_s8 = smul.u32 (!%p819_p10), 576, %s825_s7  ;;  %v2416_v52 = vld [vmem:[%s3026_s0 + $0x4c] ss:$36 sps:$4 sm:$0xff] (!%p819_p10)   ;;  %v2418_v10 = vld [vmem:[%s3026_s0 + $0x54] ss:$36 sps:$4 sm:$0xff] (!%p819_p10)   ;;  %s859_s29 = scalar_lea.vmem (!%p819_p10), [#allocation4], %s2057_s28 }
  0x7c   : > { %v2421_v12 = vld [vmem:[%s3026_s0 + $0x48] ss:$36 sps:$4 sm:$0xff] (!%p819_p10)   ;;  %v2422_v13 = vld [vmem:[%s3026_s0 + $0x50] ss:$36 sps:$4 sm:$0xff] (!%p819_p10)  }
  0x7d   : > { %s2873_s13 = scalar_lea.vmem (!%p819_p10), [#allocation3], %s2316_s8 }
  0x7e   : > { %v2357_v18 = vld [vmem:[%s2873_s13 + $0x40] sm:$0xff] (!%p819_p10)   ;;  %v2361_v22 = vld [vmem:[%s2873_s13 + $0x48] sm:$0xff] (!%p819_p10)   ;;  %v2365_v26 = vld [vmem:[%s2873_s13 + $0x50] sm:$0xff] (!%p819_p10)  }
  0x7f   : > { %v2358_v19 = vld [vmem:[%s2873_s13 + $0xc0] sm:$0xff] (!%p819_p10)   ;;  %2173 = vmatprep.subr.bf16.mxu0 (!%p819_p10), %v2357_v18  ;;  %v2362_v23 = vld [vmem:[%s2873_s13 + $0xc8] sm:$0xff] (!%p819_p10)   ;;  %v2366_v27 = vld [vmem:[%s2873_s13 + $0xd0] sm:$0xff] (!%p819_p10)  }
  0x80   : > { %v2359_v20 = vld [vmem:[%s2873_s13] sm:$0xff] (!%p819_p10)   ;;  %2201 = vmatprep.subr.bf16.mxu1 (!%p819_p10), %v2358_v19  ;;  %v2363_v24 = vld [vmem:[%s2873_s13 + $0x8] sm:$0xff] (!%p819_p10)   ;;  %v2367_v28 = vld [vmem:[%s2873_s13 + $0x10] sm:$0xff] (!%p819_p10)  }
  0x81   : > { %v2360_v21 = vld [vmem:[%s2873_s13 + $0x80] sm:$0xff]   ;;  %2174 = vmatpush3.bf16.msra.mxu0 %v2359_v20  ;;  %v2364_v25 = vld [vmem:[%s2873_s13 + $0x88] sm:$0xff]   ;;  %v2368_v29 = vld [vmem:[%s2873_s13 + $0x90] sm:$0xff]   ;;  %s2155_s30 = sshll.u32 (%p2557_p6), %s2487_s17, 2 }
  0x82   : > { %2202 = vmatpush3.bf16.msra.mxu1 %v2360_v21  ;;  %2175 = vmatprep.subr.bf16.mxu0 %v2361_v22  ;;  %v2369_v30 = vld [vmem:[%s2873_s13 + $0x58] sm:$0xff]   ;;  %v2373_v34 = vld [vmem:[%s2873_s13 + $0x60] sm:$0xff]   ;;  %v2377_v38 = vld [vmem:[%s2873_s13 + $0x68] sm:$0xff]   ;;  %s1898_s5 = scalar_lea.vmem (%p2557_p6), %s3030_s4, %s2155_s30 }
  0x83   : > { %2203 = vmatprep.subr.bf16.mxu1 %v2362_v23  ;;  %v2370_v31 = vld [vmem:[%s2873_s13 + $0xd8] sm:$0xff]   ;;  %v2374_v35 = vld [vmem:[%s2873_s13 + $0xe0] sm:$0xff]   ;;  %v2378_v39 = vld [vmem:[%s2873_s13 + $0xe8] sm:$0xff]  }
  0x84   : > { %v2371_v32 = vld [vmem:[%s2873_s13 + $0x18] sm:$0xff]   ;;  %v2375_v36 = vld [vmem:[%s2873_s13 + $0x20] sm:$0xff]   ;;  %v2379_v40 = vld [vmem:[%s2873_s13 + $0x28] sm:$0xff]  }
  0x85   : > { %2176 = vmatpush3.bf16.msra.mxu0 %v2363_v24  ;;  %v2372_v33 = vld [vmem:[%s2873_s13 + $0x98] sm:$0xff]   ;;  %v2376_v37 = vld [vmem:[%s2873_s13 + $0xa0] sm:$0xff]   ;;  %v2380_v41 = vld [vmem:[%s2873_s13 + $0xa8] sm:$0xff]  }
  0x86   : > { %2204 = vmatpush3.bf16.msra.mxu1 %v2364_v25  ;;  %2177 = vmatprep.subr.bf16.mxu0 %v2365_v26  ;;  %v2381_v42 = vld [vmem:[%s2873_s13 + $0x70] sm:$0xff]   ;;  %v2385_v46 = vld [vmem:[%s2873_s13 + $0x78] sm:$0xff]   ;;  %v2395_v53 = vld [vmem:[%s2873_s13 + $0x140] sm:$0xff]  }
  0x87   : > { %2205 = vmatprep.subr.bf16.mxu1 %v2366_v27  ;;  %v2382_v43 = vld [vmem:[%s2873_s13 + $0xf0] sm:$0xff]   ;;  %v2386_v47 = vld [vmem:[%s2873_s13 + $0xf8] sm:$0xff]   ;;  %v2396_v54 = vld [vmem:[%s2873_s13 + $0x100] sm:$0xff]  }
  0x88   : > { %v2383_v44 = vld [vmem:[%s2873_s13 + $0x30] sm:$0xff]   ;;  %v2387_v49 = vld [vmem:[%s2873_s13 + $0x38] sm:$0xff]   ;;  %v2397_v55 = vld [vmem:[%s2873_s13 + $0x1c0] sm:$0xff]  }
  0x89   : > { %2178 = vmatpush3.bf16.msra.mxu0 %v2367_v28  ;;  %v2384_v45 = vld [vmem:[%s2873_s13 + $0xb0] sm:$0xff]   ;;  %v2388_v51 = vld [vmem:[%s2873_s13 + $0xb8] sm:$0xff]   ;;  %v2398_v56 = vld [vmem:[%s2873_s13 + $0x180] sm:$0xff]  }
  0x8a   : > { %2206 = vmatpush3.bf16.msra.mxu1 %v2368_v29  ;;  %2179 = vmatprep.subr.bf16.mxu0 %v2369_v30  ;;  %v2399_v57 = vld [vmem:[%s2873_s13 + $0x148] sm:$0xff]   ;;  %v2403_v61 = vld [vmem:[%s2873_s13 + $0x150] sm:$0xff]   ;;  %v2407_v1 = vld [vmem:[%s2873_s13 + $0x158] sm:$0xff]  }
  0x8b   : > { %2207 = vmatprep.subr.bf16.mxu1 %v2370_v31  ;;  %v2400_v58 = vld [vmem:[%s2873_s13 + $0x108] sm:$0xff]   ;;  %v2404_v62 = vld [vmem:[%s2873_s13 + $0x110] sm:$0xff]   ;;  %v2408_v2 = vld [vmem:[%s2873_s13 + $0x118] sm:$0xff]  }
  0x8c   : > { %v2401_v59 = vld [vmem:[%s2873_s13 + $0x1c8] sm:$0xff]   ;;  %v2405_v63 = vld [vmem:[%s2873_s13 + $0x1d0] sm:$0xff]   ;;  %v2409_v3 = vld [vmem:[%s2873_s13 + $0x1d8] sm:$0xff]  }
  0x8d   : > { %2180 = vmatpush3.bf16.msra.mxu0 %v2371_v32  ;;  %v2402_v60 = vld [vmem:[%s2873_s13 + $0x188] sm:$0xff]   ;;  %v2406_v0 = vld [vmem:[%s2873_s13 + $0x190] sm:$0xff]   ;;  %v2410_v4 = vld [vmem:[%s2873_s13 + $0x198] sm:$0xff]  }
  0x8e   : > { %2208 = vmatpush3.bf16.msra.mxu1 %v2372_v33  ;;  %2181 = vmatprep.subr.bf16.mxu0 %v2373_v34  ;;  %v2411_v5 = vld [vmem:[%s2873_s13 + $0x160] sm:$0xff]   ;;  %v2415_v9 = vld [vmem:[%s2873_s13 + $0x168] sm:$0xff]   ;;  %v2425_v16 = vld [vmem:[%s2873_s13 + $0x170] sm:$0xff]  }
  0x8f   : > { %2209 = vmatprep.subr.bf16.mxu1 %v2374_v35  ;;  %v2412_v6 = vld [vmem:[%s2873_s13 + $0x120] sm:$0xff]   ;;  %v2420_v11 = vld [vmem:[%s2873_s13 + $0x128] sm:$0xff]   ;;  %v2426_v17 = vld [vmem:[%s2873_s13 + $0x130] sm:$0xff]  }
  0x90   : > { %v2413_v7 = vld [vmem:[%s2873_s13 + $0x1e0] sm:$0xff]   ;;  %v2423_v14 = vld [vmem:[%s2873_s13 + $0x1e8] sm:$0xff]   ;;  %v2427_v18 = vld [vmem:[%s2873_s13 + $0x1f0] sm:$0xff]  }
  0x91   : > { %2182 = vmatpush3.bf16.msra.mxu0 %v2375_v36  ;;  %v2414_v8 = vld [vmem:[%s2873_s13 + $0x1a0] sm:$0xff]   ;;  %v2424_v15 = vld [vmem:[%s2873_s13 + $0x1a8] sm:$0xff]   ;;  %v2428_v19 = vld [vmem:[%s2873_s13 + $0x1b0] sm:$0xff]  }
  0x92   : > { %2210 = vmatpush3.bf16.msra.mxu1 %v2376_v37  ;;  %2183 = vmatprep.subr.bf16.mxu0 %v2377_v38  ;;  %v2429_v20 = vld [vmem:[%s2873_s13 + $0x178] sm:$0xff]   ;;  %v2432_v23 = vld [vmem:[%s3026_s0 + $0x10] ss:$36 sps:$4 sm:$0xff]   ;;  %v2436_v26 = vld [vmem:[%s2873_s13 + $0x200] sm:$0xff]  }
  0x93   : > { %2211 = vmatprep.subr.bf16.mxu1 %v2378_v39  ;;  %v2430_v21 = vld [vmem:[%s2873_s13 + $0x138] sm:$0xff]   ;;  %v2440_v29 = vld [vmem:[%s2873_s13 + $0x208] sm:$0xff]   ;;  %v2444_v32 = vld [vmem:[%s2873_s13 + $0x210] sm:$0xff]  }
  0x94   : > { %v2431_v22 = vld [vmem:[%s2873_s13 + $0x1f8] sm:$0xff]   ;;  %v2445_v33 = vld [vmem:[%s3026_s0 + $0x64] ss:$36 sps:$4 sm:$0xff]   ;;  %v2451_v39 = vld [vmem:[%s2873_s13 + $0x230] sm:$0xff]  }
  0x95   : > { %2184 = vmatpush3.bf16.msra.mxu0 %v2379_v40  ;;  %v2434_v24 = vld [vmem:[%s3026_s0 + $0x14] ss:$36 sps:$4 sm:$0xff]   ;;  %v2439_v28 = vld [vmem:[%s3026_s0 + $0x1c] ss:$36 sps:$4 sm:$0xff]   ;;  %v2450_v38 = vld [vmem:[%s2873_s13 + $0x228] sm:$0xff]  }
  0x96   : > { %2212 = vmatpush3.bf16.msra.mxu1 %v2380_v41  ;;  %2185 = vmatprep.subr.bf16.mxu0 %v2381_v42  ;;  %v2435_v25 = vld [vmem:[%s2873_s13 + $0x1b8] sm:$0xff]   ;;  %v2447_v34 = vld [vmem:[%s3026_s0 + $0x60] ss:$36 sps:$4 sm:$0xff]   ;;  %v2454_v41 = vld [vmem:[%s3026_s0 + $0x68] ss:$36 sps:$4 sm:$0xff]  }
  0x97   : > { %2213 = vmatprep.subr.bf16.mxu1 %v2382_v43  ;;  %v2437_v27 = vld [vmem:[%s3026_s0 + $0x18] ss:$36 sps:$4 sm:$0xff]   ;;  %v2449_v36 = vld [vmem:[%s2873_s13 + $0x220] sm:$0xff]  }
  0x98   : > { %v2441_v30 = vld [vmem:[%s3026_s0 + $0x5c] ss:$36 sps:$4 sm:$0xff]  }
  0x99   : > { %2186 = vmatpush3.bf16.msra.mxu0 %v2383_v44  ;;  %v2443_v31 = vld [vmem:[%s3026_s0 + $0x58] ss:$36 sps:$4 sm:$0xff]   ;;  %v2453_v37 = vld [vmem:[%s3026_s0 + $0x20] ss:$36 sps:$4 sm:$0xff]  }
  0x9a   : > { %2214 = vmatpush3.bf16.msra.mxu1 %v2384_v45  ;;  %2187 = vmatprep.subr.bf16.mxu0 %v2385_v46  ;;  %v2448_v35 = vld [vmem:[%s2873_s13 + $0x218] sm:$0xff]  }
  0x9b   : > { %2215 = vmatprep.subr.bf16.mxu1 %v2386_v47  ;;  %v2452_v40 = vld [vmem:[%s2873_s13 + $0x238] sm:$0xff]   ;;  %s868_s13 = scalar_select %p867_p11, %s2487_s17, 1 }
  0x9d   : > { %2188 = vmatpush3.bf16.msra.mxu0 %v2387_v49  ;;  %s869_s22 = scalar_lea.vmem %s3028_s2, %s868_s13  ;;  %s872_s27 = scalar_lea.vmem %s3029_s3, %s868_s13 }
  0x9e   : > { %2216 = vmatpush3.bf16.msra.mxu1 %v2388_v51  ;;  %2229 = vmatprep.subr.bf16.mxu0 %v2395_v53 }
  0x9f   : > { %2257 = vmatprep.subr.bf16.mxu1 %v2397_v55 }
  0xa0   : > { %1595 = vmatmul.mubr.bf16.vlgmr.msra.gmra.mrb[0].mxu0 %v2389_v48 }
  0xa1   : > { %1644 = vmatmul.mubr.bf16.vlgmr.msra.gmra.mrb[0].mxu1 %v2392_v50  ;;  %2230 = vmatpush3.bf16.msra.mxu0 %v2396_v54 }
  0xa2   : > { %1602 = vmatprep.mubr.bf16.mxu0 %v2416_v52  ;;  %2258 = vmatpush3.bf16.msra.mxu1 %v2398_v56 }
  0xa3   : > { %2231 = vmatprep.subr.bf16.mxu0 %v2399_v57  ;;  %2259 = vmatprep.subr.bf16.mxu1 %v2401_v59 }
  0xa4   : > { %1651 = vmatprep.mubr.bf16.mxu1 %v2418_v10 }
  0xa5   : > { %2232 = vmatpush3.bf16.msra.mxu0 %v2400_v58 }
  0xa6   : > { %2260 = vmatpush3.bf16.msra.mxu1 %v2402_v60  ;;  %2233 = vmatprep.subr.bf16.mxu0 %v2403_v61 }
  0xa7   : > { %2261 = vmatprep.subr.bf16.mxu1 %v2405_v63 }
  0xa8   : > { %1603 = vmatmul.mubr.bf16.gmra.mrb[4].mxu0 %v2421_v12 }
  0xa9   : > { %2234 = vmatpush3.bf16.msra.mxu0 %v2404_v62  ;;  %1652 = vmatmul.mubr.bf16.gmra.mrb[4].mxu1 %v2422_v13 }
  0xaa   : > { %2262 = vmatpush3.bf16.msra.mxu1 %v2406_v0  ;;  %2235 = vmatprep.subr.bf16.mxu0 %v2407_v1 }
  0xab   : > { %2263 = vmatprep.subr.bf16.mxu1 %v2409_v3  ;;  %1692 = vmatprep.mubr.bf16.mxu0 %v2434_v24 }
  0xac   : > { %1741 = vmatprep.mubr.bf16.mxu1 %v2439_v28 }
  0xad   : > { %2236 = vmatpush3.bf16.msra.mxu0 %v2408_v2 }
  0xae   : > { %2264 = vmatpush3.bf16.msra.mxu1 %v2410_v4  ;;  %2237 = vmatprep.subr.bf16.mxu0 %v2411_v5 }
  0xaf   : > { %2265 = vmatprep.subr.bf16.mxu1 %v2413_v7 }
  0xb1   : > { %2238 = vmatpush3.bf16.msra.mxu0 %v2412_v6 }
  0xb2   : > { %2266 = vmatpush3.bf16.msra.mxu1 %v2414_v8  ;;  %2239 = vmatprep.subr.bf16.mxu0 %v2415_v9 }
  0xb3   : > { %2267 = vmatprep.subr.bf16.mxu1 %v2423_v14 }
  0xb5   : > { %2240 = vmatpush3.bf16.msra.mxu0 %v2420_v11 }
  0xb6   : > { %2268 = vmatpush3.bf16.msra.mxu1 %v2424_v15  ;;  %2241 = vmatprep.subr.bf16.mxu0 %v2425_v16 }
  0xb7   : > { %2269 = vmatprep.subr.bf16.mxu1 %v2427_v18 }
  0xb9   : > { %2242 = vmatpush3.bf16.msra.mxu0 %v2426_v17 }
  0xba   : > { %2270 = vmatpush3.bf16.msra.mxu1 %v2428_v19  ;;  %2243 = vmatprep.subr.bf16.mxu0 %v2429_v20 }
  0xbb   : > { %2271 = vmatprep.subr.bf16.mxu1 %v2431_v22 }
  0xbd   : > { %2244 = vmatpush3.bf16.msra.mxu0 %v2430_v21 }
  0xbe   : > { %2272 = vmatpush3.bf16.msra.mxu1 %v2435_v25  ;;  %2295 = vmatprep.subr.bf16.mxu0 %v2436_v26 }
  0xc0   : > { %1693 = vmatmul.mubr.bf16.vlgmr.msra.gmra.mrb[8].mxu0 %v2432_v23 }
  0xc1   : > { %2296 = vmatpush3.bf16.msra.mxu0 %v2436_v26  ;;  %1742 = vmatmul.mubr.bf16.vlgmr.msra.gmra.mrb[8].mxu1 %v2437_v27 }
  0xc2   : > { %2297 = vmatprep.subr.bf16.mxu0 %v2440_v29  ;;  %1700 = vmatprep.mubr.bf16.mxu0 %v2441_v30 }
  0xc3   : > { %1749 = vmatprep.mubr.bf16.mxu1 %v2445_v33 }
  0xc5   : > { %2298 = vmatpush3.bf16.msra.mxu0 %v2440_v29 }
  0xc6   : > { %2299 = vmatprep.subr.bf16.mxu0 %v2444_v32 }
  0xc8   : > { %1701 = vmatmul.mubr.bf16.gmra.mrb[12].mxu0 %v2443_v31 }
  0xc9   : > { %2300 = vmatpush3.bf16.msra.mxu0 %v2444_v32  ;;  %1750 = vmatmul.mubr.bf16.gmra.mrb[12].mxu1 %v2447_v34 }
  0xca   : > { %2301 = vmatprep.subr.bf16.mxu0 %v2448_v35  ;;  %2311 = vmatprep.mubr.bf16.mxu0 %v2453_v37 }
  0xcd   : > { %2302 = vmatpush3.bf16.msra.mxu0 %v2448_v35 }
  0xce   : > { %2303 = vmatprep.subr.bf16.mxu0 %v2449_v36 }
  0xd1   : > { %2304 = vmatpush3.bf16.msra.mxu0 %v2449_v36 }
  0xd2   : > { %2305 = vmatprep.subr.bf16.mxu0 %v2450_v38 }
  0xd5   : > { %2306 = vmatpush3.bf16.msra.mxu0 %v2450_v38 }
  0xd6   : > { %2307 = vmatprep.subr.bf16.mxu0 %v2451_v39 }
  0xd9   : > { %2308 = vmatpush3.bf16.msra.mxu0 %v2451_v39 }
  0xda   : > { %2309 = vmatprep.subr.bf16.mxu0 %v2452_v40 }
  0xdd   : > { %2310 = vmatpush3.bf16.msra.mxu0 %v2452_v40 }
  0xe0   : > { %2312 = vmatmul.mubr.bf16.vlgmr.msra.gmra.mrb[16].mxu0 %v2454_v41 }
 0x173   : > { %v2189_v42 = vpop.f32.mrb[0].mxu0 }
 0x174   : > { %v2217_v43 = vpop.f32.mrb[0].mxu1  ;;  %v2190_v44 = vpop.f32.mrb[1].mxu0 }
 0x175   : > { %v2191_v45 = vadd.f32 %v2190_v44, %v2189_v42  ;;  %v2218_v46 = vpop.f32.mrb[1].mxu1  ;;  %v2192_v47 = vpop.f32.mrb[2].mxu0 }
 0x176   : > { %v2219_v48 = vadd.f32 %v2218_v46, %v2217_v43  ;;  %v2220_v49 = vpop.f32.mrb[2].mxu1  ;;  %v2193_v50 = vpop.f32.mrb[3].mxu0 }
 0x177   : > { %v2194_v51 = vadd.f32 %v2193_v50, %v2192_v47  ;;  %v2221_v52 = vpop.f32.mrb[3].mxu1 }
 0x178   : > { %v1646_v53 = vadd.f32 %v2219_v48, %v2191_v45  ;;  %v2222_v54 = vadd.f32 %v2221_v52, %v2220_v49 }
 0x17a   : > { %v1649_v55 = vadd.f32 %v2222_v54, %v2194_v51 }
 0x17b   : > { %v2195_v56 = vpop.f32.mrb[4].mxu0 }
 0x17c   : > { %v2223_v57 = vpop.f32.mrb[4].mxu1  ;;  %v2196_v58 = vpop.f32.mrb[5].mxu0 }
 0x17d   : > { %v2224_v59 = vpop.f32.mrb[5].mxu1  ;;  %v2197_v60 = vadd.f32 %v2196_v58, %v2195_v56  ;;  %v2198_v62 = vpop.f32.mrb[6].mxu0 }
 0x17e   : > { %v2225_v61 = vadd.f32 %v2224_v59, %v2223_v57  ;;  %v2226_v63 = vpop.f32.mrb[6].mxu1  ;;  %v2199_v0 = vpop.f32.mrb[7].mxu0 }
 0x17f   : > { %v2227_v1 = vpop.f32.mrb[7].mxu1  ;;  %v2200_v3 = vadd.f32 %v2199_v0, %v2198_v62 }
 0x180   : > { %v1654_v2 = vadd.f32 %v2225_v61, %v2197_v60  ;;  %v2228_v4 = vadd.f32 %v2227_v1, %v2226_v63 }
 0x182   : > { %v1657_v5 = vadd.f32 %v2228_v4, %v2200_v3 }
 0x193   : > { %v2245_v6 = vpop.f32.mrb[8].mxu0 }
 0x194   : > { %v2246_v7 = vpop.f32.mrb[9].mxu0  ;;  %v2273_v10 = vpop.f32.mrb[8].mxu1 }
 0x195   : > { %v2247_v8 = vadd.f32 %v2246_v7, %v2245_v6  ;;  %v2248_v9 = vpop.f32.mrb[10].mxu0  ;;  %v2274_v14 = vpop.f32.mrb[9].mxu1 }
 0x196   : > { %v2249_v11 = vpop.f32.mrb[11].mxu0  ;;  %v2275_v15 = vadd.f32 %v2274_v14, %v2273_v10  ;;  %v2276_v16 = vpop.f32.mrb[10].mxu1 }
 0x197   : > { %v1695_v12 = vadd.f32 %v2247_v8, %v1646_v53  ;;  %v2250_v13 = vadd.f32 %v2249_v11, %v2248_v9  ;;  %v2277_v18 = vpop.f32.mrb[11].mxu1 }
 0x198   : > { %v2278_v19 = vadd.f32 %v2277_v18, %v2276_v16 }
 0x199   : > { %v1698_v17 = vadd.f32 %v2250_v13, %v1649_v55  ;;  %v1744_v20 = vadd.f32 %v2275_v15, %v1695_v12  ;;  %v2148_v15 = vld [vmem:[%s869_s22] ss:$0 sm:$0xff] }
 0x19b   : > { %v2251_v21 = vpop.f32.mrb[12].mxu0  ;;  %v1747_v23 = vadd.f32 %v2278_v19, %v1698_v17 }
 0x19c   : > { %v2252_v22 = vpop.f32.mrb[13].mxu0  ;;  %v2279_v26 = vpop.f32.mrb[12].mxu1 }
 0x19d   : > { %v2253_v24 = vadd.f32 %v2252_v22, %v2251_v21  ;;  %v2254_v25 = vpop.f32.mrb[14].mxu0  ;;  %v2280_v30 = vpop.f32.mrb[13].mxu1 }
 0x19e   : > { %v2255_v27 = vpop.f32.mrb[15].mxu0  ;;  %v2281_v31 = vadd.f32 %v2280_v30, %v2279_v26  ;;  %v2282_v32 = vpop.f32.mrb[14].mxu1 }
 0x19f   : > { %v1703_v28 = vadd.f32 %v2253_v24, %v1654_v2  ;;  %v2256_v29 = vadd.f32 %v2255_v27, %v2254_v25  ;;  %v2283_v34 = vpop.f32.mrb[15].mxu1 }
 0x1a0   : > { %v2284_v35 = vadd.f32 %v2283_v34, %v2282_v32 }
 0x1a1   : > { %v1706_v33 = vadd.f32 %v2256_v29, %v1657_v5  ;;  %v1752_v36 = vadd.f32 %v2281_v31, %v1703_v28 }
 0x1a3   : > { %v1755_v37 = vadd.f32 %v2284_v35, %v1706_v33 }
 0x1b3   : > { %v2313_v38 = vpop.f32.mrb[16].mxu0 }
 0x1b4   : > { %v1801_v39 = vadd.f32 %v2313_v38, %v1752_v36  ;;  %v1792_v40 = vpop.f32.mrb[17].mxu0 }
 0x1b5   : > { %v1793_v41 = vadd.f32 %v1792_v40, %v1744_v20  ;;  %v2314_v42 = vpop.f32.mrb[18].mxu0  ;;  %v2149_v20 = vld [vmem:[%s872_s27] ss:$0 sm:$0xff] }
 0x1b6   : > { %v1804_v43 = vadd.f32 %v2314_v42, %v1755_v37  ;;  %v1795_v44 = vpop.f32.mrb[19].mxu0  ;;  %v1819_v49 = vmul.f32 %v1801_v39, %v1801_v39 }
 0x1b7   : > { %v1796_v45 = vadd.f32 %v1795_v44, %v1747_v23  ;;  %v1817_v46 = vmul.f32 %v1793_v41, %v1793_v41 }
 0x1b8   : > { %v1820_v52 = vmul.f32 %v1804_v43, %v1804_v43 }
 0x1b9   : > { %v1807_v47 = vadd.f32 %v1796_v45, %v1793_v41  ;;  %v1818_v48 = vmul.f32 %v1796_v45, %v1796_v45 }
 0x1bb   : > { %v1808_v50 = vadd.f32 %v1807_v47, %v1801_v39  ;;  %v1821_v51 = vadd.f32 %v1818_v48, %v1817_v46 }
 0x1bd   : > { %v1809_v53 = vadd.f32 %v1808_v50, %v1804_v43  ;;  %v1822_v54 = vadd.f32 %v1821_v51, %v1819_v49 }
 0x1bf   : > { %v1810_v55 = vrot.slane %v1809_v53, 4  ;;  %v1823_v56 = vadd.f32 %v1822_v54, %v1820_v52 }
 0x1c1   : > { %v1811_v57 = vadd.f32 %v1810_v55, %v1809_v53  ;;  %v1824_v58 = vrot.slane %v1823_v56, 4 }
 0x1c3   : > { %v1812_v59 = vrot.slane %v1811_v57, 2  ;;  %v1825_v60 = vadd.f32 %v1824_v58, %v1823_v56 }
 0x1c5   : > { %v1813_v61 = vadd.f32 %v1812_v59, %v1811_v57  ;;  %v1826_v62 = vrot.slane %v1825_v60, 2 }
 0x1c7   : > { %v1814_v63 = vrot.slane %v1813_v61, 1  ;;  %v1827_v0 = vadd.f32 %v1826_v62, %v1825_v60 }
 0x1c9   : > { %v1815_v1 = vadd.f32 %v1814_v63, %v1813_v61  ;;  %v1828_v2 = vrot.slane %v1827_v0, 1 }
 0x1cb   : > { %v1816_v3 = vmul.f32 0.03125, %v1815_v1  ;;  %v1829_v4 = vadd.f32 %v1828_v2, %v1827_v0 }
 0x1cd   : > { %v1830_v5 = vmul.f32 0.03125, %v1829_v4  ;;  %v1831_v6 = vmul.f32 %v1816_v3, %v1816_v3  ;;  %v1834_v7 = vsub.f32 %v1793_v41, %v1816_v3  ;;  %v1835_v8 = vsub.f32 %v1796_v45, %v1816_v3 }
 0x1ce   : > { %v1836_v9 = vsub.f32 %v1801_v39, %v1816_v3  ;;  %v1837_v10 = vsub.f32 %v1804_v43, %v1816_v3 }
 0x1cf   : > { %v1832_v11 = vsub.f32 %v1830_v5, %v1831_v6 }
 0x1d1   : > { %v1833_v12 = vmax.f32 %v1832_v11, 0.0 }
 0x1d3   : > { %v1838_v13 = vadd.f32 1e-05, %v1833_v12 }
 0x1d5   : > { %2455 = vrsqrt.f32 %v1838_v13 }
 0x1df   : > { %v2456_v14 = vpop.eup %2455 }
 0x1e0   : > { %v1840_v16 = vmul.f32 %v2456_v14, %v1834_v7  ;;  %v1841_v17 = vmul.f32 %v2456_v14, %v1835_v8  ;;  %v1842_v18 = vmul.f32 %v2456_v14, %v1836_v9  ;;  %v1843_v19 = vmul.f32 %v2456_v14, %v1837_v10 }
 0x1e2   : > { %v1851_v21 = vmul.f32 %v2148_v15, %v1840_v16  ;;  %v1852_v22 = vmul.f32 %v2148_v15, %v1841_v17  ;;  %v1853_v23 = vmul.f32 %v2148_v15, %v1842_v18  ;;  %v1854_v24 = vmul.f32 %v2148_v15, %v1843_v19 }
 0x1e4   : > { %v1862_v25 = vadd.f32 %v2149_v20, %v1851_v21  ;;  %v1863_v26 = vadd.f32 %v2149_v20, %v1852_v22  ;;  %v1864_v27 = vadd.f32 %v2149_v20, %v1853_v23  ;;  %v1865_v28 = vadd.f32 %v2149_v20, %v1854_v24  ;;  %1896 = sbr.rel (!%p2557_p6) target bundleno = 500 (0x1f4), region = 81 }
 0x1e6   : > { %v1866_v29 = vmax.f32 %v1862_v25, 0.0  ;;  %v1867_v30 = vmax.f32 %v1863_v26, 0.0  ;;  %v1868_v31 = vmax.f32 %v1864_v27, 0.0  ;;  %v1869_v32 = vmax.f32 %v1865_v28, 0.0 }
 0x1e8   : > { %v2165_v33 = vpack.c.bf16 %v1867_v30, %v1866_v29  ;;  %v2170_v34 = vpack.c.bf16 %v1869_v32, %v1868_v31 }
 0x1ea   : > { %2166 = vst [vmem:[%s859_s29] sm:$0xff] %v2165_v33   ;;  %2172 = vst [vmem:[%s859_s29 + $0x8] sm:$0xff] %v2170_v34  }
 0x1f1   : > { %v1914_v35 = vld [vmem:[%s859_s29] sm:$0xf]  ;;  %v1916_v36 = vld [vmem:[%s859_s29 + $0x4] sm:$0xf]  ;;  %v1918_v37 = vld [vmem:[%s859_s29 + $0x8] sm:$0xf] }
 0x1f2   : > { %v1920_v38 = vld [vmem:[%s859_s29 + $0xc] sm:$0xf]  ;;  %1915 = vst [vmem:[%s1898_s5] sm:$0xf] %v1914_v35  ;;  %1917 = vst [vmem:[%s1898_s5 + $0x8] sm:$0xf] %v1916_v36 }
 0x1f3   : > { %1919 = vst [vmem:[%s1898_s5 + $0x10] sm:$0xf] %v1918_v37  ;;  %1921 = vst [vmem:[%s1898_s5 + $0x18] sm:$0xf] %v1920_v38 }
 0x1f4 PF: > { %s14_s19 = sadd.s32 1, %s2495_s19   ;;  %s3032_s15 = smov %s2483_s16 }
 0x1f5   : > { %p11_p12 = scmp.ge.s32.totalorder %s14_s19, 4   ;;  %s3033_s16 = smov %s2562_s25 }
 0x1f6   : > { %s3034_s17 = smov %s2491_s18  ;;  %s3035_s18 = smov %s3037_s20 }
 0x1f7   :  { %13 = sbr.rel (!%p11_p12) target bundleno = 3 (0x3), region = 162 }

// kernel: _lambda_.16
= control target key start
LH: loop header
LB: loop body
LE: loop exit
PB: predicated region body
PF: predicated region fallthrough
CT: control target
= control target key end

     0   :  { %s4859_s15 = smov 0   ;;  %s4861_s16 = smov 0   ;;  %s5890_s0 = inlined_call_operand.vmem [shape: bf16[16,2304], index: 0, kind: input, shape index: {}]   ;;  %s5891_s1 = inlined_call_operand.vmem [shape: bf16[2304,512], index: 1, kind: input, shape index: {}]   ;;  %s5892_s2 = inlined_call_operand.vmem [shape: f32[1,512], index: 2, kind: input, shape index: {}]   ;;  %s5893_s3 = inlined_call_operand.vmem [shape: f32[1,512], index: 3, kind: input, shape index: {}]   ;;  %s5894_s4 = inlined_call_operand.vmem [shape: bf16[16,512], index: 4, kind: output, shape index: {}]  }
   0x1   :  { %s4863_s17 = smov 0   ;;  %s4865_s18 = smov 0  }
   0x2   :  { %s4867_s19 = smov 0  }
   0x3 LB: > { %s26_s20 = sadd.s32 1, %s4828_s18  ;;  %s3929_s21 = sadd.s32 4294967295, %s4832_s19   ;;  %s4832_s19 = sphi %s4867_s19, %s14_s19   ;;  %s4828_s18 = sphi %s4865_s18, %s5899_s18   ;;  %s4824_s17 = sphi %s4863_s17, %s5898_s17   ;;  %s4820_s16 = sphi %s4861_s16, %s5897_s16   ;;  %s4816_s15 = sphi %s4859_s15, %s5896_s15  }
   0x4   : > { %p28_p0 = scmp.ge.s32.totalorder %s26_s20, 2  ;;  %p68_p1 = scmp.ne.s32.totalorder %s4820_s16, %s4816_s15 }
   0x5   : > { %p69_p2 = scmp.eq.s32.totalorder %s4832_s19, 0  ;;  %p150_p4 = scmp.eq.s32.totalorder %s3929_s21, 1 }
   0x6   : > { %s5901_s20 = smov (%p28_p0, %s26_s20), 0  ;;  %s61_s23 = sadd.s32 1, %s4820_s16 }
   0x7   : > { %p70_p3 = por %p69_p2, %p68_p1  ;;  %s57_s22 = ssub.s32 %s4828_s18, %s5901_s20 }
   0x8   : > { %p59_p5 = scmp.eq.s32.totalorder %s57_s22, 0  ;;  %p4894_p6 = por %p150_p4, %p68_p1 }
   0x9   : > { %p3933_p7 = scmp.ge.s32.totalorder %s4832_s19, 2 }
   0xa   : > { %s4899_s25 = scalar_select %p59_p5, %s4820_s16, %s61_s23  }
   0xb   : > { %181 = sbr.rel (%p3933_p7) target bundleno = 166 (0xa6), region = 20 }
  0x12   : > { %184 = sbr.rel (!%p70_p3) target bundleno = 166 (0xa6), region = 24  ;;  %s186_s26 = sand.u32 (%p70_p3), 1, %s4820_s16  }
  0x13   : > { %s4253_s27 = sshll.u32 (%p70_p3), %s4828_s18, 3  ;;  %s4289_s28 = smul.u32 (%p70_p3), 2304, %s186_s26 }
  0x14   : > { %s4907_s5 = scalar_lea.vmem (%p70_p3), %s5891_s1, %s4253_s27 }
  0x15   : > { %v796_v0 = vld [vmem:[%s4907_s5] sm:$0xff] (%p70_p3)  ;;  %v798_v1 = vld [vmem:[%s4907_s5 + $0x10] sm:$0xff] (%p70_p3)  ;;  %s4915_s6 = scalar_lea.vmem (%p70_p3), [#allocation3], %s4289_s28 }
  0x16   : > { %v800_v2 = vld [vmem:[%s4907_s5 + $0x20] sm:$0xff] (%p70_p3)  ;;  %v802_v3 = vld [vmem:[%s4907_s5 + $0x30] sm:$0xff] (%p70_p3)  ;;  %797 = vst [vmem:[%s4915_s6] sm:$0xff] (%p70_p3), %v796_v0  ;;  %799 = vst [vmem:[%s4915_s6 + $0x8] sm:$0xff] (%p70_p3), %v798_v1 }
  0x17   : > { %v804_v4 = vld [vmem:[%s4907_s5 + $0x40] sm:$0xff] (%p70_p3)  ;;  %v806_v5 = vld [vmem:[%s4907_s5 + $0x50] sm:$0xff] (%p70_p3)  ;;  %801 = vst [vmem:[%s4915_s6 + $0x10] sm:$0xff] (%p70_p3), %v800_v2  ;;  %803 = vst [vmem:[%s4915_s6 + $0x18] sm:$0xff] (%p70_p3), %v802_v3 }
  0x18   : > { %805 = vst [vmem:[%s4915_s6 + $0x20] sm:$0xff] (%p70_p3), %v804_v4  ;;  %807 = vst [vmem:[%s4915_s6 + $0x28] sm:$0xff] (%p70_p3), %v806_v5  ;;  %v808_v6 = vld [vmem:[%s4907_s5 + $0x60] sm:$0xff] (%p70_p3)  ;;  %v810_v7 = vld [vmem:[%s4907_s5 + $0x70] sm:$0xff] (%p70_p3) }
  0x19   : > { %v812_v8 = vld [vmem:[%s4907_s5 + $0x80] sm:$0xff]  ;;  %809 = vst [vmem:[%s4915_s6 + $0x30] sm:$0xff] %v808_v6  ;;  %811 = vst [vmem:[%s4915_s6 + $0x38] sm:$0xff] %v810_v7  ;;  %v814_v9 = vld [vmem:[%s4907_s5 + $0x90] sm:$0xff] }
  0x1a   : > { %813 = vst [vmem:[%s4915_s6 + $0x40] sm:$0xff] %v812_v8  ;;  %v816_v10 = vld [vmem:[%s4907_s5 + $0xa0] sm:$0xff]  ;;  %v818_v11 = vld [vmem:[%s4907_s5 + $0xb0] sm:$0xff]  ;;  %815 = vst [vmem:[%s4915_s6 + $0x48] sm:$0xff] %v814_v9 }
  0x1b   : > { %817 = vst [vmem:[%s4915_s6 + $0x50] sm:$0xff] %v816_v10  ;;  %819 = vst [vmem:[%s4915_s6 + $0x58] sm:$0xff] %v818_v11  ;;  %v820_v12 = vld [vmem:[%s4907_s5 + $0xc0] sm:$0xff]  ;;  %v822_v13 = vld [vmem:[%s4907_s5 + $0xd0] sm:$0xff] }
  0x1c   : > { %v824_v14 = vld [vmem:[%s4907_s5 + $0xe0] sm:$0xff]  ;;  %821 = vst [vmem:[%s4915_s6 + $0x60] sm:$0xff] %v820_v12  ;;  %823 = vst [vmem:[%s4915_s6 + $0x68] sm:$0xff] %v822_v13  ;;  %v826_v15 = vld [vmem:[%s4907_s5 + $0xf0] sm:$0xff] }
  0x1d   : > { %825 = vst [vmem:[%s4915_s6 + $0x70] sm:$0xff] %v824_v14  ;;  %v828_v16 = vld [vmem:[%s4907_s5 + $0x100] sm:$0xff]  ;;  %v830_v17 = vld [vmem:[%s4907_s5 + $0x110] sm:$0xff]  ;;  %827 = vst [vmem:[%s4915_s6 + $0x78] sm:$0xff] %v826_v15 }
  0x1e   : > { %829 = vst [vmem:[%s4915_s6 + $0x80] sm:$0xff] %v828_v16  ;;  %831 = vst [vmem:[%s4915_s6 + $0x88] sm:$0xff] %v830_v17  ;;  %v832_v18 = vld [vmem:[%s4907_s5 + $0x120] sm:$0xff]  ;;  %v834_v19 = vld [vmem:[%s4907_s5 + $0x130] sm:$0xff] }
  0x1f   : > { %v836_v20 = vld [vmem:[%s4907_s5 + $0x140] sm:$0xff]  ;;  %833 = vst [vmem:[%s4915_s6 + $0x90] sm:$0xff] %v832_v18  ;;  %835 = vst [vmem:[%s4915_s6 + $0x98] sm:$0xff] %v834_v19  ;;  %v838_v21 = vld [vmem:[%s4907_s5 + $0x150] sm:$0xff] }
  0x20   : > { %837 = vst [vmem:[%s4915_s6 + $0xa0] sm:$0xff] %v836_v20  ;;  %v840_v22 = vld [vmem:[%s4907_s5 + $0x160] sm:$0xff]  ;;  %v842_v23 = vld [vmem:[%s4907_s5 + $0x170] sm:$0xff]  ;;  %839 = vst [vmem:[%s4915_s6 + $0xa8] sm:$0xff] %v838_v21 }
  0x21   : > { %841 = vst [vmem:[%s4915_s6 + $0xb0] sm:$0xff] %v840_v22  ;;  %843 = vst [vmem:[%s4915_s6 + $0xb8] sm:$0xff] %v842_v23  ;;  %v844_v24 = vld [vmem:[%s4907_s5 + $0x180] sm:$0xff]  ;;  %v846_v25 = vld [vmem:[%s4907_s5 + $0x190] sm:$0xff] }
  0x22   : > { %v848_v26 = vld [vmem:[%s4907_s5 + $0x1a0] sm:$0xff]  ;;  %845 = vst [vmem:[%s4915_s6 + $0xc0] sm:$0xff] %v844_v24  ;;  %847 = vst [vmem:[%s4915_s6 + $0xc8] sm:$0xff] %v846_v25  ;;  %v850_v27 = vld [vmem:[%s4907_s5 + $0x1b0] sm:$0xff] }
  0x23   : > { %849 = vst [vmem:[%s4915_s6 + $0xd0] sm:$0xff] %v848_v26  ;;  %v852_v28 = vld [vmem:[%s4907_s5 + $0x1c0] sm:$0xff]  ;;  %v854_v29 = vld [vmem:[%s4907_s5 + $0x1d0] sm:$0xff]  ;;  %851 = vst [vmem:[%s4915_s6 + $0xd8] sm:$0xff] %v850_v27 }
  0x24   : > { %853 = vst [vmem:[%s4915_s6 + $0xe0] sm:$0xff] %v852_v28  ;;  %855 = vst [vmem:[%s4915_s6 + $0xe8] sm:$0xff] %v854_v29  ;;  %v856_v30 = vld [vmem:[%s4907_s5 + $0x1e0] sm:$0xff]  ;;  %v858_v31 = vld [vmem:[%s4907_s5 + $0x1f0] sm:$0xff] }
  0x25   : > { %v860_v32 = vld [vmem:[%s4907_s5 + $0x200] sm:$0xff]  ;;  %857 = vst [vmem:[%s4915_s6 + $0xf0] sm:$0xff] %v856_v30  ;;  %859 = vst [vmem:[%s4915_s6 + $0xf8] sm:$0xff] %v858_v31  ;;  %v862_v33 = vld [vmem:[%s4907_s5 + $0x210] sm:$0xff] }
  0x26   : > { %861 = vst [vmem:[%s4915_s6 + $0x100] sm:$0xff] %v860_v32  ;;  %v864_v34 = vld [vmem:[%s4907_s5 + $0x220] sm:$0xff]  ;;  %v866_v35 = vld [vmem:[%s4907_s5 + $0x230] sm:$0xff]  ;;  %863 = vst [vmem:[%s4915_s6 + $0x108] sm:$0xff] %v862_v33 }
  0x27   : > { %865 = vst [vmem:[%s4915_s6 + $0x110] sm:$0xff] %v864_v34  ;;  %867 = vst [vmem:[%s4915_s6 + $0x118] sm:$0xff] %v866_v35  ;;  %v868_v36 = vld [vmem:[%s4907_s5 + $0x240] sm:$0xff]  ;;  %v870_v37 = vld [vmem:[%s4907_s5 + $0x250] sm:$0xff] }
  0x28   : > { %v872_v38 = vld [vmem:[%s4907_s5 + $0x260] sm:$0xff]  ;;  %869 = vst [vmem:[%s4915_s6 + $0x120] sm:$0xff] %v868_v36  ;;  %871 = vst [vmem:[%s4915_s6 + $0x128] sm:$0xff] %v870_v37  ;;  %v874_v39 = vld [vmem:[%s4907_s5 + $0x270] sm:$0xff] }
  0x29   : > { %873 = vst [vmem:[%s4915_s6 + $0x130] sm:$0xff] %v872_v38  ;;  %v876_v40 = vld [vmem:[%s4907_s5 + $0x280] sm:$0xff]  ;;  %v878_v41 = vld [vmem:[%s4907_s5 + $0x290] sm:$0xff]  ;;  %875 = vst [vmem:[%s4915_s6 + $0x138] sm:$0xff] %v874_v39 }
  0x2a   : > { %877 = vst [vmem:[%s4915_s6 + $0x140] sm:$0xff] %v876_v40  ;;  %879 = vst [vmem:[%s4915_s6 + $0x148] sm:$0xff] %v878_v41  ;;  %v880_v42 = vld [vmem:[%s4907_s5 + $0x2a0] sm:$0xff]  ;;  %v882_v43 = vld [vmem:[%s4907_s5 + $0x2b0] sm:$0xff] }
  0x2b   : > { %v884_v44 = vld [vmem:[%s4907_s5 + $0x2c0] sm:$0xff]  ;;  %881 = vst [vmem:[%s4915_s6 + $0x150] sm:$0xff] %v880_v42  ;;  %883 = vst [vmem:[%s4915_s6 + $0x158] sm:$0xff] %v882_v43  ;;  %v886_v45 = vld [vmem:[%s4907_s5 + $0x2d0] sm:$0xff] }
  0x2c   : > { %885 = vst [vmem:[%s4915_s6 + $0x160] sm:$0xff] %v884_v44  ;;  %v888_v46 = vld [vmem:[%s4907_s5 + $0x2e0] sm:$0xff]  ;;  %v890_v47 = vld [vmem:[%s4907_s5 + $0x2f0] sm:$0xff]  ;;  %887 = vst [vmem:[%s4915_s6 + $0x168] sm:$0xff] %v886_v45 }
  0x2d   : > { %889 = vst [vmem:[%s4915_s6 + $0x170] sm:$0xff] %v888_v46  ;;  %891 = vst [vmem:[%s4915_s6 + $0x178] sm:$0xff] %v890_v47  ;;  %v892_v48 = vld [vmem:[%s4907_s5 + $0x300] sm:$0xff]  ;;  %v894_v49 = vld [vmem:[%s4907_s5 + $0x310] sm:$0xff] }
  0x2e   : > { %v896_v50 = vld [vmem:[%s4907_s5 + $0x320] sm:$0xff]  ;;  %893 = vst [vmem:[%s4915_s6 + $0x180] sm:$0xff] %v892_v48  ;;  %895 = vst [vmem:[%s4915_s6 + $0x188] sm:$0xff] %v894_v49  ;;  %v898_v51 = vld [vmem:[%s4907_s5 + $0x330] sm:$0xff] }
  0x2f   : > { %897 = vst [vmem:[%s4915_s6 + $0x190] sm:$0xff] %v896_v50  ;;  %v900_v52 = vld [vmem:[%s4907_s5 + $0x340] sm:$0xff]  ;;  %v902_v53 = vld [vmem:[%s4907_s5 + $0x350] sm:$0xff]  ;;  %899 = vst [vmem:[%s4915_s6 + $0x198] sm:$0xff] %v898_v51 }
  0x30   : > { %901 = vst [vmem:[%s4915_s6 + $0x1a0] sm:$0xff] %v900_v52  ;;  %903 = vst [vmem:[%s4915_s6 + $0x1a8] sm:$0xff] %v902_v53  ;;  %v904_v54 = vld [vmem:[%s4907_s5 + $0x360] sm:$0xff]  ;;  %v906_v55 = vld [vmem:[%s4907_s5 + $0x370] sm:$0xff] }
  0x31   : > { %v908_v56 = vld [vmem:[%s4907_s5 + $0x380] sm:$0xff]  ;;  %905 = vst [vmem:[%s4915_s6 + $0x1b0] sm:$0xff] %v904_v54  ;;  %907 = vst [vmem:[%s4915_s6 + $0x1b8] sm:$0xff] %v906_v55  ;;  %v910_v57 = vld [vmem:[%s4907_s5 + $0x390] sm:$0xff] }
  0x32   : > { %909 = vst [vmem:[%s4915_s6 + $0x1c0] sm:$0xff] %v908_v56  ;;  %v912_v58 = vld [vmem:[%s4907_s5 + $0x3a0] sm:$0xff]  ;;  %v914_v59 = vld [vmem:[%s4907_s5 + $0x3b0] sm:$0xff]  ;;  %911 = vst [vmem:[%s4915_s6 + $0x1c8] sm:$0xff] %v910_v57 }
  0x33   : > { %913 = vst [vmem:[%s4915_s6 + $0x1d0] sm:$0xff] %v912_v58  ;;  %915 = vst [vmem:[%s4915_s6 + $0x1d8] sm:$0xff] %v914_v59  ;;  %v916_v60 = vld [vmem:[%s4907_s5 + $0x3c0] sm:$0xff]  ;;  %v918_v61 = vld [vmem:[%s4907_s5 + $0x3d0] sm:$0xff] }
  0x34   : > { %v920_v62 = vld [vmem:[%s4907_s5 + $0x3e0] sm:$0xff]  ;;  %917 = vst [vmem:[%s4915_s6 + $0x1e0] sm:$0xff] %v916_v60  ;;  %919 = vst [vmem:[%s4915_s6 + $0x1e8] sm:$0xff] %v918_v61  ;;  %v922_v63 = vld [vmem:[%s4907_s5 + $0x3f0] sm:$0xff] }
  0x35   : > { %921 = vst [vmem:[%s4915_s6 + $0x1f0] sm:$0xff] %v920_v62  ;;  %v924_v0 = vld [vmem:[%s4907_s5 + $0x400] sm:$0xff]  ;;  %v926_v1 = vld [vmem:[%s4907_s5 + $0x410] sm:$0xff]  ;;  %923 = vst [vmem:[%s4915_s6 + $0x1f8] sm:$0xff] %v922_v63 }
  0x36   : > { %925 = vst [vmem:[%s4915_s6 + $0x200] sm:$0xff] %v924_v0  ;;  %927 = vst [vmem:[%s4915_s6 + $0x208] sm:$0xff] %v926_v1  ;;  %v928_v2 = vld [vmem:[%s4907_s5 + $0x420] sm:$0xff]  ;;  %v930_v3 = vld [vmem:[%s4907_s5 + $0x430] sm:$0xff] }
  0x37   : > { %v932_v4 = vld [vmem:[%s4907_s5 + $0x440] sm:$0xff]  ;;  %929 = vst [vmem:[%s4915_s6 + $0x210] sm:$0xff] %v928_v2  ;;  %931 = vst [vmem:[%s4915_s6 + $0x218] sm:$0xff] %v930_v3  ;;  %v934_v5 = vld [vmem:[%s4907_s5 + $0x450] sm:$0xff] }
  0x38   : > { %933 = vst [vmem:[%s4915_s6 + $0x220] sm:$0xff] %v932_v4  ;;  %v936_v6 = vld [vmem:[%s4907_s5 + $0x460] sm:$0xff]  ;;  %v938_v7 = vld [vmem:[%s4907_s5 + $0x470] sm:$0xff]  ;;  %935 = vst [vmem:[%s4915_s6 + $0x228] sm:$0xff] %v934_v5 }
  0x39   : > { %937 = vst [vmem:[%s4915_s6 + $0x230] sm:$0xff] %v936_v6  ;;  %939 = vst [vmem:[%s4915_s6 + $0x238] sm:$0xff] %v938_v7  ;;  %v940_v8 = vld [vmem:[%s4907_s5 + $0x480] sm:$0xff]  ;;  %v942_v9 = vld [vmem:[%s4907_s5 + $0x490] sm:$0xff] }
  0x3a   : > { %v944_v10 = vld [vmem:[%s4907_s5 + $0x4a0] sm:$0xff]  ;;  %941 = vst [vmem:[%s4915_s6 + $0x240] sm:$0xff] %v940_v8  ;;  %943 = vst [vmem:[%s4915_s6 + $0x248] sm:$0xff] %v942_v9  ;;  %v946_v11 = vld [vmem:[%s4907_s5 + $0x4b0] sm:$0xff] }
  0x3b   : > { %945 = vst [vmem:[%s4915_s6 + $0x250] sm:$0xff] %v944_v10  ;;  %v948_v12 = vld [vmem:[%s4907_s5 + $0x4c0] sm:$0xff]  ;;  %v950_v13 = vld [vmem:[%s4907_s5 + $0x4d0] sm:$0xff]  ;;  %947 = vst [vmem:[%s4915_s6 + $0x258] sm:$0xff] %v946_v11 }
  0x3c   : > { %949 = vst [vmem:[%s4915_s6 + $0x260] sm:$0xff] %v948_v12  ;;  %951 = vst [vmem:[%s4915_s6 + $0x268] sm:$0xff] %v950_v13  ;;  %v952_v14 = vld [vmem:[%s4907_s5 + $0x4e0] sm:$0xff]  ;;  %v954_v15 = vld [vmem:[%s4907_s5 + $0x4f0] sm:$0xff] }
  0x3d   : > { %v956_v16 = vld [vmem:[%s4907_s5 + $0x500] sm:$0xff]  ;;  %953 = vst [vmem:[%s4915_s6 + $0x270] sm:$0xff] %v952_v14  ;;  %955 = vst [vmem:[%s4915_s6 + $0x278] sm:$0xff] %v954_v15  ;;  %v958_v17 = vld [vmem:[%s4907_s5 + $0x510] sm:$0xff] }
  0x3e   : > { %957 = vst [vmem:[%s4915_s6 + $0x280] sm:$0xff] %v956_v16  ;;  %v960_v18 = vld [vmem:[%s4907_s5 + $0x520] sm:$0xff]  ;;  %v962_v19 = vld [vmem:[%s4907_s5 + $0x530] sm:$0xff]  ;;  %959 = vst [vmem:[%s4915_s6 + $0x288] sm:$0xff] %v958_v17 }
  0x3f   : > { %961 = vst [vmem:[%s4915_s6 + $0x290] sm:$0xff] %v960_v18  ;;  %963 = vst [vmem:[%s4915_s6 + $0x298] sm:$0xff] %v962_v19  ;;  %v964_v20 = vld [vmem:[%s4907_s5 + $0x540] sm:$0xff]  ;;  %v966_v21 = vld [vmem:[%s4907_s5 + $0x550] sm:$0xff] }
  0x40   : > { %v968_v22 = vld [vmem:[%s4907_s5 + $0x560] sm:$0xff]  ;;  %965 = vst [vmem:[%s4915_s6 + $0x2a0] sm:$0xff] %v964_v20  ;;  %967 = vst [vmem:[%s4915_s6 + $0x2a8] sm:$0xff] %v966_v21  ;;  %v970_v23 = vld [vmem:[%s4907_s5 + $0x570] sm:$0xff] }
  0x41   : > { %969 = vst [vmem:[%s4915_s6 + $0x2b0] sm:$0xff] %v968_v22  ;;  %v972_v24 = vld [vmem:[%s4907_s5 + $0x580] sm:$0xff]  ;;  %v974_v25 = vld [vmem:[%s4907_s5 + $0x590] sm:$0xff]  ;;  %971 = vst [vmem:[%s4915_s6 + $0x2b8] sm:$0xff] %v970_v23 }
  0x42   : > { %973 = vst [vmem:[%s4915_s6 + $0x2c0] sm:$0xff] %v972_v24  ;;  %975 = vst [vmem:[%s4915_s6 + $0x2c8] sm:$0xff] %v974_v25  ;;  %v976_v26 = vld [vmem:[%s4907_s5 + $0x5a0] sm:$0xff]  ;;  %v978_v27 = vld [vmem:[%s4907_s5 + $0x5b0] sm:$0xff] }
  0x43   : > { %v980_v28 = vld [vmem:[%s4907_s5 + $0x5c0] sm:$0xff]  ;;  %977 = vst [vmem:[%s4915_s6 + $0x2d0] sm:$0xff] %v976_v26  ;;  %979 = vst [vmem:[%s4915_s6 + $0x2d8] sm:$0xff] %v978_v27  ;;  %v982_v29 = vld [vmem:[%s4907_s5 + $0x5d0] sm:$0xff] }
  0x44   : > { %981 = vst [vmem:[%s4915_s6 + $0x2e0] sm:$0xff] %v980_v28  ;;  %v984_v30 = vld [vmem:[%s4907_s5 + $0x5e0] sm:$0xff]  ;;  %v986_v31 = vld [vmem:[%s4907_s5 + $0x5f0] sm:$0xff]  ;;  %983 = vst [vmem:[%s4915_s6 + $0x2e8] sm:$0xff] %v982_v29 }
  0x45   : > { %985 = vst [vmem:[%s4915_s6 + $0x2f0] sm:$0xff] %v984_v30  ;;  %987 = vst [vmem:[%s4915_s6 + $0x2f8] sm:$0xff] %v986_v31  ;;  %v988_v32 = vld [vmem:[%s4907_s5 + $0x600] sm:$0xff]  ;;  %v990_v33 = vld [vmem:[%s4907_s5 + $0x610] sm:$0xff] }
  0x46   : > { %v992_v34 = vld [vmem:[%s4907_s5 + $0x620] sm:$0xff]  ;;  %989 = vst [vmem:[%s4915_s6 + $0x300] sm:$0xff] %v988_v32  ;;  %991 = vst [vmem:[%s4915_s6 + $0x308] sm:$0xff] %v990_v33  ;;  %v994_v35 = vld [vmem:[%s4907_s5 + $0x630] sm:$0xff] }
  0x47   : > { %993 = vst [vmem:[%s4915_s6 + $0x310] sm:$0xff] %v992_v34  ;;  %v996_v36 = vld [vmem:[%s4907_s5 + $0x640] sm:$0xff]  ;;  %v998_v37 = vld [vmem:[%s4907_s5 + $0x650] sm:$0xff]  ;;  %995 = vst [vmem:[%s4915_s6 + $0x318] sm:$0xff] %v994_v35 }
  0x48   : > { %997 = vst [vmem:[%s4915_s6 + $0x320] sm:$0xff] %v996_v36  ;;  %999 = vst [vmem:[%s4915_s6 + $0x328] sm:$0xff] %v998_v37  ;;  %v1000_v38 = vld [vmem:[%s4907_s5 + $0x660] sm:$0xff]  ;;  %v1002_v39 = vld [vmem:[%s4907_s5 + $0x670] sm:$0xff] }
  0x49   : > { %v1004_v40 = vld [vmem:[%s4907_s5 + $0x680] sm:$0xff]  ;;  %1001 = vst [vmem:[%s4915_s6 + $0x330] sm:$0xff] %v1000_v38  ;;  %1003 = vst [vmem:[%s4915_s6 + $0x338] sm:$0xff] %v1002_v39  ;;  %v1006_v41 = vld [vmem:[%s4907_s5 + $0x690] sm:$0xff] }
  0x4a   : > { %1005 = vst [vmem:[%s4915_s6 + $0x340] sm:$0xff] %v1004_v40  ;;  %v1008_v42 = vld [vmem:[%s4907_s5 + $0x6a0] sm:$0xff]  ;;  %v1010_v43 = vld [vmem:[%s4907_s5 + $0x6b0] sm:$0xff]  ;;  %1007 = vst [vmem:[%s4915_s6 + $0x348] sm:$0xff] %v1006_v41 }
  0x4b   : > { %1009 = vst [vmem:[%s4915_s6 + $0x350] sm:$0xff] %v1008_v42  ;;  %1011 = vst [vmem:[%s4915_s6 + $0x358] sm:$0xff] %v1010_v43  ;;  %v1012_v44 = vld [vmem:[%s4907_s5 + $0x6c0] sm:$0xff]  ;;  %v1014_v45 = vld [vmem:[%s4907_s5 + $0x6d0] sm:$0xff] }
  0x4c   : > { %v1016_v46 = vld [vmem:[%s4907_s5 + $0x6e0] sm:$0xff]  ;;  %1013 = vst [vmem:[%s4915_s6 + $0x360] sm:$0xff] %v1012_v44  ;;  %1015 = vst [vmem:[%s4915_s6 + $0x368] sm:$0xff] %v1014_v45  ;;  %v1018_v47 = vld [vmem:[%s4907_s5 + $0x6f0] sm:$0xff] }
  0x4d   : > { %1017 = vst [vmem:[%s4915_s6 + $0x370] sm:$0xff] %v1016_v46  ;;  %v1020_v48 = vld [vmem:[%s4907_s5 + $0x700] sm:$0xff]  ;;  %v1022_v49 = vld [vmem:[%s4907_s5 + $0x710] sm:$0xff]  ;;  %1019 = vst [vmem:[%s4915_s6 + $0x378] sm:$0xff] %v1018_v47 }
  0x4e   : > { %1021 = vst [vmem:[%s4915_s6 + $0x380] sm:$0xff] %v1020_v48  ;;  %1023 = vst [vmem:[%s4915_s6 + $0x388] sm:$0xff] %v1022_v49  ;;  %v1024_v50 = vld [vmem:[%s4907_s5 + $0x720] sm:$0xff]  ;;  %v1026_v51 = vld [vmem:[%s4907_s5 + $0x730] sm:$0xff] }
  0x4f   : > { %v1028_v52 = vld [vmem:[%s4907_s5 + $0x740] sm:$0xff]  ;;  %1025 = vst [vmem:[%s4915_s6 + $0x390] sm:$0xff] %v1024_v50  ;;  %1027 = vst [vmem:[%s4915_s6 + $0x398] sm:$0xff] %v1026_v51  ;;  %v1030_v53 = vld [vmem:[%s4907_s5 + $0x750] sm:$0xff] }
  0x50   : > { %1029 = vst [vmem:[%s4915_s6 + $0x3a0] sm:$0xff] %v1028_v52  ;;  %v1032_v54 = vld [vmem:[%s4907_s5 + $0x760] sm:$0xff]  ;;  %v1034_v55 = vld [vmem:[%s4907_s5 + $0x770] sm:$0xff]  ;;  %1031 = vst [vmem:[%s4915_s6 + $0x3a8] sm:$0xff] %v1030_v53 }
  0x51   : > { %1033 = vst [vmem:[%s4915_s6 + $0x3b0] sm:$0xff] %v1032_v54  ;;  %1035 = vst [vmem:[%s4915_s6 + $0x3b8] sm:$0xff] %v1034_v55  ;;  %v1036_v56 = vld [vmem:[%s4907_s5 + $0x780] sm:$0xff]  ;;  %v1038_v57 = vld [vmem:[%s4907_s5 + $0x790] sm:$0xff] }
  0x52   : > { %v1040_v58 = vld [vmem:[%s4907_s5 + $0x7a0] sm:$0xff]  ;;  %1037 = vst [vmem:[%s4915_s6 + $0x3c0] sm:$0xff] %v1036_v56  ;;  %1039 = vst [vmem:[%s4915_s6 + $0x3c8] sm:$0xff] %v1038_v57  ;;  %v1042_v59 = vld [vmem:[%s4907_s5 + $0x7b0] sm:$0xff] }
  0x53   : > { %1041 = vst [vmem:[%s4915_s6 + $0x3d0] sm:$0xff] %v1040_v58  ;;  %v1044_v60 = vld [vmem:[%s4907_s5 + $0x7c0] sm:$0xff]  ;;  %v1046_v61 = vld [vmem:[%s4907_s5 + $0x7d0] sm:$0xff]  ;;  %1043 = vst [vmem:[%s4915_s6 + $0x3d8] sm:$0xff] %v1042_v59 }
  0x54   : > { %1045 = vst [vmem:[%s4915_s6 + $0x3e0] sm:$0xff] %v1044_v60  ;;  %1047 = vst [vmem:[%s4915_s6 + $0x3e8] sm:$0xff] %v1046_v61  ;;  %v1048_v62 = vld [vmem:[%s4907_s5 + $0x7e0] sm:$0xff]  ;;  %v1050_v63 = vld [vmem:[%s4907_s5 + $0x7f0] sm:$0xff] }
  0x55   : > { %v1052_v0 = vld [vmem:[%s4907_s5 + $0x800] sm:$0xff]  ;;  %1049 = vst [vmem:[%s4915_s6 + $0x3f0] sm:$0xff] %v1048_v62  ;;  %1051 = vst [vmem:[%s4915_s6 + $0x3f8] sm:$0xff] %v1050_v63  ;;  %v1054_v1 = vld [vmem:[%s4907_s5 + $0x810] sm:$0xff] }
  0x56   : > { %1053 = vst [vmem:[%s4915_s6 + $0x400] sm:$0xff] %v1052_v0  ;;  %v1056_v2 = vld [vmem:[%s4907_s5 + $0x820] sm:$0xff]  ;;  %v1058_v3 = vld [vmem:[%s4907_s5 + $0x830] sm:$0xff]  ;;  %1055 = vst [vmem:[%s4915_s6 + $0x408] sm:$0xff] %v1054_v1 }
  0x57   : > { %1057 = vst [vmem:[%s4915_s6 + $0x410] sm:$0xff] %v1056_v2  ;;  %1059 = vst [vmem:[%s4915_s6 + $0x418] sm:$0xff] %v1058_v3  ;;  %v1060_v4 = vld [vmem:[%s4907_s5 + $0x840] sm:$0xff]  ;;  %v1062_v5 = vld [vmem:[%s4907_s5 + $0x850] sm:$0xff] }
  0x58   : > { %v1064_v6 = vld [vmem:[%s4907_s5 + $0x860] sm:$0xff]  ;;  %1061 = vst [vmem:[%s4915_s6 + $0x420] sm:$0xff] %v1060_v4  ;;  %1063 = vst [vmem:[%s4915_s6 + $0x428] sm:$0xff] %v1062_v5  ;;  %v1066_v7 = vld [vmem:[%s4907_s5 + $0x870] sm:$0xff] }
  0x59   : > { %1065 = vst [vmem:[%s4915_s6 + $0x430] sm:$0xff] %v1064_v6  ;;  %v1068_v8 = vld [vmem:[%s4907_s5 + $0x880] sm:$0xff]  ;;  %v1070_v9 = vld [vmem:[%s4907_s5 + $0x890] sm:$0xff]  ;;  %1067 = vst [vmem:[%s4915_s6 + $0x438] sm:$0xff] %v1066_v7 }
  0x5a   : > { %1069 = vst [vmem:[%s4915_s6 + $0x440] sm:$0xff] %v1068_v8  ;;  %1071 = vst [vmem:[%s4915_s6 + $0x448] sm:$0xff] %v1070_v9  ;;  %v1072_v10 = vld [vmem:[%s4907_s5 + $0x8a0] sm:$0xff]  ;;  %v1074_v11 = vld [vmem:[%s4907_s5 + $0x8b0] sm:$0xff] }
  0x5b   : > { %v1076_v12 = vld [vmem:[%s4907_s5 + $0x8c0] sm:$0xff]  ;;  %1073 = vst [vmem:[%s4915_s6 + $0x450] sm:$0xff] %v1072_v10  ;;  %1075 = vst [vmem:[%s4915_s6 + $0x458] sm:$0xff] %v1074_v11  ;;  %v1078_v13 = vld [vmem:[%s4907_s5 + $0x8d0] sm:$0xff] }
  0x5c   : > { %1077 = vst [vmem:[%s4915_s6 + $0x460] sm:$0xff] %v1076_v12  ;;  %v1080_v14 = vld [vmem:[%s4907_s5 + $0x8e0] sm:$0xff]  ;;  %v1082_v15 = vld [vmem:[%s4907_s5 + $0x8f0] sm:$0xff]  ;;  %1079 = vst [vmem:[%s4915_s6 + $0x468] sm:$0xff] %v1078_v13 }
  0x5d   : > { %1081 = vst [vmem:[%s4915_s6 + $0x470] sm:$0xff] %v1080_v14  ;;  %1083 = vst [vmem:[%s4915_s6 + $0x478] sm:$0xff] %v1082_v15  ;;  %v1084_v16 = vld [vmem:[%s4907_s5 + $0x900] sm:$0xff]  ;;  %v1086_v17 = vld [vmem:[%s4907_s5 + $0x910] sm:$0xff] }
  0x5e   : > { %v1088_v18 = vld [vmem:[%s4907_s5 + $0x920] sm:$0xff]  ;;  %1085 = vst [vmem:[%s4915_s6 + $0x480] sm:$0xff] %v1084_v16  ;;  %1087 = vst [vmem:[%s4915_s6 + $0x488] sm:$0xff] %v1086_v17  ;;  %v1090_v19 = vld [vmem:[%s4907_s5 + $0x930] sm:$0xff] }
  0x5f   : > { %1089 = vst [vmem:[%s4915_s6 + $0x490] sm:$0xff] %v1088_v18  ;;  %v1092_v20 = vld [vmem:[%s4907_s5 + $0x940] sm:$0xff]  ;;  %v1094_v21 = vld [vmem:[%s4907_s5 + $0x950] sm:$0xff]  ;;  %1091 = vst [vmem:[%s4915_s6 + $0x498] sm:$0xff] %v1090_v19 }
  0x60   : > { %1093 = vst [vmem:[%s4915_s6 + $0x4a0] sm:$0xff] %v1092_v20  ;;  %1095 = vst [vmem:[%s4915_s6 + $0x4a8] sm:$0xff] %v1094_v21  ;;  %v1096_v22 = vld [vmem:[%s4907_s5 + $0x960] sm:$0xff]  ;;  %v1098_v23 = vld [vmem:[%s4907_s5 + $0x970] sm:$0xff] }
  0x61   : > { %v1100_v24 = vld [vmem:[%s4907_s5 + $0x980] sm:$0xff]  ;;  %1097 = vst [vmem:[%s4915_s6 + $0x4b0] sm:$0xff] %v1096_v22  ;;  %1099 = vst [vmem:[%s4915_s6 + $0x4b8] sm:$0xff] %v1098_v23  ;;  %v1102_v25 = vld [vmem:[%s4907_s5 + $0x990] sm:$0xff] }
  0x62   : > { %1101 = vst [vmem:[%s4915_s6 + $0x4c0] sm:$0xff] %v1100_v24  ;;  %v1104_v26 = vld [vmem:[%s4907_s5 + $0x9a0] sm:$0xff]  ;;  %v1106_v27 = vld [vmem:[%s4907_s5 + $0x9b0] sm:$0xff]  ;;  %1103 = vst [vmem:[%s4915_s6 + $0x4c8] sm:$0xff] %v1102_v25 }
  0x63   : > { %1105 = vst [vmem:[%s4915_s6 + $0x4d0] sm:$0xff] %v1104_v26  ;;  %1107 = vst [vmem:[%s4915_s6 + $0x4d8] sm:$0xff] %v1106_v27  ;;  %v1108_v28 = vld [vmem:[%s4907_s5 + $0x9c0] sm:$0xff]  ;;  %v1110_v29 = vld [vmem:[%s4907_s5 + $0x9d0] sm:$0xff] }
  0x64   : > { %v1112_v30 = vld [vmem:[%s4907_s5 + $0x9e0] sm:$0xff]  ;;  %1109 = vst [vmem:[%s4915_s6 + $0x4e0] sm:$0xff] %v1108_v28  ;;  %1111 = vst [vmem:[%s4915_s6 + $0x4e8] sm:$0xff] %v1110_v29  ;;  %v1114_v31 = vld [vmem:[%s4907_s5 + $0x9f0] sm:$0xff] }
  0x65   : > { %1113 = vst [vmem:[%s4915_s6 + $0x4f0] sm:$0xff] %v1112_v30  ;;  %v1116_v32 = vld [vmem:[%s4907_s5 + $0xa00] sm:$0xff]  ;;  %v1118_v33 = vld [vmem:[%s4907_s5 + $0xa10] sm:$0xff]  ;;  %1115 = vst [vmem:[%s4915_s6 + $0x4f8] sm:$0xff] %v1114_v31 }
  0x66   : > { %1117 = vst [vmem:[%s4915_s6 + $0x500] sm:$0xff] %v1116_v32  ;;  %1119 = vst [vmem:[%s4915_s6 + $0x508] sm:$0xff] %v1118_v33  ;;  %v1120_v34 = vld [vmem:[%s4907_s5 + $0xa20] sm:$0xff]  ;;  %v1122_v35 = vld [vmem:[%s4907_s5 + $0xa30] sm:$0xff] }
  0x67   : > { %v1124_v36 = vld [vmem:[%s4907_s5 + $0xa40] sm:$0xff]  ;;  %1121 = vst [vmem:[%s4915_s6 + $0x510] sm:$0xff] %v1120_v34  ;;  %1123 = vst [vmem:[%s4915_s6 + $0x518] sm:$0xff] %v1122_v35  ;;  %v1126_v37 = vld [vmem:[%s4907_s5 + $0xa50] sm:$0xff] }
  0x68   : > { %1125 = vst [vmem:[%s4915_s6 + $0x520] sm:$0xff] %v1124_v36  ;;  %v1128_v38 = vld [vmem:[%s4907_s5 + $0xa60] sm:$0xff]  ;;  %v1130_v39 = vld [vmem:[%s4907_s5 + $0xa70] sm:$0xff]  ;;  %1127 = vst [vmem:[%s4915_s6 + $0x528] sm:$0xff] %v1126_v37 }
  0x69   : > { %1129 = vst [vmem:[%s4915_s6 + $0x530] sm:$0xff] %v1128_v38  ;;  %1131 = vst [vmem:[%s4915_s6 + $0x538] sm:$0xff] %v1130_v39  ;;  %v1132_v40 = vld [vmem:[%s4907_s5 + $0xa80] sm:$0xff]  ;;  %v1134_v41 = vld [vmem:[%s4907_s5 + $0xa90] sm:$0xff] }
  0x6a   : > { %v1136_v42 = vld [vmem:[%s4907_s5 + $0xaa0] sm:$0xff]  ;;  %1133 = vst [vmem:[%s4915_s6 + $0x540] sm:$0xff] %v1132_v40  ;;  %1135 = vst [vmem:[%s4915_s6 + $0x548] sm:$0xff] %v1134_v41  ;;  %v1138_v43 = vld [vmem:[%s4907_s5 + $0xab0] sm:$0xff] }
  0x6b   : > { %1137 = vst [vmem:[%s4915_s6 + $0x550] sm:$0xff] %v1136_v42  ;;  %v1140_v44 = vld [vmem:[%s4907_s5 + $0xac0] sm:$0xff]  ;;  %v1142_v45 = vld [vmem:[%s4907_s5 + $0xad0] sm:$0xff]  ;;  %1139 = vst [vmem:[%s4915_s6 + $0x558] sm:$0xff] %v1138_v43 }
  0x6c   : > { %1141 = vst [vmem:[%s4915_s6 + $0x560] sm:$0xff] %v1140_v44  ;;  %1143 = vst [vmem:[%s4915_s6 + $0x568] sm:$0xff] %v1142_v45  ;;  %v1144_v46 = vld [vmem:[%s4907_s5 + $0xae0] sm:$0xff]  ;;  %v1146_v47 = vld [vmem:[%s4907_s5 + $0xaf0] sm:$0xff] }
  0x6d   : > { %v1148_v48 = vld [vmem:[%s4907_s5 + $0xb00] sm:$0xff]  ;;  %1145 = vst [vmem:[%s4915_s6 + $0x570] sm:$0xff] %v1144_v46  ;;  %1147 = vst [vmem:[%s4915_s6 + $0x578] sm:$0xff] %v1146_v47  ;;  %v1150_v49 = vld [vmem:[%s4907_s5 + $0xb10] sm:$0xff] }
  0x6e   : > { %1149 = vst [vmem:[%s4915_s6 + $0x580] sm:$0xff] %v1148_v48  ;;  %v1152_v50 = vld [vmem:[%s4907_s5 + $0xb20] sm:$0xff]  ;;  %v1154_v51 = vld [vmem:[%s4907_s5 + $0xb30] sm:$0xff]  ;;  %1151 = vst [vmem:[%s4915_s6 + $0x588] sm:$0xff] %v1150_v49 }
  0x6f   : > { %1153 = vst [vmem:[%s4915_s6 + $0x590] sm:$0xff] %v1152_v50  ;;  %1155 = vst [vmem:[%s4915_s6 + $0x598] sm:$0xff] %v1154_v51  ;;  %v1156_v52 = vld [vmem:[%s4907_s5 + $0xb40] sm:$0xff]  ;;  %v1158_v53 = vld [vmem:[%s4907_s5 + $0xb50] sm:$0xff] }
  0x70   : > { %v1160_v54 = vld [vmem:[%s4907_s5 + $0xb60] sm:$0xff]  ;;  %1157 = vst [vmem:[%s4915_s6 + $0x5a0] sm:$0xff] %v1156_v52  ;;  %1159 = vst [vmem:[%s4915_s6 + $0x5a8] sm:$0xff] %v1158_v53  ;;  %v1162_v55 = vld [vmem:[%s4907_s5 + $0xb70] sm:$0xff] }
  0x71   : > { %1161 = vst [vmem:[%s4915_s6 + $0x5b0] sm:$0xff] %v1160_v54  ;;  %v1164_v56 = vld [vmem:[%s4907_s5 + $0xb80] sm:$0xff]  ;;  %v1166_v57 = vld [vmem:[%s4907_s5 + $0xb90] sm:$0xff]  ;;  %1163 = vst [vmem:[%s4915_s6 + $0x5b8] sm:$0xff] %v1162_v55 }
  0x72   : > { %1165 = vst [vmem:[%s4915_s6 + $0x5c0] sm:$0xff] %v1164_v56  ;;  %1167 = vst [vmem:[%s4915_s6 + $0x5c8] sm:$0xff] %v1166_v57  ;;  %v1168_v58 = vld [vmem:[%s4907_s5 + $0xba0] sm:$0xff]  ;;  %v1170_v59 = vld [vmem:[%s4907_s5 + $0xbb0] sm:$0xff] }
  0x73   : > { %v1172_v60 = vld [vmem:[%s4907_s5 + $0xbc0] sm:$0xff]  ;;  %1169 = vst [vmem:[%s4915_s6 + $0x5d0] sm:$0xff] %v1168_v58  ;;  %1171 = vst [vmem:[%s4915_s6 + $0x5d8] sm:$0xff] %v1170_v59  ;;  %v1174_v61 = vld [vmem:[%s4907_s5 + $0xbd0] sm:$0xff] }
  0x74   : > { %1173 = vst [vmem:[%s4915_s6 + $0x5e0] sm:$0xff] %v1172_v60  ;;  %v1176_v62 = vld [vmem:[%s4907_s5 + $0xbe0] sm:$0xff]  ;;  %v1178_v63 = vld [vmem:[%s4907_s5 + $0xbf0] sm:$0xff]  ;;  %1175 = vst [vmem:[%s4915_s6 + $0x5e8] sm:$0xff] %v1174_v61 }
  0x75   : > { %1177 = vst [vmem:[%s4915_s6 + $0x5f0] sm:$0xff] %v1176_v62  ;;  %1179 = vst [vmem:[%s4915_s6 + $0x5f8] sm:$0xff] %v1178_v63  ;;  %v1180_v0 = vld [vmem:[%s4907_s5 + $0xc00] sm:$0xff]  ;;  %v1182_v1 = vld [vmem:[%s4907_s5 + $0xc10] sm:$0xff] }
  0x76   : > { %v1184_v2 = vld [vmem:[%s4907_s5 + $0xc20] sm:$0xff]  ;;  %1181 = vst [vmem:[%s4915_s6 + $0x600] sm:$0xff] %v1180_v0  ;;  %1183 = vst [vmem:[%s4915_s6 + $0x608] sm:$0xff] %v1182_v1  ;;  %v1186_v3 = vld [vmem:[%s4907_s5 + $0xc30] sm:$0xff] }
  0x77   : > { %1185 = vst [vmem:[%s4915_s6 + $0x610] sm:$0xff] %v1184_v2  ;;  %v1188_v4 = vld [vmem:[%s4907_s5 + $0xc40] sm:$0xff]  ;;  %v1190_v5 = vld [vmem:[%s4907_s5 + $0xc50] sm:$0xff]  ;;  %1187 = vst [vmem:[%s4915_s6 + $0x618] sm:$0xff] %v1186_v3 }
  0x78   : > { %1189 = vst [vmem:[%s4915_s6 + $0x620] sm:$0xff] %v1188_v4  ;;  %1191 = vst [vmem:[%s4915_s6 + $0x628] sm:$0xff] %v1190_v5  ;;  %v1192_v6 = vld [vmem:[%s4907_s5 + $0xc60] sm:$0xff]  ;;  %v1194_v7 = vld [vmem:[%s4907_s5 + $0xc70] sm:$0xff] }
  0x79   : > { %v1196_v8 = vld [vmem:[%s4907_s5 + $0xc80] sm:$0xff]  ;;  %1193 = vst [vmem:[%s4915_s6 + $0x630] sm:$0xff] %v1192_v6  ;;  %1195 = vst [vmem:[%s4915_s6 + $0x638] sm:$0xff] %v1194_v7  ;;  %v1198_v9 = vld [vmem:[%s4907_s5 + $0xc90] sm:$0xff] }
  0x7a   : > { %1197 = vst [vmem:[%s4915_s6 + $0x640] sm:$0xff] %v1196_v8  ;;  %v1200_v10 = vld [vmem:[%s4907_s5 + $0xca0] sm:$0xff]  ;;  %v1202_v11 = vld [vmem:[%s4907_s5 + $0xcb0] sm:$0xff]  ;;  %1199 = vst [vmem:[%s4915_s6 + $0x648] sm:$0xff] %v1198_v9 }
  0x7b   : > { %1201 = vst [vmem:[%s4915_s6 + $0x650] sm:$0xff] %v1200_v10  ;;  %1203 = vst [vmem:[%s4915_s6 + $0x658] sm:$0xff] %v1202_v11  ;;  %v1204_v12 = vld [vmem:[%s4907_s5 + $0xcc0] sm:$0xff]  ;;  %v1206_v13 = vld [vmem:[%s4907_s5 + $0xcd0] sm:$0xff] }
  0x7c   : > { %v1208_v14 = vld [vmem:[%s4907_s5 + $0xce0] sm:$0xff]  ;;  %1205 = vst [vmem:[%s4915_s6 + $0x660] sm:$0xff] %v1204_v12  ;;  %1207 = vst [vmem:[%s4915_s6 + $0x668] sm:$0xff] %v1206_v13  ;;  %v1210_v15 = vld [vmem:[%s4907_s5 + $0xcf0] sm:$0xff] }
  0x7d   : > { %1209 = vst [vmem:[%s4915_s6 + $0x670] sm:$0xff] %v1208_v14  ;;  %v1212_v16 = vld [vmem:[%s4907_s5 + $0xd00] sm:$0xff]  ;;  %v1214_v17 = vld [vmem:[%s4907_s5 + $0xd10] sm:$0xff]  ;;  %1211 = vst [vmem:[%s4915_s6 + $0x678] sm:$0xff] %v1210_v15 }
  0x7e   : > { %1213 = vst [vmem:[%s4915_s6 + $0x680] sm:$0xff] %v1212_v16  ;;  %1215 = vst [vmem:[%s4915_s6 + $0x688] sm:$0xff] %v1214_v17  ;;  %v1216_v18 = vld [vmem:[%s4907_s5 + $0xd20] sm:$0xff]  ;;  %v1218_v19 = vld [vmem:[%s4907_s5 + $0xd30] sm:$0xff] }
  0x7f   : > { %v1220_v20 = vld [vmem:[%s4907_s5 + $0xd40] sm:$0xff]  ;;  %1217 = vst [vmem:[%s4915_s6 + $0x690] sm:$0xff] %v1216_v18  ;;  %1219 = vst [vmem:[%s4915_s6 + $0x698] sm:$0xff] %v1218_v19  ;;  %v1222_v21 = vld [vmem:[%s4907_s5 + $0xd50] sm:$0xff] }
  0x80   : > { %1221 = vst [vmem:[%s4915_s6 + $0x6a0] sm:$0xff] %v1220_v20  ;;  %v1224_v22 = vld [vmem:[%s4907_s5 + $0xd60] sm:$0xff]  ;;  %v1226_v23 = vld [vmem:[%s4907_s5 + $0xd70] sm:$0xff]  ;;  %1223 = vst [vmem:[%s4915_s6 + $0x6a8] sm:$0xff] %v1222_v21 }
  0x81   : > { %1225 = vst [vmem:[%s4915_s6 + $0x6b0] sm:$0xff] %v1224_v22  ;;  %1227 = vst [vmem:[%s4915_s6 + $0x6b8] sm:$0xff] %v1226_v23  ;;  %v1228_v24 = vld [vmem:[%s4907_s5 + $0xd80] sm:$0xff]  ;;  %v1230_v25 = vld [vmem:[%s4907_s5 + $0xd90] sm:$0xff] }
  0x82   : > { %v1232_v26 = vld [vmem:[%s4907_s5 + $0xda0] sm:$0xff]  ;;  %1229 = vst [vmem:[%s4915_s6 + $0x6c0] sm:$0xff] %v1228_v24  ;;  %1231 = vst [vmem:[%s4915_s6 + $0x6c8] sm:$0xff] %v1230_v25  ;;  %v1234_v27 = vld [vmem:[%s4907_s5 + $0xdb0] sm:$0xff] }
  0x83   : > { %1233 = vst [vmem:[%s4915_s6 + $0x6d0] sm:$0xff] %v1232_v26  ;;  %v1236_v28 = vld [vmem:[%s4907_s5 + $0xdc0] sm:$0xff]  ;;  %v1238_v29 = vld [vmem:[%s4907_s5 + $0xdd0] sm:$0xff]  ;;  %1235 = vst [vmem:[%s4915_s6 + $0x6d8] sm:$0xff] %v1234_v27 }
  0x84   : > { %1237 = vst [vmem:[%s4915_s6 + $0x6e0] sm:$0xff] %v1236_v28  ;;  %1239 = vst [vmem:[%s4915_s6 + $0x6e8] sm:$0xff] %v1238_v29  ;;  %v1240_v30 = vld [vmem:[%s4907_s5 + $0xde0] sm:$0xff]  ;;  %v1242_v31 = vld [vmem:[%s4907_s5 + $0xdf0] sm:$0xff] }
  0x85   : > { %v1244_v32 = vld [vmem:[%s4907_s5 + $0xe00] sm:$0xff]  ;;  %1241 = vst [vmem:[%s4915_s6 + $0x6f0] sm:$0xff] %v1240_v30  ;;  %1243 = vst [vmem:[%s4915_s6 + $0x6f8] sm:$0xff] %v1242_v31  ;;  %v1246_v33 = vld [vmem:[%s4907_s5 + $0xe10] sm:$0xff] }
  0x86   : > { %1245 = vst [vmem:[%s4915_s6 + $0x700] sm:$0xff] %v1244_v32  ;;  %v1248_v34 = vld [vmem:[%s4907_s5 + $0xe20] sm:$0xff]  ;;  %v1250_v35 = vld [vmem:[%s4907_s5 + $0xe30] sm:$0xff]  ;;  %1247 = vst [vmem:[%s4915_s6 + $0x708] sm:$0xff] %v1246_v33 }
  0x87   : > { %1249 = vst [vmem:[%s4915_s6 + $0x710] sm:$0xff] %v1248_v34  ;;  %1251 = vst [vmem:[%s4915_s6 + $0x718] sm:$0xff] %v1250_v35  ;;  %v1252_v36 = vld [vmem:[%s4907_s5 + $0xe40] sm:$0xff]  ;;  %v1254_v37 = vld [vmem:[%s4907_s5 + $0xe50] sm:$0xff] }
  0x88   : > { %v1256_v38 = vld [vmem:[%s4907_s5 + $0xe60] sm:$0xff]  ;;  %1253 = vst [vmem:[%s4915_s6 + $0x720] sm:$0xff] %v1252_v36  ;;  %1255 = vst [vmem:[%s4915_s6 + $0x728] sm:$0xff] %v1254_v37  ;;  %v1258_v39 = vld [vmem:[%s4907_s5 + $0xe70] sm:$0xff] }
  0x89   : > { %1257 = vst [vmem:[%s4915_s6 + $0x730] sm:$0xff] %v1256_v38  ;;  %v1260_v40 = vld [vmem:[%s4907_s5 + $0xe80] sm:$0xff]  ;;  %v1262_v41 = vld [vmem:[%s4907_s5 + $0xe90] sm:$0xff]  ;;  %1259 = vst [vmem:[%s4915_s6 + $0x738] sm:$0xff] %v1258_v39 }
  0x8a   : > { %1261 = vst [vmem:[%s4915_s6 + $0x740] sm:$0xff] %v1260_v40  ;;  %1263 = vst [vmem:[%s4915_s6 + $0x748] sm:$0xff] %v1262_v41  ;;  %v1264_v42 = vld [vmem:[%s4907_s5 + $0xea0] sm:$0xff]  ;;  %v1266_v43 = vld [vmem:[%s4907_s5 + $0xeb0] sm:$0xff] }
  0x8b   : > { %v1268_v44 = vld [vmem:[%s4907_s5 + $0xec0] sm:$0xff]  ;;  %1265 = vst [vmem:[%s4915_s6 + $0x750] sm:$0xff] %v1264_v42  ;;  %1267 = vst [vmem:[%s4915_s6 + $0x758] sm:$0xff] %v1266_v43  ;;  %v1270_v45 = vld [vmem:[%s4907_s5 + $0xed0] sm:$0xff] }
  0x8c   : > { %1269 = vst [vmem:[%s4915_s6 + $0x760] sm:$0xff] %v1268_v44  ;;  %v1272_v46 = vld [vmem:[%s4907_s5 + $0xee0] sm:$0xff]  ;;  %v1274_v47 = vld [vmem:[%s4907_s5 + $0xef0] sm:$0xff]  ;;  %1271 = vst [vmem:[%s4915_s6 + $0x768] sm:$0xff] %v1270_v45 }
  0x8d   : > { %1273 = vst [vmem:[%s4915_s6 + $0x770] sm:$0xff] %v1272_v46  ;;  %1275 = vst [vmem:[%s4915_s6 + $0x778] sm:$0xff] %v1274_v47  ;;  %v1276_v48 = vld [vmem:[%s4907_s5 + $0xf00] sm:$0xff]  ;;  %v1278_v49 = vld [vmem:[%s4907_s5 + $0xf10] sm:$0xff] }
  0x8e   : > { %v1280_v50 = vld [vmem:[%s4907_s5 + $0xf20] sm:$0xff]  ;;  %1277 = vst [vmem:[%s4915_s6 + $0x780] sm:$0xff] %v1276_v48  ;;  %1279 = vst [vmem:[%s4915_s6 + $0x788] sm:$0xff] %v1278_v49  ;;  %v1282_v51 = vld [vmem:[%s4907_s5 + $0xf30] sm:$0xff] }
  0x8f   : > { %1281 = vst [vmem:[%s4915_s6 + $0x790] sm:$0xff] %v1280_v50  ;;  %v1284_v52 = vld [vmem:[%s4907_s5 + $0xf40] sm:$0xff]  ;;  %v1286_v53 = vld [vmem:[%s4907_s5 + $0xf50] sm:$0xff]  ;;  %1283 = vst [vmem:[%s4915_s6 + $0x798] sm:$0xff] %v1282_v51 }
  0x90   : > { %1285 = vst [vmem:[%s4915_s6 + $0x7a0] sm:$0xff] %v1284_v52  ;;  %1287 = vst [vmem:[%s4915_s6 + $0x7a8] sm:$0xff] %v1286_v53  ;;  %v1288_v54 = vld [vmem:[%s4907_s5 + $0xf60] sm:$0xff]  ;;  %v1290_v55 = vld [vmem:[%s4907_s5 + $0xf70] sm:$0xff] }
  0x91   : > { %v1292_v56 = vld [vmem:[%s4907_s5 + $0xf80] sm:$0xff]  ;;  %1289 = vst [vmem:[%s4915_s6 + $0x7b0] sm:$0xff] %v1288_v54  ;;  %1291 = vst [vmem:[%s4915_s6 + $0x7b8] sm:$0xff] %v1290_v55  ;;  %v1294_v57 = vld [vmem:[%s4907_s5 + $0xf90] sm:$0xff] }
  0x92   : > { %1293 = vst [vmem:[%s4915_s6 + $0x7c0] sm:$0xff] %v1292_v56  ;;  %v1296_v58 = vld [vmem:[%s4907_s5 + $0xfa0] sm:$0xff]  ;;  %v1298_v59 = vld [vmem:[%s4907_s5 + $0xfb0] sm:$0xff]  ;;  %1295 = vst [vmem:[%s4915_s6 + $0x7c8] sm:$0xff] %v1294_v57 }
  0x93   : > { %1297 = vst [vmem:[%s4915_s6 + $0x7d0] sm:$0xff] %v1296_v58  ;;  %1299 = vst [vmem:[%s4915_s6 + $0x7d8] sm:$0xff] %v1298_v59  ;;  %v1300_v60 = vld [vmem:[%s4907_s5 + $0xfc0] sm:$0xff]  ;;  %v1302_v61 = vld [vmem:[%s4907_s5 + $0xfd0] sm:$0xff] }
  0x94   : > { %v1304_v62 = vld [vmem:[%s4907_s5 + $0xfe0] sm:$0xff]  ;;  %1301 = vst [vmem:[%s4915_s6 + $0x7e0] sm:$0xff] %v1300_v60  ;;  %1303 = vst [vmem:[%s4915_s6 + $0x7e8] sm:$0xff] %v1302_v61  ;;  %v1306_v63 = vld [vmem:[%s4907_s5 + $0xff0] sm:$0xff] }
  0x95   : > { %1305 = vst [vmem:[%s4915_s6 + $0x7f0] sm:$0xff] %v1304_v62  ;;  %v1308_v0 = vld [vmem:[%s4907_s5 + $0x1000] sm:$0xff]  ;;  %v1310_v1 = vld [vmem:[%s4907_s5 + $0x1010] sm:$0xff]  ;;  %1307 = vst [vmem:[%s4915_s6 + $0x7f8] sm:$0xff] %v1306_v63 }
  0x96   : > { %1309 = vst [vmem:[%s4915_s6 + $0x800] sm:$0xff] %v1308_v0  ;;  %1311 = vst [vmem:[%s4915_s6 + $0x808] sm:$0xff] %v1310_v1  ;;  %v1312_v2 = vld [vmem:[%s4907_s5 + $0x1020] sm:$0xff]  ;;  %v1314_v3 = vld [vmem:[%s4907_s5 + $0x1030] sm:$0xff] }
  0x97   : > { %v1316_v4 = vld [vmem:[%s4907_s5 + $0x1040] sm:$0xff]  ;;  %1313 = vst [vmem:[%s4915_s6 + $0x810] sm:$0xff] %v1312_v2  ;;  %1315 = vst [vmem:[%s4915_s6 + $0x818] sm:$0xff] %v1314_v3  ;;  %v1318_v5 = vld [vmem:[%s4907_s5 + $0x1050] sm:$0xff] }
  0x98   : > { %1317 = vst [vmem:[%s4915_s6 + $0x820] sm:$0xff] %v1316_v4  ;;  %v1320_v6 = vld [vmem:[%s4907_s5 + $0x1060] sm:$0xff]  ;;  %v1322_v7 = vld [vmem:[%s4907_s5 + $0x1070] sm:$0xff]  ;;  %1319 = vst [vmem:[%s4915_s6 + $0x828] sm:$0xff] %v1318_v5 }
  0x99   : > { %1321 = vst [vmem:[%s4915_s6 + $0x830] sm:$0xff] %v1320_v6  ;;  %1323 = vst [vmem:[%s4915_s6 + $0x838] sm:$0xff] %v1322_v7  ;;  %v1324_v8 = vld [vmem:[%s4907_s5 + $0x1080] sm:$0xff]  ;;  %v1326_v9 = vld [vmem:[%s4907_s5 + $0x1090] sm:$0xff] }
  0x9a   : > { %v1328_v10 = vld [vmem:[%s4907_s5 + $0x10a0] sm:$0xff]  ;;  %1325 = vst [vmem:[%s4915_s6 + $0x840] sm:$0xff] %v1324_v8  ;;  %1327 = vst [vmem:[%s4915_s6 + $0x848] sm:$0xff] %v1326_v9  ;;  %v1330_v11 = vld [vmem:[%s4907_s5 + $0x10b0] sm:$0xff] }
  0x9b   : > { %1329 = vst [vmem:[%s4915_s6 + $0x850] sm:$0xff] %v1328_v10  ;;  %v1332_v12 = vld [vmem:[%s4907_s5 + $0x10c0] sm:$0xff]  ;;  %v1334_v13 = vld [vmem:[%s4907_s5 + $0x10d0] sm:$0xff]  ;;  %1331 = vst [vmem:[%s4915_s6 + $0x858] sm:$0xff] %v1330_v11 }
  0x9c   : > { %1333 = vst [vmem:[%s4915_s6 + $0x860] sm:$0xff] %v1332_v12  ;;  %1335 = vst [vmem:[%s4915_s6 + $0x868] sm:$0xff] %v1334_v13  ;;  %v1336_v14 = vld [vmem:[%s4907_s5 + $0x10e0] sm:$0xff]  ;;  %v1338_v15 = vld [vmem:[%s4907_s5 + $0x10f0] sm:$0xff] }
  0x9d   : > { %v1340_v16 = vld [vmem:[%s4907_s5 + $0x1100] sm:$0xff]  ;;  %1337 = vst [vmem:[%s4915_s6 + $0x870] sm:$0xff] %v1336_v14  ;;  %1339 = vst [vmem:[%s4915_s6 + $0x878] sm:$0xff] %v1338_v15  ;;  %v1342_v17 = vld [vmem:[%s4907_s5 + $0x1110] sm:$0xff] }
  0x9e   : > { %1341 = vst [vmem:[%s4915_s6 + $0x880] sm:$0xff] %v1340_v16  ;;  %v1344_v18 = vld [vmem:[%s4907_s5 + $0x1120] sm:$0xff]  ;;  %v1346_v19 = vld [vmem:[%s4907_s5 + $0x1130] sm:$0xff]  ;;  %1343 = vst [vmem:[%s4915_s6 + $0x888] sm:$0xff] %v1342_v17 }
  0x9f   : > { %1345 = vst [vmem:[%s4915_s6 + $0x890] sm:$0xff] %v1344_v18  ;;  %1347 = vst [vmem:[%s4915_s6 + $0x898] sm:$0xff] %v1346_v19  ;;  %v1348_v20 = vld [vmem:[%s4907_s5 + $0x1140] sm:$0xff]  ;;  %v1350_v21 = vld [vmem:[%s4907_s5 + $0x1150] sm:$0xff] }
  0xa0   : > { %v1352_v22 = vld [vmem:[%s4907_s5 + $0x1160] sm:$0xff]  ;;  %1349 = vst [vmem:[%s4915_s6 + $0x8a0] sm:$0xff] %v1348_v20  ;;  %1351 = vst [vmem:[%s4915_s6 + $0x8a8] sm:$0xff] %v1350_v21  ;;  %v1354_v23 = vld [vmem:[%s4907_s5 + $0x1170] sm:$0xff] }
  0xa1   : > { %1353 = vst [vmem:[%s4915_s6 + $0x8b0] sm:$0xff] %v1352_v22  ;;  %v1356_v24 = vld [vmem:[%s4907_s5 + $0x1180] sm:$0xff]  ;;  %v1358_v25 = vld [vmem:[%s4907_s5 + $0x1190] sm:$0xff]  ;;  %1355 = vst [vmem:[%s4915_s6 + $0x8b8] sm:$0xff] %v1354_v23 }
  0xa2   : > { %1357 = vst [vmem:[%s4915_s6 + $0x8c0] sm:$0xff] %v1356_v24  ;;  %1359 = vst [vmem:[%s4915_s6 + $0x8c8] sm:$0xff] %v1358_v25  ;;  %v1360_v26 = vld [vmem:[%s4907_s5 + $0x11a0] sm:$0xff]  ;;  %v1362_v27 = vld [vmem:[%s4907_s5 + $0x11b0] sm:$0xff] }
  0xa3   : > { %v1364_v28 = vld [vmem:[%s4907_s5 + $0x11c0] sm:$0xff]  ;;  %1361 = vst [vmem:[%s4915_s6 + $0x8d0] sm:$0xff] %v1360_v26  ;;  %1363 = vst [vmem:[%s4915_s6 + $0x8d8] sm:$0xff] %v1362_v27  ;;  %v1366_v29 = vld [vmem:[%s4907_s5 + $0x11d0] sm:$0xff] }
  0xa4   : > { %1365 = vst [vmem:[%s4915_s6 + $0x8e0] sm:$0xff] %v1364_v28  ;;  %v1368_v30 = vld [vmem:[%s4907_s5 + $0x11e0] sm:$0xff]  ;;  %v1370_v31 = vld [vmem:[%s4907_s5 + $0x11f0] sm:$0xff]  ;;  %1367 = vst [vmem:[%s4915_s6 + $0x8e8] sm:$0xff] %v1366_v29 }
  0xa5   : > { %1369 = vst [vmem:[%s4915_s6 + $0x8f0] sm:$0xff] %v1368_v30  ;;  %1371 = vst [vmem:[%s4915_s6 + $0x8f8] sm:$0xff] %v1370_v31 }
  0xa6 PF: > { %p3936_p8 = scmp.ge.s32.totalorder %s4832_s19, 1  ;;  %p1392_p9 = scmp.lt.s32.totalorder %s4832_s19, 3 }
  0xa8   : > { %p1393_p10 = pnand %p3936_p8, %p1392_p9 }
  0xa9   : > { %s1399_s7 = sand.u32 (!%p1393_p10), 1, %s4816_s15   ;;  %v4429_v32 = vld [vmem:[%s5890_s0 + $0x4] ss:$72 sps:$4 sm:$0xff] (!%p1393_p10)  }
  0xaa   : > { %1396 = sbr.rel (%p1393_p10) target bundleno = 767 (0x2ff), region = 70  ;;  %v4435_v33 = vld [vmem:[%s5890_s0 + $0x24] ss:$72 sps:$4 sm:$0xff] (!%p1393_p10)   ;;  %3323 = vmatprep.mubr.bf16.mxu1 (!%p1393_p10), %v4429_v32  ;;  %s3937_s28 = sshll.u32 (!%p1393_p10), %s1399_s7, 4 }
  0xab   : > { %s4290_s8 = smul.u32 (!%p1393_p10), 2304, %s1399_s7  ;;  %3495 = vmatprep.mubr.bf16.mxu0 (!%p1393_p10), %v4435_v33  ;;  %s1435_s29 = scalar_lea.vmem (!%p1393_p10), [#allocation4], %s3937_s28 }
  0xad   : > { %s5498_s13 = scalar_lea.vmem (!%p1393_p10), [#allocation3], %s4290_s8 }
  0xae   : > { %v4331_v34 = vld [vmem:[%s5498_s13 + $0x4] ss:$8 sps:$4 sm:$0xff] (!%p1393_p10)   ;;  %v4335_v36 = vld [vmem:[%s5498_s13] ss:$8 sps:$4 sm:$0xff] (!%p1393_p10)   ;;  %v4337_v38 = vld [vmem:[%s5498_s13 + $0x14] ss:$8 sps:$4 sm:$0xff] (!%p1393_p10)  }
  0xaf   : > { %v4333_v35 = vld [vmem:[%s5498_s13 + $0x404] ss:$8 sps:$4 sm:$0xff] (!%p1393_p10)   ;;  %3291 = vmatprep.subr.bf16.mxu1 (!%p1393_p10), %v4331_v34  ;;  %v4336_v37 = vld [vmem:[%s5498_s13 + $0x400] ss:$8 sps:$4 sm:$0xff] (!%p1393_p10)   ;;  %v4339_v39 = vld [vmem:[%s5498_s13 + $0x414] ss:$8 sps:$4 sm:$0xff] (!%p1393_p10)  }
  0xb0   : > { %3463 = vmatprep.subr.bf16.mxu0 (!%p1393_p10), %v4333_v35  ;;  %3292 = vmatpush1.bf16.msra.mxu1 (!%p1393_p10), %v4335_v36  ;;  %v4341_v40 = vld [vmem:[%s5498_s13 + $0x10] ss:$8 sps:$4 sm:$0xff] (!%p1393_p10)   ;;  %v4343_v42 = vld [vmem:[%s5498_s13 + $0x24] ss:$8 sps:$4 sm:$0xff] (!%p1393_p10)   ;;  %v4347_v44 = vld [vmem:[%s5498_s13 + $0x20] ss:$8 sps:$4 sm:$0xff] (!%p1393_p10)  }
  0xb1   : > { %3464 = vmatpush1.bf16.msra.mxu0 %v4336_v37  ;;  %3293 = vmatprep.subr.bf16.mxu1 %v4337_v38  ;;  %v4342_v41 = vld [vmem:[%s5498_s13 + $0x410] ss:$8 sps:$4 sm:$0xff]   ;;  %v4345_v43 = vld [vmem:[%s5498_s13 + $0x424] ss:$8 sps:$4 sm:$0xff]   ;;  %v4348_v45 = vld [vmem:[%s5498_s13 + $0x420] ss:$8 sps:$4 sm:$0xff]  }
  0xb2   : > { %3465 = vmatprep.subr.bf16.mxu0 %v4339_v39  ;;  %v4349_v46 = vld [vmem:[%s5498_s13 + $0x34] ss:$8 sps:$4 sm:$0xff]   ;;  %v4353_v48 = vld [vmem:[%s5498_s13 + $0x30] ss:$8 sps:$4 sm:$0xff]   ;;  %v4355_v50 = vld [vmem:[%s5498_s13 + $0x44] ss:$8 sps:$4 sm:$0xff]  }
  0xb3   : > { %v4351_v47 = vld [vmem:[%s5498_s13 + $0x434] ss:$8 sps:$4 sm:$0xff]   ;;  %v4354_v49 = vld [vmem:[%s5498_s13 + $0x430] ss:$8 sps:$4 sm:$0xff]   ;;  %v4357_v51 = vld [vmem:[%s5498_s13 + $0x444] ss:$8 sps:$4 sm:$0xff]  }
  0xb4   : > { %3294 = vmatpush1.bf16.msra.mxu1 %v4341_v40  ;;  %v4359_v52 = vld [vmem:[%s5498_s13 + $0x40] ss:$8 sps:$4 sm:$0xff]   ;;  %v4361_v54 = vld [vmem:[%s5498_s13 + $0x54] ss:$8 sps:$4 sm:$0xff]   ;;  %v4365_v56 = vld [vmem:[%s5498_s13 + $0x50] ss:$8 sps:$4 sm:$0xff]  }
  0xb5   : > { %3466 = vmatpush1.bf16.msra.mxu0 %v4342_v41  ;;  %3295 = vmatprep.subr.bf16.mxu1 %v4343_v42  ;;  %v4360_v53 = vld [vmem:[%s5498_s13 + $0x440] ss:$8 sps:$4 sm:$0xff]   ;;  %v4363_v55 = vld [vmem:[%s5498_s13 + $0x454] ss:$8 sps:$4 sm:$0xff]   ;;  %v4366_v57 = vld [vmem:[%s5498_s13 + $0x450] ss:$8 sps:$4 sm:$0xff]  }
  0xb6   : > { %3467 = vmatprep.subr.bf16.mxu0 %v4345_v43  ;;  %v4367_v58 = vld [vmem:[%s5498_s13 + $0x64] ss:$8 sps:$4 sm:$0xff]   ;;  %v4371_v60 = vld [vmem:[%s5498_s13 + $0x60] ss:$8 sps:$4 sm:$0xff]   ;;  %v4373_v62 = vld [vmem:[%s5498_s13 + $0x74] ss:$8 sps:$4 sm:$0xff]  }
  0xb7   : > { %v4369_v59 = vld [vmem:[%s5498_s13 + $0x464] ss:$8 sps:$4 sm:$0xff]   ;;  %v4372_v61 = vld [vmem:[%s5498_s13 + $0x460] ss:$8 sps:$4 sm:$0xff]   ;;  %v4375_v63 = vld [vmem:[%s5498_s13 + $0x474] ss:$8 sps:$4 sm:$0xff]  }
  0xb8   : > { %3296 = vmatpush1.bf16.msra.mxu1 %v4347_v44  ;;  %v4377_v0 = vld [vmem:[%s5498_s13 + $0x70] ss:$8 sps:$4 sm:$0xff]   ;;  %v4379_v2 = vld [vmem:[%s5498_s13 + $0x84] ss:$8 sps:$4 sm:$0xff]   ;;  %v4383_v4 = vld [vmem:[%s5498_s13 + $0x80] ss:$8 sps:$4 sm:$0xff]  }
  0xb9   : > { %3468 = vmatpush1.bf16.msra.mxu0 %v4348_v45  ;;  %3297 = vmatprep.subr.bf16.mxu1 %v4349_v46  ;;  %v4378_v1 = vld [vmem:[%s5498_s13 + $0x470] ss:$8 sps:$4 sm:$0xff]   ;;  %v4381_v3 = vld [vmem:[%s5498_s13 + $0x484] ss:$8 sps:$4 sm:$0xff]   ;;  %v4384_v5 = vld [vmem:[%s5498_s13 + $0x480] ss:$8 sps:$4 sm:$0xff]  }
  0xba   : > { %3469 = vmatprep.subr.bf16.mxu0 %v4351_v47  ;;  %v4385_v6 = vld [vmem:[%s5498_s13 + $0x94] ss:$8 sps:$4 sm:$0xff]   ;;  %v4389_v8 = vld [vmem:[%s5498_s13 + $0x90] ss:$8 sps:$4 sm:$0xff]   ;;  %v4391_v10 = vld [vmem:[%s5498_s13 + $0xa4] ss:$8 sps:$4 sm:$0xff]  }
  0xbb   : > { %v4387_v7 = vld [vmem:[%s5498_s13 + $0x494] ss:$8 sps:$4 sm:$0xff]   ;;  %v4390_v9 = vld [vmem:[%s5498_s13 + $0x490] ss:$8 sps:$4 sm:$0xff]   ;;  %v4393_v11 = vld [vmem:[%s5498_s13 + $0x4a4] ss:$8 sps:$4 sm:$0xff]  }
  0xbc   : > { %3298 = vmatpush1.bf16.msra.mxu1 %v4353_v48  ;;  %v4395_v12 = vld [vmem:[%s5498_s13 + $0xa0] ss:$8 sps:$4 sm:$0xff]   ;;  %v4397_v14 = vld [vmem:[%s5498_s13 + $0xb4] ss:$8 sps:$4 sm:$0xff]   ;;  %v4401_v16 = vld [vmem:[%s5498_s13 + $0xb0] ss:$8 sps:$4 sm:$0xff]  }
  0xbd   : > { %3470 = vmatpush1.bf16.msra.mxu0 %v4354_v49  ;;  %3299 = vmatprep.subr.bf16.mxu1 %v4355_v50  ;;  %v4396_v13 = vld [vmem:[%s5498_s13 + $0x4a0] ss:$8 sps:$4 sm:$0xff]   ;;  %v4399_v15 = vld [vmem:[%s5498_s13 + $0x4b4] ss:$8 sps:$4 sm:$0xff]   ;;  %v4402_v17 = vld [vmem:[%s5498_s13 + $0x4b0] ss:$8 sps:$4 sm:$0xff]  }
  0xbe   : > { %3471 = vmatprep.subr.bf16.mxu0 %v4357_v51  ;;  %v4403_v18 = vld [vmem:[%s5498_s13 + $0xc4] ss:$8 sps:$4 sm:$0xff]   ;;  %v4407_v20 = vld [vmem:[%s5498_s13 + $0xc0] ss:$8 sps:$4 sm:$0xff]   ;;  %v4409_v22 = vld [vmem:[%s5498_s13 + $0xd4] ss:$8 sps:$4 sm:$0xff]  }
  0xbf   : > { %v4405_v19 = vld [vmem:[%s5498_s13 + $0x4c4] ss:$8 sps:$4 sm:$0xff]   ;;  %v4408_v21 = vld [vmem:[%s5498_s13 + $0x4c0] ss:$8 sps:$4 sm:$0xff]   ;;  %v4411_v23 = vld [vmem:[%s5498_s13 + $0x4d4] ss:$8 sps:$4 sm:$0xff]  }
  0xc0   : > { %3300 = vmatpush1.bf16.msra.mxu1 %v4359_v52  ;;  %v4413_v24 = vld [vmem:[%s5498_s13 + $0xd0] ss:$8 sps:$4 sm:$0xff]   ;;  %v4415_v26 = vld [vmem:[%s5498_s13 + $0xe4] ss:$8 sps:$4 sm:$0xff]   ;;  %v4419_v28 = vld [vmem:[%s5498_s13 + $0xe0] ss:$8 sps:$4 sm:$0xff]  }
  0xc1   : > { %3472 = vmatpush1.bf16.msra.mxu0 %v4360_v53  ;;  %3301 = vmatprep.subr.bf16.mxu1 %v4361_v54  ;;  %v4414_v25 = vld [vmem:[%s5498_s13 + $0x4d0] ss:$8 sps:$4 sm:$0xff]   ;;  %v4417_v27 = vld [vmem:[%s5498_s13 + $0x4e4] ss:$8 sps:$4 sm:$0xff]   ;;  %v4420_v29 = vld [vmem:[%s5498_s13 + $0x4e0] ss:$8 sps:$4 sm:$0xff]  }
  0xc2   : > { %3473 = vmatprep.subr.bf16.mxu0 %v4363_v55  ;;  %v4421_v30 = vld [vmem:[%s5498_s13 + $0xf4] ss:$8 sps:$4 sm:$0xff]   ;;  %v4425_v32 = vld [vmem:[%s5498_s13 + $0xf0] ss:$8 sps:$4 sm:$0xff]   ;;  %v4432_v34 = vld [vmem:[%s5498_s13 + $0x104] ss:$8 sps:$4 sm:$0xff]  }
  0xc3   : > { %v4423_v31 = vld [vmem:[%s5498_s13 + $0x4f4] ss:$8 sps:$4 sm:$0xff]   ;;  %v4426_v33 = vld [vmem:[%s5498_s13 + $0x4f0] ss:$8 sps:$4 sm:$0xff]   ;;  %v4438_v35 = vld [vmem:[%s5498_s13 + $0x504] ss:$8 sps:$4 sm:$0xff]  }
  0xc4   : > { %3302 = vmatpush1.bf16.msra.mxu1 %v4365_v56  ;;  %v4427_v36 = vld [vmem:[%s5890_s0] ss:$72 sps:$4 sm:$0xff]   ;;  %v4441_v40 = vld [vmem:[%s5498_s13 + $0x114] ss:$8 sps:$4 sm:$0xff]   ;;  %v4439_v42 = vld [vmem:[%s5498_s13 + $0x110] ss:$8 sps:$4 sm:$0xff]  }
  0xc5   : > { %3474 = vmatpush1.bf16.msra.mxu0 %v4366_v57  ;;  %3303 = vmatprep.subr.bf16.mxu1 %v4367_v58  ;;  %v4433_v37 = vld [vmem:[%s5890_s0 + $0x20] ss:$72 sps:$4 sm:$0xff]   ;;  %v4444_v41 = vld [vmem:[%s5498_s13 + $0x514] ss:$8 sps:$4 sm:$0xff]   ;;  %v4442_v43 = vld [vmem:[%s5498_s13 + $0x510] ss:$8 sps:$4 sm:$0xff]  }
  0xc6   : > { %3475 = vmatprep.subr.bf16.mxu0 %v4369_v59  ;;  %v4430_v38 = vld [vmem:[%s5498_s13 + $0x100] ss:$8 sps:$4 sm:$0xff]   ;;  %v4447_v44 = vld [vmem:[%s5498_s13 + $0x124] ss:$8 sps:$4 sm:$0xff]   ;;  %v4453_v48 = vld [vmem:[%s5498_s13 + $0x134] ss:$8 sps:$4 sm:$0xff]  }
  0xc7   : > { %v4436_v39 = vld [vmem:[%s5498_s13 + $0x500] ss:$8 sps:$4 sm:$0xff]   ;;  %v4450_v45 = vld [vmem:[%s5498_s13 + $0x524] ss:$8 sps:$4 sm:$0xff]   ;;  %v4456_v49 = vld [vmem:[%s5498_s13 + $0x534] ss:$8 sps:$4 sm:$0xff]  }
  0xc8   : > { %3304 = vmatpush1.bf16.msra.mxu1 %v4371_v60  ;;  %v4445_v46 = vld [vmem:[%s5498_s13 + $0x120] ss:$8 sps:$4 sm:$0xff]   ;;  %v4451_v50 = vld [vmem:[%s5498_s13 + $0x130] ss:$8 sps:$4 sm:$0xff]   ;;  %v4459_v52 = vld [vmem:[%s5498_s13 + $0x144] ss:$8 sps:$4 sm:$0xff]  }
  0xc9   : > { %3476 = vmatpush1.bf16.msra.mxu0 %v4372_v61  ;;  %3305 = vmatprep.subr.bf16.mxu1 %v4373_v62  ;;  %v4448_v47 = vld [vmem:[%s5498_s13 + $0x520] ss:$8 sps:$4 sm:$0xff]   ;;  %v4454_v51 = vld [vmem:[%s5498_s13 + $0x530] ss:$8 sps:$4 sm:$0xff]   ;;  %v4462_v53 = vld [vmem:[%s5498_s13 + $0x544] ss:$8 sps:$4 sm:$0xff]  }
  0xca   : > { %3477 = vmatprep.subr.bf16.mxu0 %v4375_v63  ;;  %v4457_v54 = vld [vmem:[%s5498_s13 + $0x140] ss:$8 sps:$4 sm:$0xff]   ;;  %v4465_v56 = vld [vmem:[%s5498_s13 + $0x154] ss:$8 sps:$4 sm:$0xff]   ;;  %v4463_v58 = vld [vmem:[%s5498_s13 + $0x150] ss:$8 sps:$4 sm:$0xff]  }
  0xcb   : > { %v4460_v55 = vld [vmem:[%s5498_s13 + $0x540] ss:$8 sps:$4 sm:$0xff]   ;;  %v4468_v57 = vld [vmem:[%s5498_s13 + $0x554] ss:$8 sps:$4 sm:$0xff]   ;;  %v4466_v59 = vld [vmem:[%s5498_s13 + $0x550] ss:$8 sps:$4 sm:$0xff]  }
  0xcc   : > { %3306 = vmatpush1.bf16.msra.mxu1 %v4377_v0  ;;  %v4471_v60 = vld [vmem:[%s5498_s13 + $0x164] ss:$8 sps:$4 sm:$0xff]   ;;  %v4469_v63 = vld [vmem:[%s5498_s13 + $0x160] ss:$8 sps:$4 sm:$0xff]   ;;  %s4256_s30 = sshll.u32 (%p4894_p6), %s4824_s17, 3 }
  0xcd   : > { %3478 = vmatpush1.bf16.msra.mxu0 %v4378_v1  ;;  %3307 = vmatprep.subr.bf16.mxu1 %v4379_v2  ;;  %v4474_v61 = vld [vmem:[%s5498_s13 + $0x564] ss:$8 sps:$4 sm:$0xff]   ;;  %v4472_v0 = vld [vmem:[%s5498_s13 + $0x560] ss:$8 sps:$4 sm:$0xff]   ;;  %v4477_v2 = vld [vmem:[%s5498_s13 + $0x174] ss:$8 sps:$4 sm:$0xff]   ;;  %s3791_s5 = scalar_lea.vmem (%p4894_p6), %s5894_s4, %s4256_s30 }
  0xce   : > { %3479 = vmatprep.subr.bf16.mxu0 %v4381_v3  ;;  %v4531_v62 = vld [vmem:[%s5890_s0 + $0xc] ss:$72 sps:$4 sm:$0xff]  }
  0xcf   : > { %v4537_v1 = vld [vmem:[%s5890_s0 + $0x2c] ss:$72 sps:$4 sm:$0xff]  }
  0xd0   : > { %3308 = vmatpush1.bf16.msra.mxu1 %v4383_v4  ;;  %v4480_v3 = vld [vmem:[%s5498_s13 + $0x574] ss:$8 sps:$4 sm:$0xff]   ;;  %v4475_v4 = vld [vmem:[%s5498_s13 + $0x170] ss:$8 sps:$4 sm:$0xff]  }
  0xd1   : > { %3480 = vmatpush1.bf16.msra.mxu0 %v4384_v5  ;;  %3309 = vmatprep.subr.bf16.mxu1 %v4385_v6  ;;  %v4478_v5 = vld [vmem:[%s5498_s13 + $0x570] ss:$8 sps:$4 sm:$0xff]   ;;  %v4483_v6 = vld [vmem:[%s5498_s13 + $0x184] ss:$8 sps:$4 sm:$0xff]  }
  0xd2   : > { %3481 = vmatprep.subr.bf16.mxu0 %v4387_v7  ;;  %v4486_v7 = vld [vmem:[%s5498_s13 + $0x584] ss:$8 sps:$4 sm:$0xff]  }
  0xd4   : > { %3310 = vmatpush1.bf16.msra.mxu1 %v4389_v8  ;;  %v4481_v8 = vld [vmem:[%s5498_s13 + $0x180] ss:$8 sps:$4 sm:$0xff]  }
  0xd5   : > { %3482 = vmatpush1.bf16.msra.mxu0 %v4390_v9  ;;  %3311 = vmatprep.subr.bf16.mxu1 %v4391_v10  ;;  %v4484_v9 = vld [vmem:[%s5498_s13 + $0x580] ss:$8 sps:$4 sm:$0xff]   ;;  %v4489_v10 = vld [vmem:[%s5498_s13 + $0x194] ss:$8 sps:$4 sm:$0xff]  }
  0xd6   : > { %3483 = vmatprep.subr.bf16.mxu0 %v4393_v11  ;;  %v4492_v11 = vld [vmem:[%s5498_s13 + $0x594] ss:$8 sps:$4 sm:$0xff]  }
  0xd8   : > { %3312 = vmatpush1.bf16.msra.mxu1 %v4395_v12  ;;  %v4487_v12 = vld [vmem:[%s5498_s13 + $0x190] ss:$8 sps:$4 sm:$0xff]  }
  0xd9   : > { %3484 = vmatpush1.bf16.msra.mxu0 %v4396_v13  ;;  %3313 = vmatprep.subr.bf16.mxu1 %v4397_v14  ;;  %v4490_v13 = vld [vmem:[%s5498_s13 + $0x590] ss:$8 sps:$4 sm:$0xff]   ;;  %v4495_v14 = vld [vmem:[%s5498_s13 + $0x1a4] ss:$8 sps:$4 sm:$0xff]  }
  0xda   : > { %3485 = vmatprep.subr.bf16.mxu0 %v4399_v15  ;;  %v4498_v15 = vld [vmem:[%s5498_s13 + $0x5a4] ss:$8 sps:$4 sm:$0xff]  }
  0xdc   : > { %3314 = vmatpush1.bf16.msra.mxu1 %v4401_v16  ;;  %v4493_v16 = vld [vmem:[%s5498_s13 + $0x1a0] ss:$8 sps:$4 sm:$0xff]  }
  0xdd   : > { %3486 = vmatpush1.bf16.msra.mxu0 %v4402_v17  ;;  %3315 = vmatprep.subr.bf16.mxu1 %v4403_v18  ;;  %v4496_v17 = vld [vmem:[%s5498_s13 + $0x5a0] ss:$8 sps:$4 sm:$0xff]   ;;  %v4501_v18 = vld [vmem:[%s5498_s13 + $0x1b4] ss:$8 sps:$4 sm:$0xff]  }
  0xde   : > { %3487 = vmatprep.subr.bf16.mxu0 %v4405_v19  ;;  %v4504_v19 = vld [vmem:[%s5498_s13 + $0x5b4] ss:$8 sps:$4 sm:$0xff]  }
  0xe0   : > { %3316 = vmatpush1.bf16.msra.mxu1 %v4407_v20  ;;  %v4499_v20 = vld [vmem:[%s5498_s13 + $0x1b0] ss:$8 sps:$4 sm:$0xff]  }
  0xe1   : > { %3488 = vmatpush1.bf16.msra.mxu0 %v4408_v21  ;;  %3317 = vmatprep.subr.bf16.mxu1 %v4409_v22  ;;  %v4502_v21 = vld [vmem:[%s5498_s13 + $0x5b0] ss:$8 sps:$4 sm:$0xff]   ;;  %v4507_v22 = vld [vmem:[%s5498_s13 + $0x1c4] ss:$8 sps:$4 sm:$0xff]  }
  0xe2   : > { %3489 = vmatprep.subr.bf16.mxu0 %v4411_v23  ;;  %v4510_v23 = vld [vmem:[%s5498_s13 + $0x5c4] ss:$8 sps:$4 sm:$0xff]  }
  0xe4   : > { %3318 = vmatpush1.bf16.msra.mxu1 %v4413_v24  ;;  %v4505_v24 = vld [vmem:[%s5498_s13 + $0x1c0] ss:$8 sps:$4 sm:$0xff]  }
  0xe5   : > { %3490 = vmatpush1.bf16.msra.mxu0 %v4414_v25  ;;  %3319 = vmatprep.subr.bf16.mxu1 %v4415_v26  ;;  %v4508_v25 = vld [vmem:[%s5498_s13 + $0x5c0] ss:$8 sps:$4 sm:$0xff]   ;;  %v4513_v26 = vld [vmem:[%s5498_s13 + $0x1d4] ss:$8 sps:$4 sm:$0xff]  }
  0xe6   : > { %3491 = vmatprep.subr.bf16.mxu0 %v4417_v27  ;;  %v4516_v27 = vld [vmem:[%s5498_s13 + $0x5d4] ss:$8 sps:$4 sm:$0xff]  }
  0xe8   : > { %3320 = vmatpush1.bf16.msra.mxu1 %v4419_v28  ;;  %v4511_v28 = vld [vmem:[%s5498_s13 + $0x1d0] ss:$8 sps:$4 sm:$0xff]  }
  0xe9   : > { %3492 = vmatpush1.bf16.msra.mxu0 %v4420_v29  ;;  %3321 = vmatprep.subr.bf16.mxu1 %v4421_v30  ;;  %v4514_v29 = vld [vmem:[%s5498_s13 + $0x5d0] ss:$8 sps:$4 sm:$0xff]   ;;  %v4519_v30 = vld [vmem:[%s5498_s13 + $0x1e4] ss:$8 sps:$4 sm:$0xff]  }
  0xea   : > { %3493 = vmatprep.subr.bf16.mxu0 %v4423_v31  ;;  %v4522_v31 = vld [vmem:[%s5498_s13 + $0x5e4] ss:$8 sps:$4 sm:$0xff]  }
  0xec   : > { %3322 = vmatpush1.bf16.msra.mxu1 %v4425_v32  ;;  %v4517_v32 = vld [vmem:[%s5498_s13 + $0x1e0] ss:$8 sps:$4 sm:$0xff]  }
  0xed   : > { %3494 = vmatpush1.bf16.msra.mxu0 %v4426_v33  ;;  %3334 = vmatprep.subr.bf16.mxu1 %v4432_v34  ;;  %v4520_v33 = vld [vmem:[%s5498_s13 + $0x5e0] ss:$8 sps:$4 sm:$0xff]   ;;  %v4525_v34 = vld [vmem:[%s5498_s13 + $0x1f4] ss:$8 sps:$4 sm:$0xff]  }
  0xee   : > { %3506 = vmatprep.subr.bf16.mxu0 %v4438_v35  ;;  %v4528_v35 = vld [vmem:[%s5498_s13 + $0x5f4] ss:$8 sps:$4 sm:$0xff]  }
  0xef   : > { %3324 = vmatmul.mubr.bf16.vlgmr.msra.gmra.mrb[0].mxu1 %v4427_v36  ;;  %v4523_v36 = vld [vmem:[%s5498_s13 + $0x1f0] ss:$8 sps:$4 sm:$0xff]  }
  0xf0   : > { %3496 = vmatmul.mubr.bf16.vlgmr.msra.gmra.mrb[0].mxu0 %v4433_v37  ;;  %3335 = vmatpush1.bf16.msra.mxu1 %v4430_v38  ;;  %v4526_v37 = vld [vmem:[%s5498_s13 + $0x5f0] ss:$8 sps:$4 sm:$0xff]   ;;  %v4534_v38 = vld [vmem:[%s5498_s13 + $0x204] ss:$8 sps:$4 sm:$0xff]  }
  0xf1   : > { %3507 = vmatpush1.bf16.msra.mxu0 %v4436_v39  ;;  %3336 = vmatprep.subr.bf16.mxu1 %v4441_v40  ;;  %v4540_v39 = vld [vmem:[%s5498_s13 + $0x604] ss:$8 sps:$4 sm:$0xff]   ;;  %v4529_v40 = vld [vmem:[%s5890_s0 + $0x8] ss:$72 sps:$4 sm:$0xff]  }
  0xf2   : > { %3508 = vmatprep.subr.bf16.mxu0 %v4444_v41  ;;  %3366 = vmatprep.mubr.bf16.mxu1 %v4531_v62  ;;  %v4532_v41 = vld [vmem:[%s5498_s13 + $0x200] ss:$8 sps:$4 sm:$0xff]   ;;  %v4567_v62 = vld [vmem:[%s5498_s13 + $0x254] ss:$8 sps:$4 sm:$0xff]  }
  0xf3   : > { %3538 = vmatprep.mubr.bf16.mxu0 %v4537_v1  ;;  %v4568_v1 = vld [vmem:[%s5498_s13 + $0x650] ss:$8 sps:$4 sm:$0xff]  }
  0xf4   : > { %3337 = vmatpush1.bf16.msra.mxu1 %v4439_v42  ;;  %v4535_v42 = vld [vmem:[%s5890_s0 + $0x28] ss:$72 sps:$4 sm:$0xff]  }
  0xf5   : > { %3509 = vmatpush1.bf16.msra.mxu0 %v4442_v43  ;;  %3338 = vmatprep.subr.bf16.mxu1 %v4447_v44  ;;  %v4538_v43 = vld [vmem:[%s5498_s13 + $0x600] ss:$8 sps:$4 sm:$0xff]   ;;  %v4543_v44 = vld [vmem:[%s5498_s13 + $0x214] ss:$8 sps:$4 sm:$0xff]  }
  0xf6   : > { %3510 = vmatprep.subr.bf16.mxu0 %v4450_v45  ;;  %v4546_v45 = vld [vmem:[%s5498_s13 + $0x614] ss:$8 sps:$4 sm:$0xff]  }
  0xf8   : > { %3339 = vmatpush1.bf16.msra.mxu1 %v4445_v46  ;;  %v4541_v46 = vld [vmem:[%s5498_s13 + $0x210] ss:$8 sps:$4 sm:$0xff]  }
  0xf9   : > { %3511 = vmatpush1.bf16.msra.mxu0 %v4448_v47  ;;  %3340 = vmatprep.subr.bf16.mxu1 %v4453_v48  ;;  %v4633_v47 = vld [vmem:[%s5890_s0 + $0x14] ss:$72 sps:$4 sm:$0xff]   ;;  %v4544_v48 = vld [vmem:[%s5498_s13 + $0x610] ss:$8 sps:$4 sm:$0xff]  }
  0xfa   : > { %3512 = vmatprep.subr.bf16.mxu0 %v4456_v49  ;;  %v4549_v49 = vld [vmem:[%s5498_s13 + $0x224] ss:$8 sps:$4 sm:$0xff]  }
  0xfc   : > { %3341 = vmatpush1.bf16.msra.mxu1 %v4451_v50  ;;  %v4552_v50 = vld [vmem:[%s5498_s13 + $0x624] ss:$8 sps:$4 sm:$0xff]  }
  0xfd   : > { %3513 = vmatpush1.bf16.msra.mxu0 %v4454_v51  ;;  %3342 = vmatprep.subr.bf16.mxu1 %v4459_v52  ;;  %v4639_v51 = vld [vmem:[%s5890_s0 + $0x34] ss:$72 sps:$4 sm:$0xff]   ;;  %v4547_v52 = vld [vmem:[%s5498_s13 + $0x220] ss:$8 sps:$4 sm:$0xff]  }
  0xfe   : > { %3514 = vmatprep.subr.bf16.mxu0 %v4462_v53  ;;  %v4550_v53 = vld [vmem:[%s5498_s13 + $0x620] ss:$8 sps:$4 sm:$0xff]  }
 0x100   : > { %3343 = vmatpush1.bf16.msra.mxu1 %v4457_v54  ;;  %v4555_v54 = vld [vmem:[%s5498_s13 + $0x234] ss:$8 sps:$4 sm:$0xff]  }
 0x101   : > { %3515 = vmatpush1.bf16.msra.mxu0 %v4460_v55  ;;  %3344 = vmatprep.subr.bf16.mxu1 %v4465_v56  ;;  %v4558_v55 = vld [vmem:[%s5498_s13 + $0x634] ss:$8 sps:$4 sm:$0xff]   ;;  %v4553_v56 = vld [vmem:[%s5498_s13 + $0x230] ss:$8 sps:$4 sm:$0xff]  }
 0x102   : > { %3516 = vmatprep.subr.bf16.mxu0 %v4468_v57  ;;  %v4556_v57 = vld [vmem:[%s5498_s13 + $0x630] ss:$8 sps:$4 sm:$0xff]  }
 0x104   : > { %3345 = vmatpush1.bf16.msra.mxu1 %v4463_v58  ;;  %v4561_v58 = vld [vmem:[%s5498_s13 + $0x244] ss:$8 sps:$4 sm:$0xff]  }
 0x105   : > { %3517 = vmatpush1.bf16.msra.mxu0 %v4466_v59  ;;  %3346 = vmatprep.subr.bf16.mxu1 %v4471_v60  ;;  %v4564_v59 = vld [vmem:[%s5498_s13 + $0x644] ss:$8 sps:$4 sm:$0xff]   ;;  %v4559_v60 = vld [vmem:[%s5498_s13 + $0x240] ss:$8 sps:$4 sm:$0xff]  }
 0x106   : > { %3518 = vmatprep.subr.bf16.mxu0 %v4474_v61  ;;  %v4562_v61 = vld [vmem:[%s5498_s13 + $0x640] ss:$8 sps:$4 sm:$0xff]  }
 0x108   : > { %3347 = vmatpush1.bf16.msra.mxu1 %v4469_v63  ;;  %v4570_v63 = vld [vmem:[%s5498_s13 + $0x654] ss:$8 sps:$4 sm:$0xff]  }
 0x109   : > { %3519 = vmatpush1.bf16.msra.mxu0 %v4472_v0  ;;  %3348 = vmatprep.subr.bf16.mxu1 %v4477_v2  ;;  %v4565_v0 = vld [vmem:[%s5498_s13 + $0x250] ss:$8 sps:$4 sm:$0xff]   ;;  %v4573_v2 = vld [vmem:[%s5498_s13 + $0x264] ss:$8 sps:$4 sm:$0xff]  }
 0x10a   : > { %3520 = vmatprep.subr.bf16.mxu0 %v4480_v3  ;;  %v4576_v3 = vld [vmem:[%s5498_s13 + $0x664] ss:$8 sps:$4 sm:$0xff]  }
 0x10c   : > { %3349 = vmatpush1.bf16.msra.mxu1 %v4475_v4  ;;  %v4571_v4 = vld [vmem:[%s5498_s13 + $0x260] ss:$8 sps:$4 sm:$0xff]  }
 0x10d   : > { %3521 = vmatpush1.bf16.msra.mxu0 %v4478_v5  ;;  %3350 = vmatprep.subr.bf16.mxu1 %v4483_v6  ;;  %v4574_v5 = vld [vmem:[%s5498_s13 + $0x660] ss:$8 sps:$4 sm:$0xff]   ;;  %v4579_v6 = vld [vmem:[%s5498_s13 + $0x274] ss:$8 sps:$4 sm:$0xff]  }
 0x10e   : > { %3522 = vmatprep.subr.bf16.mxu0 %v4486_v7  ;;  %v4582_v7 = vld [vmem:[%s5498_s13 + $0x674] ss:$8 sps:$4 sm:$0xff]  }
 0x110   : > { %3351 = vmatpush1.bf16.msra.mxu1 %v4481_v8  ;;  %v4577_v8 = vld [vmem:[%s5498_s13 + $0x270] ss:$8 sps:$4 sm:$0xff]  }
 0x111   : > { %3523 = vmatpush1.bf16.msra.mxu0 %v4484_v9  ;;  %3352 = vmatprep.subr.bf16.mxu1 %v4489_v10  ;;  %v4580_v9 = vld [vmem:[%s5498_s13 + $0x670] ss:$8 sps:$4 sm:$0xff]   ;;  %v4585_v10 = vld [vmem:[%s5498_s13 + $0x284] ss:$8 sps:$4 sm:$0xff]  }
 0x112   : > { %3524 = vmatprep.subr.bf16.mxu0 %v4492_v11  ;;  %v4588_v11 = vld [vmem:[%s5498_s13 + $0x684] ss:$8 sps:$4 sm:$0xff]  }
 0x114   : > { %3353 = vmatpush1.bf16.msra.mxu1 %v4487_v12  ;;  %v4583_v12 = vld [vmem:[%s5498_s13 + $0x280] ss:$8 sps:$4 sm:$0xff]  }
 0x115   : > { %3525 = vmatpush1.bf16.msra.mxu0 %v4490_v13  ;;  %3354 = vmatprep.subr.bf16.mxu1 %v4495_v14  ;;  %v4586_v13 = vld [vmem:[%s5498_s13 + $0x680] ss:$8 sps:$4 sm:$0xff]   ;;  %v4591_v14 = vld [vmem:[%s5498_s13 + $0x294] ss:$8 sps:$4 sm:$0xff]  }
 0x116   : > { %3526 = vmatprep.subr.bf16.mxu0 %v4498_v15  ;;  %v4594_v15 = vld [vmem:[%s5498_s13 + $0x694] ss:$8 sps:$4 sm:$0xff]  }
 0x118   : > { %3355 = vmatpush1.bf16.msra.mxu1 %v4493_v16  ;;  %v4589_v16 = vld [vmem:[%s5498_s13 + $0x290] ss:$8 sps:$4 sm:$0xff]  }
 0x119   : > { %3527 = vmatpush1.bf16.msra.mxu0 %v4496_v17  ;;  %3356 = vmatprep.subr.bf16.mxu1 %v4501_v18  ;;  %v4592_v17 = vld [vmem:[%s5498_s13 + $0x690] ss:$8 sps:$4 sm:$0xff]   ;;  %v4597_v18 = vld [vmem:[%s5498_s13 + $0x2a4] ss:$8 sps:$4 sm:$0xff]  }
 0x11a   : > { %3528 = vmatprep.subr.bf16.mxu0 %v4504_v19  ;;  %v4600_v19 = vld [vmem:[%s5498_s13 + $0x6a4] ss:$8 sps:$4 sm:$0xff]  }
 0x11c   : > { %3357 = vmatpush1.bf16.msra.mxu1 %v4499_v20  ;;  %v4595_v20 = vld [vmem:[%s5498_s13 + $0x2a0] ss:$8 sps:$4 sm:$0xff]  }
 0x11d   : > { %3529 = vmatpush1.bf16.msra.mxu0 %v4502_v21  ;;  %3358 = vmatprep.subr.bf16.mxu1 %v4507_v22  ;;  %v4598_v21 = vld [vmem:[%s5498_s13 + $0x6a0] ss:$8 sps:$4 sm:$0xff]   ;;  %v4603_v22 = vld [vmem:[%s5498_s13 + $0x2b4] ss:$8 sps:$4 sm:$0xff]  }
 0x11e   : > { %3530 = vmatprep.subr.bf16.mxu0 %v4510_v23  ;;  %v4606_v23 = vld [vmem:[%s5498_s13 + $0x6b4] ss:$8 sps:$4 sm:$0xff]  }
 0x120   : > { %3359 = vmatpush1.bf16.msra.mxu1 %v4505_v24  ;;  %v4601_v24 = vld [vmem:[%s5498_s13 + $0x2b0] ss:$8 sps:$4 sm:$0xff]  }
 0x121   : > { %3531 = vmatpush1.bf16.msra.mxu0 %v4508_v25  ;;  %3360 = vmatprep.subr.bf16.mxu1 %v4513_v26  ;;  %v4604_v25 = vld [vmem:[%s5498_s13 + $0x6b0] ss:$8 sps:$4 sm:$0xff]   ;;  %v4609_v26 = vld [vmem:[%s5498_s13 + $0x2c4] ss:$8 sps:$4 sm:$0xff]  }
 0x122   : > { %3532 = vmatprep.subr.bf16.mxu0 %v4516_v27  ;;  %v4612_v27 = vld [vmem:[%s5498_s13 + $0x6c4] ss:$8 sps:$4 sm:$0xff]  }
 0x124   : > { %3361 = vmatpush1.bf16.msra.mxu1 %v4511_v28  ;;  %v4607_v28 = vld [vmem:[%s5498_s13 + $0x2c0] ss:$8 sps:$4 sm:$0xff]  }
 0x125   : > { %3533 = vmatpush1.bf16.msra.mxu0 %v4514_v29  ;;  %3362 = vmatprep.subr.bf16.mxu1 %v4519_v30  ;;  %v4610_v29 = vld [vmem:[%s5498_s13 + $0x6c0] ss:$8 sps:$4 sm:$0xff]   ;;  %v4615_v30 = vld [vmem:[%s5498_s13 + $0x2d4] ss:$8 sps:$4 sm:$0xff]  }
 0x126   : > { %3534 = vmatprep.subr.bf16.mxu0 %v4522_v31  ;;  %v4618_v31 = vld [vmem:[%s5498_s13 + $0x6d4] ss:$8 sps:$4 sm:$0xff]  }
 0x128   : > { %3363 = vmatpush1.bf16.msra.mxu1 %v4517_v32  ;;  %v4613_v32 = vld [vmem:[%s5498_s13 + $0x2d0] ss:$8 sps:$4 sm:$0xff]  }
 0x129   : > { %3535 = vmatpush1.bf16.msra.mxu0 %v4520_v33  ;;  %3364 = vmatprep.subr.bf16.mxu1 %v4525_v34  ;;  %v4616_v33 = vld [vmem:[%s5498_s13 + $0x6d0] ss:$8 sps:$4 sm:$0xff]   ;;  %v4621_v34 = vld [vmem:[%s5498_s13 + $0x2e4] ss:$8 sps:$4 sm:$0xff]  }
 0x12a   : > { %3536 = vmatprep.subr.bf16.mxu0 %v4528_v35  ;;  %v4624_v35 = vld [vmem:[%s5498_s13 + $0x6e4] ss:$8 sps:$4 sm:$0xff]  }
 0x12c   : > { %3365 = vmatpush1.bf16.msra.mxu1 %v4523_v36  ;;  %v4619_v36 = vld [vmem:[%s5498_s13 + $0x2e0] ss:$8 sps:$4 sm:$0xff]  }
 0x12d   : > { %3537 = vmatpush1.bf16.msra.mxu0 %v4526_v37  ;;  %3377 = vmatprep.subr.bf16.mxu1 %v4534_v38  ;;  %v4622_v37 = vld [vmem:[%s5498_s13 + $0x6e0] ss:$8 sps:$4 sm:$0xff]   ;;  %v4627_v38 = vld [vmem:[%s5498_s13 + $0x2f4] ss:$8 sps:$4 sm:$0xff]  }
 0x12e   : > { %3549 = vmatprep.subr.bf16.mxu0 %v4540_v39  ;;  %v4630_v39 = vld [vmem:[%s5498_s13 + $0x6f4] ss:$8 sps:$4 sm:$0xff]  }
 0x12f   : > { %3367 = vmatmul.mubr.bf16.vlgmr.msra.gmra.mrb[0].mxu1 %v4529_v40  ;;  %v4625_v40 = vld [vmem:[%s5498_s13 + $0x2f0] ss:$8 sps:$4 sm:$0xff]  }
 0x130   : > { %3539 = vmatmul.mubr.bf16.vlgmr.msra.gmra.mrb[0].mxu0 %v4535_v42  ;;  %3378 = vmatpush1.bf16.msra.mxu1 %v4532_v41  ;;  %v4628_v41 = vld [vmem:[%s5498_s13 + $0x6f0] ss:$8 sps:$4 sm:$0xff]   ;;  %v4636_v42 = vld [vmem:[%s5498_s13 + $0x304] ss:$8 sps:$4 sm:$0xff]  }
 0x131   : > { %3550 = vmatpush1.bf16.msra.mxu0 %v4538_v43  ;;  %3379 = vmatprep.subr.bf16.mxu1 %v4543_v44  ;;  %v4642_v43 = vld [vmem:[%s5498_s13 + $0x704] ss:$8 sps:$4 sm:$0xff]   ;;  %v4631_v44 = vld [vmem:[%s5890_s0 + $0x10] ss:$72 sps:$4 sm:$0xff]  }
 0x132   : > { %3551 = vmatprep.subr.bf16.mxu0 %v4546_v45  ;;  %3409 = vmatprep.mubr.bf16.mxu1 %v4633_v47  ;;  %v4634_v45 = vld [vmem:[%s5498_s13 + $0x300] ss:$8 sps:$4 sm:$0xff]  }
 0x133   : > { %3581 = vmatprep.mubr.bf16.mxu0 %v4639_v51  ;;  %v4640_v47 = vld [vmem:[%s5498_s13 + $0x700] ss:$8 sps:$4 sm:$0xff]   ;;  %v4738_v51 = vld [vmem:[%s5890_s0 + $0x3c] ss:$72 sps:$4 sm:$0xff]  }
 0x134   : > { %3380 = vmatpush1.bf16.msra.mxu1 %v4541_v46  ;;  %v4637_v46 = vld [vmem:[%s5890_s0 + $0x30] ss:$72 sps:$4 sm:$0xff]  }
 0x135   : > { %3552 = vmatpush1.bf16.msra.mxu0 %v4544_v48  ;;  %3381 = vmatprep.subr.bf16.mxu1 %v4549_v49  ;;  %v4645_v48 = vld [vmem:[%s5498_s13 + $0x314] ss:$8 sps:$4 sm:$0xff]  }
 0x136   : > { %3553 = vmatprep.subr.bf16.mxu0 %v4552_v50  ;;  %v4648_v49 = vld [vmem:[%s5498_s13 + $0x714] ss:$8 sps:$4 sm:$0xff]  }
 0x137   : > { %v4735_v50 = vld [vmem:[%s5890_s0 + $0x1c] ss:$72 sps:$4 sm:$0xff]  }
 0x138   : > { %3382 = vmatpush1.bf16.msra.mxu1 %v4547_v52  ;;  %v4643_v52 = vld [vmem:[%s5498_s13 + $0x310] ss:$8 sps:$4 sm:$0xff]  }
 0x139   : > { %3554 = vmatpush1.bf16.msra.mxu0 %v4550_v53  ;;  %3383 = vmatprep.subr.bf16.mxu1 %v4555_v54  ;;  %v4646_v53 = vld [vmem:[%s5498_s13 + $0x710] ss:$8 sps:$4 sm:$0xff]   ;;  %v4651_v54 = vld [vmem:[%s5498_s13 + $0x324] ss:$8 sps:$4 sm:$0xff]  }
 0x13a   : > { %3555 = vmatprep.subr.bf16.mxu0 %v4558_v55  ;;  %v4654_v55 = vld [vmem:[%s5498_s13 + $0x724] ss:$8 sps:$4 sm:$0xff]  }
 0x13c   : > { %3384 = vmatpush1.bf16.msra.mxu1 %v4553_v56  ;;  %v4649_v56 = vld [vmem:[%s5498_s13 + $0x320] ss:$8 sps:$4 sm:$0xff]  }
 0x13d   : > { %3556 = vmatpush1.bf16.msra.mxu0 %v4556_v57  ;;  %3385 = vmatprep.subr.bf16.mxu1 %v4561_v58  ;;  %v4652_v57 = vld [vmem:[%s5498_s13 + $0x720] ss:$8 sps:$4 sm:$0xff]   ;;  %v4657_v58 = vld [vmem:[%s5498_s13 + $0x334] ss:$8 sps:$4 sm:$0xff]  }
 0x13e   : > { %3557 = vmatprep.subr.bf16.mxu0 %v4564_v59  ;;  %v4660_v59 = vld [vmem:[%s5498_s13 + $0x734] ss:$8 sps:$4 sm:$0xff]  }
 0x140   : > { %3386 = vmatpush1.bf16.msra.mxu1 %v4559_v60  ;;  %v4655_v60 = vld [vmem:[%s5498_s13 + $0x330] ss:$8 sps:$4 sm:$0xff]  }
 0x141   : > { %3558 = vmatpush1.bf16.msra.mxu0 %v4562_v61  ;;  %3387 = vmatprep.subr.bf16.mxu1 %v4567_v62  ;;  %v4658_v61 = vld [vmem:[%s5498_s13 + $0x730] ss:$8 sps:$4 sm:$0xff]   ;;  %v4663_v62 = vld [vmem:[%s5498_s13 + $0x344] ss:$8 sps:$4 sm:$0xff]  }
 0x142   : > { %3559 = vmatprep.subr.bf16.mxu0 %v4570_v63  ;;  %v4666_v63 = vld [vmem:[%s5498_s13 + $0x744] ss:$8 sps:$4 sm:$0xff]  }
 0x144   : > { %3388 = vmatpush1.bf16.msra.mxu1 %v4565_v0  ;;  %v4661_v0 = vld [vmem:[%s5498_s13 + $0x340] ss:$8 sps:$4 sm:$0xff]  }
 0x145   : > { %3560 = vmatpush1.bf16.msra.mxu0 %v4568_v1  ;;  %3389 = vmatprep.subr.bf16.mxu1 %v4573_v2  ;;  %v4664_v1 = vld [vmem:[%s5498_s13 + $0x740] ss:$8 sps:$4 sm:$0xff]   ;;  %v4669_v2 = vld [vmem:[%s5498_s13 + $0x354] ss:$8 sps:$4 sm:$0xff]  }
 0x146   : > { %3561 = vmatprep.subr.bf16.mxu0 %v4576_v3  ;;  %v4672_v3 = vld [vmem:[%s5498_s13 + $0x754] ss:$8 sps:$4 sm:$0xff]  }
 0x148   : > { %3390 = vmatpush1.bf16.msra.mxu1 %v4571_v4  ;;  %v4667_v4 = vld [vmem:[%s5498_s13 + $0x350] ss:$8 sps:$4 sm:$0xff]  }
 0x149   : > { %3562 = vmatpush1.bf16.msra.mxu0 %v4574_v5  ;;  %3391 = vmatprep.subr.bf16.mxu1 %v4579_v6  ;;  %v4670_v5 = vld [vmem:[%s5498_s13 + $0x750] ss:$8 sps:$4 sm:$0xff]   ;;  %v4675_v6 = vld [vmem:[%s5498_s13 + $0x364] ss:$8 sps:$4 sm:$0xff]  }
 0x14a   : > { %3563 = vmatprep.subr.bf16.mxu0 %v4582_v7  ;;  %v4678_v7 = vld [vmem:[%s5498_s13 + $0x764] ss:$8 sps:$4 sm:$0xff]  }
 0x14c   : > { %3392 = vmatpush1.bf16.msra.mxu1 %v4577_v8  ;;  %v4673_v8 = vld [vmem:[%s5498_s13 + $0x360] ss:$8 sps:$4 sm:$0xff]  }
 0x14d   : > { %3564 = vmatpush1.bf16.msra.mxu0 %v4580_v9  ;;  %3393 = vmatprep.subr.bf16.mxu1 %v4585_v10  ;;  %v4676_v9 = vld [vmem:[%s5498_s13 + $0x760] ss:$8 sps:$4 sm:$0xff]   ;;  %v4681_v10 = vld [vmem:[%s5498_s13 + $0x374] ss:$8 sps:$4 sm:$0xff]  }
 0x14e   : > { %3565 = vmatprep.subr.bf16.mxu0 %v4588_v11  ;;  %v4684_v11 = vld [vmem:[%s5498_s13 + $0x774] ss:$8 sps:$4 sm:$0xff]  }
 0x150   : > { %3394 = vmatpush1.bf16.msra.mxu1 %v4583_v12  ;;  %v4679_v12 = vld [vmem:[%s5498_s13 + $0x370] ss:$8 sps:$4 sm:$0xff]  }
 0x151   : > { %3566 = vmatpush1.bf16.msra.mxu0 %v4586_v13  ;;  %3395 = vmatprep.subr.bf16.mxu1 %v4591_v14  ;;  %v4682_v13 = vld [vmem:[%s5498_s13 + $0x770] ss:$8 sps:$4 sm:$0xff]   ;;  %v4687_v14 = vld [vmem:[%s5498_s13 + $0x384] ss:$8 sps:$4 sm:$0xff]  }
 0x152   : > { %3567 = vmatprep.subr.bf16.mxu0 %v4594_v15  ;;  %v4690_v15 = vld [vmem:[%s5498_s13 + $0x784] ss:$8 sps:$4 sm:$0xff]  }
 0x154   : > { %3396 = vmatpush1.bf16.msra.mxu1 %v4589_v16  ;;  %v4685_v16 = vld [vmem:[%s5498_s13 + $0x380] ss:$8 sps:$4 sm:$0xff]  }
 0x155   : > { %3568 = vmatpush1.bf16.msra.mxu0 %v4592_v17  ;;  %3397 = vmatprep.subr.bf16.mxu1 %v4597_v18  ;;  %v4688_v17 = vld [vmem:[%s5498_s13 + $0x780] ss:$8 sps:$4 sm:$0xff]   ;;  %v4693_v18 = vld [vmem:[%s5498_s13 + $0x394] ss:$8 sps:$4 sm:$0xff]  }
 0x156   : > { %3569 = vmatprep.subr.bf16.mxu0 %v4600_v19  ;;  %v4696_v19 = vld [vmem:[%s5498_s13 + $0x794] ss:$8 sps:$4 sm:$0xff]  }
 0x158   : > { %3398 = vmatpush1.bf16.msra.mxu1 %v4595_v20  ;;  %v4691_v20 = vld [vmem:[%s5498_s13 + $0x390] ss:$8 sps:$4 sm:$0xff]  }
 0x159   : > { %3570 = vmatpush1.bf16.msra.mxu0 %v4598_v21  ;;  %3399 = vmatprep.subr.bf16.mxu1 %v4603_v22  ;;  %v4694_v21 = vld [vmem:[%s5498_s13 + $0x790] ss:$8 sps:$4 sm:$0xff]   ;;  %v4699_v22 = vld [vmem:[%s5498_s13 + $0x3a4] ss:$8 sps:$4 sm:$0xff]  }
 0x15a   : > { %3571 = vmatprep.subr.bf16.mxu0 %v4606_v23  ;;  %v4702_v23 = vld [vmem:[%s5498_s13 + $0x7a4] ss:$8 sps:$4 sm:$0xff]  }
 0x15c   : > { %3400 = vmatpush1.bf16.msra.mxu1 %v4601_v24  ;;  %v4697_v24 = vld [vmem:[%s5498_s13 + $0x3a0] ss:$8 sps:$4 sm:$0xff]  }
 0x15d   : > { %3572 = vmatpush1.bf16.msra.mxu0 %v4604_v25  ;;  %3401 = vmatprep.subr.bf16.mxu1 %v4609_v26  ;;  %v4700_v25 = vld [vmem:[%s5498_s13 + $0x7a0] ss:$8 sps:$4 sm:$0xff]   ;;  %v4705_v26 = vld [vmem:[%s5498_s13 + $0x3b4] ss:$8 sps:$4 sm:$0xff]  }
 0x15e   : > { %3573 = vmatprep.subr.bf16.mxu0 %v4612_v27  ;;  %v4708_v27 = vld [vmem:[%s5498_s13 + $0x7b4] ss:$8 sps:$4 sm:$0xff]  }
 0x160   : > { %3402 = vmatpush1.bf16.msra.mxu1 %v4607_v28  ;;  %v4703_v28 = vld [vmem:[%s5498_s13 + $0x3b0] ss:$8 sps:$4 sm:$0xff]  }
 0x161   : > { %3574 = vmatpush1.bf16.msra.mxu0 %v4610_v29  ;;  %3403 = vmatprep.subr.bf16.mxu1 %v4615_v30  ;;  %v4706_v29 = vld [vmem:[%s5498_s13 + $0x7b0] ss:$8 sps:$4 sm:$0xff]   ;;  %v4711_v30 = vld [vmem:[%s5498_s13 + $0x3c4] ss:$8 sps:$4 sm:$0xff]  }
 0x162   : > { %3575 = vmatprep.subr.bf16.mxu0 %v4618_v31  ;;  %v4714_v31 = vld [vmem:[%s5498_s13 + $0x7c4] ss:$8 sps:$4 sm:$0xff]  }
 0x164   : > { %3404 = vmatpush1.bf16.msra.mxu1 %v4613_v32  ;;  %v4709_v32 = vld [vmem:[%s5498_s13 + $0x3c0] ss:$8 sps:$4 sm:$0xff]  }
 0x165   : > { %3576 = vmatpush1.bf16.msra.mxu0 %v4616_v33  ;;  %3405 = vmatprep.subr.bf16.mxu1 %v4621_v34  ;;  %v4712_v33 = vld [vmem:[%s5498_s13 + $0x7c0] ss:$8 sps:$4 sm:$0xff]   ;;  %v4717_v34 = vld [vmem:[%s5498_s13 + $0x3d4] ss:$8 sps:$4 sm:$0xff]  }
 0x166   : > { %3577 = vmatprep.subr.bf16.mxu0 %v4624_v35  ;;  %v4720_v35 = vld [vmem:[%s5498_s13 + $0x7d4] ss:$8 sps:$4 sm:$0xff]  }
 0x168   : > { %3406 = vmatpush1.bf16.msra.mxu1 %v4619_v36  ;;  %v4715_v36 = vld [vmem:[%s5498_s13 + $0x3d0] ss:$8 sps:$4 sm:$0xff]  }
 0x169   : > { %3578 = vmatpush1.bf16.msra.mxu0 %v4622_v37  ;;  %3407 = vmatprep.subr.bf16.mxu1 %v4627_v38  ;;  %v4718_v37 = vld [vmem:[%s5498_s13 + $0x7d0] ss:$8 sps:$4 sm:$0xff]   ;;  %v4723_v38 = vld [vmem:[%s5498_s13 + $0x3e4] ss:$8 sps:$4 sm:$0xff]  }
 0x16a   : > { %3579 = vmatprep.subr.bf16.mxu0 %v4630_v39  ;;  %v4726_v39 = vld [vmem:[%s5498_s13 + $0x7e4] ss:$8 sps:$4 sm:$0xff]  }
 0x16c   : > { %3408 = vmatpush1.bf16.msra.mxu1 %v4625_v40  ;;  %v4721_v40 = vld [vmem:[%s5498_s13 + $0x3e0] ss:$8 sps:$4 sm:$0xff]  }
 0x16d   : > { %3580 = vmatpush1.bf16.msra.mxu0 %v4628_v41  ;;  %3420 = vmatprep.subr.bf16.mxu1 %v4636_v42  ;;  %v4724_v41 = vld [vmem:[%s5498_s13 + $0x7e0] ss:$8 sps:$4 sm:$0xff]   ;;  %v4729_v42 = vld [vmem:[%s5498_s13 + $0x3f4] ss:$8 sps:$4 sm:$0xff]  }
 0x16e   : > { %3592 = vmatprep.subr.bf16.mxu0 %v4642_v43  ;;  %v4732_v43 = vld [vmem:[%s5498_s13 + $0x7f4] ss:$8 sps:$4 sm:$0xff]  }
 0x16f   : > { %3410 = vmatmul.mubr.bf16.vlgmr.msra.gmra.mrb[0].mxu1 %v4631_v44  ;;  %v4727_v44 = vld [vmem:[%s5498_s13 + $0x3f0] ss:$8 sps:$4 sm:$0xff]  }
 0x170   : > { %3582 = vmatmul.mubr.bf16.vlgmr.msra.gmra.mrb[0].mxu0 %v4637_v46  ;;  %3421 = vmatpush1.bf16.msra.mxu1 %v4634_v45  ;;  %v4730_v45 = vld [vmem:[%s5498_s13 + $0x7f0] ss:$8 sps:$4 sm:$0xff]   ;;  %v4741_v46 = vld [vmem:[%s5498_s13 + $0x804] ss:$8 sps:$4 sm:$0xff]  }
 0x171   : > { %3593 = vmatpush1.bf16.msra.mxu0 %v4640_v47  ;;  %3422 = vmatprep.subr.bf16.mxu1 %v4645_v48  ;;  %v4733_v47 = vld [vmem:[%s5890_s0 + $0x18] ss:$72 sps:$4 sm:$0xff]  }
 0x172   : > { %3594 = vmatprep.subr.bf16.mxu0 %v4648_v49  ;;  %3452 = vmatprep.mubr.bf16.mxu1 %v4735_v50  ;;  %v4736_v48 = vld [vmem:[%s5890_s0 + $0x38] ss:$72 sps:$4 sm:$0xff]   ;;  %v4789_v50 = vld [vmem:[%s5890_s0 + $0x44] ss:$72 sps:$4 sm:$0xff]  }
 0x173   : > { %3624 = vmatprep.mubr.bf16.mxu0 %v4738_v51  ;;  %v4739_v49 = vld [vmem:[%s5498_s13 + $0x800] ss:$8 sps:$4 sm:$0xff]   ;;  %v4744_v51 = vld [vmem:[%s5498_s13 + $0x814] ss:$8 sps:$4 sm:$0xff]  }
 0x174   : > { %3423 = vmatpush1.bf16.msra.mxu1 %v4643_v52  ;;  %v4742_v52 = vld [vmem:[%s5498_s13 + $0x810] ss:$8 sps:$4 sm:$0xff]  }
 0x175   : > { %3595 = vmatpush1.bf16.msra.mxu0 %v4646_v53  ;;  %3424 = vmatprep.subr.bf16.mxu1 %v4651_v54  ;;  %v4747_v53 = vld [vmem:[%s5498_s13 + $0x824] ss:$8 sps:$4 sm:$0xff]   ;;  %v4745_v54 = vld [vmem:[%s5498_s13 + $0x820] ss:$8 sps:$4 sm:$0xff]  }
 0x176   : > { %3596 = vmatprep.subr.bf16.mxu0 %v4654_v55  ;;  %v4750_v55 = vld [vmem:[%s5498_s13 + $0x834] ss:$8 sps:$4 sm:$0xff]  }
 0x178   : > { %3425 = vmatpush1.bf16.msra.mxu1 %v4649_v56  ;;  %v4748_v56 = vld [vmem:[%s5498_s13 + $0x830] ss:$8 sps:$4 sm:$0xff]  }
 0x179   : > { %3597 = vmatpush1.bf16.msra.mxu0 %v4652_v57  ;;  %3426 = vmatprep.subr.bf16.mxu1 %v4657_v58  ;;  %v4753_v57 = vld [vmem:[%s5498_s13 + $0x844] ss:$8 sps:$4 sm:$0xff]   ;;  %v4751_v58 = vld [vmem:[%s5498_s13 + $0x840] ss:$8 sps:$4 sm:$0xff]  }
 0x17a   : > { %3598 = vmatprep.subr.bf16.mxu0 %v4660_v59  ;;  %v4756_v59 = vld [vmem:[%s5498_s13 + $0x854] ss:$8 sps:$4 sm:$0xff]  }
 0x17c   : > { %3427 = vmatpush1.bf16.msra.mxu1 %v4655_v60  ;;  %v4754_v60 = vld [vmem:[%s5498_s13 + $0x850] ss:$8 sps:$4 sm:$0xff]  }
 0x17d   : > { %3599 = vmatpush1.bf16.msra.mxu0 %v4658_v61  ;;  %3428 = vmatprep.subr.bf16.mxu1 %v4663_v62  ;;  %v4759_v61 = vld [vmem:[%s5498_s13 + $0x864] ss:$8 sps:$4 sm:$0xff]   ;;  %v4757_v62 = vld [vmem:[%s5498_s13 + $0x860] ss:$8 sps:$4 sm:$0xff]  }
 0x17e   : > { %3600 = vmatprep.subr.bf16.mxu0 %v4666_v63  ;;  %v4762_v63 = vld [vmem:[%s5498_s13 + $0x874] ss:$8 sps:$4 sm:$0xff]  }
 0x180   : > { %3429 = vmatpush1.bf16.msra.mxu1 %v4661_v0  ;;  %v4760_v0 = vld [vmem:[%s5498_s13 + $0x870] ss:$8 sps:$4 sm:$0xff]  }
 0x181   : > { %3601 = vmatpush1.bf16.msra.mxu0 %v4664_v1  ;;  %3430 = vmatprep.subr.bf16.mxu1 %v4669_v2  ;;  %v4765_v1 = vld [vmem:[%s5498_s13 + $0x884] ss:$8 sps:$4 sm:$0xff]   ;;  %v4763_v2 = vld [vmem:[%s5498_s13 + $0x880] ss:$8 sps:$4 sm:$0xff]  }
 0x182   : > { %3602 = vmatprep.subr.bf16.mxu0 %v4672_v3  ;;  %v4768_v3 = vld [vmem:[%s5498_s13 + $0x894] ss:$8 sps:$4 sm:$0xff]  }
 0x184   : > { %3431 = vmatpush1.bf16.msra.mxu1 %v4667_v4  ;;  %v4766_v4 = vld [vmem:[%s5498_s13 + $0x890] ss:$8 sps:$4 sm:$0xff]  }
 0x185   : > { %3603 = vmatpush1.bf16.msra.mxu0 %v4670_v5  ;;  %3432 = vmatprep.subr.bf16.mxu1 %v4675_v6  ;;  %v4771_v5 = vld [vmem:[%s5498_s13 + $0x8a4] ss:$8 sps:$4 sm:$0xff]   ;;  %v4769_v6 = vld [vmem:[%s5498_s13 + $0x8a0] ss:$8 sps:$4 sm:$0xff]  }
 0x186   : > { %3604 = vmatprep.subr.bf16.mxu0 %v4678_v7  ;;  %v4774_v7 = vld [vmem:[%s5498_s13 + $0x8b4] ss:$8 sps:$4 sm:$0xff]  }
 0x188   : > { %3433 = vmatpush1.bf16.msra.mxu1 %v4673_v8  ;;  %v4772_v8 = vld [vmem:[%s5498_s13 + $0x8b0] ss:$8 sps:$4 sm:$0xff]  }
 0x189   : > { %3605 = vmatpush1.bf16.msra.mxu0 %v4676_v9  ;;  %3434 = vmatprep.subr.bf16.mxu1 %v4681_v10  ;;  %v4777_v9 = vld [vmem:[%s5498_s13 + $0x8c4] ss:$8 sps:$4 sm:$0xff]   ;;  %v4775_v10 = vld [vmem:[%s5498_s13 + $0x8c0] ss:$8 sps:$4 sm:$0xff]  }
 0x18a   : > { %3606 = vmatprep.subr.bf16.mxu0 %v4684_v11  ;;  %v4780_v11 = vld [vmem:[%s5498_s13 + $0x8d4] ss:$8 sps:$4 sm:$0xff]  }
 0x18c   : > { %3435 = vmatpush1.bf16.msra.mxu1 %v4679_v12  ;;  %v4778_v12 = vld [vmem:[%s5498_s13 + $0x8d0] ss:$8 sps:$4 sm:$0xff]  }
 0x18d   : > { %3607 = vmatpush1.bf16.msra.mxu0 %v4682_v13  ;;  %3436 = vmatprep.subr.bf16.mxu1 %v4687_v14  ;;  %v4783_v13 = vld [vmem:[%s5498_s13 + $0x8e4] ss:$8 sps:$4 sm:$0xff]   ;;  %v4781_v14 = vld [vmem:[%s5498_s13 + $0x8e0] ss:$8 sps:$4 sm:$0xff]  }
 0x18e   : > { %3608 = vmatprep.subr.bf16.mxu0 %v4690_v15  ;;  %v4786_v15 = vld [vmem:[%s5498_s13 + $0x8f4] ss:$8 sps:$4 sm:$0xff]  }
 0x190   : > { %3437 = vmatpush1.bf16.msra.mxu1 %v4685_v16  ;;  %v4784_v16 = vld [vmem:[%s5498_s13 + $0x8f0] ss:$8 sps:$4 sm:$0xff]   ;;  %s3938_s13 = sshll.u32 %s4824_s17, 1 }
 0x191   : > { %3609 = vmatpush1.bf16.msra.mxu0 %v4688_v17  ;;  %3438 = vmatprep.subr.bf16.mxu1 %v4693_v18  ;;  %v4787_v17 = vld [vmem:[%s5890_s0 + $0x40] ss:$72 sps:$4 sm:$0xff]   ;;  %p1445_p11 = scmp.lt.s32.totalorder %s3938_s13, 3 }
 0x192   : > { %3610 = vmatprep.subr.bf16.mxu0 %v4696_v19 }
 0x193   : > { %s5903_s13 = smov (!%p1445_p11, %s3938_s13), 3 }
 0x194   : > { %3439 = vmatpush1.bf16.msra.mxu1 %v4691_v20  ;;  %s1447_s22 = scalar_lea.vmem %s5892_s2, %s5903_s13  ;;  %s1452_s27 = scalar_lea.vmem %s5893_s3, %s5903_s13 }
 0x195   : > { %3611 = vmatpush1.bf16.msra.mxu0 %v4694_v21  ;;  %3440 = vmatprep.subr.bf16.mxu1 %v4699_v22 }
 0x196   : > { %3612 = vmatprep.subr.bf16.mxu0 %v4702_v23 }
 0x198   : > { %3441 = vmatpush1.bf16.msra.mxu1 %v4697_v24 }
 0x199   : > { %3613 = vmatpush1.bf16.msra.mxu0 %v4700_v25  ;;  %3442 = vmatprep.subr.bf16.mxu1 %v4705_v26 }
 0x19a   : > { %3614 = vmatprep.subr.bf16.mxu0 %v4708_v27 }
 0x19c   : > { %3443 = vmatpush1.bf16.msra.mxu1 %v4703_v28 }
 0x19d   : > { %3615 = vmatpush1.bf16.msra.mxu0 %v4706_v29  ;;  %3444 = vmatprep.subr.bf16.mxu1 %v4711_v30 }
 0x19e   : > { %3616 = vmatprep.subr.bf16.mxu0 %v4714_v31 }
 0x1a0   : > { %3445 = vmatpush1.bf16.msra.mxu1 %v4709_v32 }
 0x1a1   : > { %3617 = vmatpush1.bf16.msra.mxu0 %v4712_v33  ;;  %3446 = vmatprep.subr.bf16.mxu1 %v4717_v34 }
 0x1a2   : > { %3618 = vmatprep.subr.bf16.mxu0 %v4720_v35 }
 0x1a4   : > { %3447 = vmatpush1.bf16.msra.mxu1 %v4715_v36 }
 0x1a5   : > { %3619 = vmatpush1.bf16.msra.mxu0 %v4718_v37  ;;  %3448 = vmatprep.subr.bf16.mxu1 %v4723_v38 }
 0x1a6   : > { %3620 = vmatprep.subr.bf16.mxu0 %v4726_v39 }
 0x1a8   : > { %3449 = vmatpush1.bf16.msra.mxu1 %v4721_v40 }
 0x1a9   : > { %3621 = vmatpush1.bf16.msra.mxu0 %v4724_v41  ;;  %3450 = vmatprep.subr.bf16.mxu1 %v4729_v42 }
 0x1aa   : > { %3622 = vmatprep.subr.bf16.mxu0 %v4732_v43 }
 0x1ac   : > { %3451 = vmatpush1.bf16.msra.mxu1 %v4727_v44 }
 0x1ad   : > { %3623 = vmatpush1.bf16.msra.mxu0 %v4730_v45 }
 0x1ae   : > { %3635 = vmatprep.subr.bf16.mxu0 %v4741_v46 }
 0x1af   : > { %3453 = vmatmul.mubr.bf16.vlgmr.msra.gmra.mrb[0].mxu1 %v4733_v47 }
 0x1b0   : > { %3625 = vmatmul.mubr.bf16.vlgmr.msra.gmra.mrb[0].mxu0 %v4736_v48 }
 0x1b1   : > { %3636 = vmatpush1.bf16.msra.mxu0 %v4739_v49  ;;  %3667 = vmatprep.mubr.bf16.mxu0 %v4789_v50 }
 0x1b2   : > { %3637 = vmatprep.subr.bf16.mxu0 %v4744_v51 }
 0x1b5   : > { %3638 = vmatpush1.bf16.msra.mxu0 %v4742_v52 }
 0x1b6   : > { %3639 = vmatprep.subr.bf16.mxu0 %v4747_v53 }
 0x1b9   : > { %3640 = vmatpush1.bf16.msra.mxu0 %v4745_v54 }
 0x1ba   : > { %3641 = vmatprep.subr.bf16.mxu0 %v4750_v55 }
 0x1bd   : > { %3642 = vmatpush1.bf16.msra.mxu0 %v4748_v56 }
 0x1be   : > { %3643 = vmatprep.subr.bf16.mxu0 %v4753_v57 }
 0x1c1   : > { %3644 = vmatpush1.bf16.msra.mxu0 %v4751_v58 }
 0x1c2   : > { %3645 = vmatprep.subr.bf16.mxu0 %v4756_v59 }
 0x1c5   : > { %3646 = vmatpush1.bf16.msra.mxu0 %v4754_v60 }
 0x1c6   : > { %3647 = vmatprep.subr.bf16.mxu0 %v4759_v61 }
 0x1c9   : > { %3648 = vmatpush1.bf16.msra.mxu0 %v4757_v62 }
 0x1ca   : > { %3649 = vmatprep.subr.bf16.mxu0 %v4762_v63 }
 0x1cd   : > { %3650 = vmatpush1.bf16.msra.mxu0 %v4760_v0 }
 0x1ce   : > { %3651 = vmatprep.subr.bf16.mxu0 %v4765_v1 }
 0x1d1   : > { %3652 = vmatpush1.bf16.msra.mxu0 %v4763_v2 }
 0x1d2   : > { %3653 = vmatprep.subr.bf16.mxu0 %v4768_v3 }
 0x1d5   : > { %3654 = vmatpush1.bf16.msra.mxu0 %v4766_v4 }
 0x1d6   : > { %3655 = vmatprep.subr.bf16.mxu0 %v4771_v5 }
 0x1d9   : > { %3656 = vmatpush1.bf16.msra.mxu0 %v4769_v6 }
 0x1da   : > { %3657 = vmatprep.subr.bf16.mxu0 %v4774_v7 }
 0x1dd   : > { %3658 = vmatpush1.bf16.msra.mxu0 %v4772_v8 }
 0x1de   : > { %3659 = vmatprep.subr.bf16.mxu0 %v4777_v9 }
 0x1e1   : > { %3660 = vmatpush1.bf16.msra.mxu0 %v4775_v10 }
 0x1e2   : > { %3661 = vmatprep.subr.bf16.mxu0 %v4780_v11  ;;  %v3734_v11 = vlaneseq }
 0x1e5   : > { %3662 = vmatpush1.bf16.msra.mxu0 %v4778_v12 }
 0x1e6   : > { %3663 = vmatprep.subr.bf16.mxu0 %v4783_v13 }
 0x1e9   : > { %3664 = vmatpush1.bf16.msra.mxu0 %v4781_v14 }
 0x1ea   : > { %3665 = vmatprep.subr.bf16.mxu0 %v4786_v15  ;;  %v3735_v15 = vshrl.u32 %v3734_v11, 7 }
 0x1ed   : > { %3666 = vmatpush1.bf16.msra.mxu0 %v4784_v16  ;;  %v3736_v16 = vsub.s32 0, %v3735_v15 }
 0x1f0   : > { %3668 = vmatmul.mubr.bf16.vlgmr.msra.gmra.mrb[0].mxu0 %v4787_v17  ;;  %v3732_v17 = vld [vmem:[%s1447_s22] sm:$0x3] }
 0x282   : > { %v3454_v18 = vpop.f32.mrb[0].mxu1 }
 0x283   : > { %v3456_v19 = vpop.f32.mrb[1].mxu1 }
 0x284   : > { %v3458_v20 = vpop.f32.mrb[2].mxu1 }
 0x285   : > { %v3460_v21 = vpop.f32.mrb[3].mxu1 }
 0x2c3   : > { %v3669_v22 = vpop.f32.mrb[0].mxu0 }
 0x2c4   : > { %v5836_v23 = vadd.f32 %v3669_v22, %v3454_v18  ;;  %v3671_v24 = vpop.f32.mrb[1].mxu0  ;;  %v3740_v18 = vsub.s32 1, %v3735_v15 }
 0x2c5   : > { %v5838_v25 = vadd.f32 %v3671_v24, %v3456_v19  ;;  %v3673_v26 = vpop.f32.mrb[2].mxu0  ;;  %v3748_v19 = vld [vmem:[%s1452_s27] sm:$0x3] }
 0x2c6   : > { %v5840_v27 = vadd.f32 %v3673_v26, %v3458_v20  ;;  %v3675_v28 = vpop.f32.mrb[3].mxu0  ;;  %v3694_v30 = vmul.f32 %v5836_v23, %v5836_v23  ;;  %v3737_v20 = vrot.slane %v3732_v17, %v3736_v16  ;;  %v3741_v22 = vrot.slane %v3732_v17, %v3740_v18 }
 0x2c7   : > { %v5842_v29 = vadd.f32 %v3675_v28, %v3460_v21  ;;  %v3695_v33 = vmul.f32 %v5838_v25, %v5838_v25  ;;  %v3753_v26 = vrot.slane %v3748_v19, %v3736_v16 }
 0x2c8   : > { %v3678_v31 = vadd.f32 %v5840_v27, %v5836_v23  ;;  %v3696_v32 = vmul.f32 %v5840_v27, %v5840_v27 }
 0x2c9   : > { %v3685_v34 = vadd.f32 %v5842_v29, %v5838_v25  ;;  %v3697_v35 = vmul.f32 %v5842_v29, %v5842_v29 }
 0x2ca   : > { %v3679_v36 = vrot.slane %v3678_v31, 4  ;;  %v3698_v37 = vadd.f32 %v3696_v32, %v3694_v30 }
 0x2cb   : > { %v3686_v38 = vrot.slane %v3685_v34, 4  ;;  %v3705_v39 = vadd.f32 %v3697_v35, %v3695_v33 }
 0x2cc   : > { %v3680_v40 = vadd.f32 %v3679_v36, %v3678_v31  ;;  %v3699_v41 = vrot.slane %v3698_v37, 4 }
 0x2cd   : > { %v3687_v42 = vadd.f32 %v3686_v38, %v3685_v34  ;;  %v3706_v43 = vrot.slane %v3705_v39, 4 }
 0x2ce   : > { %v3681_v44 = vrot.slane %v3680_v40, 2  ;;  %v3700_v45 = vadd.f32 %v3699_v41, %v3698_v37 }
 0x2cf   : > { %v3688_v46 = vrot.slane %v3687_v42, 2  ;;  %v3707_v47 = vadd.f32 %v3706_v43, %v3705_v39 }
 0x2d0   : > { %v3682_v48 = vadd.f32 %v3681_v44, %v3680_v40  ;;  %v3701_v49 = vrot.slane %v3700_v45, 2 }
 0x2d1   : > { %v3689_v50 = vadd.f32 %v3688_v46, %v3687_v42  ;;  %v3708_v51 = vrot.slane %v3707_v47, 2 }
 0x2d2   : > { %v3683_v52 = vrot.slane %v3682_v48, 1  ;;  %v3702_v53 = vadd.f32 %v3701_v49, %v3700_v45 }
 0x2d3   : > { %v3690_v54 = vrot.slane %v3689_v50, 1  ;;  %v3709_v55 = vadd.f32 %v3708_v51, %v3707_v47 }
 0x2d4   : > { %v3684_v56 = vadd.f32 %v3683_v52, %v3682_v48  ;;  %v3703_v57 = vrot.slane %v3702_v53, 1 }
 0x2d5   : > { %v3691_v58 = vadd.f32 %v3690_v54, %v3689_v50  ;;  %v3710_v59 = vrot.slane %v3709_v55, 1 }
 0x2d6   : > { %v3692_v60 = vmul.f32 0.125, %v3684_v56  ;;  %v3704_v61 = vadd.f32 %v3703_v57, %v3702_v53 }
 0x2d7   : > { %v3693_v62 = vmul.f32 0.125, %v3691_v58  ;;  %v3711_v63 = vadd.f32 %v3710_v59, %v3709_v55 }
 0x2d8   : > { %v3712_v0 = vmul.f32 0.125, %v3704_v61  ;;  %v3714_v1 = vmul.f32 %v3692_v60, %v3692_v60  ;;  %v3720_v2 = vsub.f32 %v5836_v23, %v3692_v60  ;;  %v3722_v3 = vsub.f32 %v5840_v27, %v3692_v60 }
 0x2d9   : > { %v3713_v4 = vmul.f32 0.125, %v3711_v63  ;;  %v3715_v5 = vmul.f32 %v3693_v62, %v3693_v62  ;;  %v3721_v6 = vsub.f32 %v5838_v25, %v3693_v62  ;;  %v3723_v7 = vsub.f32 %v5842_v29, %v3693_v62 }
 0x2da   : > { %v3716_v8 = vsub.f32 %v3712_v0, %v3714_v1  ;;  %v3757_v29 = vrot.slane %v3748_v19, %v3740_v18 }
 0x2db   : > { %v3717_v9 = vsub.f32 %v3713_v4, %v3715_v5 }
 0x2dc   : > { %v3718_v10 = vmax.f32 %v3716_v8, 0.0 }
 0x2dd   : > { %v3719_v12 = vmax.f32 %v3717_v9, 0.0 }
 0x2de   : > { %v3724_v13 = vadd.f32 1e-05, %v3718_v10 }
 0x2df   : > { %v3725_v14 = vadd.f32 1e-05, %v3719_v12 }
 0x2e0   : > { %4790 = vrsqrt.f32 %v3724_v13 }
 0x2e1   : > { %4792 = vrsqrt.f32 %v3725_v14 }
 0x2ea   : > { %v4791_v21 = vpop.eup %4790 }
 0x2eb   : > { %v4793_v23 = vpop.eup %4792  ;;  %v3728_v24 = vmul.f32 %v4791_v21, %v3720_v2  ;;  %v3730_v25 = vmul.f32 %v4791_v21, %v3722_v3 }
 0x2ec   : > { %v3729_v27 = vmul.f32 %v4793_v23, %v3721_v6  ;;  %v3731_v28 = vmul.f32 %v4793_v23, %v3723_v7 }
 0x2ed   : > { %v3744_v30 = vmul.f32 %v3737_v20, %v3728_v24  ;;  %v3746_v31 = vmul.f32 %v3737_v20, %v3730_v25 }
 0x2ee   : > { %v3745_v32 = vmul.f32 %v3741_v22, %v3729_v27  ;;  %v3747_v33 = vmul.f32 %v3741_v22, %v3731_v28 }
 0x2ef   : > { %v3760_v34 = vadd.f32 %v3753_v26, %v3744_v30  ;;  %v3762_v35 = vadd.f32 %v3753_v26, %v3746_v31 }
 0x2f0   : > { %v3761_v36 = vadd.f32 %v3757_v29, %v3745_v32  ;;  %v3763_v37 = vadd.f32 %v3757_v29, %v3747_v33  ;;  %3788 = sbr.rel (!%p4894_p6) target bundleno = 767 (0x2ff), region = 78 }
 0x2f1   : > { %v3764_v38 = vmax.f32 %v3760_v34, 0.0  ;;  %v3766_v39 = vmax.f32 %v3762_v35, 0.0 }
 0x2f2   : > { %v3765_v40 = vmax.f32 %v3761_v36, 0.0  ;;  %v3767_v41 = vmax.f32 %v3763_v37, 0.0 }
 0x2f4   : > { %v4254_v42 = vpack.c.bf16 %v3765_v40, %v3764_v38  ;;  %v4255_v43 = vpack.c.bf16 %v3767_v41, %v3766_v39 }
 0x2f6   : > { %3780 = vst [vmem:[%s1435_s29] sm:$0xff] %v4254_v42  ;;  %3781 = vst [vmem:[%s1435_s29 + $0x8] sm:$0xff] %v4255_v43 }
 0x2fd   : > { %v3821_v44 = vld [vmem:[%s1435_s29] sm:$0xff]  ;;  %v3823_v45 = vld [vmem:[%s1435_s29 + $0x8] sm:$0xff] }
 0x2fe   : > { %3822 = vst [vmem:[%s3791_s5] sm:$0xff] %v3821_v44  ;;  %3824 = vst [vmem:[%s3791_s5 + $0x10] sm:$0xff] %v3823_v45 }
 0x2ff PF: > { %s14_s19 = sadd.s32 1, %s4832_s19   ;;  %s5896_s15 = smov %s4820_s16 }
 0x300   : > { %p11_p12 = scmp.ge.s32.totalorder %s14_s19, 4   ;;  %s5897_s16 = smov %s4899_s25 }
 0x301   : > { %s5898_s17 = smov %s4828_s18  ;;  %s5899_s18 = smov %s5901_s20 }
 0x302   :  { %13 = sbr.rel (!%p11_p12) target bundleno = 3 (0x3), region = 156 }

// kernel: _lambda_.17
= control target key start
LH: loop header
LB: loop body
LE: loop exit
PB: predicated region body
PF: predicated region fallthrough
CT: control target
= control target key end

     0   :  { %s4371_s15 = smov 0   ;;  %s4373_s16 = smov 0   ;;  %s5370_s0 = inlined_call_operand.vmem [shape: bf16[16,2048], index: 0, kind: input, shape index: {}]   ;;  %s5371_s1 = inlined_call_operand.vmem [shape: bf16[2048,512], index: 1, kind: input, shape index: {}]   ;;  %s5372_s2 = inlined_call_operand.vmem [shape: f32[1,512], index: 2, kind: input, shape index: {}]   ;;  %s5373_s3 = inlined_call_operand.vmem [shape: f32[1,512], index: 3, kind: input, shape index: {}]   ;;  %s5374_s4 = inlined_call_operand.vmem [shape: bf16[16,512], index: 4, kind: output, shape index: {}]  }
   0x1   :  { %s4375_s17 = smov 0   ;;  %s4377_s18 = smov 0  }
   0x2   :  { %s4379_s19 = smov 0  }
   0x3 LB: > { %s26_s20 = sadd.s32 1, %s4340_s18  ;;  %s3554_s21 = sadd.s32 4294967295, %s4344_s19   ;;  %s4344_s19 = sphi %s4379_s19, %s14_s19   ;;  %s4340_s18 = sphi %s4377_s18, %s5379_s18   ;;  %s4336_s17 = sphi %s4375_s17, %s5378_s17   ;;  %s4332_s16 = sphi %s4373_s16, %s5377_s16   ;;  %s4328_s15 = sphi %s4371_s15, %s5376_s15  }
   0x4   : > { %p28_p0 = scmp.ge.s32.totalorder %s26_s20, 2  ;;  %p68_p1 = scmp.ne.s32.totalorder %s4332_s16, %s4328_s15 }
   0x5   : > { %p69_p2 = scmp.eq.s32.totalorder %s4344_s19, 0  ;;  %p150_p4 = scmp.eq.s32.totalorder %s3554_s21, 1 }
   0x6   : > { %s5381_s20 = smov (%p28_p0, %s26_s20), 0  ;;  %s61_s23 = sadd.s32 1, %s4332_s16 }
   0x7   : > { %p70_p3 = por %p69_p2, %p68_p1  ;;  %s57_s22 = ssub.s32 %s4340_s18, %s5381_s20 }
   0x8   : > { %p59_p5 = scmp.eq.s32.totalorder %s57_s22, 0  ;;  %p4406_p6 = por %p150_p4, %p68_p1 }
   0x9   : > { %p3558_p7 = scmp.ge.s32.totalorder %s4344_s19, 2 }
   0xa   : > { %s4411_s25 = scalar_select %p59_p5, %s4332_s16, %s61_s23  }
   0xb   : > { %181 = sbr.rel (%p3558_p7) target bundleno = 150 (0x96), region = 20 }
  0x12   : > { %184 = sbr.rel (!%p70_p3) target bundleno = 150 (0x96), region = 24  ;;  %s186_s26 = sand.u32 (%p70_p3), 1, %s4332_s16  }
  0x13   : > { %s3846_s27 = sshll.u32 (%p70_p3), %s4340_s18, 3  ;;  %s3559_s28 = sshll.u32 (%p70_p3), %s186_s26, 11 }
  0x14   : > { %s4419_s5 = scalar_lea.vmem (%p70_p3), %s5371_s1, %s3846_s27  ;;  %s4424_s6 = scalar_lea.vmem (%p70_p3), [#allocation3], %s3559_s28 }
  0x15   : > { %v732_v0 = vld [vmem:[%s4419_s5] sm:$0xff] (%p70_p3)  ;;  %v734_v1 = vld [vmem:[%s4419_s5 + $0x10] sm:$0xff] (%p70_p3) }
  0x16   : > { %v736_v2 = vld [vmem:[%s4419_s5 + $0x20] sm:$0xff] (%p70_p3)  ;;  %733 = vst [vmem:[%s4424_s6] sm:$0xff] (%p70_p3), %v732_v0  ;;  %735 = vst [vmem:[%s4424_s6 + $0x8] sm:$0xff] (%p70_p3), %v734_v1  ;;  %v738_v3 = vld [vmem:[%s4419_s5 + $0x30] sm:$0xff] (%p70_p3) }
  0x17   : > { %737 = vst [vmem:[%s4424_s6 + $0x10] sm:$0xff] (%p70_p3), %v736_v2  ;;  %v740_v4 = vld [vmem:[%s4419_s5 + $0x40] sm:$0xff] (%p70_p3)  ;;  %v742_v5 = vld [vmem:[%s4419_s5 + $0x50] sm:$0xff] (%p70_p3)  ;;  %739 = vst [vmem:[%s4424_s6 + $0x18] sm:$0xff] (%p70_p3), %v738_v3 }
  0x18   : > { %741 = vst [vmem:[%s4424_s6 + $0x20] sm:$0xff] (%p70_p3), %v740_v4  ;;  %743 = vst [vmem:[%s4424_s6 + $0x28] sm:$0xff] (%p70_p3), %v742_v5  ;;  %v744_v6 = vld [vmem:[%s4419_s5 + $0x60] sm:$0xff] (%p70_p3)  ;;  %v746_v7 = vld [vmem:[%s4419_s5 + $0x70] sm:$0xff] (%p70_p3) }
  0x19   : > { %v748_v8 = vld [vmem:[%s4419_s5 + $0x80] sm:$0xff]  ;;  %745 = vst [vmem:[%s4424_s6 + $0x30] sm:$0xff] %v744_v6  ;;  %747 = vst [vmem:[%s4424_s6 + $0x38] sm:$0xff] %v746_v7  ;;  %v750_v9 = vld [vmem:[%s4419_s5 + $0x90] sm:$0xff] }
  0x1a   : > { %749 = vst [vmem:[%s4424_s6 + $0x40] sm:$0xff] %v748_v8  ;;  %v752_v10 = vld [vmem:[%s4419_s5 + $0xa0] sm:$0xff]  ;;  %v754_v11 = vld [vmem:[%s4419_s5 + $0xb0] sm:$0xff]  ;;  %751 = vst [vmem:[%s4424_s6 + $0x48] sm:$0xff] %v750_v9 }
  0x1b   : > { %753 = vst [vmem:[%s4424_s6 + $0x50] sm:$0xff] %v752_v10  ;;  %755 = vst [vmem:[%s4424_s6 + $0x58] sm:$0xff] %v754_v11  ;;  %v756_v12 = vld [vmem:[%s4419_s5 + $0xc0] sm:$0xff]  ;;  %v758_v13 = vld [vmem:[%s4419_s5 + $0xd0] sm:$0xff] }
  0x1c   : > { %v760_v14 = vld [vmem:[%s4419_s5 + $0xe0] sm:$0xff]  ;;  %757 = vst [vmem:[%s4424_s6 + $0x60] sm:$0xff] %v756_v12  ;;  %759 = vst [vmem:[%s4424_s6 + $0x68] sm:$0xff] %v758_v13  ;;  %v762_v15 = vld [vmem:[%s4419_s5 + $0xf0] sm:$0xff] }
  0x1d   : > { %761 = vst [vmem:[%s4424_s6 + $0x70] sm:$0xff] %v760_v14  ;;  %v764_v16 = vld [vmem:[%s4419_s5 + $0x100] sm:$0xff]  ;;  %v766_v17 = vld [vmem:[%s4419_s5 + $0x110] sm:$0xff]  ;;  %763 = vst [vmem:[%s4424_s6 + $0x78] sm:$0xff] %v762_v15 }
  0x1e   : > { %765 = vst [vmem:[%s4424_s6 + $0x80] sm:$0xff] %v764_v16  ;;  %767 = vst [vmem:[%s4424_s6 + $0x88] sm:$0xff] %v766_v17  ;;  %v768_v18 = vld [vmem:[%s4419_s5 + $0x120] sm:$0xff]  ;;  %v770_v19 = vld [vmem:[%s4419_s5 + $0x130] sm:$0xff] }
  0x1f   : > { %v772_v20 = vld [vmem:[%s4419_s5 + $0x140] sm:$0xff]  ;;  %769 = vst [vmem:[%s4424_s6 + $0x90] sm:$0xff] %v768_v18  ;;  %771 = vst [vmem:[%s4424_s6 + $0x98] sm:$0xff] %v770_v19  ;;  %v774_v21 = vld [vmem:[%s4419_s5 + $0x150] sm:$0xff] }
  0x20   : > { %773 = vst [vmem:[%s4424_s6 + $0xa0] sm:$0xff] %v772_v20  ;;  %v776_v22 = vld [vmem:[%s4419_s5 + $0x160] sm:$0xff]  ;;  %v778_v23 = vld [vmem:[%s4419_s5 + $0x170] sm:$0xff]  ;;  %775 = vst [vmem:[%s4424_s6 + $0xa8] sm:$0xff] %v774_v21 }
  0x21   : > { %777 = vst [vmem:[%s4424_s6 + $0xb0] sm:$0xff] %v776_v22  ;;  %779 = vst [vmem:[%s4424_s6 + $0xb8] sm:$0xff] %v778_v23  ;;  %v780_v24 = vld [vmem:[%s4419_s5 + $0x180] sm:$0xff]  ;;  %v782_v25 = vld [vmem:[%s4419_s5 + $0x190] sm:$0xff] }
  0x22   : > { %v784_v26 = vld [vmem:[%s4419_s5 + $0x1a0] sm:$0xff]  ;;  %781 = vst [vmem:[%s4424_s6 + $0xc0] sm:$0xff] %v780_v24  ;;  %783 = vst [vmem:[%s4424_s6 + $0xc8] sm:$0xff] %v782_v25  ;;  %v786_v27 = vld [vmem:[%s4419_s5 + $0x1b0] sm:$0xff] }
  0x23   : > { %785 = vst [vmem:[%s4424_s6 + $0xd0] sm:$0xff] %v784_v26  ;;  %v788_v28 = vld [vmem:[%s4419_s5 + $0x1c0] sm:$0xff]  ;;  %v790_v29 = vld [vmem:[%s4419_s5 + $0x1d0] sm:$0xff]  ;;  %787 = vst [vmem:[%s4424_s6 + $0xd8] sm:$0xff] %v786_v27 }
  0x24   : > { %789 = vst [vmem:[%s4424_s6 + $0xe0] sm:$0xff] %v788_v28  ;;  %791 = vst [vmem:[%s4424_s6 + $0xe8] sm:$0xff] %v790_v29  ;;  %v792_v30 = vld [vmem:[%s4419_s5 + $0x1e0] sm:$0xff]  ;;  %v794_v31 = vld [vmem:[%s4419_s5 + $0x1f0] sm:$0xff] }
  0x25   : > { %v796_v32 = vld [vmem:[%s4419_s5 + $0x200] sm:$0xff]  ;;  %793 = vst [vmem:[%s4424_s6 + $0xf0] sm:$0xff] %v792_v30  ;;  %795 = vst [vmem:[%s4424_s6 + $0xf8] sm:$0xff] %v794_v31  ;;  %v798_v33 = vld [vmem:[%s4419_s5 + $0x210] sm:$0xff] }
  0x26   : > { %797 = vst [vmem:[%s4424_s6 + $0x100] sm:$0xff] %v796_v32  ;;  %v800_v34 = vld [vmem:[%s4419_s5 + $0x220] sm:$0xff]  ;;  %v802_v35 = vld [vmem:[%s4419_s5 + $0x230] sm:$0xff]  ;;  %799 = vst [vmem:[%s4424_s6 + $0x108] sm:$0xff] %v798_v33 }
  0x27   : > { %801 = vst [vmem:[%s4424_s6 + $0x110] sm:$0xff] %v800_v34  ;;  %803 = vst [vmem:[%s4424_s6 + $0x118] sm:$0xff] %v802_v35  ;;  %v804_v36 = vld [vmem:[%s4419_s5 + $0x240] sm:$0xff]  ;;  %v806_v37 = vld [vmem:[%s4419_s5 + $0x250] sm:$0xff] }
  0x28   : > { %v808_v38 = vld [vmem:[%s4419_s5 + $0x260] sm:$0xff]  ;;  %805 = vst [vmem:[%s4424_s6 + $0x120] sm:$0xff] %v804_v36  ;;  %807 = vst [vmem:[%s4424_s6 + $0x128] sm:$0xff] %v806_v37  ;;  %v810_v39 = vld [vmem:[%s4419_s5 + $0x270] sm:$0xff] }
  0x29   : > { %809 = vst [vmem:[%s4424_s6 + $0x130] sm:$0xff] %v808_v38  ;;  %v812_v40 = vld [vmem:[%s4419_s5 + $0x280] sm:$0xff]  ;;  %v814_v41 = vld [vmem:[%s4419_s5 + $0x290] sm:$0xff]  ;;  %811 = vst [vmem:[%s4424_s6 + $0x138] sm:$0xff] %v810_v39 }
  0x2a   : > { %813 = vst [vmem:[%s4424_s6 + $0x140] sm:$0xff] %v812_v40  ;;  %815 = vst [vmem:[%s4424_s6 + $0x148] sm:$0xff] %v814_v41  ;;  %v816_v42 = vld [vmem:[%s4419_s5 + $0x2a0] sm:$0xff]  ;;  %v818_v43 = vld [vmem:[%s4419_s5 + $0x2b0] sm:$0xff] }
  0x2b   : > { %v820_v44 = vld [vmem:[%s4419_s5 + $0x2c0] sm:$0xff]  ;;  %817 = vst [vmem:[%s4424_s6 + $0x150] sm:$0xff] %v816_v42  ;;  %819 = vst [vmem:[%s4424_s6 + $0x158] sm:$0xff] %v818_v43  ;;  %v822_v45 = vld [vmem:[%s4419_s5 + $0x2d0] sm:$0xff] }
  0x2c   : > { %821 = vst [vmem:[%s4424_s6 + $0x160] sm:$0xff] %v820_v44  ;;  %v824_v46 = vld [vmem:[%s4419_s5 + $0x2e0] sm:$0xff]  ;;  %v826_v47 = vld [vmem:[%s4419_s5 + $0x2f0] sm:$0xff]  ;;  %823 = vst [vmem:[%s4424_s6 + $0x168] sm:$0xff] %v822_v45 }
  0x2d   : > { %825 = vst [vmem:[%s4424_s6 + $0x170] sm:$0xff] %v824_v46  ;;  %827 = vst [vmem:[%s4424_s6 + $0x178] sm:$0xff] %v826_v47  ;;  %v828_v48 = vld [vmem:[%s4419_s5 + $0x300] sm:$0xff]  ;;  %v830_v49 = vld [vmem:[%s4419_s5 + $0x310] sm:$0xff] }
  0x2e   : > { %v832_v50 = vld [vmem:[%s4419_s5 + $0x320] sm:$0xff]  ;;  %829 = vst [vmem:[%s4424_s6 + $0x180] sm:$0xff] %v828_v48  ;;  %831 = vst [vmem:[%s4424_s6 + $0x188] sm:$0xff] %v830_v49  ;;  %v834_v51 = vld [vmem:[%s4419_s5 + $0x330] sm:$0xff] }
  0x2f   : > { %833 = vst [vmem:[%s4424_s6 + $0x190] sm:$0xff] %v832_v50  ;;  %v836_v52 = vld [vmem:[%s4419_s5 + $0x340] sm:$0xff]  ;;  %v838_v53 = vld [vmem:[%s4419_s5 + $0x350] sm:$0xff]  ;;  %835 = vst [vmem:[%s4424_s6 + $0x198] sm:$0xff] %v834_v51 }
  0x30   : > { %837 = vst [vmem:[%s4424_s6 + $0x1a0] sm:$0xff] %v836_v52  ;;  %839 = vst [vmem:[%s4424_s6 + $0x1a8] sm:$0xff] %v838_v53  ;;  %v840_v54 = vld [vmem:[%s4419_s5 + $0x360] sm:$0xff]  ;;  %v842_v55 = vld [vmem:[%s4419_s5 + $0x370] sm:$0xff] }
  0x31   : > { %v844_v56 = vld [vmem:[%s4419_s5 + $0x380] sm:$0xff]  ;;  %841 = vst [vmem:[%s4424_s6 + $0x1b0] sm:$0xff] %v840_v54  ;;  %843 = vst [vmem:[%s4424_s6 + $0x1b8] sm:$0xff] %v842_v55  ;;  %v846_v57 = vld [vmem:[%s4419_s5 + $0x390] sm:$0xff] }
  0x32   : > { %845 = vst [vmem:[%s4424_s6 + $0x1c0] sm:$0xff] %v844_v56  ;;  %v848_v58 = vld [vmem:[%s4419_s5 + $0x3a0] sm:$0xff]  ;;  %v850_v59 = vld [vmem:[%s4419_s5 + $0x3b0] sm:$0xff]  ;;  %847 = vst [vmem:[%s4424_s6 + $0x1c8] sm:$0xff] %v846_v57 }
  0x33   : > { %849 = vst [vmem:[%s4424_s6 + $0x1d0] sm:$0xff] %v848_v58  ;;  %851 = vst [vmem:[%s4424_s6 + $0x1d8] sm:$0xff] %v850_v59  ;;  %v852_v60 = vld [vmem:[%s4419_s5 + $0x3c0] sm:$0xff]  ;;  %v854_v61 = vld [vmem:[%s4419_s5 + $0x3d0] sm:$0xff] }
  0x34   : > { %v856_v62 = vld [vmem:[%s4419_s5 + $0x3e0] sm:$0xff]  ;;  %853 = vst [vmem:[%s4424_s6 + $0x1e0] sm:$0xff] %v852_v60  ;;  %855 = vst [vmem:[%s4424_s6 + $0x1e8] sm:$0xff] %v854_v61  ;;  %v858_v63 = vld [vmem:[%s4419_s5 + $0x3f0] sm:$0xff] }
  0x35   : > { %857 = vst [vmem:[%s4424_s6 + $0x1f0] sm:$0xff] %v856_v62  ;;  %v860_v0 = vld [vmem:[%s4419_s5 + $0x400] sm:$0xff]  ;;  %v862_v1 = vld [vmem:[%s4419_s5 + $0x410] sm:$0xff]  ;;  %859 = vst [vmem:[%s4424_s6 + $0x1f8] sm:$0xff] %v858_v63 }
  0x36   : > { %861 = vst [vmem:[%s4424_s6 + $0x200] sm:$0xff] %v860_v0  ;;  %863 = vst [vmem:[%s4424_s6 + $0x208] sm:$0xff] %v862_v1  ;;  %v864_v2 = vld [vmem:[%s4419_s5 + $0x420] sm:$0xff]  ;;  %v866_v3 = vld [vmem:[%s4419_s5 + $0x430] sm:$0xff] }
  0x37   : > { %v868_v4 = vld [vmem:[%s4419_s5 + $0x440] sm:$0xff]  ;;  %865 = vst [vmem:[%s4424_s6 + $0x210] sm:$0xff] %v864_v2  ;;  %867 = vst [vmem:[%s4424_s6 + $0x218] sm:$0xff] %v866_v3  ;;  %v870_v5 = vld [vmem:[%s4419_s5 + $0x450] sm:$0xff] }
  0x38   : > { %869 = vst [vmem:[%s4424_s6 + $0x220] sm:$0xff] %v868_v4  ;;  %v872_v6 = vld [vmem:[%s4419_s5 + $0x460] sm:$0xff]  ;;  %v874_v7 = vld [vmem:[%s4419_s5 + $0x470] sm:$0xff]  ;;  %871 = vst [vmem:[%s4424_s6 + $0x228] sm:$0xff] %v870_v5 }
  0x39   : > { %873 = vst [vmem:[%s4424_s6 + $0x230] sm:$0xff] %v872_v6  ;;  %875 = vst [vmem:[%s4424_s6 + $0x238] sm:$0xff] %v874_v7  ;;  %v876_v8 = vld [vmem:[%s4419_s5 + $0x480] sm:$0xff]  ;;  %v878_v9 = vld [vmem:[%s4419_s5 + $0x490] sm:$0xff] }
  0x3a   : > { %v880_v10 = vld [vmem:[%s4419_s5 + $0x4a0] sm:$0xff]  ;;  %877 = vst [vmem:[%s4424_s6 + $0x240] sm:$0xff] %v876_v8  ;;  %879 = vst [vmem:[%s4424_s6 + $0x248] sm:$0xff] %v878_v9  ;;  %v882_v11 = vld [vmem:[%s4419_s5 + $0x4b0] sm:$0xff] }
  0x3b   : > { %881 = vst [vmem:[%s4424_s6 + $0x250] sm:$0xff] %v880_v10  ;;  %v884_v12 = vld [vmem:[%s4419_s5 + $0x4c0] sm:$0xff]  ;;  %v886_v13 = vld [vmem:[%s4419_s5 + $0x4d0] sm:$0xff]  ;;  %883 = vst [vmem:[%s4424_s6 + $0x258] sm:$0xff] %v882_v11 }
  0x3c   : > { %885 = vst [vmem:[%s4424_s6 + $0x260] sm:$0xff] %v884_v12  ;;  %887 = vst [vmem:[%s4424_s6 + $0x268] sm:$0xff] %v886_v13  ;;  %v888_v14 = vld [vmem:[%s4419_s5 + $0x4e0] sm:$0xff]  ;;  %v890_v15 = vld [vmem:[%s4419_s5 + $0x4f0] sm:$0xff] }
  0x3d   : > { %v892_v16 = vld [vmem:[%s4419_s5 + $0x500] sm:$0xff]  ;;  %889 = vst [vmem:[%s4424_s6 + $0x270] sm:$0xff] %v888_v14  ;;  %891 = vst [vmem:[%s4424_s6 + $0x278] sm:$0xff] %v890_v15  ;;  %v894_v17 = vld [vmem:[%s4419_s5 + $0x510] sm:$0xff] }
  0x3e   : > { %893 = vst [vmem:[%s4424_s6 + $0x280] sm:$0xff] %v892_v16  ;;  %v896_v18 = vld [vmem:[%s4419_s5 + $0x520] sm:$0xff]  ;;  %v898_v19 = vld [vmem:[%s4419_s5 + $0x530] sm:$0xff]  ;;  %895 = vst [vmem:[%s4424_s6 + $0x288] sm:$0xff] %v894_v17 }
  0x3f   : > { %897 = vst [vmem:[%s4424_s6 + $0x290] sm:$0xff] %v896_v18  ;;  %899 = vst [vmem:[%s4424_s6 + $0x298] sm:$0xff] %v898_v19  ;;  %v900_v20 = vld [vmem:[%s4419_s5 + $0x540] sm:$0xff]  ;;  %v902_v21 = vld [vmem:[%s4419_s5 + $0x550] sm:$0xff] }
  0x40   : > { %v904_v22 = vld [vmem:[%s4419_s5 + $0x560] sm:$0xff]  ;;  %901 = vst [vmem:[%s4424_s6 + $0x2a0] sm:$0xff] %v900_v20  ;;  %903 = vst [vmem:[%s4424_s6 + $0x2a8] sm:$0xff] %v902_v21  ;;  %v906_v23 = vld [vmem:[%s4419_s5 + $0x570] sm:$0xff] }
  0x41   : > { %905 = vst [vmem:[%s4424_s6 + $0x2b0] sm:$0xff] %v904_v22  ;;  %v908_v24 = vld [vmem:[%s4419_s5 + $0x580] sm:$0xff]  ;;  %v910_v25 = vld [vmem:[%s4419_s5 + $0x590] sm:$0xff]  ;;  %907 = vst [vmem:[%s4424_s6 + $0x2b8] sm:$0xff] %v906_v23 }
  0x42   : > { %909 = vst [vmem:[%s4424_s6 + $0x2c0] sm:$0xff] %v908_v24  ;;  %911 = vst [vmem:[%s4424_s6 + $0x2c8] sm:$0xff] %v910_v25  ;;  %v912_v26 = vld [vmem:[%s4419_s5 + $0x5a0] sm:$0xff]  ;;  %v914_v27 = vld [vmem:[%s4419_s5 + $0x5b0] sm:$0xff] }
  0x43   : > { %v916_v28 = vld [vmem:[%s4419_s5 + $0x5c0] sm:$0xff]  ;;  %913 = vst [vmem:[%s4424_s6 + $0x2d0] sm:$0xff] %v912_v26  ;;  %915 = vst [vmem:[%s4424_s6 + $0x2d8] sm:$0xff] %v914_v27  ;;  %v918_v29 = vld [vmem:[%s4419_s5 + $0x5d0] sm:$0xff] }
  0x44   : > { %917 = vst [vmem:[%s4424_s6 + $0x2e0] sm:$0xff] %v916_v28  ;;  %v920_v30 = vld [vmem:[%s4419_s5 + $0x5e0] sm:$0xff]  ;;  %v922_v31 = vld [vmem:[%s4419_s5 + $0x5f0] sm:$0xff]  ;;  %919 = vst [vmem:[%s4424_s6 + $0x2e8] sm:$0xff] %v918_v29 }
  0x45   : > { %921 = vst [vmem:[%s4424_s6 + $0x2f0] sm:$0xff] %v920_v30  ;;  %923 = vst [vmem:[%s4424_s6 + $0x2f8] sm:$0xff] %v922_v31  ;;  %v924_v32 = vld [vmem:[%s4419_s5 + $0x600] sm:$0xff]  ;;  %v926_v33 = vld [vmem:[%s4419_s5 + $0x610] sm:$0xff] }
  0x46   : > { %v928_v34 = vld [vmem:[%s4419_s5 + $0x620] sm:$0xff]  ;;  %925 = vst [vmem:[%s4424_s6 + $0x300] sm:$0xff] %v924_v32  ;;  %927 = vst [vmem:[%s4424_s6 + $0x308] sm:$0xff] %v926_v33  ;;  %v930_v35 = vld [vmem:[%s4419_s5 + $0x630] sm:$0xff] }
  0x47   : > { %929 = vst [vmem:[%s4424_s6 + $0x310] sm:$0xff] %v928_v34  ;;  %v932_v36 = vld [vmem:[%s4419_s5 + $0x640] sm:$0xff]  ;;  %v934_v37 = vld [vmem:[%s4419_s5 + $0x650] sm:$0xff]  ;;  %931 = vst [vmem:[%s4424_s6 + $0x318] sm:$0xff] %v930_v35 }
  0x48   : > { %933 = vst [vmem:[%s4424_s6 + $0x320] sm:$0xff] %v932_v36  ;;  %935 = vst [vmem:[%s4424_s6 + $0x328] sm:$0xff] %v934_v37  ;;  %v936_v38 = vld [vmem:[%s4419_s5 + $0x660] sm:$0xff]  ;;  %v938_v39 = vld [vmem:[%s4419_s5 + $0x670] sm:$0xff] }
  0x49   : > { %v940_v40 = vld [vmem:[%s4419_s5 + $0x680] sm:$0xff]  ;;  %937 = vst [vmem:[%s4424_s6 + $0x330] sm:$0xff] %v936_v38  ;;  %939 = vst [vmem:[%s4424_s6 + $0x338] sm:$0xff] %v938_v39  ;;  %v942_v41 = vld [vmem:[%s4419_s5 + $0x690] sm:$0xff] }
  0x4a   : > { %941 = vst [vmem:[%s4424_s6 + $0x340] sm:$0xff] %v940_v40  ;;  %v944_v42 = vld [vmem:[%s4419_s5 + $0x6a0] sm:$0xff]  ;;  %v946_v43 = vld [vmem:[%s4419_s5 + $0x6b0] sm:$0xff]  ;;  %943 = vst [vmem:[%s4424_s6 + $0x348] sm:$0xff] %v942_v41 }
  0x4b   : > { %945 = vst [vmem:[%s4424_s6 + $0x350] sm:$0xff] %v944_v42  ;;  %947 = vst [vmem:[%s4424_s6 + $0x358] sm:$0xff] %v946_v43  ;;  %v948_v44 = vld [vmem:[%s4419_s5 + $0x6c0] sm:$0xff]  ;;  %v950_v45 = vld [vmem:[%s4419_s5 + $0x6d0] sm:$0xff] }
  0x4c   : > { %v952_v46 = vld [vmem:[%s4419_s5 + $0x6e0] sm:$0xff]  ;;  %949 = vst [vmem:[%s4424_s6 + $0x360] sm:$0xff] %v948_v44  ;;  %951 = vst [vmem:[%s4424_s6 + $0x368] sm:$0xff] %v950_v45  ;;  %v954_v47 = vld [vmem:[%s4419_s5 + $0x6f0] sm:$0xff] }
  0x4d   : > { %953 = vst [vmem:[%s4424_s6 + $0x370] sm:$0xff] %v952_v46  ;;  %v956_v48 = vld [vmem:[%s4419_s5 + $0x700] sm:$0xff]  ;;  %v958_v49 = vld [vmem:[%s4419_s5 + $0x710] sm:$0xff]  ;;  %955 = vst [vmem:[%s4424_s6 + $0x378] sm:$0xff] %v954_v47 }
  0x4e   : > { %957 = vst [vmem:[%s4424_s6 + $0x380] sm:$0xff] %v956_v48  ;;  %959 = vst [vmem:[%s4424_s6 + $0x388] sm:$0xff] %v958_v49  ;;  %v960_v50 = vld [vmem:[%s4419_s5 + $0x720] sm:$0xff]  ;;  %v962_v51 = vld [vmem:[%s4419_s5 + $0x730] sm:$0xff] }
  0x4f   : > { %v964_v52 = vld [vmem:[%s4419_s5 + $0x740] sm:$0xff]  ;;  %961 = vst [vmem:[%s4424_s6 + $0x390] sm:$0xff] %v960_v50  ;;  %963 = vst [vmem:[%s4424_s6 + $0x398] sm:$0xff] %v962_v51  ;;  %v966_v53 = vld [vmem:[%s4419_s5 + $0x750] sm:$0xff] }
  0x50   : > { %965 = vst [vmem:[%s4424_s6 + $0x3a0] sm:$0xff] %v964_v52  ;;  %v968_v54 = vld [vmem:[%s4419_s5 + $0x760] sm:$0xff]  ;;  %v970_v55 = vld [vmem:[%s4419_s5 + $0x770] sm:$0xff]  ;;  %967 = vst [vmem:[%s4424_s6 + $0x3a8] sm:$0xff] %v966_v53 }
  0x51   : > { %969 = vst [vmem:[%s4424_s6 + $0x3b0] sm:$0xff] %v968_v54  ;;  %971 = vst [vmem:[%s4424_s6 + $0x3b8] sm:$0xff] %v970_v55  ;;  %v972_v56 = vld [vmem:[%s4419_s5 + $0x780] sm:$0xff]  ;;  %v974_v57 = vld [vmem:[%s4419_s5 + $0x790] sm:$0xff] }
  0x52   : > { %v976_v58 = vld [vmem:[%s4419_s5 + $0x7a0] sm:$0xff]  ;;  %973 = vst [vmem:[%s4424_s6 + $0x3c0] sm:$0xff] %v972_v56  ;;  %975 = vst [vmem:[%s4424_s6 + $0x3c8] sm:$0xff] %v974_v57  ;;  %v978_v59 = vld [vmem:[%s4419_s5 + $0x7b0] sm:$0xff] }
  0x53   : > { %977 = vst [vmem:[%s4424_s6 + $0x3d0] sm:$0xff] %v976_v58  ;;  %v980_v60 = vld [vmem:[%s4419_s5 + $0x7c0] sm:$0xff]  ;;  %v982_v61 = vld [vmem:[%s4419_s5 + $0x7d0] sm:$0xff]  ;;  %979 = vst [vmem:[%s4424_s6 + $0x3d8] sm:$0xff] %v978_v59 }
  0x54   : > { %981 = vst [vmem:[%s4424_s6 + $0x3e0] sm:$0xff] %v980_v60  ;;  %983 = vst [vmem:[%s4424_s6 + $0x3e8] sm:$0xff] %v982_v61  ;;  %v984_v62 = vld [vmem:[%s4419_s5 + $0x7e0] sm:$0xff]  ;;  %v986_v63 = vld [vmem:[%s4419_s5 + $0x7f0] sm:$0xff] }
  0x55   : > { %v988_v0 = vld [vmem:[%s4419_s5 + $0x800] sm:$0xff]  ;;  %985 = vst [vmem:[%s4424_s6 + $0x3f0] sm:$0xff] %v984_v62  ;;  %987 = vst [vmem:[%s4424_s6 + $0x3f8] sm:$0xff] %v986_v63  ;;  %v990_v1 = vld [vmem:[%s4419_s5 + $0x810] sm:$0xff] }
  0x56   : > { %989 = vst [vmem:[%s4424_s6 + $0x400] sm:$0xff] %v988_v0  ;;  %v992_v2 = vld [vmem:[%s4419_s5 + $0x820] sm:$0xff]  ;;  %v994_v3 = vld [vmem:[%s4419_s5 + $0x830] sm:$0xff]  ;;  %991 = vst [vmem:[%s4424_s6 + $0x408] sm:$0xff] %v990_v1 }
  0x57   : > { %993 = vst [vmem:[%s4424_s6 + $0x410] sm:$0xff] %v992_v2  ;;  %995 = vst [vmem:[%s4424_s6 + $0x418] sm:$0xff] %v994_v3  ;;  %v996_v4 = vld [vmem:[%s4419_s5 + $0x840] sm:$0xff]  ;;  %v998_v5 = vld [vmem:[%s4419_s5 + $0x850] sm:$0xff] }
  0x58   : > { %v1000_v6 = vld [vmem:[%s4419_s5 + $0x860] sm:$0xff]  ;;  %997 = vst [vmem:[%s4424_s6 + $0x420] sm:$0xff] %v996_v4  ;;  %999 = vst [vmem:[%s4424_s6 + $0x428] sm:$0xff] %v998_v5  ;;  %v1002_v7 = vld [vmem:[%s4419_s5 + $0x870] sm:$0xff] }
  0x59   : > { %1001 = vst [vmem:[%s4424_s6 + $0x430] sm:$0xff] %v1000_v6  ;;  %v1004_v8 = vld [vmem:[%s4419_s5 + $0x880] sm:$0xff]  ;;  %v1006_v9 = vld [vmem:[%s4419_s5 + $0x890] sm:$0xff]  ;;  %1003 = vst [vmem:[%s4424_s6 + $0x438] sm:$0xff] %v1002_v7 }
  0x5a   : > { %1005 = vst [vmem:[%s4424_s6 + $0x440] sm:$0xff] %v1004_v8  ;;  %1007 = vst [vmem:[%s4424_s6 + $0x448] sm:$0xff] %v1006_v9  ;;  %v1008_v10 = vld [vmem:[%s4419_s5 + $0x8a0] sm:$0xff]  ;;  %v1010_v11 = vld [vmem:[%s4419_s5 + $0x8b0] sm:$0xff] }
  0x5b   : > { %v1012_v12 = vld [vmem:[%s4419_s5 + $0x8c0] sm:$0xff]  ;;  %1009 = vst [vmem:[%s4424_s6 + $0x450] sm:$0xff] %v1008_v10  ;;  %1011 = vst [vmem:[%s4424_s6 + $0x458] sm:$0xff] %v1010_v11  ;;  %v1014_v13 = vld [vmem:[%s4419_s5 + $0x8d0] sm:$0xff] }
  0x5c   : > { %1013 = vst [vmem:[%s4424_s6 + $0x460] sm:$0xff] %v1012_v12  ;;  %v1016_v14 = vld [vmem:[%s4419_s5 + $0x8e0] sm:$0xff]  ;;  %v1018_v15 = vld [vmem:[%s4419_s5 + $0x8f0] sm:$0xff]  ;;  %1015 = vst [vmem:[%s4424_s6 + $0x468] sm:$0xff] %v1014_v13 }
  0x5d   : > { %1017 = vst [vmem:[%s4424_s6 + $0x470] sm:$0xff] %v1016_v14  ;;  %1019 = vst [vmem:[%s4424_s6 + $0x478] sm:$0xff] %v1018_v15  ;;  %v1020_v16 = vld [vmem:[%s4419_s5 + $0x900] sm:$0xff]  ;;  %v1022_v17 = vld [vmem:[%s4419_s5 + $0x910] sm:$0xff] }
  0x5e   : > { %v1024_v18 = vld [vmem:[%s4419_s5 + $0x920] sm:$0xff]  ;;  %1021 = vst [vmem:[%s4424_s6 + $0x480] sm:$0xff] %v1020_v16  ;;  %1023 = vst [vmem:[%s4424_s6 + $0x488] sm:$0xff] %v1022_v17  ;;  %v1026_v19 = vld [vmem:[%s4419_s5 + $0x930] sm:$0xff] }
  0x5f   : > { %1025 = vst [vmem:[%s4424_s6 + $0x490] sm:$0xff] %v1024_v18  ;;  %v1028_v20 = vld [vmem:[%s4419_s5 + $0x940] sm:$0xff]  ;;  %v1030_v21 = vld [vmem:[%s4419_s5 + $0x950] sm:$0xff]  ;;  %1027 = vst [vmem:[%s4424_s6 + $0x498] sm:$0xff] %v1026_v19 }
  0x60   : > { %1029 = vst [vmem:[%s4424_s6 + $0x4a0] sm:$0xff] %v1028_v20  ;;  %1031 = vst [vmem:[%s4424_s6 + $0x4a8] sm:$0xff] %v1030_v21  ;;  %v1032_v22 = vld [vmem:[%s4419_s5 + $0x960] sm:$0xff]  ;;  %v1034_v23 = vld [vmem:[%s4419_s5 + $0x970] sm:$0xff] }
  0x61   : > { %v1036_v24 = vld [vmem:[%s4419_s5 + $0x980] sm:$0xff]  ;;  %1033 = vst [vmem:[%s4424_s6 + $0x4b0] sm:$0xff] %v1032_v22  ;;  %1035 = vst [vmem:[%s4424_s6 + $0x4b8] sm:$0xff] %v1034_v23  ;;  %v1038_v25 = vld [vmem:[%s4419_s5 + $0x990] sm:$0xff] }
  0x62   : > { %1037 = vst [vmem:[%s4424_s6 + $0x4c0] sm:$0xff] %v1036_v24  ;;  %v1040_v26 = vld [vmem:[%s4419_s5 + $0x9a0] sm:$0xff]  ;;  %v1042_v27 = vld [vmem:[%s4419_s5 + $0x9b0] sm:$0xff]  ;;  %1039 = vst [vmem:[%s4424_s6 + $0x4c8] sm:$0xff] %v1038_v25 }
  0x63   : > { %1041 = vst [vmem:[%s4424_s6 + $0x4d0] sm:$0xff] %v1040_v26  ;;  %1043 = vst [vmem:[%s4424_s6 + $0x4d8] sm:$0xff] %v1042_v27  ;;  %v1044_v28 = vld [vmem:[%s4419_s5 + $0x9c0] sm:$0xff]  ;;  %v1046_v29 = vld [vmem:[%s4419_s5 + $0x9d0] sm:$0xff] }
  0x64   : > { %v1048_v30 = vld [vmem:[%s4419_s5 + $0x9e0] sm:$0xff]  ;;  %1045 = vst [vmem:[%s4424_s6 + $0x4e0] sm:$0xff] %v1044_v28  ;;  %1047 = vst [vmem:[%s4424_s6 + $0x4e8] sm:$0xff] %v1046_v29  ;;  %v1050_v31 = vld [vmem:[%s4419_s5 + $0x9f0] sm:$0xff] }
  0x65   : > { %1049 = vst [vmem:[%s4424_s6 + $0x4f0] sm:$0xff] %v1048_v30  ;;  %v1052_v32 = vld [vmem:[%s4419_s5 + $0xa00] sm:$0xff]  ;;  %v1054_v33 = vld [vmem:[%s4419_s5 + $0xa10] sm:$0xff]  ;;  %1051 = vst [vmem:[%s4424_s6 + $0x4f8] sm:$0xff] %v1050_v31 }
  0x66   : > { %1053 = vst [vmem:[%s4424_s6 + $0x500] sm:$0xff] %v1052_v32  ;;  %1055 = vst [vmem:[%s4424_s6 + $0x508] sm:$0xff] %v1054_v33  ;;  %v1056_v34 = vld [vmem:[%s4419_s5 + $0xa20] sm:$0xff]  ;;  %v1058_v35 = vld [vmem:[%s4419_s5 + $0xa30] sm:$0xff] }
  0x67   : > { %v1060_v36 = vld [vmem:[%s4419_s5 + $0xa40] sm:$0xff]  ;;  %1057 = vst [vmem:[%s4424_s6 + $0x510] sm:$0xff] %v1056_v34  ;;  %1059 = vst [vmem:[%s4424_s6 + $0x518] sm:$0xff] %v1058_v35  ;;  %v1062_v37 = vld [vmem:[%s4419_s5 + $0xa50] sm:$0xff] }
  0x68   : > { %1061 = vst [vmem:[%s4424_s6 + $0x520] sm:$0xff] %v1060_v36  ;;  %v1064_v38 = vld [vmem:[%s4419_s5 + $0xa60] sm:$0xff]  ;;  %v1066_v39 = vld [vmem:[%s4419_s5 + $0xa70] sm:$0xff]  ;;  %1063 = vst [vmem:[%s4424_s6 + $0x528] sm:$0xff] %v1062_v37 }
  0x69   : > { %1065 = vst [vmem:[%s4424_s6 + $0x530] sm:$0xff] %v1064_v38  ;;  %1067 = vst [vmem:[%s4424_s6 + $0x538] sm:$0xff] %v1066_v39  ;;  %v1068_v40 = vld [vmem:[%s4419_s5 + $0xa80] sm:$0xff]  ;;  %v1070_v41 = vld [vmem:[%s4419_s5 + $0xa90] sm:$0xff] }
  0x6a   : > { %v1072_v42 = vld [vmem:[%s4419_s5 + $0xaa0] sm:$0xff]  ;;  %1069 = vst [vmem:[%s4424_s6 + $0x540] sm:$0xff] %v1068_v40  ;;  %1071 = vst [vmem:[%s4424_s6 + $0x548] sm:$0xff] %v1070_v41  ;;  %v1074_v43 = vld [vmem:[%s4419_s5 + $0xab0] sm:$0xff] }
  0x6b   : > { %1073 = vst [vmem:[%s4424_s6 + $0x550] sm:$0xff] %v1072_v42  ;;  %v1076_v44 = vld [vmem:[%s4419_s5 + $0xac0] sm:$0xff]  ;;  %v1078_v45 = vld [vmem:[%s4419_s5 + $0xad0] sm:$0xff]  ;;  %1075 = vst [vmem:[%s4424_s6 + $0x558] sm:$0xff] %v1074_v43 }
  0x6c   : > { %1077 = vst [vmem:[%s4424_s6 + $0x560] sm:$0xff] %v1076_v44  ;;  %1079 = vst [vmem:[%s4424_s6 + $0x568] sm:$0xff] %v1078_v45  ;;  %v1080_v46 = vld [vmem:[%s4419_s5 + $0xae0] sm:$0xff]  ;;  %v1082_v47 = vld [vmem:[%s4419_s5 + $0xaf0] sm:$0xff] }
  0x6d   : > { %v1084_v48 = vld [vmem:[%s4419_s5 + $0xb00] sm:$0xff]  ;;  %1081 = vst [vmem:[%s4424_s6 + $0x570] sm:$0xff] %v1080_v46  ;;  %1083 = vst [vmem:[%s4424_s6 + $0x578] sm:$0xff] %v1082_v47  ;;  %v1086_v49 = vld [vmem:[%s4419_s5 + $0xb10] sm:$0xff] }
  0x6e   : > { %1085 = vst [vmem:[%s4424_s6 + $0x580] sm:$0xff] %v1084_v48  ;;  %v1088_v50 = vld [vmem:[%s4419_s5 + $0xb20] sm:$0xff]  ;;  %v1090_v51 = vld [vmem:[%s4419_s5 + $0xb30] sm:$0xff]  ;;  %1087 = vst [vmem:[%s4424_s6 + $0x588] sm:$0xff] %v1086_v49 }
  0x6f   : > { %1089 = vst [vmem:[%s4424_s6 + $0x590] sm:$0xff] %v1088_v50  ;;  %1091 = vst [vmem:[%s4424_s6 + $0x598] sm:$0xff] %v1090_v51  ;;  %v1092_v52 = vld [vmem:[%s4419_s5 + $0xb40] sm:$0xff]  ;;  %v1094_v53 = vld [vmem:[%s4419_s5 + $0xb50] sm:$0xff] }
  0x70   : > { %v1096_v54 = vld [vmem:[%s4419_s5 + $0xb60] sm:$0xff]  ;;  %1093 = vst [vmem:[%s4424_s6 + $0x5a0] sm:$0xff] %v1092_v52  ;;  %1095 = vst [vmem:[%s4424_s6 + $0x5a8] sm:$0xff] %v1094_v53  ;;  %v1098_v55 = vld [vmem:[%s4419_s5 + $0xb70] sm:$0xff] }
  0x71   : > { %1097 = vst [vmem:[%s4424_s6 + $0x5b0] sm:$0xff] %v1096_v54  ;;  %v1100_v56 = vld [vmem:[%s4419_s5 + $0xb80] sm:$0xff]  ;;  %v1102_v57 = vld [vmem:[%s4419_s5 + $0xb90] sm:$0xff]  ;;  %1099 = vst [vmem:[%s4424_s6 + $0x5b8] sm:$0xff] %v1098_v55 }
  0x72   : > { %1101 = vst [vmem:[%s4424_s6 + $0x5c0] sm:$0xff] %v1100_v56  ;;  %1103 = vst [vmem:[%s4424_s6 + $0x5c8] sm:$0xff] %v1102_v57  ;;  %v1104_v58 = vld [vmem:[%s4419_s5 + $0xba0] sm:$0xff]  ;;  %v1106_v59 = vld [vmem:[%s4419_s5 + $0xbb0] sm:$0xff] }
  0x73   : > { %v1108_v60 = vld [vmem:[%s4419_s5 + $0xbc0] sm:$0xff]  ;;  %1105 = vst [vmem:[%s4424_s6 + $0x5d0] sm:$0xff] %v1104_v58  ;;  %1107 = vst [vmem:[%s4424_s6 + $0x5d8] sm:$0xff] %v1106_v59  ;;  %v1110_v61 = vld [vmem:[%s4419_s5 + $0xbd0] sm:$0xff] }
  0x74   : > { %1109 = vst [vmem:[%s4424_s6 + $0x5e0] sm:$0xff] %v1108_v60  ;;  %v1112_v62 = vld [vmem:[%s4419_s5 + $0xbe0] sm:$0xff]  ;;  %v1114_v63 = vld [vmem:[%s4419_s5 + $0xbf0] sm:$0xff]  ;;  %1111 = vst [vmem:[%s4424_s6 + $0x5e8] sm:$0xff] %v1110_v61 }
  0x75   : > { %1113 = vst [vmem:[%s4424_s6 + $0x5f0] sm:$0xff] %v1112_v62  ;;  %1115 = vst [vmem:[%s4424_s6 + $0x5f8] sm:$0xff] %v1114_v63  ;;  %v1116_v0 = vld [vmem:[%s4419_s5 + $0xc00] sm:$0xff]  ;;  %v1118_v1 = vld [vmem:[%s4419_s5 + $0xc10] sm:$0xff] }
  0x76   : > { %v1120_v2 = vld [vmem:[%s4419_s5 + $0xc20] sm:$0xff]  ;;  %1117 = vst [vmem:[%s4424_s6 + $0x600] sm:$0xff] %v1116_v0  ;;  %1119 = vst [vmem:[%s4424_s6 + $0x608] sm:$0xff] %v1118_v1  ;;  %v1122_v3 = vld [vmem:[%s4419_s5 + $0xc30] sm:$0xff] }
  0x77   : > { %1121 = vst [vmem:[%s4424_s6 + $0x610] sm:$0xff] %v1120_v2  ;;  %v1124_v4 = vld [vmem:[%s4419_s5 + $0xc40] sm:$0xff]  ;;  %v1126_v5 = vld [vmem:[%s4419_s5 + $0xc50] sm:$0xff]  ;;  %1123 = vst [vmem:[%s4424_s6 + $0x618] sm:$0xff] %v1122_v3 }
  0x78   : > { %1125 = vst [vmem:[%s4424_s6 + $0x620] sm:$0xff] %v1124_v4  ;;  %1127 = vst [vmem:[%s4424_s6 + $0x628] sm:$0xff] %v1126_v5  ;;  %v1128_v6 = vld [vmem:[%s4419_s5 + $0xc60] sm:$0xff]  ;;  %v1130_v7 = vld [vmem:[%s4419_s5 + $0xc70] sm:$0xff] }
  0x79   : > { %v1132_v8 = vld [vmem:[%s4419_s5 + $0xc80] sm:$0xff]  ;;  %1129 = vst [vmem:[%s4424_s6 + $0x630] sm:$0xff] %v1128_v6  ;;  %1131 = vst [vmem:[%s4424_s6 + $0x638] sm:$0xff] %v1130_v7  ;;  %v1134_v9 = vld [vmem:[%s4419_s5 + $0xc90] sm:$0xff] }
  0x7a   : > { %1133 = vst [vmem:[%s4424_s6 + $0x640] sm:$0xff] %v1132_v8  ;;  %v1136_v10 = vld [vmem:[%s4419_s5 + $0xca0] sm:$0xff]  ;;  %v1138_v11 = vld [vmem:[%s4419_s5 + $0xcb0] sm:$0xff]  ;;  %1135 = vst [vmem:[%s4424_s6 + $0x648] sm:$0xff] %v1134_v9 }
  0x7b   : > { %1137 = vst [vmem:[%s4424_s6 + $0x650] sm:$0xff] %v1136_v10  ;;  %1139 = vst [vmem:[%s4424_s6 + $0x658] sm:$0xff] %v1138_v11  ;;  %v1140_v12 = vld [vmem:[%s4419_s5 + $0xcc0] sm:$0xff]  ;;  %v1142_v13 = vld [vmem:[%s4419_s5 + $0xcd0] sm:$0xff] }
  0x7c   : > { %v1144_v14 = vld [vmem:[%s4419_s5 + $0xce0] sm:$0xff]  ;;  %1141 = vst [vmem:[%s4424_s6 + $0x660] sm:$0xff] %v1140_v12  ;;  %1143 = vst [vmem:[%s4424_s6 + $0x668] sm:$0xff] %v1142_v13  ;;  %v1146_v15 = vld [vmem:[%s4419_s5 + $0xcf0] sm:$0xff] }
  0x7d   : > { %1145 = vst [vmem:[%s4424_s6 + $0x670] sm:$0xff] %v1144_v14  ;;  %v1148_v16 = vld [vmem:[%s4419_s5 + $0xd00] sm:$0xff]  ;;  %v1150_v17 = vld [vmem:[%s4419_s5 + $0xd10] sm:$0xff]  ;;  %1147 = vst [vmem:[%s4424_s6 + $0x678] sm:$0xff] %v1146_v15 }
  0x7e   : > { %1149 = vst [vmem:[%s4424_s6 + $0x680] sm:$0xff] %v1148_v16  ;;  %1151 = vst [vmem:[%s4424_s6 + $0x688] sm:$0xff] %v1150_v17  ;;  %v1152_v18 = vld [vmem:[%s4419_s5 + $0xd20] sm:$0xff]  ;;  %v1154_v19 = vld [vmem:[%s4419_s5 + $0xd30] sm:$0xff] }
  0x7f   : > { %v1156_v20 = vld [vmem:[%s4419_s5 + $0xd40] sm:$0xff]  ;;  %1153 = vst [vmem:[%s4424_s6 + $0x690] sm:$0xff] %v1152_v18  ;;  %1155 = vst [vmem:[%s4424_s6 + $0x698] sm:$0xff] %v1154_v19  ;;  %v1158_v21 = vld [vmem:[%s4419_s5 + $0xd50] sm:$0xff] }
  0x80   : > { %1157 = vst [vmem:[%s4424_s6 + $0x6a0] sm:$0xff] %v1156_v20  ;;  %v1160_v22 = vld [vmem:[%s4419_s5 + $0xd60] sm:$0xff]  ;;  %v1162_v23 = vld [vmem:[%s4419_s5 + $0xd70] sm:$0xff]  ;;  %1159 = vst [vmem:[%s4424_s6 + $0x6a8] sm:$0xff] %v1158_v21 }
  0x81   : > { %1161 = vst [vmem:[%s4424_s6 + $0x6b0] sm:$0xff] %v1160_v22  ;;  %1163 = vst [vmem:[%s4424_s6 + $0x6b8] sm:$0xff] %v1162_v23  ;;  %v1164_v24 = vld [vmem:[%s4419_s5 + $0xd80] sm:$0xff]  ;;  %v1166_v25 = vld [vmem:[%s4419_s5 + $0xd90] sm:$0xff] }
  0x82   : > { %v1168_v26 = vld [vmem:[%s4419_s5 + $0xda0] sm:$0xff]  ;;  %1165 = vst [vmem:[%s4424_s6 + $0x6c0] sm:$0xff] %v1164_v24  ;;  %1167 = vst [vmem:[%s4424_s6 + $0x6c8] sm:$0xff] %v1166_v25  ;;  %v1170_v27 = vld [vmem:[%s4419_s5 + $0xdb0] sm:$0xff] }
  0x83   : > { %1169 = vst [vmem:[%s4424_s6 + $0x6d0] sm:$0xff] %v1168_v26  ;;  %v1172_v28 = vld [vmem:[%s4419_s5 + $0xdc0] sm:$0xff]  ;;  %v1174_v29 = vld [vmem:[%s4419_s5 + $0xdd0] sm:$0xff]  ;;  %1171 = vst [vmem:[%s4424_s6 + $0x6d8] sm:$0xff] %v1170_v27 }
  0x84   : > { %1173 = vst [vmem:[%s4424_s6 + $0x6e0] sm:$0xff] %v1172_v28  ;;  %1175 = vst [vmem:[%s4424_s6 + $0x6e8] sm:$0xff] %v1174_v29  ;;  %v1176_v30 = vld [vmem:[%s4419_s5 + $0xde0] sm:$0xff]  ;;  %v1178_v31 = vld [vmem:[%s4419_s5 + $0xdf0] sm:$0xff] }
  0x85   : > { %v1180_v32 = vld [vmem:[%s4419_s5 + $0xe00] sm:$0xff]  ;;  %1177 = vst [vmem:[%s4424_s6 + $0x6f0] sm:$0xff] %v1176_v30  ;;  %1179 = vst [vmem:[%s4424_s6 + $0x6f8] sm:$0xff] %v1178_v31  ;;  %v1182_v33 = vld [vmem:[%s4419_s5 + $0xe10] sm:$0xff] }
  0x86   : > { %1181 = vst [vmem:[%s4424_s6 + $0x700] sm:$0xff] %v1180_v32  ;;  %v1184_v34 = vld [vmem:[%s4419_s5 + $0xe20] sm:$0xff]  ;;  %v1186_v35 = vld [vmem:[%s4419_s5 + $0xe30] sm:$0xff]  ;;  %1183 = vst [vmem:[%s4424_s6 + $0x708] sm:$0xff] %v1182_v33 }
  0x87   : > { %1185 = vst [vmem:[%s4424_s6 + $0x710] sm:$0xff] %v1184_v34  ;;  %1187 = vst [vmem:[%s4424_s6 + $0x718] sm:$0xff] %v1186_v35  ;;  %v1188_v36 = vld [vmem:[%s4419_s5 + $0xe40] sm:$0xff]  ;;  %v1190_v37 = vld [vmem:[%s4419_s5 + $0xe50] sm:$0xff] }
  0x88   : > { %v1192_v38 = vld [vmem:[%s4419_s5 + $0xe60] sm:$0xff]  ;;  %1189 = vst [vmem:[%s4424_s6 + $0x720] sm:$0xff] %v1188_v36  ;;  %1191 = vst [vmem:[%s4424_s6 + $0x728] sm:$0xff] %v1190_v37  ;;  %v1194_v39 = vld [vmem:[%s4419_s5 + $0xe70] sm:$0xff] }
  0x89   : > { %1193 = vst [vmem:[%s4424_s6 + $0x730] sm:$0xff] %v1192_v38  ;;  %v1196_v40 = vld [vmem:[%s4419_s5 + $0xe80] sm:$0xff]  ;;  %v1198_v41 = vld [vmem:[%s4419_s5 + $0xe90] sm:$0xff]  ;;  %1195 = vst [vmem:[%s4424_s6 + $0x738] sm:$0xff] %v1194_v39 }
  0x8a   : > { %1197 = vst [vmem:[%s4424_s6 + $0x740] sm:$0xff] %v1196_v40  ;;  %1199 = vst [vmem:[%s4424_s6 + $0x748] sm:$0xff] %v1198_v41  ;;  %v1200_v42 = vld [vmem:[%s4419_s5 + $0xea0] sm:$0xff]  ;;  %v1202_v43 = vld [vmem:[%s4419_s5 + $0xeb0] sm:$0xff] }
  0x8b   : > { %v1204_v44 = vld [vmem:[%s4419_s5 + $0xec0] sm:$0xff]  ;;  %1201 = vst [vmem:[%s4424_s6 + $0x750] sm:$0xff] %v1200_v42  ;;  %1203 = vst [vmem:[%s4424_s6 + $0x758] sm:$0xff] %v1202_v43  ;;  %v1206_v45 = vld [vmem:[%s4419_s5 + $0xed0] sm:$0xff] }
  0x8c   : > { %1205 = vst [vmem:[%s4424_s6 + $0x760] sm:$0xff] %v1204_v44  ;;  %v1208_v46 = vld [vmem:[%s4419_s5 + $0xee0] sm:$0xff]  ;;  %v1210_v47 = vld [vmem:[%s4419_s5 + $0xef0] sm:$0xff]  ;;  %1207 = vst [vmem:[%s4424_s6 + $0x768] sm:$0xff] %v1206_v45 }
  0x8d   : > { %1209 = vst [vmem:[%s4424_s6 + $0x770] sm:$0xff] %v1208_v46  ;;  %1211 = vst [vmem:[%s4424_s6 + $0x778] sm:$0xff] %v1210_v47  ;;  %v1212_v48 = vld [vmem:[%s4419_s5 + $0xf00] sm:$0xff]  ;;  %v1214_v49 = vld [vmem:[%s4419_s5 + $0xf10] sm:$0xff] }
  0x8e   : > { %v1216_v50 = vld [vmem:[%s4419_s5 + $0xf20] sm:$0xff]  ;;  %1213 = vst [vmem:[%s4424_s6 + $0x780] sm:$0xff] %v1212_v48  ;;  %1215 = vst [vmem:[%s4424_s6 + $0x788] sm:$0xff] %v1214_v49  ;;  %v1218_v51 = vld [vmem:[%s4419_s5 + $0xf30] sm:$0xff] }
  0x8f   : > { %1217 = vst [vmem:[%s4424_s6 + $0x790] sm:$0xff] %v1216_v50  ;;  %v1220_v52 = vld [vmem:[%s4419_s5 + $0xf40] sm:$0xff]  ;;  %v1222_v53 = vld [vmem:[%s4419_s5 + $0xf50] sm:$0xff]  ;;  %1219 = vst [vmem:[%s4424_s6 + $0x798] sm:$0xff] %v1218_v51 }
  0x90   : > { %1221 = vst [vmem:[%s4424_s6 + $0x7a0] sm:$0xff] %v1220_v52  ;;  %1223 = vst [vmem:[%s4424_s6 + $0x7a8] sm:$0xff] %v1222_v53  ;;  %v1224_v54 = vld [vmem:[%s4419_s5 + $0xf60] sm:$0xff]  ;;  %v1226_v55 = vld [vmem:[%s4419_s5 + $0xf70] sm:$0xff] }
  0x91   : > { %v1228_v56 = vld [vmem:[%s4419_s5 + $0xf80] sm:$0xff]  ;;  %1225 = vst [vmem:[%s4424_s6 + $0x7b0] sm:$0xff] %v1224_v54  ;;  %1227 = vst [vmem:[%s4424_s6 + $0x7b8] sm:$0xff] %v1226_v55  ;;  %v1230_v57 = vld [vmem:[%s4419_s5 + $0xf90] sm:$0xff] }
  0x92   : > { %1229 = vst [vmem:[%s4424_s6 + $0x7c0] sm:$0xff] %v1228_v56  ;;  %v1232_v58 = vld [vmem:[%s4419_s5 + $0xfa0] sm:$0xff]  ;;  %v1234_v59 = vld [vmem:[%s4419_s5 + $0xfb0] sm:$0xff]  ;;  %1231 = vst [vmem:[%s4424_s6 + $0x7c8] sm:$0xff] %v1230_v57 }
  0x93   : > { %1233 = vst [vmem:[%s4424_s6 + $0x7d0] sm:$0xff] %v1232_v58  ;;  %1235 = vst [vmem:[%s4424_s6 + $0x7d8] sm:$0xff] %v1234_v59  ;;  %v1236_v60 = vld [vmem:[%s4419_s5 + $0xfc0] sm:$0xff]  ;;  %v1238_v61 = vld [vmem:[%s4419_s5 + $0xfd0] sm:$0xff] }
  0x94   : > { %v1240_v62 = vld [vmem:[%s4419_s5 + $0xfe0] sm:$0xff]  ;;  %1237 = vst [vmem:[%s4424_s6 + $0x7e0] sm:$0xff] %v1236_v60  ;;  %1239 = vst [vmem:[%s4424_s6 + $0x7e8] sm:$0xff] %v1238_v61  ;;  %v1242_v63 = vld [vmem:[%s4419_s5 + $0xff0] sm:$0xff] }
  0x95   : > { %1241 = vst [vmem:[%s4424_s6 + $0x7f0] sm:$0xff] %v1240_v62  ;;  %1243 = vst [vmem:[%s4424_s6 + $0x7f8] sm:$0xff] %v1242_v63 }
  0x96 PF: > { %p3562_p8 = scmp.ge.s32.totalorder %s4344_s19, 1  ;;  %p1264_p9 = scmp.lt.s32.totalorder %s4344_s19, 3 }
  0x98   : > { %p1265_p10 = pnand %p3562_p8, %p1264_p9 }
  0x99   : > { %s1271_s7 = sand.u32 (!%p1265_p10), 1, %s4328_s15   ;;  %v4941_v0 = vld [vmem:[%s5370_s0] sm:$0xff] (!%p1265_p10) }
  0x9a   : > { %1268 = sbr.rel (%p1265_p10) target bundleno = 686 (0x2ae), region = 70  ;;  %v4946_v1 = vld [vmem:[%s5370_s0 + $0x40] sm:$0xff] (!%p1265_p10)  ;;  %s3563_s14 = sshll.u32 (!%p1265_p10), %s1271_s7, 11 }
  0x9b   : > { %v4951_v2 = vld [vmem:[%s5370_s0 + $0x20] sm:$0xff] (!%p1265_p10)  ;;  %v3567_v3 = vcombine.low (!%p1265_p10), %v4941_v0, %v4946_v1  ;;  %v3568_v4 = vcombine.high (!%p1265_p10), %v4941_v0, %v4946_v1  ;;  %s4968_s23 = scalar_lea.vmem (!%p1265_p10), [#allocation3], %s3563_s14  ;;  %s3564_s21 = sshll.u32 (!%p1265_p10), %s1271_s7, 4 }
  0x9c   : > { %v4962_v5 = vld [vmem:[%s5370_s0 + $0x60] sm:$0xff] (!%p1265_p10)  ;;  %v3924_v12 = vld [vmem:[%s4968_s23 + $0x14] ss:$8 sps:$4 sm:$0xff] (!%p1265_p10)   ;;  %v3928_v14 = vld [vmem:[%s4968_s23 + $0x10] ss:$8 sps:$4 sm:$0xff] (!%p1265_p10)   ;;  %s1307_s22 = scalar_lea.vmem (!%p1265_p10), [#allocation4], %s3564_s21 }
  0x9d   : > { %v3575_v6 = vcombine.low (!%p1265_p10), %v4951_v2, %v4962_v5  ;;  %v3576_v7 = vcombine.high (!%p1265_p10), %v4951_v2, %v4962_v5  ;;  %v3918_v8 = vld [vmem:[%s4968_s23 + $0x4] ss:$8 sps:$4 sm:$0xff] (!%p1265_p10)   ;;  %2991 = vmatprep.mubr.bf16.mxu1 (!%p1265_p10), %v3568_v4  ;;  %v3922_v10 = vld [vmem:[%s4968_s23] ss:$8 sps:$4 sm:$0xff] (!%p1265_p10)   ;;  %v3926_v13 = vld [vmem:[%s4968_s23 + $0x414] ss:$8 sps:$4 sm:$0xff] (!%p1265_p10)  }
  0x9e   : > { %v3920_v9 = vld [vmem:[%s4968_s23 + $0x404] ss:$8 sps:$4 sm:$0xff] (!%p1265_p10)   ;;  %2959 = vmatprep.subr.bf16.mxu1 (!%p1265_p10), %v3918_v8  ;;  %v3923_v11 = vld [vmem:[%s4968_s23 + $0x400] ss:$8 sps:$4 sm:$0xff] (!%p1265_p10)   ;;  %v3929_v15 = vld [vmem:[%s4968_s23 + $0x410] ss:$8 sps:$4 sm:$0xff] (!%p1265_p10)  }
  0x9f   : > { %3163 = vmatprep.mubr.bf16.mxu0 (!%p1265_p10), %v3576_v7  ;;  %3131 = vmatprep.subr.bf16.mxu0 (!%p1265_p10), %v3920_v9  ;;  %v3930_v16 = vld [vmem:[%s4968_s23 + $0x24] ss:$8 sps:$4 sm:$0xff] (!%p1265_p10)   ;;  %v3934_v18 = vld [vmem:[%s4968_s23 + $0x20] ss:$8 sps:$4 sm:$0xff] (!%p1265_p10)   ;;  %v3936_v20 = vld [vmem:[%s4968_s23 + $0x34] ss:$8 sps:$4 sm:$0xff] (!%p1265_p10)  }
  0xa0   : > { %2960 = vmatpush1.bf16.msra.mxu1 (!%p1265_p10), %v3922_v10  ;;  %3132 = vmatpush1.bf16.msra.mxu0 (!%p1265_p10), %v3923_v11  ;;  %v3932_v17 = vld [vmem:[%s4968_s23 + $0x424] ss:$8 sps:$4 sm:$0xff] (!%p1265_p10)   ;;  %v3935_v19 = vld [vmem:[%s4968_s23 + $0x420] ss:$8 sps:$4 sm:$0xff] (!%p1265_p10)   ;;  %v3938_v21 = vld [vmem:[%s4968_s23 + $0x434] ss:$8 sps:$4 sm:$0xff] (!%p1265_p10)  }
  0xa1   : > { %2961 = vmatprep.subr.bf16.mxu1 %v3924_v12  ;;  %3133 = vmatprep.subr.bf16.mxu0 %v3926_v13  ;;  %v3940_v22 = vld [vmem:[%s4968_s23 + $0x30] ss:$8 sps:$4 sm:$0xff]   ;;  %v3942_v24 = vld [vmem:[%s4968_s23 + $0x44] ss:$8 sps:$4 sm:$0xff]   ;;  %v3946_v26 = vld [vmem:[%s4968_s23 + $0x40] ss:$8 sps:$4 sm:$0xff]  }
  0xa2   : > { %v3941_v23 = vld [vmem:[%s4968_s23 + $0x430] ss:$8 sps:$4 sm:$0xff]   ;;  %v3944_v25 = vld [vmem:[%s4968_s23 + $0x444] ss:$8 sps:$4 sm:$0xff]   ;;  %v3947_v27 = vld [vmem:[%s4968_s23 + $0x440] ss:$8 sps:$4 sm:$0xff]  }
  0xa3   : > { %v3948_v28 = vld [vmem:[%s4968_s23 + $0x54] ss:$8 sps:$4 sm:$0xff]   ;;  %v3952_v30 = vld [vmem:[%s4968_s23 + $0x50] ss:$8 sps:$4 sm:$0xff]   ;;  %v3954_v32 = vld [vmem:[%s4968_s23 + $0x64] ss:$8 sps:$4 sm:$0xff]  }
  0xa4   : > { %2962 = vmatpush1.bf16.msra.mxu1 %v3928_v14  ;;  %3134 = vmatpush1.bf16.msra.mxu0 %v3929_v15  ;;  %v3950_v29 = vld [vmem:[%s4968_s23 + $0x454] ss:$8 sps:$4 sm:$0xff]   ;;  %v3953_v31 = vld [vmem:[%s4968_s23 + $0x450] ss:$8 sps:$4 sm:$0xff]   ;;  %v3956_v33 = vld [vmem:[%s4968_s23 + $0x464] ss:$8 sps:$4 sm:$0xff]  }
  0xa5   : > { %2963 = vmatprep.subr.bf16.mxu1 %v3930_v16  ;;  %3135 = vmatprep.subr.bf16.mxu0 %v3932_v17  ;;  %v3958_v34 = vld [vmem:[%s4968_s23 + $0x60] ss:$8 sps:$4 sm:$0xff]   ;;  %v3960_v36 = vld [vmem:[%s4968_s23 + $0x74] ss:$8 sps:$4 sm:$0xff]   ;;  %v3964_v38 = vld [vmem:[%s4968_s23 + $0x70] ss:$8 sps:$4 sm:$0xff]  }
  0xa6   : > { %v3959_v35 = vld [vmem:[%s4968_s23 + $0x460] ss:$8 sps:$4 sm:$0xff]   ;;  %v3962_v37 = vld [vmem:[%s4968_s23 + $0x474] ss:$8 sps:$4 sm:$0xff]   ;;  %v3965_v39 = vld [vmem:[%s4968_s23 + $0x470] ss:$8 sps:$4 sm:$0xff]  }
  0xa7   : > { %v3966_v40 = vld [vmem:[%s4968_s23 + $0x84] ss:$8 sps:$4 sm:$0xff]   ;;  %v3970_v42 = vld [vmem:[%s4968_s23 + $0x80] ss:$8 sps:$4 sm:$0xff]   ;;  %v3972_v44 = vld [vmem:[%s4968_s23 + $0x94] ss:$8 sps:$4 sm:$0xff]  }
  0xa8   : > { %2964 = vmatpush1.bf16.msra.mxu1 %v3934_v18  ;;  %3136 = vmatpush1.bf16.msra.mxu0 %v3935_v19  ;;  %v3968_v41 = vld [vmem:[%s4968_s23 + $0x484] ss:$8 sps:$4 sm:$0xff]   ;;  %v3971_v43 = vld [vmem:[%s4968_s23 + $0x480] ss:$8 sps:$4 sm:$0xff]   ;;  %v3974_v45 = vld [vmem:[%s4968_s23 + $0x494] ss:$8 sps:$4 sm:$0xff]  }
  0xa9   : > { %2965 = vmatprep.subr.bf16.mxu1 %v3936_v20  ;;  %3137 = vmatprep.subr.bf16.mxu0 %v3938_v21  ;;  %v3976_v46 = vld [vmem:[%s4968_s23 + $0x90] ss:$8 sps:$4 sm:$0xff]   ;;  %v3978_v48 = vld [vmem:[%s4968_s23 + $0xa4] ss:$8 sps:$4 sm:$0xff]   ;;  %v3982_v50 = vld [vmem:[%s4968_s23 + $0xa0] ss:$8 sps:$4 sm:$0xff]  }
  0xaa   : > { %v3977_v47 = vld [vmem:[%s4968_s23 + $0x490] ss:$8 sps:$4 sm:$0xff]   ;;  %v3980_v49 = vld [vmem:[%s4968_s23 + $0x4a4] ss:$8 sps:$4 sm:$0xff]   ;;  %v3983_v51 = vld [vmem:[%s4968_s23 + $0x4a0] ss:$8 sps:$4 sm:$0xff]  }
  0xab   : > { %v3984_v52 = vld [vmem:[%s4968_s23 + $0xb4] ss:$8 sps:$4 sm:$0xff]   ;;  %v3988_v54 = vld [vmem:[%s4968_s23 + $0xb0] ss:$8 sps:$4 sm:$0xff]   ;;  %v3990_v56 = vld [vmem:[%s4968_s23 + $0xc4] ss:$8 sps:$4 sm:$0xff]  }
  0xac   : > { %2966 = vmatpush1.bf16.msra.mxu1 %v3940_v22  ;;  %3138 = vmatpush1.bf16.msra.mxu0 %v3941_v23  ;;  %v3986_v53 = vld [vmem:[%s4968_s23 + $0x4b4] ss:$8 sps:$4 sm:$0xff]   ;;  %v3989_v55 = vld [vmem:[%s4968_s23 + $0x4b0] ss:$8 sps:$4 sm:$0xff]   ;;  %v3992_v57 = vld [vmem:[%s4968_s23 + $0x4c4] ss:$8 sps:$4 sm:$0xff]  }
  0xad   : > { %2967 = vmatprep.subr.bf16.mxu1 %v3942_v24  ;;  %3139 = vmatprep.subr.bf16.mxu0 %v3944_v25  ;;  %v3994_v58 = vld [vmem:[%s4968_s23 + $0xc0] ss:$8 sps:$4 sm:$0xff]   ;;  %v3996_v60 = vld [vmem:[%s4968_s23 + $0xd4] ss:$8 sps:$4 sm:$0xff]   ;;  %v4000_v62 = vld [vmem:[%s4968_s23 + $0xd0] ss:$8 sps:$4 sm:$0xff]  }
  0xae   : > { %v3995_v59 = vld [vmem:[%s4968_s23 + $0x4c0] ss:$8 sps:$4 sm:$0xff]   ;;  %v3998_v61 = vld [vmem:[%s4968_s23 + $0x4d4] ss:$8 sps:$4 sm:$0xff]   ;;  %v4001_v63 = vld [vmem:[%s4968_s23 + $0x4d0] ss:$8 sps:$4 sm:$0xff]  }
  0xaf   : > { %v4002_v4 = vld [vmem:[%s4968_s23 + $0xe4] ss:$8 sps:$4 sm:$0xff]   ;;  %v4006_v8 = vld [vmem:[%s4968_s23 + $0xe0] ss:$8 sps:$4 sm:$0xff]   ;;  %v4008_v10 = vld [vmem:[%s4968_s23 + $0xf4] ss:$8 sps:$4 sm:$0xff]  }
  0xb0   : > { %2968 = vmatpush1.bf16.msra.mxu1 %v3946_v26  ;;  %3140 = vmatpush1.bf16.msra.mxu0 %v3947_v27  ;;  %v4004_v7 = vld [vmem:[%s4968_s23 + $0x4e4] ss:$8 sps:$4 sm:$0xff]   ;;  %v4007_v9 = vld [vmem:[%s4968_s23 + $0x4e0] ss:$8 sps:$4 sm:$0xff]   ;;  %v4010_v11 = vld [vmem:[%s4968_s23 + $0x4f4] ss:$8 sps:$4 sm:$0xff]  }
  0xb1   : > { %2969 = vmatprep.subr.bf16.mxu1 %v3948_v28  ;;  %3141 = vmatprep.subr.bf16.mxu0 %v3950_v29  ;;  %v4012_v12 = vld [vmem:[%s4968_s23 + $0xf0] ss:$8 sps:$4 sm:$0xff]   ;;  %v4016_v14 = vld [vmem:[%s4968_s23 + $0x104] ss:$8 sps:$4 sm:$0xff]   ;;  %v4014_v16 = vld [vmem:[%s4968_s23 + $0x100] ss:$8 sps:$4 sm:$0xff]  }
  0xb2   : > { %v4013_v13 = vld [vmem:[%s4968_s23 + $0x4f0] ss:$8 sps:$4 sm:$0xff]   ;;  %v4019_v15 = vld [vmem:[%s4968_s23 + $0x504] ss:$8 sps:$4 sm:$0xff]   ;;  %v4017_v17 = vld [vmem:[%s4968_s23 + $0x500] ss:$8 sps:$4 sm:$0xff]  }
  0xb3   : > { %v4022_v18 = vld [vmem:[%s4968_s23 + $0x114] ss:$8 sps:$4 sm:$0xff]   ;;  %v4020_v20 = vld [vmem:[%s4968_s23 + $0x110] ss:$8 sps:$4 sm:$0xff]   ;;  %v4028_v22 = vld [vmem:[%s4968_s23 + $0x124] ss:$8 sps:$4 sm:$0xff]  }
  0xb4   : > { %2970 = vmatpush1.bf16.msra.mxu1 %v3952_v30  ;;  %3142 = vmatpush1.bf16.msra.mxu0 %v3953_v31  ;;  %v4025_v19 = vld [vmem:[%s4968_s23 + $0x514] ss:$8 sps:$4 sm:$0xff]   ;;  %v4023_v21 = vld [vmem:[%s4968_s23 + $0x510] ss:$8 sps:$4 sm:$0xff]   ;;  %v4031_v23 = vld [vmem:[%s4968_s23 + $0x524] ss:$8 sps:$4 sm:$0xff]  }
  0xb5   : > { %2971 = vmatprep.subr.bf16.mxu1 %v3954_v32  ;;  %3143 = vmatprep.subr.bf16.mxu0 %v3956_v33  ;;  %v4026_v24 = vld [vmem:[%s4968_s23 + $0x120] ss:$8 sps:$4 sm:$0xff]   ;;  %v4034_v1 = vld [vmem:[%s4968_s23 + $0x134] ss:$8 sps:$4 sm:$0xff]   ;;  %v4035_v5 = vld [vmem:[%s4968_s23 + $0x530] ss:$8 sps:$4 sm:$0xff]  }
  0xb6   : > { %v4029_v0 = vld [vmem:[%s4968_s23 + $0x520] ss:$8 sps:$4 sm:$0xff]   ;;  %v4037_v2 = vld [vmem:[%s4968_s23 + $0x534] ss:$8 sps:$4 sm:$0xff]   ;;  %v4043_v25 = vld [vmem:[%s4968_s23 + $0x544] ss:$8 sps:$4 sm:$0xff]  }
  0xb7   : > { %v4038_v26 = vld [vmem:[%s4968_s23 + $0x140] ss:$8 sps:$4 sm:$0xff]   ;;  %v4046_v28 = vld [vmem:[%s4968_s23 + $0x154] ss:$8 sps:$4 sm:$0xff]   ;;  %v4044_v30 = vld [vmem:[%s4968_s23 + $0x150] ss:$8 sps:$4 sm:$0xff]  }
  0xb8   : > { %2972 = vmatpush1.bf16.msra.mxu1 %v3958_v34  ;;  %3144 = vmatpush1.bf16.msra.mxu0 %v3959_v35  ;;  %v4041_v27 = vld [vmem:[%s4968_s23 + $0x540] ss:$8 sps:$4 sm:$0xff]   ;;  %v4049_v29 = vld [vmem:[%s4968_s23 + $0x554] ss:$8 sps:$4 sm:$0xff]   ;;  %v4047_v31 = vld [vmem:[%s4968_s23 + $0x550] ss:$8 sps:$4 sm:$0xff]  }
  0xb9   : > { %2973 = vmatprep.subr.bf16.mxu1 %v3960_v36  ;;  %3145 = vmatprep.subr.bf16.mxu0 %v3962_v37  ;;  %v4052_v32 = vld [vmem:[%s4968_s23 + $0x164] ss:$8 sps:$4 sm:$0xff]   ;;  %v4050_v36 = vld [vmem:[%s4968_s23 + $0x160] ss:$8 sps:$4 sm:$0xff]   ;;  %s3849_s26 = sshll.u32 (%p4406_p6), %s4336_s17, 3 }
  0xba   : > { %v4055_v33 = vld [vmem:[%s4968_s23 + $0x564] ss:$8 sps:$4 sm:$0xff]   ;;  %s3416_s27 = scalar_lea.vmem (%p4406_p6), %s5374_s4, %s3849_s26 }
  0xbb   : > { %v5069_v34 = vld [vmem:[%s5370_s0 + $0x8] sm:$0xff] }
  0xbc   : > { %2974 = vmatpush1.bf16.msra.mxu1 %v3964_v38  ;;  %3146 = vmatpush1.bf16.msra.mxu0 %v3965_v39  ;;  %v5074_v35 = vld [vmem:[%s5370_s0 + $0x48] sm:$0xff] }
  0xbd   : > { %2975 = vmatprep.subr.bf16.mxu1 %v3966_v40  ;;  %3147 = vmatprep.subr.bf16.mxu0 %v3968_v41  ;;  %v3570_v37 = vcombine.high %v5069_v34, %v5074_v35  ;;  %v4053_v38 = vld [vmem:[%s4968_s23 + $0x560] ss:$8 sps:$4 sm:$0xff]   ;;  %v4058_v41 = vld [vmem:[%s4968_s23 + $0x174] ss:$8 sps:$4 sm:$0xff]  }
  0xbe   : > { %v5083_v39 = vld [vmem:[%s5370_s0 + $0x28] sm:$0xff] }
  0xbf   : > { %v5088_v40 = vld [vmem:[%s5370_s0 + $0x68] sm:$0xff] }
  0xc0   : > { %2976 = vmatpush1.bf16.msra.mxu1 %v3970_v42  ;;  %3148 = vmatpush1.bf16.msra.mxu0 %v3971_v43  ;;  %v3578_v42 = vcombine.high %v5083_v39, %v5088_v40  ;;  %v4061_v43 = vld [vmem:[%s4968_s23 + $0x574] ss:$8 sps:$4 sm:$0xff]  }
  0xc1   : > { %2977 = vmatprep.subr.bf16.mxu1 %v3972_v44  ;;  %3149 = vmatprep.subr.bf16.mxu0 %v3974_v45  ;;  %v4056_v44 = vld [vmem:[%s4968_s23 + $0x170] ss:$8 sps:$4 sm:$0xff]  }
  0xc2   : > { %v4059_v45 = vld [vmem:[%s4968_s23 + $0x570] ss:$8 sps:$4 sm:$0xff]  }
  0xc4   : > { %2978 = vmatpush1.bf16.msra.mxu1 %v3976_v46  ;;  %3150 = vmatpush1.bf16.msra.mxu0 %v3977_v47  ;;  %v4064_v46 = vld [vmem:[%s4968_s23 + $0x184] ss:$8 sps:$4 sm:$0xff]  }
  0xc5   : > { %2979 = vmatprep.subr.bf16.mxu1 %v3978_v48  ;;  %3151 = vmatprep.subr.bf16.mxu0 %v3980_v49  ;;  %v4067_v47 = vld [vmem:[%s4968_s23 + $0x584] ss:$8 sps:$4 sm:$0xff]   ;;  %v4062_v48 = vld [vmem:[%s4968_s23 + $0x180] ss:$8 sps:$4 sm:$0xff]  }
  0xc6   : > { %v4065_v49 = vld [vmem:[%s4968_s23 + $0x580] ss:$8 sps:$4 sm:$0xff]  }
  0xc8   : > { %2980 = vmatpush1.bf16.msra.mxu1 %v3982_v50  ;;  %3152 = vmatpush1.bf16.msra.mxu0 %v3983_v51  ;;  %v4070_v50 = vld [vmem:[%s4968_s23 + $0x194] ss:$8 sps:$4 sm:$0xff]  }
  0xc9   : > { %2981 = vmatprep.subr.bf16.mxu1 %v3984_v52  ;;  %3153 = vmatprep.subr.bf16.mxu0 %v3986_v53  ;;  %v4073_v51 = vld [vmem:[%s4968_s23 + $0x594] ss:$8 sps:$4 sm:$0xff]   ;;  %v4068_v52 = vld [vmem:[%s4968_s23 + $0x190] ss:$8 sps:$4 sm:$0xff]  }
  0xca   : > { %v4071_v53 = vld [vmem:[%s4968_s23 + $0x590] ss:$8 sps:$4 sm:$0xff]  }
  0xcc   : > { %2982 = vmatpush1.bf16.msra.mxu1 %v3988_v54  ;;  %3154 = vmatpush1.bf16.msra.mxu0 %v3989_v55  ;;  %v4076_v54 = vld [vmem:[%s4968_s23 + $0x1a4] ss:$8 sps:$4 sm:$0xff]  }
  0xcd   : > { %2983 = vmatprep.subr.bf16.mxu1 %v3990_v56  ;;  %3155 = vmatprep.subr.bf16.mxu0 %v3992_v57  ;;  %v4079_v55 = vld [vmem:[%s4968_s23 + $0x5a4] ss:$8 sps:$4 sm:$0xff]   ;;  %v4074_v56 = vld [vmem:[%s4968_s23 + $0x1a0] ss:$8 sps:$4 sm:$0xff]  }
  0xce   : > { %v4077_v57 = vld [vmem:[%s4968_s23 + $0x5a0] ss:$8 sps:$4 sm:$0xff]  }
  0xd0   : > { %2984 = vmatpush1.bf16.msra.mxu1 %v3994_v58  ;;  %3156 = vmatpush1.bf16.msra.mxu0 %v3995_v59  ;;  %v4082_v58 = vld [vmem:[%s4968_s23 + $0x1b4] ss:$8 sps:$4 sm:$0xff]  }
  0xd1   : > { %2985 = vmatprep.subr.bf16.mxu1 %v3996_v60  ;;  %3157 = vmatprep.subr.bf16.mxu0 %v3998_v61  ;;  %v4085_v59 = vld [vmem:[%s4968_s23 + $0x5b4] ss:$8 sps:$4 sm:$0xff]   ;;  %v4080_v60 = vld [vmem:[%s4968_s23 + $0x1b0] ss:$8 sps:$4 sm:$0xff]  }
  0xd2   : > { %v4083_v61 = vld [vmem:[%s4968_s23 + $0x5b0] ss:$8 sps:$4 sm:$0xff]  }
  0xd4   : > { %2986 = vmatpush1.bf16.msra.mxu1 %v4000_v62  ;;  %3158 = vmatpush1.bf16.msra.mxu0 %v4001_v63  ;;  %v4088_v62 = vld [vmem:[%s4968_s23 + $0x1c4] ss:$8 sps:$4 sm:$0xff]  }
  0xd5   : > { %2987 = vmatprep.subr.bf16.mxu1 %v4002_v4  ;;  %3159 = vmatprep.subr.bf16.mxu0 %v4004_v7  ;;  %v4091_v63 = vld [vmem:[%s4968_s23 + $0x5c4] ss:$8 sps:$4 sm:$0xff]   ;;  %v4086_v4 = vld [vmem:[%s4968_s23 + $0x1c0] ss:$8 sps:$4 sm:$0xff]  }
  0xd6   : > { %v4089_v7 = vld [vmem:[%s4968_s23 + $0x5c0] ss:$8 sps:$4 sm:$0xff]  }
  0xd8   : > { %2988 = vmatpush1.bf16.msra.mxu1 %v4006_v8  ;;  %3160 = vmatpush1.bf16.msra.mxu0 %v4007_v9  ;;  %v4094_v8 = vld [vmem:[%s4968_s23 + $0x1d4] ss:$8 sps:$4 sm:$0xff]  }
  0xd9   : > { %2989 = vmatprep.subr.bf16.mxu1 %v4008_v10  ;;  %3161 = vmatprep.subr.bf16.mxu0 %v4010_v11  ;;  %v4097_v9 = vld [vmem:[%s4968_s23 + $0x5d4] ss:$8 sps:$4 sm:$0xff]   ;;  %v4092_v10 = vld [vmem:[%s4968_s23 + $0x1d0] ss:$8 sps:$4 sm:$0xff]  }
  0xda   : > { %v4095_v11 = vld [vmem:[%s4968_s23 + $0x5d0] ss:$8 sps:$4 sm:$0xff]  }
  0xdc   : > { %2990 = vmatpush1.bf16.msra.mxu1 %v4012_v12  ;;  %3162 = vmatpush1.bf16.msra.mxu0 %v4013_v13  ;;  %v4100_v12 = vld [vmem:[%s4968_s23 + $0x1e4] ss:$8 sps:$4 sm:$0xff]  }
  0xdd   : > { %3002 = vmatprep.subr.bf16.mxu1 %v4016_v14  ;;  %3174 = vmatprep.subr.bf16.mxu0 %v4019_v15  ;;  %v4103_v13 = vld [vmem:[%s4968_s23 + $0x5e4] ss:$8 sps:$4 sm:$0xff]   ;;  %v4098_v14 = vld [vmem:[%s4968_s23 + $0x1e0] ss:$8 sps:$4 sm:$0xff]  }
  0xde   : > { %v4101_v15 = vld [vmem:[%s4968_s23 + $0x5e0] ss:$8 sps:$4 sm:$0xff]  }
  0xdf   : > { %2992 = vmatmul.mubr.bf16.vlgmr.msra.gmra.mrb[0].mxu1 %v3567_v3  ;;  %3164 = vmatmul.mubr.bf16.vlgmr.msra.gmra.mrb[0].mxu0 %v3575_v6  ;;  %v4032_v3 = vld [vmem:[%s4968_s23 + $0x130] ss:$8 sps:$4 sm:$0xff]   ;;  %v4040_v6 = vld [vmem:[%s4968_s23 + $0x144] ss:$8 sps:$4 sm:$0xff]  }
  0xe0   : > { %3003 = vmatpush1.bf16.msra.mxu1 %v4014_v16  ;;  %3175 = vmatpush1.bf16.msra.mxu0 %v4017_v17  ;;  %v4106_v16 = vld [vmem:[%s4968_s23 + $0x1f4] ss:$8 sps:$4 sm:$0xff]  }
  0xe1   : > { %3004 = vmatprep.subr.bf16.mxu1 %v4022_v18  ;;  %3176 = vmatprep.subr.bf16.mxu0 %v4025_v19  ;;  %v4109_v17 = vld [vmem:[%s4968_s23 + $0x5f4] ss:$8 sps:$4 sm:$0xff]   ;;  %v4104_v18 = vld [vmem:[%s4968_s23 + $0x1f0] ss:$8 sps:$4 sm:$0xff]  }
  0xe2   : > { %3034 = vmatprep.mubr.bf16.mxu1 %v3570_v37  ;;  %3206 = vmatprep.mubr.bf16.mxu0 %v3578_v42  ;;  %v4107_v19 = vld [vmem:[%s4968_s23 + $0x5f0] ss:$8 sps:$4 sm:$0xff]   ;;  %v4142_v42 = vld [vmem:[%s4968_s23 + $0x254] ss:$8 sps:$4 sm:$0xff]  }
  0xe3   : > { %v4131_v37 = vld [vmem:[%s4968_s23 + $0x630] ss:$8 sps:$4 sm:$0xff]  }
  0xe4   : > { %3005 = vmatpush1.bf16.msra.mxu1 %v4020_v20  ;;  %3177 = vmatpush1.bf16.msra.mxu0 %v4023_v21  ;;  %v4112_v20 = vld [vmem:[%s4968_s23 + $0x204] ss:$8 sps:$4 sm:$0xff]  }
  0xe5   : > { %3006 = vmatprep.subr.bf16.mxu1 %v4028_v22  ;;  %3178 = vmatprep.subr.bf16.mxu0 %v4031_v23  ;;  %v4115_v21 = vld [vmem:[%s4968_s23 + $0x604] ss:$8 sps:$4 sm:$0xff]   ;;  %v3569_v22 = vcombine.low %v5069_v34, %v5074_v35  ;;  %v4110_v23 = vld [vmem:[%s4968_s23 + $0x200] ss:$8 sps:$4 sm:$0xff]   ;;  %v4130_v34 = vld [vmem:[%s4968_s23 + $0x234] ss:$8 sps:$4 sm:$0xff]  }
  0xe6   : > { %v4133_v35 = vld [vmem:[%s4968_s23 + $0x634] ss:$8 sps:$4 sm:$0xff]  }
  0xe8   : > { %3007 = vmatpush1.bf16.msra.mxu1 %v4026_v24  ;;  %3179 = vmatpush1.bf16.msra.mxu0 %v4029_v0  ;;  %v3577_v24 = vcombine.low %v5083_v39, %v5088_v40  ;;  %v4113_v0 = vld [vmem:[%s4968_s23 + $0x600] ss:$8 sps:$4 sm:$0xff]   ;;  %v4139_v39 = vld [vmem:[%s4968_s23 + $0x644] ss:$8 sps:$4 sm:$0xff]  }
  0xe9   : > { %3008 = vmatprep.subr.bf16.mxu1 %v4034_v1  ;;  %3180 = vmatprep.subr.bf16.mxu0 %v4037_v2  ;;  %v4118_v1 = vld [vmem:[%s4968_s23 + $0x214] ss:$8 sps:$4 sm:$0xff]   ;;  %v4134_v40 = vld [vmem:[%s4968_s23 + $0x240] ss:$8 sps:$4 sm:$0xff]  }
  0xea   : > { %v4121_v2 = vld [vmem:[%s4968_s23 + $0x614] ss:$8 sps:$4 sm:$0xff]  }
  0xec   : > { %3009 = vmatpush1.bf16.msra.mxu1 %v4032_v3  ;;  %3181 = vmatpush1.bf16.msra.mxu0 %v4035_v5  ;;  %v5141_v3 = vld [vmem:[%s5370_s0 + $0x10] sm:$0xff] }
  0xed   : > { %3010 = vmatprep.subr.bf16.mxu1 %v4040_v6  ;;  %3182 = vmatprep.subr.bf16.mxu0 %v4043_v25  ;;  %v5146_v5 = vld [vmem:[%s5370_s0 + $0x50] sm:$0xff] }
  0xee   : > { %v4116_v6 = vld [vmem:[%s4968_s23 + $0x210] ss:$8 sps:$4 sm:$0xff]   ;;  %v3572_v25 = vcombine.high %v5141_v3, %v5146_v5 }
  0xf0   : > { %3011 = vmatpush1.bf16.msra.mxu1 %v4038_v26  ;;  %3183 = vmatpush1.bf16.msra.mxu0 %v4041_v27  ;;  %v4119_v26 = vld [vmem:[%s4968_s23 + $0x610] ss:$8 sps:$4 sm:$0xff]  }
  0xf1   : > { %3012 = vmatprep.subr.bf16.mxu1 %v4046_v28  ;;  %3184 = vmatprep.subr.bf16.mxu0 %v4049_v29  ;;  %v5155_v27 = vld [vmem:[%s5370_s0 + $0x30] sm:$0xff]  ;;  %v4124_v29 = vld [vmem:[%s4968_s23 + $0x224] ss:$8 sps:$4 sm:$0xff]  }
  0xf2   : > { %v5160_v28 = vld [vmem:[%s5370_s0 + $0x70] sm:$0xff] }
  0xf4   : > { %3013 = vmatpush1.bf16.msra.mxu1 %v4044_v30  ;;  %3185 = vmatpush1.bf16.msra.mxu0 %v4047_v31  ;;  %v3580_v30 = vcombine.high %v5155_v27, %v5160_v28  ;;  %v4127_v31 = vld [vmem:[%s4968_s23 + $0x624] ss:$8 sps:$4 sm:$0xff]  }
  0xf5   : > { %3014 = vmatprep.subr.bf16.mxu1 %v4052_v32  ;;  %3186 = vmatprep.subr.bf16.mxu0 %v4055_v33  ;;  %v4122_v32 = vld [vmem:[%s4968_s23 + $0x220] ss:$8 sps:$4 sm:$0xff]  }
  0xf6   : > { %v4125_v33 = vld [vmem:[%s4968_s23 + $0x620] ss:$8 sps:$4 sm:$0xff]  }
  0xf8   : > { %3015 = vmatpush1.bf16.msra.mxu1 %v4050_v36  ;;  %3187 = vmatpush1.bf16.msra.mxu0 %v4053_v38  ;;  %v4128_v36 = vld [vmem:[%s4968_s23 + $0x230] ss:$8 sps:$4 sm:$0xff]   ;;  %v4136_v38 = vld [vmem:[%s4968_s23 + $0x244] ss:$8 sps:$4 sm:$0xff]  }
  0xf9   : > { %3016 = vmatprep.subr.bf16.mxu1 %v4058_v41  ;;  %3188 = vmatprep.subr.bf16.mxu0 %v4061_v43  ;;  %v4137_v41 = vld [vmem:[%s4968_s23 + $0x640] ss:$8 sps:$4 sm:$0xff]   ;;  %v4145_v43 = vld [vmem:[%s4968_s23 + $0x654] ss:$8 sps:$4 sm:$0xff]  }
  0xfc   : > { %3017 = vmatpush1.bf16.msra.mxu1 %v4056_v44  ;;  %3189 = vmatpush1.bf16.msra.mxu0 %v4059_v45  ;;  %v4140_v44 = vld [vmem:[%s4968_s23 + $0x250] ss:$8 sps:$4 sm:$0xff]  }
  0xfd   : > { %3018 = vmatprep.subr.bf16.mxu1 %v4064_v46  ;;  %3190 = vmatprep.subr.bf16.mxu0 %v4067_v47  ;;  %v4143_v45 = vld [vmem:[%s4968_s23 + $0x650] ss:$8 sps:$4 sm:$0xff]   ;;  %v4148_v46 = vld [vmem:[%s4968_s23 + $0x264] ss:$8 sps:$4 sm:$0xff]  }
  0xfe   : > { %v4151_v47 = vld [vmem:[%s4968_s23 + $0x664] ss:$8 sps:$4 sm:$0xff]  }
 0x100   : > { %3019 = vmatpush1.bf16.msra.mxu1 %v4062_v48  ;;  %3191 = vmatpush1.bf16.msra.mxu0 %v4065_v49  ;;  %v4146_v48 = vld [vmem:[%s4968_s23 + $0x260] ss:$8 sps:$4 sm:$0xff]  }
 0x101   : > { %3020 = vmatprep.subr.bf16.mxu1 %v4070_v50  ;;  %3192 = vmatprep.subr.bf16.mxu0 %v4073_v51  ;;  %v4149_v49 = vld [vmem:[%s4968_s23 + $0x660] ss:$8 sps:$4 sm:$0xff]   ;;  %v4154_v50 = vld [vmem:[%s4968_s23 + $0x274] ss:$8 sps:$4 sm:$0xff]  }
 0x102   : > { %v4157_v51 = vld [vmem:[%s4968_s23 + $0x674] ss:$8 sps:$4 sm:$0xff]  }
 0x104   : > { %3021 = vmatpush1.bf16.msra.mxu1 %v4068_v52  ;;  %3193 = vmatpush1.bf16.msra.mxu0 %v4071_v53  ;;  %v4152_v52 = vld [vmem:[%s4968_s23 + $0x270] ss:$8 sps:$4 sm:$0xff]  }
 0x105   : > { %3022 = vmatprep.subr.bf16.mxu1 %v4076_v54  ;;  %3194 = vmatprep.subr.bf16.mxu0 %v4079_v55  ;;  %v4155_v53 = vld [vmem:[%s4968_s23 + $0x670] ss:$8 sps:$4 sm:$0xff]   ;;  %v4160_v54 = vld [vmem:[%s4968_s23 + $0x284] ss:$8 sps:$4 sm:$0xff]  }
 0x106   : > { %v4163_v55 = vld [vmem:[%s4968_s23 + $0x684] ss:$8 sps:$4 sm:$0xff]  }
 0x108   : > { %3023 = vmatpush1.bf16.msra.mxu1 %v4074_v56  ;;  %3195 = vmatpush1.bf16.msra.mxu0 %v4077_v57  ;;  %v4158_v56 = vld [vmem:[%s4968_s23 + $0x280] ss:$8 sps:$4 sm:$0xff]  }
 0x109   : > { %3024 = vmatprep.subr.bf16.mxu1 %v4082_v58  ;;  %3196 = vmatprep.subr.bf16.mxu0 %v4085_v59  ;;  %v4161_v57 = vld [vmem:[%s4968_s23 + $0x680] ss:$8 sps:$4 sm:$0xff]   ;;  %v4166_v58 = vld [vmem:[%s4968_s23 + $0x294] ss:$8 sps:$4 sm:$0xff]  }
 0x10a   : > { %v4169_v59 = vld [vmem:[%s4968_s23 + $0x694] ss:$8 sps:$4 sm:$0xff]  }
 0x10c   : > { %3025 = vmatpush1.bf16.msra.mxu1 %v4080_v60  ;;  %3197 = vmatpush1.bf16.msra.mxu0 %v4083_v61  ;;  %v4164_v60 = vld [vmem:[%s4968_s23 + $0x290] ss:$8 sps:$4 sm:$0xff]  }
 0x10d   : > { %3026 = vmatprep.subr.bf16.mxu1 %v4088_v62  ;;  %3198 = vmatprep.subr.bf16.mxu0 %v4091_v63  ;;  %v4167_v61 = vld [vmem:[%s4968_s23 + $0x690] ss:$8 sps:$4 sm:$0xff]   ;;  %v4172_v62 = vld [vmem:[%s4968_s23 + $0x2a4] ss:$8 sps:$4 sm:$0xff]  }
 0x10e   : > { %v4175_v63 = vld [vmem:[%s4968_s23 + $0x6a4] ss:$8 sps:$4 sm:$0xff]  }
 0x110   : > { %3027 = vmatpush1.bf16.msra.mxu1 %v4086_v4  ;;  %3199 = vmatpush1.bf16.msra.mxu0 %v4089_v7  ;;  %v4170_v4 = vld [vmem:[%s4968_s23 + $0x2a0] ss:$8 sps:$4 sm:$0xff]  }
 0x111   : > { %3028 = vmatprep.subr.bf16.mxu1 %v4094_v8  ;;  %3200 = vmatprep.subr.bf16.mxu0 %v4097_v9  ;;  %v4173_v7 = vld [vmem:[%s4968_s23 + $0x6a0] ss:$8 sps:$4 sm:$0xff]   ;;  %v4178_v8 = vld [vmem:[%s4968_s23 + $0x2b4] ss:$8 sps:$4 sm:$0xff]  }
 0x112   : > { %v4181_v9 = vld [vmem:[%s4968_s23 + $0x6b4] ss:$8 sps:$4 sm:$0xff]  }
 0x114   : > { %3029 = vmatpush1.bf16.msra.mxu1 %v4092_v10  ;;  %3201 = vmatpush1.bf16.msra.mxu0 %v4095_v11  ;;  %v4176_v10 = vld [vmem:[%s4968_s23 + $0x2b0] ss:$8 sps:$4 sm:$0xff]  }
 0x115   : > { %3030 = vmatprep.subr.bf16.mxu1 %v4100_v12  ;;  %3202 = vmatprep.subr.bf16.mxu0 %v4103_v13  ;;  %v4179_v11 = vld [vmem:[%s4968_s23 + $0x6b0] ss:$8 sps:$4 sm:$0xff]   ;;  %v4184_v12 = vld [vmem:[%s4968_s23 + $0x2c4] ss:$8 sps:$4 sm:$0xff]  }
 0x116   : > { %v4187_v13 = vld [vmem:[%s4968_s23 + $0x6c4] ss:$8 sps:$4 sm:$0xff]  }
 0x118   : > { %3031 = vmatpush1.bf16.msra.mxu1 %v4098_v14  ;;  %3203 = vmatpush1.bf16.msra.mxu0 %v4101_v15  ;;  %v4182_v14 = vld [vmem:[%s4968_s23 + $0x2c0] ss:$8 sps:$4 sm:$0xff]  }
 0x119   : > { %3032 = vmatprep.subr.bf16.mxu1 %v4106_v16  ;;  %3204 = vmatprep.subr.bf16.mxu0 %v4109_v17  ;;  %v4185_v15 = vld [vmem:[%s4968_s23 + $0x6c0] ss:$8 sps:$4 sm:$0xff]   ;;  %v4190_v16 = vld [vmem:[%s4968_s23 + $0x2d4] ss:$8 sps:$4 sm:$0xff]  }
 0x11a   : > { %v4193_v17 = vld [vmem:[%s4968_s23 + $0x6d4] ss:$8 sps:$4 sm:$0xff]  }
 0x11c   : > { %3033 = vmatpush1.bf16.msra.mxu1 %v4104_v18  ;;  %3205 = vmatpush1.bf16.msra.mxu0 %v4107_v19  ;;  %v4188_v18 = vld [vmem:[%s4968_s23 + $0x2d0] ss:$8 sps:$4 sm:$0xff]  }
 0x11d   : > { %3045 = vmatprep.subr.bf16.mxu1 %v4112_v20  ;;  %3217 = vmatprep.subr.bf16.mxu0 %v4115_v21  ;;  %v4191_v19 = vld [vmem:[%s4968_s23 + $0x6d0] ss:$8 sps:$4 sm:$0xff]   ;;  %v4196_v20 = vld [vmem:[%s4968_s23 + $0x2e4] ss:$8 sps:$4 sm:$0xff]  }
 0x11e   : > { %v4199_v21 = vld [vmem:[%s4968_s23 + $0x6e4] ss:$8 sps:$4 sm:$0xff]  }
 0x11f   : > { %3035 = vmatmul.mubr.bf16.vlgmr.msra.gmra.mrb[0].mxu1 %v3569_v22  ;;  %3207 = vmatmul.mubr.bf16.vlgmr.msra.gmra.mrb[0].mxu0 %v3577_v24  ;;  %v4194_v22 = vld [vmem:[%s4968_s23 + $0x2e0] ss:$8 sps:$4 sm:$0xff]   ;;  %v4202_v24 = vld [vmem:[%s4968_s23 + $0x2f4] ss:$8 sps:$4 sm:$0xff]  }
 0x120   : > { %3046 = vmatpush1.bf16.msra.mxu1 %v4110_v23  ;;  %3218 = vmatpush1.bf16.msra.mxu0 %v4113_v0  ;;  %v4197_v23 = vld [vmem:[%s4968_s23 + $0x6e0] ss:$8 sps:$4 sm:$0xff]   ;;  %v4205_v0 = vld [vmem:[%s4968_s23 + $0x6f4] ss:$8 sps:$4 sm:$0xff]  }
 0x121   : > { %3047 = vmatprep.subr.bf16.mxu1 %v4118_v1  ;;  %3219 = vmatprep.subr.bf16.mxu0 %v4121_v2  ;;  %v4200_v1 = vld [vmem:[%s4968_s23 + $0x2f0] ss:$8 sps:$4 sm:$0xff]  }
 0x122   : > { %3077 = vmatprep.mubr.bf16.mxu1 %v3572_v25  ;;  %3249 = vmatprep.mubr.bf16.mxu0 %v3580_v30  ;;  %v4203_v2 = vld [vmem:[%s4968_s23 + $0x6f0] ss:$8 sps:$4 sm:$0xff]   ;;  %v4211_v25 = vld [vmem:[%s4968_s23 + $0x704] ss:$8 sps:$4 sm:$0xff]   ;;  %v3579_v30 = vcombine.low %v5155_v27, %v5160_v28  ;;  %v4214_v27 = vld [vmem:[%s4968_s23 + $0x314] ss:$8 sps:$4 sm:$0xff]  }
 0x123   : > { %v4217_v28 = vld [vmem:[%s4968_s23 + $0x714] ss:$8 sps:$4 sm:$0xff]  }
 0x124   : > { %3048 = vmatpush1.bf16.msra.mxu1 %v4116_v6  ;;  %3220 = vmatpush1.bf16.msra.mxu0 %v4119_v26  ;;  %v4208_v6 = vld [vmem:[%s4968_s23 + $0x304] ss:$8 sps:$4 sm:$0xff]   ;;  %v5225_v26 = vld [vmem:[%s5370_s0 + $0x18] sm:$0xff] }
 0x125   : > { %3049 = vmatprep.subr.bf16.mxu1 %v4124_v29  ;;  %3221 = vmatprep.subr.bf16.mxu0 %v4127_v31  ;;  %v3571_v29 = vcombine.low %v5141_v3, %v5146_v5  ;;  %v5234_v31 = vld [vmem:[%s5370_s0 + $0x58] sm:$0xff]  ;;  %v4206_v3 = vld [vmem:[%s4968_s23 + $0x300] ss:$8 sps:$4 sm:$0xff]  }
 0x126   : > { %v4209_v5 = vld [vmem:[%s4968_s23 + $0x700] ss:$8 sps:$4 sm:$0xff]  }
 0x128   : > { %3050 = vmatpush1.bf16.msra.mxu1 %v4122_v32  ;;  %3222 = vmatpush1.bf16.msra.mxu0 %v4125_v33  ;;  %v5239_v32 = vld [vmem:[%s5370_s0 + $0x38] sm:$0xff] }
 0x129   : > { %3051 = vmatprep.subr.bf16.mxu1 %v4130_v34  ;;  %3223 = vmatprep.subr.bf16.mxu0 %v4133_v35  ;;  %v5244_v33 = vld [vmem:[%s5370_s0 + $0x78] sm:$0xff]  ;;  %v3574_v34 = vcombine.high %v5225_v26, %v5234_v31 }
 0x12a   : > { %v3582_v35 = vcombine.high %v5239_v32, %v5244_v33 }
 0x12c   : > { %3052 = vmatpush1.bf16.msra.mxu1 %v4128_v36  ;;  %3224 = vmatpush1.bf16.msra.mxu0 %v4131_v37  ;;  %v4212_v36 = vld [vmem:[%s4968_s23 + $0x310] ss:$8 sps:$4 sm:$0xff]  }
 0x12d   : > { %3053 = vmatprep.subr.bf16.mxu1 %v4136_v38  ;;  %3225 = vmatprep.subr.bf16.mxu0 %v4139_v39  ;;  %v4215_v37 = vld [vmem:[%s4968_s23 + $0x710] ss:$8 sps:$4 sm:$0xff]   ;;  %v4220_v38 = vld [vmem:[%s4968_s23 + $0x324] ss:$8 sps:$4 sm:$0xff]  }
 0x12e   : > { %v4223_v39 = vld [vmem:[%s4968_s23 + $0x724] ss:$8 sps:$4 sm:$0xff]  }
 0x130   : > { %3054 = vmatpush1.bf16.msra.mxu1 %v4134_v40  ;;  %3226 = vmatpush1.bf16.msra.mxu0 %v4137_v41  ;;  %v4218_v40 = vld [vmem:[%s4968_s23 + $0x320] ss:$8 sps:$4 sm:$0xff]  }
 0x131   : > { %3055 = vmatprep.subr.bf16.mxu1 %v4142_v42  ;;  %3227 = vmatprep.subr.bf16.mxu0 %v4145_v43  ;;  %v4221_v41 = vld [vmem:[%s4968_s23 + $0x720] ss:$8 sps:$4 sm:$0xff]   ;;  %v4226_v42 = vld [vmem:[%s4968_s23 + $0x334] ss:$8 sps:$4 sm:$0xff]  }
 0x132   : > { %v4229_v43 = vld [vmem:[%s4968_s23 + $0x734] ss:$8 sps:$4 sm:$0xff]  }
 0x134   : > { %3056 = vmatpush1.bf16.msra.mxu1 %v4140_v44  ;;  %3228 = vmatpush1.bf16.msra.mxu0 %v4143_v45  ;;  %v4224_v44 = vld [vmem:[%s4968_s23 + $0x330] ss:$8 sps:$4 sm:$0xff]  }
 0x135   : > { %3057 = vmatprep.subr.bf16.mxu1 %v4148_v46  ;;  %3229 = vmatprep.subr.bf16.mxu0 %v4151_v47  ;;  %v4227_v45 = vld [vmem:[%s4968_s23 + $0x730] ss:$8 sps:$4 sm:$0xff]   ;;  %v4232_v46 = vld [vmem:[%s4968_s23 + $0x344] ss:$8 sps:$4 sm:$0xff]  }
 0x136   : > { %v4235_v47 = vld [vmem:[%s4968_s23 + $0x744] ss:$8 sps:$4 sm:$0xff]  }
 0x138   : > { %3058 = vmatpush1.bf16.msra.mxu1 %v4146_v48  ;;  %3230 = vmatpush1.bf16.msra.mxu0 %v4149_v49  ;;  %v4230_v48 = vld [vmem:[%s4968_s23 + $0x340] ss:$8 sps:$4 sm:$0xff]  }
 0x139   : > { %3059 = vmatprep.subr.bf16.mxu1 %v4154_v50  ;;  %3231 = vmatprep.subr.bf16.mxu0 %v4157_v51  ;;  %v4233_v49 = vld [vmem:[%s4968_s23 + $0x740] ss:$8 sps:$4 sm:$0xff]   ;;  %v4238_v50 = vld [vmem:[%s4968_s23 + $0x354] ss:$8 sps:$4 sm:$0xff]  }
 0x13a   : > { %v4241_v51 = vld [vmem:[%s4968_s23 + $0x754] ss:$8 sps:$4 sm:$0xff]  }
 0x13c   : > { %3060 = vmatpush1.bf16.msra.mxu1 %v4152_v52  ;;  %3232 = vmatpush1.bf16.msra.mxu0 %v4155_v53  ;;  %v4236_v52 = vld [vmem:[%s4968_s23 + $0x350] ss:$8 sps:$4 sm:$0xff]  }
 0x13d   : > { %3061 = vmatprep.subr.bf16.mxu1 %v4160_v54  ;;  %3233 = vmatprep.subr.bf16.mxu0 %v4163_v55  ;;  %v4239_v53 = vld [vmem:[%s4968_s23 + $0x750] ss:$8 sps:$4 sm:$0xff]   ;;  %v4244_v54 = vld [vmem:[%s4968_s23 + $0x364] ss:$8 sps:$4 sm:$0xff]  }
 0x13e   : > { %v4247_v55 = vld [vmem:[%s4968_s23 + $0x764] ss:$8 sps:$4 sm:$0xff]  }
 0x140   : > { %3062 = vmatpush1.bf16.msra.mxu1 %v4158_v56  ;;  %3234 = vmatpush1.bf16.msra.mxu0 %v4161_v57  ;;  %v4242_v56 = vld [vmem:[%s4968_s23 + $0x360] ss:$8 sps:$4 sm:$0xff]  }
 0x141   : > { %3063 = vmatprep.subr.bf16.mxu1 %v4166_v58  ;;  %3235 = vmatprep.subr.bf16.mxu0 %v4169_v59  ;;  %v4245_v57 = vld [vmem:[%s4968_s23 + $0x760] ss:$8 sps:$4 sm:$0xff]   ;;  %v4250_v58 = vld [vmem:[%s4968_s23 + $0x374] ss:$8 sps:$4 sm:$0xff]  }
 0x142   : > { %v4253_v59 = vld [vmem:[%s4968_s23 + $0x774] ss:$8 sps:$4 sm:$0xff]  }
 0x144   : > { %3064 = vmatpush1.bf16.msra.mxu1 %v4164_v60  ;;  %3236 = vmatpush1.bf16.msra.mxu0 %v4167_v61  ;;  %v4248_v60 = vld [vmem:[%s4968_s23 + $0x370] ss:$8 sps:$4 sm:$0xff]  }
 0x145   : > { %3065 = vmatprep.subr.bf16.mxu1 %v4172_v62  ;;  %3237 = vmatprep.subr.bf16.mxu0 %v4175_v63  ;;  %v4251_v61 = vld [vmem:[%s4968_s23 + $0x770] ss:$8 sps:$4 sm:$0xff]   ;;  %v4256_v62 = vld [vmem:[%s4968_s23 + $0x384] ss:$8 sps:$4 sm:$0xff]  }
 0x146   : > { %v4259_v63 = vld [vmem:[%s4968_s23 + $0x784] ss:$8 sps:$4 sm:$0xff]  }
 0x148   : > { %3066 = vmatpush1.bf16.msra.mxu1 %v4170_v4  ;;  %3238 = vmatpush1.bf16.msra.mxu0 %v4173_v7  ;;  %v4254_v4 = vld [vmem:[%s4968_s23 + $0x380] ss:$8 sps:$4 sm:$0xff]  }
 0x149   : > { %3067 = vmatprep.subr.bf16.mxu1 %v4178_v8  ;;  %3239 = vmatprep.subr.bf16.mxu0 %v4181_v9  ;;  %v4257_v7 = vld [vmem:[%s4968_s23 + $0x780] ss:$8 sps:$4 sm:$0xff]   ;;  %v4262_v8 = vld [vmem:[%s4968_s23 + $0x394] ss:$8 sps:$4 sm:$0xff]  }
 0x14a   : > { %v4265_v9 = vld [vmem:[%s4968_s23 + $0x794] ss:$8 sps:$4 sm:$0xff]  }
 0x14c   : > { %3068 = vmatpush1.bf16.msra.mxu1 %v4176_v10  ;;  %3240 = vmatpush1.bf16.msra.mxu0 %v4179_v11  ;;  %v4260_v10 = vld [vmem:[%s4968_s23 + $0x390] ss:$8 sps:$4 sm:$0xff]  }
 0x14d   : > { %3069 = vmatprep.subr.bf16.mxu1 %v4184_v12  ;;  %3241 = vmatprep.subr.bf16.mxu0 %v4187_v13  ;;  %v4263_v11 = vld [vmem:[%s4968_s23 + $0x790] ss:$8 sps:$4 sm:$0xff]   ;;  %v4268_v12 = vld [vmem:[%s4968_s23 + $0x3a4] ss:$8 sps:$4 sm:$0xff]  }
 0x14e   : > { %v4271_v13 = vld [vmem:[%s4968_s23 + $0x7a4] ss:$8 sps:$4 sm:$0xff]  }
 0x150   : > { %3070 = vmatpush1.bf16.msra.mxu1 %v4182_v14  ;;  %3242 = vmatpush1.bf16.msra.mxu0 %v4185_v15  ;;  %v4266_v14 = vld [vmem:[%s4968_s23 + $0x3a0] ss:$8 sps:$4 sm:$0xff]  }
 0x151   : > { %3071 = vmatprep.subr.bf16.mxu1 %v4190_v16  ;;  %3243 = vmatprep.subr.bf16.mxu0 %v4193_v17  ;;  %v4269_v15 = vld [vmem:[%s4968_s23 + $0x7a0] ss:$8 sps:$4 sm:$0xff]   ;;  %v4274_v16 = vld [vmem:[%s4968_s23 + $0x3b4] ss:$8 sps:$4 sm:$0xff]  }
 0x152   : > { %v4277_v17 = vld [vmem:[%s4968_s23 + $0x7b4] ss:$8 sps:$4 sm:$0xff]  }
 0x154   : > { %3072 = vmatpush1.bf16.msra.mxu1 %v4188_v18  ;;  %3244 = vmatpush1.bf16.msra.mxu0 %v4191_v19  ;;  %v4272_v18 = vld [vmem:[%s4968_s23 + $0x3b0] ss:$8 sps:$4 sm:$0xff]  }
 0x155   : > { %3073 = vmatprep.subr.bf16.mxu1 %v4196_v20  ;;  %3245 = vmatprep.subr.bf16.mxu0 %v4199_v21  ;;  %v4275_v19 = vld [vmem:[%s4968_s23 + $0x7b0] ss:$8 sps:$4 sm:$0xff]   ;;  %v4280_v20 = vld [vmem:[%s4968_s23 + $0x3c4] ss:$8 sps:$4 sm:$0xff]  }
 0x156   : > { %v4283_v21 = vld [vmem:[%s4968_s23 + $0x7c4] ss:$8 sps:$4 sm:$0xff]  }
 0x158   : > { %3074 = vmatpush1.bf16.msra.mxu1 %v4194_v22  ;;  %3246 = vmatpush1.bf16.msra.mxu0 %v4197_v23  ;;  %v4278_v22 = vld [vmem:[%s4968_s23 + $0x3c0] ss:$8 sps:$4 sm:$0xff]  }
 0x159   : > { %3075 = vmatprep.subr.bf16.mxu1 %v4202_v24  ;;  %3247 = vmatprep.subr.bf16.mxu0 %v4205_v0  ;;  %v4281_v23 = vld [vmem:[%s4968_s23 + $0x7c0] ss:$8 sps:$4 sm:$0xff]   ;;  %v4286_v24 = vld [vmem:[%s4968_s23 + $0x3d4] ss:$8 sps:$4 sm:$0xff]  }
 0x15a   : > { %v4289_v0 = vld [vmem:[%s4968_s23 + $0x7d4] ss:$8 sps:$4 sm:$0xff]  }
 0x15c   : > { %3076 = vmatpush1.bf16.msra.mxu1 %v4200_v1  ;;  %3248 = vmatpush1.bf16.msra.mxu0 %v4203_v2  ;;  %v4284_v1 = vld [vmem:[%s4968_s23 + $0x3d0] ss:$8 sps:$4 sm:$0xff]  }
 0x15d   : > { %3088 = vmatprep.subr.bf16.mxu1 %v4208_v6  ;;  %3260 = vmatprep.subr.bf16.mxu0 %v4211_v25  ;;  %v4287_v2 = vld [vmem:[%s4968_s23 + $0x7d0] ss:$8 sps:$4 sm:$0xff]   ;;  %v4292_v6 = vld [vmem:[%s4968_s23 + $0x3e4] ss:$8 sps:$4 sm:$0xff]  }
 0x15e   : > { %v4295_v25 = vld [vmem:[%s4968_s23 + $0x7e4] ss:$8 sps:$4 sm:$0xff]  }
 0x15f   : > { %3078 = vmatmul.mubr.bf16.vlgmr.msra.gmra.mrb[0].mxu1 %v3571_v29  ;;  %3250 = vmatmul.mubr.bf16.vlgmr.msra.gmra.mrb[0].mxu0 %v3579_v30  ;;  %v4290_v29 = vld [vmem:[%s4968_s23 + $0x3e0] ss:$8 sps:$4 sm:$0xff]  }
 0x160   : > { %3089 = vmatpush1.bf16.msra.mxu1 %v4206_v3  ;;  %3261 = vmatpush1.bf16.msra.mxu0 %v4209_v5  ;;  %v4293_v30 = vld [vmem:[%s4968_s23 + $0x7e0] ss:$8 sps:$4 sm:$0xff]   ;;  %v4298_v3 = vld [vmem:[%s4968_s23 + $0x3f4] ss:$8 sps:$4 sm:$0xff]  }
 0x161   : > { %3090 = vmatprep.subr.bf16.mxu1 %v4214_v27  ;;  %3262 = vmatprep.subr.bf16.mxu0 %v4217_v28  ;;  %v4301_v5 = vld [vmem:[%s4968_s23 + $0x7f4] ss:$8 sps:$4 sm:$0xff]   ;;  %v4296_v27 = vld [vmem:[%s4968_s23 + $0x3f0] ss:$8 sps:$4 sm:$0xff]  }
 0x162   : > { %3120 = vmatprep.mubr.bf16.mxu1 %v3574_v34  ;;  %3292 = vmatprep.mubr.bf16.mxu0 %v3582_v35  ;;  %v4299_v28 = vld [vmem:[%s4968_s23 + $0x7f0] ss:$8 sps:$4 sm:$0xff]   ;;  %v3573_v34 = vcombine.low %v5225_v26, %v5234_v31  ;;  %v3581_v35 = vcombine.low %v5239_v32, %v5244_v33  ;;  %s3565_s23 = sshll.u32 %s4336_s17, 1 }
 0x163   : > { %p1317_p11 = scmp.lt.s32.totalorder %s3565_s23, 3 }
 0x164   : > { %3091 = vmatpush1.bf16.msra.mxu1 %v4212_v36  ;;  %3263 = vmatpush1.bf16.msra.mxu0 %v4215_v37 }
 0x165   : > { %3092 = vmatprep.subr.bf16.mxu1 %v4220_v38  ;;  %3264 = vmatprep.subr.bf16.mxu0 %v4223_v39  ;;  %s5383_s23 = smov (!%p1317_p11, %s3565_s23), 3 }
 0x166   : > { %s1319_s11 = scalar_lea.vmem %s5372_s2, %s5383_s23  ;;  %s1324_s14 = scalar_lea.vmem %s5373_s3, %s5383_s23 }
 0x168   : > { %3093 = vmatpush1.bf16.msra.mxu1 %v4218_v40  ;;  %3265 = vmatpush1.bf16.msra.mxu0 %v4221_v41 }
 0x169   : > { %3094 = vmatprep.subr.bf16.mxu1 %v4226_v42  ;;  %3266 = vmatprep.subr.bf16.mxu0 %v4229_v43 }
 0x16c   : > { %3095 = vmatpush1.bf16.msra.mxu1 %v4224_v44  ;;  %3267 = vmatpush1.bf16.msra.mxu0 %v4227_v45 }
 0x16d   : > { %3096 = vmatprep.subr.bf16.mxu1 %v4232_v46  ;;  %3268 = vmatprep.subr.bf16.mxu0 %v4235_v47 }
 0x170   : > { %3097 = vmatpush1.bf16.msra.mxu1 %v4230_v48  ;;  %3269 = vmatpush1.bf16.msra.mxu0 %v4233_v49 }
 0x171   : > { %3098 = vmatprep.subr.bf16.mxu1 %v4238_v50  ;;  %3270 = vmatprep.subr.bf16.mxu0 %v4241_v51 }
 0x174   : > { %3099 = vmatpush1.bf16.msra.mxu1 %v4236_v52  ;;  %3271 = vmatpush1.bf16.msra.mxu0 %v4239_v53 }
 0x175   : > { %3100 = vmatprep.subr.bf16.mxu1 %v4244_v54  ;;  %3272 = vmatprep.subr.bf16.mxu0 %v4247_v55 }
 0x178   : > { %3101 = vmatpush1.bf16.msra.mxu1 %v4242_v56  ;;  %3273 = vmatpush1.bf16.msra.mxu0 %v4245_v57 }
 0x179   : > { %3102 = vmatprep.subr.bf16.mxu1 %v4250_v58  ;;  %3274 = vmatprep.subr.bf16.mxu0 %v4253_v59 }
 0x17c   : > { %3103 = vmatpush1.bf16.msra.mxu1 %v4248_v60  ;;  %3275 = vmatpush1.bf16.msra.mxu0 %v4251_v61 }
 0x17d   : > { %3104 = vmatprep.subr.bf16.mxu1 %v4256_v62  ;;  %3276 = vmatprep.subr.bf16.mxu0 %v4259_v63 }
 0x180   : > { %3105 = vmatpush1.bf16.msra.mxu1 %v4254_v4  ;;  %3277 = vmatpush1.bf16.msra.mxu0 %v4257_v7 }
 0x181   : > { %3106 = vmatprep.subr.bf16.mxu1 %v4262_v8  ;;  %3278 = vmatprep.subr.bf16.mxu0 %v4265_v9 }
 0x184   : > { %3107 = vmatpush1.bf16.msra.mxu1 %v4260_v10  ;;  %3279 = vmatpush1.bf16.msra.mxu0 %v4263_v11 }
 0x185   : > { %3108 = vmatprep.subr.bf16.mxu1 %v4268_v12  ;;  %3280 = vmatprep.subr.bf16.mxu0 %v4271_v13 }
 0x188   : > { %3109 = vmatpush1.bf16.msra.mxu1 %v4266_v14  ;;  %3281 = vmatpush1.bf16.msra.mxu0 %v4269_v15 }
 0x189   : > { %3110 = vmatprep.subr.bf16.mxu1 %v4274_v16  ;;  %3282 = vmatprep.subr.bf16.mxu0 %v4277_v17 }
 0x18c   : > { %3111 = vmatpush1.bf16.msra.mxu1 %v4272_v18  ;;  %3283 = vmatpush1.bf16.msra.mxu0 %v4275_v19 }
 0x18d   : > { %3112 = vmatprep.subr.bf16.mxu1 %v4280_v20  ;;  %3284 = vmatprep.subr.bf16.mxu0 %v4283_v21 }
 0x190   : > { %3113 = vmatpush1.bf16.msra.mxu1 %v4278_v22  ;;  %3285 = vmatpush1.bf16.msra.mxu0 %v4281_v23 }
 0x191   : > { %3114 = vmatprep.subr.bf16.mxu1 %v4286_v24  ;;  %3286 = vmatprep.subr.bf16.mxu0 %v4289_v0 }
 0x194   : > { %3115 = vmatpush1.bf16.msra.mxu1 %v4284_v1  ;;  %3287 = vmatpush1.bf16.msra.mxu0 %v4287_v2 }
 0x195   : > { %3116 = vmatprep.subr.bf16.mxu1 %v4292_v6  ;;  %3288 = vmatprep.subr.bf16.mxu0 %v4295_v25 }
 0x198   : > { %3117 = vmatpush1.bf16.msra.mxu1 %v4290_v29  ;;  %3289 = vmatpush1.bf16.msra.mxu0 %v4293_v30  ;;  %v3359_v30 = vlaneseq }
 0x199   : > { %3118 = vmatprep.subr.bf16.mxu1 %v4298_v3  ;;  %3290 = vmatprep.subr.bf16.mxu0 %v4301_v5 }
 0x19c   : > { %3119 = vmatpush1.bf16.msra.mxu1 %v4296_v27  ;;  %3291 = vmatpush1.bf16.msra.mxu0 %v4299_v28  ;;  %v3360_v28 = vshrl.u32 %v3359_v30, 7 }
 0x19f   : > { %3121 = vmatmul.mubr.bf16.vlgmr.msra.gmra.mrb[0].mxu1 %v3573_v34  ;;  %3293 = vmatmul.mubr.bf16.vlgmr.msra.gmra.mrb[0].mxu0 %v3581_v35  ;;  %v3361_v34 = vsub.s32 0, %v3360_v28  ;;  %v3357_v35 = vld [vmem:[%s1319_s11] sm:$0x3] }
 0x272   : > { %v3122_v36 = vpop.f32.mrb[0].mxu1  ;;  %v3294_v37 = vpop.f32.mrb[0].mxu0 }
 0x273   : > { %v5316_v38 = vadd.f32 %v3294_v37, %v3122_v36  ;;  %v3124_v39 = vpop.f32.mrb[1].mxu1  ;;  %v3296_v40 = vpop.f32.mrb[1].mxu0  ;;  %v3365_v36 = vsub.s32 1, %v3360_v28  ;;  %v3373_v37 = vld [vmem:[%s1324_s14] sm:$0x3] }
 0x274   : > { %v5318_v41 = vadd.f32 %v3296_v40, %v3124_v39  ;;  %v3126_v42 = vpop.f32.mrb[2].mxu1  ;;  %v3298_v43 = vpop.f32.mrb[2].mxu0 }
 0x275   : > { %v5320_v44 = vadd.f32 %v3298_v43, %v3126_v42  ;;  %v3128_v26 = vpop.f32.mrb[3].mxu1  ;;  %v3300_v31 = vpop.f32.mrb[3].mxu0  ;;  %v3319_v32 = vmul.f32 %v5316_v38, %v5316_v38  ;;  %v3366_v40 = vrot.slane %v3357_v35, %v3365_v36 }
 0x276   : > { %v5322_v45 = vadd.f32 %v3300_v31, %v3128_v26  ;;  %v3320_v47 = vmul.f32 %v5318_v41, %v5318_v41 }
 0x277   : > { %v3303_v33 = vadd.f32 %v5320_v44, %v5316_v38  ;;  %v3321_v46 = vmul.f32 %v5320_v44, %v5320_v44 }
 0x278   : > { %v3310_v48 = vadd.f32 %v5322_v45, %v5318_v41  ;;  %v3322_v49 = vmul.f32 %v5322_v45, %v5322_v45 }
 0x279   : > { %v3304_v50 = vrot.slane %v3303_v33, 4  ;;  %v3323_v51 = vadd.f32 %v3321_v46, %v3319_v32 }
 0x27a   : > { %v3311_v52 = vrot.slane %v3310_v48, 4  ;;  %v3330_v53 = vadd.f32 %v3322_v49, %v3320_v47 }
 0x27b   : > { %v3305_v54 = vadd.f32 %v3304_v50, %v3303_v33  ;;  %v3324_v55 = vrot.slane %v3323_v51, 4 }
 0x27c   : > { %v3312_v56 = vadd.f32 %v3311_v52, %v3310_v48  ;;  %v3331_v57 = vrot.slane %v3330_v53, 4 }
 0x27d   : > { %v3306_v58 = vrot.slane %v3305_v54, 2  ;;  %v3325_v59 = vadd.f32 %v3324_v55, %v3323_v51 }
 0x27e   : > { %v3313_v60 = vrot.slane %v3312_v56, 2  ;;  %v3332_v61 = vadd.f32 %v3331_v57, %v3330_v53 }
 0x27f   : > { %v3307_v62 = vadd.f32 %v3306_v58, %v3305_v54  ;;  %v3326_v63 = vrot.slane %v3325_v59, 2 }
 0x280   : > { %v3314_v4 = vadd.f32 %v3313_v60, %v3312_v56  ;;  %v3333_v7 = vrot.slane %v3332_v61, 2 }
 0x281   : > { %v3308_v8 = vrot.slane %v3307_v62, 1  ;;  %v3327_v9 = vadd.f32 %v3326_v63, %v3325_v59 }
 0x282   : > { %v3315_v10 = vrot.slane %v3314_v4, 1  ;;  %v3334_v11 = vadd.f32 %v3333_v7, %v3332_v61 }
 0x283   : > { %v3309_v12 = vadd.f32 %v3308_v8, %v3307_v62  ;;  %v3328_v13 = vrot.slane %v3327_v9, 1 }
 0x284   : > { %v3316_v14 = vadd.f32 %v3315_v10, %v3314_v4  ;;  %v3335_v15 = vrot.slane %v3334_v11, 1 }
 0x285   : > { %v3317_v16 = vmul.f32 0.5, %v3309_v12  ;;  %v3329_v17 = vadd.f32 %v3328_v13, %v3327_v9 }
 0x286   : > { %v3318_v18 = vmul.f32 0.5, %v3316_v14  ;;  %v3336_v19 = vadd.f32 %v3335_v15, %v3334_v11 }
 0x287   : > { %v3337_v20 = vmul.f32 0.5, %v3329_v17  ;;  %v3339_v21 = vmul.f32 %v3317_v16, %v3317_v16  ;;  %v3345_v22 = vsub.f32 %v5316_v38, %v3317_v16  ;;  %v3347_v23 = vsub.f32 %v5320_v44, %v3317_v16 }
 0x288   : > { %v3338_v24 = vmul.f32 0.5, %v3336_v19  ;;  %v3340_v0 = vmul.f32 %v3318_v18, %v3318_v18  ;;  %v3346_v1 = vsub.f32 %v5318_v41, %v3318_v18  ;;  %v3348_v2 = vsub.f32 %v5322_v45, %v3318_v18 }
 0x289   : > { %v3341_v6 = vsub.f32 %v3337_v20, %v3339_v21  ;;  %v3362_v38 = vrot.slane %v3357_v35, %v3361_v34  ;;  %v3378_v44 = vrot.slane %v3373_v37, %v3361_v34  ;;  %v3382_v45 = vrot.slane %v3373_v37, %v3365_v36 }
 0x28a   : > { %v3342_v25 = vsub.f32 %v3338_v24, %v3340_v0 }
 0x28b   : > { %v3343_v29 = vmax.f32 %v3341_v6, 0.0 }
 0x28c   : > { %v3344_v3 = vmax.f32 %v3342_v25, 0.0 }
 0x28d   : > { %v3349_v5 = vadd.f32 1e-05, %v3343_v29 }
 0x28e   : > { %v3350_v27 = vadd.f32 1e-05, %v3344_v3 }
 0x28f   : > { %4302 = vrsqrt.f32 %v3349_v5 }
 0x290   : > { %4304 = vrsqrt.f32 %v3350_v27 }
 0x299   : > { %v4303_v39 = vpop.eup %4302 }
 0x29a   : > { %v4305_v41 = vpop.eup %4304  ;;  %v3353_v42 = vmul.f32 %v4303_v39, %v3345_v22  ;;  %v3355_v43 = vmul.f32 %v4303_v39, %v3347_v23 }
 0x29b   : > { %v3354_v26 = vmul.f32 %v4305_v41, %v3346_v1  ;;  %v3356_v31 = vmul.f32 %v4305_v41, %v3348_v2 }
 0x29c   : > { %v3369_v32 = vmul.f32 %v3362_v38, %v3353_v42  ;;  %v3371_v33 = vmul.f32 %v3362_v38, %v3355_v43 }
 0x29d   : > { %v3370_v46 = vmul.f32 %v3366_v40, %v3354_v26  ;;  %v3372_v47 = vmul.f32 %v3366_v40, %v3356_v31 }
 0x29e   : > { %v3385_v48 = vadd.f32 %v3378_v44, %v3369_v32  ;;  %v3387_v49 = vadd.f32 %v3378_v44, %v3371_v33 }
 0x29f   : > { %v3386_v50 = vadd.f32 %v3382_v45, %v3370_v46  ;;  %v3388_v51 = vadd.f32 %v3382_v45, %v3372_v47  ;;  %3413 = sbr.rel (!%p4406_p6) target bundleno = 686 (0x2ae), region = 78 }
 0x2a0   : > { %v3389_v52 = vmax.f32 %v3385_v48, 0.0  ;;  %v3391_v53 = vmax.f32 %v3387_v49, 0.0 }
 0x2a1   : > { %v3390_v54 = vmax.f32 %v3386_v50, 0.0  ;;  %v3392_v55 = vmax.f32 %v3388_v51, 0.0 }
 0x2a3   : > { %v3847_v56 = vpack.c.bf16 %v3390_v54, %v3389_v52  ;;  %v3848_v57 = vpack.c.bf16 %v3392_v55, %v3391_v53 }
 0x2a5   : > { %3405 = vst [vmem:[%s1307_s22] sm:$0xff] %v3847_v56  ;;  %3406 = vst [vmem:[%s1307_s22 + $0x8] sm:$0xff] %v3848_v57 }
 0x2ac   : > { %v3446_v58 = vld [vmem:[%s1307_s22] sm:$0xff]  ;;  %v3448_v59 = vld [vmem:[%s1307_s22 + $0x8] sm:$0xff] }
 0x2ad   : > { %3447 = vst [vmem:[%s3416_s27] sm:$0xff] %v3446_v58  ;;  %3449 = vst [vmem:[%s3416_s27 + $0x10] sm:$0xff] %v3448_v59 }
 0x2ae PF: > { %s14_s19 = sadd.s32 1, %s4344_s19   ;;  %s5376_s15 = smov %s4332_s16 }
 0x2af   : > { %p11_p12 = scmp.ge.s32.totalorder %s14_s19, 4   ;;  %s5377_s16 = smov %s4411_s25 }
 0x2b0   : > { %s5378_s17 = smov %s4340_s18  ;;  %s5379_s18 = smov %s5381_s20 }
 0x2b1   :  { %13 = sbr.rel (!%p11_p12) target bundleno = 3 (0x3), region = 156 }

// kernel: _lambda_.20
= control target key start
LH: loop header
LB: loop body
LE: loop exit
PB: predicated region body
PF: predicated region fallthrough
CT: control target
= control target key end

     0   :  { %s660_s1 = inlined_call_operand.vmem [shape: bf16[512,128], index: 1, kind: input, shape index: {}]   ;;  %s661_s0 = inlined_call_operand.vmem [shape: bf16[16,512], index: 0, kind: input, shape index: {}]   ;;  %s662_s2 = inlined_call_operand.vmem [shape: f32[1,128], index: 2, kind: input, shape index: {}]   ;;  %s663_s3 = inlined_call_operand.vmem [shape: bf16[16,128], index: 3, kind: output, shape index: {}]  }
   0x1   :  { %v488_v0 = vld [vmem:[%s660_s1 + $0x40] sm:$0xff]   ;;  %v492_v4 = vld [vmem:[%s660_s1 + $0x48] sm:$0xff]   ;;  %v496_v8 = vld [vmem:[%s660_s1 + $0x50] sm:$0xff]  }
   0x2   :  { %v489_v1 = vld [vmem:[%s660_s1 + $0xc0] sm:$0xff]   ;;  %444 = vmatprep.subr.bf16.mxu0 %v488_v0  ;;  %v493_v5 = vld [vmem:[%s660_s1 + $0xc8] sm:$0xff]   ;;  %v497_v9 = vld [vmem:[%s660_s1 + $0xd0] sm:$0xff]  }
   0x3   :  { %v490_v2 = vld [vmem:[%s660_s1] sm:$0xff]   ;;  %466 = vmatprep.subr.bf16.mxu1 %v489_v1  ;;  %v494_v6 = vld [vmem:[%s660_s1 + $0x8] sm:$0xff]   ;;  %v498_v10 = vld [vmem:[%s660_s1 + $0x10] sm:$0xff]  }
   0x4   :  { %v491_v3 = vld [vmem:[%s660_s1 + $0x80] sm:$0xff]   ;;  %445 = vmatpush3.bf16.msra.mxu0 %v490_v2  ;;  %v495_v7 = vld [vmem:[%s660_s1 + $0x88] sm:$0xff]   ;;  %v499_v11 = vld [vmem:[%s660_s1 + $0x90] sm:$0xff]  }
   0x5   :  { %467 = vmatpush3.bf16.msra.mxu1 %v491_v3  ;;  %446 = vmatprep.subr.bf16.mxu0 %v492_v4  ;;  %v500_v12 = vld [vmem:[%s660_s1 + $0x58] sm:$0xff]   ;;  %v504_v16 = vld [vmem:[%s660_s1 + $0x60] sm:$0xff]   ;;  %v508_v20 = vld [vmem:[%s660_s1 + $0x68] sm:$0xff]  }
   0x6   :  { %468 = vmatprep.subr.bf16.mxu1 %v493_v5  ;;  %v501_v13 = vld [vmem:[%s660_s1 + $0xd8] sm:$0xff]   ;;  %v505_v17 = vld [vmem:[%s660_s1 + $0xe0] sm:$0xff]   ;;  %v509_v21 = vld [vmem:[%s660_s1 + $0xe8] sm:$0xff]  }
   0x7   :  { %v502_v14 = vld [vmem:[%s660_s1 + $0x18] sm:$0xff]   ;;  %v506_v18 = vld [vmem:[%s660_s1 + $0x20] sm:$0xff]   ;;  %v510_v22 = vld [vmem:[%s660_s1 + $0x28] sm:$0xff]  }
   0x8   :  { %447 = vmatpush3.bf16.msra.mxu0 %v494_v6  ;;  %v503_v15 = vld [vmem:[%s660_s1 + $0x98] sm:$0xff]   ;;  %v507_v19 = vld [vmem:[%s660_s1 + $0xa0] sm:$0xff]   ;;  %v511_v23 = vld [vmem:[%s660_s1 + $0xa8] sm:$0xff]  }
   0x9   :  { %469 = vmatpush3.bf16.msra.mxu1 %v495_v7  ;;  %448 = vmatprep.subr.bf16.mxu0 %v496_v8  ;;  %v512_v24 = vld [vmem:[%s660_s1 + $0x70] sm:$0xff]   ;;  %v516_v28 = vld [vmem:[%s660_s1 + $0x78] sm:$0xff]   ;;  %v398_v38 = vld [vmem:[%s662_s2] ss:$0 sm:$0xff] }
   0xa   :  { %470 = vmatprep.subr.bf16.mxu1 %v497_v9  ;;  %v513_v25 = vld [vmem:[%s660_s1 + $0xf0] sm:$0xff]   ;;  %v517_v29 = vld [vmem:[%s660_s1 + $0xf8] sm:$0xff]  }
   0xb   :  { %v514_v26 = vld [vmem:[%s660_s1 + $0x30] sm:$0xff]   ;;  %v518_v30 = vld [vmem:[%s660_s1 + $0x38] sm:$0xff]  }
   0xc   :  { %449 = vmatpush3.bf16.msra.mxu0 %v498_v10  ;;  %v515_v27 = vld [vmem:[%s660_s1 + $0xb0] sm:$0xff]   ;;  %v519_v31 = vld [vmem:[%s660_s1 + $0xb8] sm:$0xff]  }
   0xd   :  { %471 = vmatpush3.bf16.msra.mxu1 %v499_v11  ;;  %450 = vmatprep.subr.bf16.mxu0 %v500_v12  ;;  %v520_v32 = vld [vmem:[%s661_s0] ss:$16 sps:$4 sm:$0xff]   ;;  %v522_v33 = vld [vmem:[%s661_s0 + $0x4] ss:$16 sps:$4 sm:$0xff]   ;;  %v523_v34 = vld [vmem:[%s661_s0 + $0x8] ss:$16 sps:$4 sm:$0xff]  }
   0xe   :  { %472 = vmatprep.subr.bf16.mxu1 %v501_v13  ;;  %v525_v35 = vld [vmem:[%s661_s0 + $0xc] ss:$16 sps:$4 sm:$0xff]   ;;  %334 = vmatprep.mubr.bf16.mxu0 %v522_v33 }
   0xf   :  { %375 = vmatprep.mubr.bf16.mxu1 %v525_v35 }
  0x10   :  { %451 = vmatpush3.bf16.msra.mxu0 %v502_v14 }
  0x11   :  { %473 = vmatpush3.bf16.msra.mxu1 %v503_v15  ;;  %452 = vmatprep.subr.bf16.mxu0 %v504_v16 }
  0x12   :  { %474 = vmatprep.subr.bf16.mxu1 %v505_v17 }
  0x14   :  { %453 = vmatpush3.bf16.msra.mxu0 %v506_v18 }
  0x15   :  { %475 = vmatpush3.bf16.msra.mxu1 %v507_v19  ;;  %454 = vmatprep.subr.bf16.mxu0 %v508_v20 }
  0x16   :  { %476 = vmatprep.subr.bf16.mxu1 %v509_v21 }
  0x18   :  { %455 = vmatpush3.bf16.msra.mxu0 %v510_v22 }
  0x19   :  { %477 = vmatpush3.bf16.msra.mxu1 %v511_v23  ;;  %456 = vmatprep.subr.bf16.mxu0 %v512_v24 }
  0x1a   :  { %478 = vmatprep.subr.bf16.mxu1 %v513_v25 }
  0x1c   :  { %457 = vmatpush3.bf16.msra.mxu0 %v514_v26 }
  0x1d   :  { %479 = vmatpush3.bf16.msra.mxu1 %v515_v27  ;;  %458 = vmatprep.subr.bf16.mxu0 %v516_v28 }
  0x1e   :  { %480 = vmatprep.subr.bf16.mxu1 %v517_v29 }
  0x20   :  { %459 = vmatpush3.bf16.msra.mxu0 %v518_v30 }
  0x21   :  { %481 = vmatpush3.bf16.msra.mxu1 %v519_v31 }
  0x23   :  { %335 = vmatmul.mubr.bf16.vlgmr.msra.gmra.mrb[0].mxu0 %v520_v32 }
  0x24   :  { %376 = vmatmul.mubr.bf16.vlgmr.msra.gmra.mrb[0].mxu1 %v523_v34 }
  0xf6   :  { %v460_v36 = vpop.f32.mrb[0].mxu0 }
  0xf7   :  { %v482_v37 = vpop.f32.mrb[0].mxu1  ;;  %v461_v39 = vpop.f32.mrb[1].mxu0 }
  0xf8   :  { %v462_v40 = vadd.f32 %v461_v39, %v460_v36  ;;  %v483_v41 = vpop.f32.mrb[1].mxu1  ;;  %v463_v42 = vpop.f32.mrb[2].mxu0 }
  0xf9   :  { %v484_v43 = vadd.f32 %v483_v41, %v482_v37  ;;  %v485_v44 = vpop.f32.mrb[2].mxu1  ;;  %v464_v45 = vpop.f32.mrb[3].mxu0 }
  0xfa   :  { %v337_v46 = vadd.f32 %v462_v40, %v398_v38  ;;  %v465_v47 = vadd.f32 %v464_v45, %v463_v42  ;;  %v486_v48 = vpop.f32.mrb[3].mxu1 }
  0xfb   :  { %v487_v49 = vadd.f32 %v486_v48, %v485_v44 }
  0xfc   :  { %v378_v50 = vadd.f32 %v484_v43, %v337_v46  ;;  %v340_v51 = vadd.f32 %v465_v47, %v398_v38 }
  0xfe   :  { %v381_v52 = vadd.f32 %v487_v49, %v340_v51 }
 0x100   :  { %v442_v53 = vpack.c.bf16 %v381_v52, %v378_v50 }
 0x102   :  { %443 = vst [vmem:[%s663_s3] sm:$0xff] %v442_v53  }

// kernel: _lambda_.18
= control target key start
LH: loop header
LB: loop body
LE: loop exit
PB: predicated region body
PF: predicated region fallthrough
CT: control target
= control target key end

     0   :  { %s1611_s15 = smov 0   ;;  %s1613_s16 = smov 0   ;;  %s1928_s0 = inlined_call_operand.vmem [shape: bf16[16,512], index: 0, kind: input, shape index: {}]   ;;  %s1929_s1 = inlined_call_operand.vmem [shape: bf16[512,512], index: 1, kind: input, shape index: {}]   ;;  %s1930_s2 = inlined_call_operand.vmem [shape: f32[1,512], index: 2, kind: input, shape index: {}]   ;;  %s1931_s3 = inlined_call_operand.vmem [shape: f32[1,512], index: 3, kind: input, shape index: {}]   ;;  %s1932_s4 = inlined_call_operand.vmem [shape: bf16[16,512], index: 4, kind: output, shape index: {}]  }
   0x1   :  { %s1615_s17 = smov 0   ;;  %s1617_s18 = smov 0  }
   0x2   :  { %s1619_s19 = smov 0  }
   0x3 LB: > { %s26_s20 = sadd.s32 1, %s1580_s18  ;;  %s1304_s21 = sadd.s32 4294967295, %s1584_s19   ;;  %s1584_s19 = sphi %s1619_s19, %s14_s19   ;;  %s1580_s18 = sphi %s1617_s18, %s1937_s18   ;;  %s1576_s17 = sphi %s1615_s17, %s1936_s17   ;;  %s1572_s16 = sphi %s1613_s16, %s1935_s16   ;;  %s1568_s15 = sphi %s1611_s15, %s1934_s15  }
   0x4   : > { %p28_p0 = scmp.ge.s32.totalorder %s26_s20, 2  ;;  %p68_p1 = scmp.ne.s32.totalorder %s1572_s16, %s1568_s15 }
   0x5   : > { %p69_p2 = scmp.eq.s32.totalorder %s1584_s19, 0  ;;  %p150_p4 = scmp.eq.s32.totalorder %s1304_s21, 1 }
   0x6   : > { %s1939_s20 = smov (%p28_p0, %s26_s20), 0  ;;  %s61_s23 = sadd.s32 1, %s1572_s16 }
   0x7   : > { %p70_p3 = por %p69_p2, %p68_p1  ;;  %s57_s22 = ssub.s32 %s1580_s18, %s1939_s20 }
   0x8   : > { %p59_p5 = scmp.eq.s32.totalorder %s57_s22, 0  ;;  %p1646_p6 = por %p150_p4, %p68_p1 }
   0x9   : > { %p1308_p7 = scmp.ge.s32.totalorder %s1584_s19, 2 }
   0xa   : > { %s1651_s25 = scalar_select %p59_p5, %s1572_s16, %s61_s23  }
   0xb   : > { %181 = sbr.rel (%p1308_p7) target bundleno = 54 (0x36), region = 20 }
  0x12   : > { %184 = sbr.rel (!%p70_p3) target bundleno = 54 (0x36), region = 24  ;;  %s186_s26 = sand.u32 (%p70_p3), 1, %s1572_s16  }
  0x13   : > { %s1392_s27 = sshll.u32 (%p70_p3), %s1580_s18, 3  ;;  %s1309_s28 = sshll.u32 (%p70_p3), %s186_s26, 9 }
  0x14   : > { %s1659_s5 = scalar_lea.vmem (%p70_p3), %s1929_s1, %s1392_s27  ;;  %s1664_s6 = scalar_lea.vmem (%p70_p3), [#allocation3], %s1309_s28 }
  0x15   : > { %v348_v0 = vld [vmem:[%s1659_s5] sm:$0xff] (%p70_p3)  ;;  %v350_v1 = vld [vmem:[%s1659_s5 + $0x10] sm:$0xff] (%p70_p3) }
  0x16   : > { %v352_v2 = vld [vmem:[%s1659_s5 + $0x20] sm:$0xff] (%p70_p3)  ;;  %349 = vst [vmem:[%s1664_s6] sm:$0xff] (%p70_p3), %v348_v0  ;;  %351 = vst [vmem:[%s1664_s6 + $0x8] sm:$0xff] (%p70_p3), %v350_v1  ;;  %v354_v3 = vld [vmem:[%s1659_s5 + $0x30] sm:$0xff] (%p70_p3) }
  0x17   : > { %353 = vst [vmem:[%s1664_s6 + $0x10] sm:$0xff] (%p70_p3), %v352_v2  ;;  %v356_v4 = vld [vmem:[%s1659_s5 + $0x40] sm:$0xff] (%p70_p3)  ;;  %v358_v5 = vld [vmem:[%s1659_s5 + $0x50] sm:$0xff] (%p70_p3)  ;;  %355 = vst [vmem:[%s1664_s6 + $0x18] sm:$0xff] (%p70_p3), %v354_v3 }
  0x18   : > { %357 = vst [vmem:[%s1664_s6 + $0x20] sm:$0xff] (%p70_p3), %v356_v4  ;;  %359 = vst [vmem:[%s1664_s6 + $0x28] sm:$0xff] (%p70_p3), %v358_v5  ;;  %v360_v6 = vld [vmem:[%s1659_s5 + $0x60] sm:$0xff] (%p70_p3)  ;;  %v362_v7 = vld [vmem:[%s1659_s5 + $0x70] sm:$0xff] (%p70_p3) }
  0x19   : > { %v364_v8 = vld [vmem:[%s1659_s5 + $0x80] sm:$0xff]  ;;  %361 = vst [vmem:[%s1664_s6 + $0x30] sm:$0xff] %v360_v6  ;;  %363 = vst [vmem:[%s1664_s6 + $0x38] sm:$0xff] %v362_v7  ;;  %v366_v9 = vld [vmem:[%s1659_s5 + $0x90] sm:$0xff] }
  0x1a   : > { %365 = vst [vmem:[%s1664_s6 + $0x40] sm:$0xff] %v364_v8  ;;  %v368_v10 = vld [vmem:[%s1659_s5 + $0xa0] sm:$0xff]  ;;  %v370_v11 = vld [vmem:[%s1659_s5 + $0xb0] sm:$0xff]  ;;  %367 = vst [vmem:[%s1664_s6 + $0x48] sm:$0xff] %v366_v9 }
  0x1b   : > { %369 = vst [vmem:[%s1664_s6 + $0x50] sm:$0xff] %v368_v10  ;;  %371 = vst [vmem:[%s1664_s6 + $0x58] sm:$0xff] %v370_v11  ;;  %v372_v12 = vld [vmem:[%s1659_s5 + $0xc0] sm:$0xff]  ;;  %v374_v13 = vld [vmem:[%s1659_s5 + $0xd0] sm:$0xff] }
  0x1c   : > { %v376_v14 = vld [vmem:[%s1659_s5 + $0xe0] sm:$0xff]  ;;  %373 = vst [vmem:[%s1664_s6 + $0x60] sm:$0xff] %v372_v12  ;;  %375 = vst [vmem:[%s1664_s6 + $0x68] sm:$0xff] %v374_v13  ;;  %v378_v15 = vld [vmem:[%s1659_s5 + $0xf0] sm:$0xff] }
  0x1d   : > { %377 = vst [vmem:[%s1664_s6 + $0x70] sm:$0xff] %v376_v14  ;;  %v380_v16 = vld [vmem:[%s1659_s5 + $0x100] sm:$0xff]  ;;  %v382_v17 = vld [vmem:[%s1659_s5 + $0x110] sm:$0xff]  ;;  %379 = vst [vmem:[%s1664_s6 + $0x78] sm:$0xff] %v378_v15 }
  0x1e   : > { %381 = vst [vmem:[%s1664_s6 + $0x80] sm:$0xff] %v380_v16  ;;  %383 = vst [vmem:[%s1664_s6 + $0x88] sm:$0xff] %v382_v17  ;;  %v384_v18 = vld [vmem:[%s1659_s5 + $0x120] sm:$0xff]  ;;  %v386_v19 = vld [vmem:[%s1659_s5 + $0x130] sm:$0xff] }
  0x1f   : > { %v388_v20 = vld [vmem:[%s1659_s5 + $0x140] sm:$0xff]  ;;  %385 = vst [vmem:[%s1664_s6 + $0x90] sm:$0xff] %v384_v18  ;;  %387 = vst [vmem:[%s1664_s6 + $0x98] sm:$0xff] %v386_v19  ;;  %v390_v21 = vld [vmem:[%s1659_s5 + $0x150] sm:$0xff] }
  0x20   : > { %389 = vst [vmem:[%s1664_s6 + $0xa0] sm:$0xff] %v388_v20  ;;  %v392_v22 = vld [vmem:[%s1659_s5 + $0x160] sm:$0xff]  ;;  %v394_v23 = vld [vmem:[%s1659_s5 + $0x170] sm:$0xff]  ;;  %391 = vst [vmem:[%s1664_s6 + $0xa8] sm:$0xff] %v390_v21 }
  0x21   : > { %393 = vst [vmem:[%s1664_s6 + $0xb0] sm:$0xff] %v392_v22  ;;  %395 = vst [vmem:[%s1664_s6 + $0xb8] sm:$0xff] %v394_v23  ;;  %v396_v24 = vld [vmem:[%s1659_s5 + $0x180] sm:$0xff]  ;;  %v398_v25 = vld [vmem:[%s1659_s5 + $0x190] sm:$0xff] }
  0x22   : > { %v400_v26 = vld [vmem:[%s1659_s5 + $0x1a0] sm:$0xff]  ;;  %397 = vst [vmem:[%s1664_s6 + $0xc0] sm:$0xff] %v396_v24  ;;  %399 = vst [vmem:[%s1664_s6 + $0xc8] sm:$0xff] %v398_v25  ;;  %v402_v27 = vld [vmem:[%s1659_s5 + $0x1b0] sm:$0xff] }
  0x23   : > { %401 = vst [vmem:[%s1664_s6 + $0xd0] sm:$0xff] %v400_v26  ;;  %v404_v28 = vld [vmem:[%s1659_s5 + $0x1c0] sm:$0xff]  ;;  %v406_v29 = vld [vmem:[%s1659_s5 + $0x1d0] sm:$0xff]  ;;  %403 = vst [vmem:[%s1664_s6 + $0xd8] sm:$0xff] %v402_v27 }
  0x24   : > { %405 = vst [vmem:[%s1664_s6 + $0xe0] sm:$0xff] %v404_v28  ;;  %407 = vst [vmem:[%s1664_s6 + $0xe8] sm:$0xff] %v406_v29  ;;  %v408_v30 = vld [vmem:[%s1659_s5 + $0x1e0] sm:$0xff]  ;;  %v410_v31 = vld [vmem:[%s1659_s5 + $0x1f0] sm:$0xff] }
  0x25   : > { %v412_v32 = vld [vmem:[%s1659_s5 + $0x200] sm:$0xff]  ;;  %409 = vst [vmem:[%s1664_s6 + $0xf0] sm:$0xff] %v408_v30  ;;  %411 = vst [vmem:[%s1664_s6 + $0xf8] sm:$0xff] %v410_v31  ;;  %v414_v33 = vld [vmem:[%s1659_s5 + $0x210] sm:$0xff] }
  0x26   : > { %413 = vst [vmem:[%s1664_s6 + $0x100] sm:$0xff] %v412_v32  ;;  %v416_v34 = vld [vmem:[%s1659_s5 + $0x220] sm:$0xff]  ;;  %v418_v35 = vld [vmem:[%s1659_s5 + $0x230] sm:$0xff]  ;;  %415 = vst [vmem:[%s1664_s6 + $0x108] sm:$0xff] %v414_v33 }
  0x27   : > { %417 = vst [vmem:[%s1664_s6 + $0x110] sm:$0xff] %v416_v34  ;;  %419 = vst [vmem:[%s1664_s6 + $0x118] sm:$0xff] %v418_v35  ;;  %v420_v36 = vld [vmem:[%s1659_s5 + $0x240] sm:$0xff]  ;;  %v422_v37 = vld [vmem:[%s1659_s5 + $0x250] sm:$0xff] }
  0x28   : > { %v424_v38 = vld [vmem:[%s1659_s5 + $0x260] sm:$0xff]  ;;  %421 = vst [vmem:[%s1664_s6 + $0x120] sm:$0xff] %v420_v36  ;;  %423 = vst [vmem:[%s1664_s6 + $0x128] sm:$0xff] %v422_v37  ;;  %v426_v39 = vld [vmem:[%s1659_s5 + $0x270] sm:$0xff] }
  0x29   : > { %425 = vst [vmem:[%s1664_s6 + $0x130] sm:$0xff] %v424_v38  ;;  %v428_v40 = vld [vmem:[%s1659_s5 + $0x280] sm:$0xff]  ;;  %v430_v41 = vld [vmem:[%s1659_s5 + $0x290] sm:$0xff]  ;;  %427 = vst [vmem:[%s1664_s6 + $0x138] sm:$0xff] %v426_v39 }
  0x2a   : > { %429 = vst [vmem:[%s1664_s6 + $0x140] sm:$0xff] %v428_v40  ;;  %431 = vst [vmem:[%s1664_s6 + $0x148] sm:$0xff] %v430_v41  ;;  %v432_v42 = vld [vmem:[%s1659_s5 + $0x2a0] sm:$0xff]  ;;  %v434_v43 = vld [vmem:[%s1659_s5 + $0x2b0] sm:$0xff] }
  0x2b   : > { %v436_v44 = vld [vmem:[%s1659_s5 + $0x2c0] sm:$0xff]  ;;  %433 = vst [vmem:[%s1664_s6 + $0x150] sm:$0xff] %v432_v42  ;;  %435 = vst [vmem:[%s1664_s6 + $0x158] sm:$0xff] %v434_v43  ;;  %v438_v45 = vld [vmem:[%s1659_s5 + $0x2d0] sm:$0xff] }
  0x2c   : > { %437 = vst [vmem:[%s1664_s6 + $0x160] sm:$0xff] %v436_v44  ;;  %v440_v46 = vld [vmem:[%s1659_s5 + $0x2e0] sm:$0xff]  ;;  %v442_v47 = vld [vmem:[%s1659_s5 + $0x2f0] sm:$0xff]  ;;  %439 = vst [vmem:[%s1664_s6 + $0x168] sm:$0xff] %v438_v45 }
  0x2d   : > { %441 = vst [vmem:[%s1664_s6 + $0x170] sm:$0xff] %v440_v46  ;;  %443 = vst [vmem:[%s1664_s6 + $0x178] sm:$0xff] %v442_v47  ;;  %v444_v48 = vld [vmem:[%s1659_s5 + $0x300] sm:$0xff]  ;;  %v446_v49 = vld [vmem:[%s1659_s5 + $0x310] sm:$0xff] }
  0x2e   : > { %v448_v50 = vld [vmem:[%s1659_s5 + $0x320] sm:$0xff]  ;;  %445 = vst [vmem:[%s1664_s6 + $0x180] sm:$0xff] %v444_v48  ;;  %447 = vst [vmem:[%s1664_s6 + $0x188] sm:$0xff] %v446_v49  ;;  %v450_v51 = vld [vmem:[%s1659_s5 + $0x330] sm:$0xff] }
  0x2f   : > { %449 = vst [vmem:[%s1664_s6 + $0x190] sm:$0xff] %v448_v50  ;;  %v452_v52 = vld [vmem:[%s1659_s5 + $0x340] sm:$0xff]  ;;  %v454_v53 = vld [vmem:[%s1659_s5 + $0x350] sm:$0xff]  ;;  %451 = vst [vmem:[%s1664_s6 + $0x198] sm:$0xff] %v450_v51 }
  0x30   : > { %453 = vst [vmem:[%s1664_s6 + $0x1a0] sm:$0xff] %v452_v52  ;;  %455 = vst [vmem:[%s1664_s6 + $0x1a8] sm:$0xff] %v454_v53  ;;  %v456_v54 = vld [vmem:[%s1659_s5 + $0x360] sm:$0xff]  ;;  %v458_v55 = vld [vmem:[%s1659_s5 + $0x370] sm:$0xff] }
  0x31   : > { %v460_v56 = vld [vmem:[%s1659_s5 + $0x380] sm:$0xff]  ;;  %457 = vst [vmem:[%s1664_s6 + $0x1b0] sm:$0xff] %v456_v54  ;;  %459 = vst [vmem:[%s1664_s6 + $0x1b8] sm:$0xff] %v458_v55  ;;  %v462_v57 = vld [vmem:[%s1659_s5 + $0x390] sm:$0xff] }
  0x32   : > { %461 = vst [vmem:[%s1664_s6 + $0x1c0] sm:$0xff] %v460_v56  ;;  %v464_v58 = vld [vmem:[%s1659_s5 + $0x3a0] sm:$0xff]  ;;  %v466_v59 = vld [vmem:[%s1659_s5 + $0x3b0] sm:$0xff]  ;;  %463 = vst [vmem:[%s1664_s6 + $0x1c8] sm:$0xff] %v462_v57 }
  0x33   : > { %465 = vst [vmem:[%s1664_s6 + $0x1d0] sm:$0xff] %v464_v58  ;;  %467 = vst [vmem:[%s1664_s6 + $0x1d8] sm:$0xff] %v466_v59  ;;  %v468_v60 = vld [vmem:[%s1659_s5 + $0x3c0] sm:$0xff]  ;;  %v470_v61 = vld [vmem:[%s1659_s5 + $0x3d0] sm:$0xff] }
  0x34   : > { %v472_v62 = vld [vmem:[%s1659_s5 + $0x3e0] sm:$0xff]  ;;  %469 = vst [vmem:[%s1664_s6 + $0x1e0] sm:$0xff] %v468_v60  ;;  %471 = vst [vmem:[%s1664_s6 + $0x1e8] sm:$0xff] %v470_v61  ;;  %v474_v63 = vld [vmem:[%s1659_s5 + $0x3f0] sm:$0xff] }
  0x35   : > { %473 = vst [vmem:[%s1664_s6 + $0x1f0] sm:$0xff] %v472_v62  ;;  %475 = vst [vmem:[%s1664_s6 + $0x1f8] sm:$0xff] %v474_v63 }
  0x36 PF: > { %p1312_p8 = scmp.ge.s32.totalorder %s1584_s19, 1  ;;  %p496_p9 = scmp.lt.s32.totalorder %s1584_s19, 3 }
  0x38   : > { %p497_p10 = pnand %p1312_p8, %p496_p9 }
  0x39   : > { %s503_s7 = sand.u32 (!%p497_p10), 1, %s1568_s15   ;;  %v1538_v0 = vld [vmem:[%s1928_s0 + $0x4] ss:$16 sps:$4 sm:$0xff] (!%p497_p10)   ;;  %v1541_v1 = vld [vmem:[%s1928_s0 + $0xc] ss:$16 sps:$4 sm:$0xff] (!%p497_p10)   ;;  %s1315_s26 = sshll.u32 (!%p497_p10), %s1576_s17, 1 }
  0x3a   : > { %500 = sbr.rel (%p497_p10) target bundleno = 397 (0x18d), region = 70  ;;  %s1313_s8 = sshll.u32 (!%p497_p10), %s503_s7, 9  ;;  %999 = vmatprep.mubr.bf16.mxu1 (!%p497_p10), %v1538_v0  ;;  %1042 = vmatprep.mubr.bf16.mxu0 (!%p497_p10), %v1541_v1 }
  0x3b   : > { %s1802_s13 = scalar_lea.vmem (!%p497_p10), [#allocation3], %s1313_s8  ;;  %p549_p11 = scmp.lt.s32.totalorder (!%p497_p10), %s1315_s26, 3 }
  0x3c   : > { %v1440_v2 = vld [vmem:[%s1802_s13 + $0x4] ss:$8 sps:$4 sm:$0xff] (!%p497_p10)   ;;  %v1444_v4 = vld [vmem:[%s1802_s13] ss:$8 sps:$4 sm:$0xff] (!%p497_p10)   ;;  %v1446_v6 = vld [vmem:[%s1802_s13 + $0x14] ss:$8 sps:$4 sm:$0xff] (!%p497_p10)  }
  0x3d   : > { %v1442_v3 = vld [vmem:[%s1802_s13 + $0x104] ss:$8 sps:$4 sm:$0xff] (!%p497_p10)   ;;  %967 = vmatprep.subr.bf16.mxu1 (!%p497_p10), %v1440_v2  ;;  %v1445_v5 = vld [vmem:[%s1802_s13 + $0x100] ss:$8 sps:$4 sm:$0xff] (!%p497_p10)   ;;  %v1448_v7 = vld [vmem:[%s1802_s13 + $0x114] ss:$8 sps:$4 sm:$0xff] (!%p497_p10)  }
  0x3e   : > { %1010 = vmatprep.subr.bf16.mxu0 (!%p497_p10), %v1442_v3  ;;  %968 = vmatpush1.bf16.msra.mxu1 (!%p497_p10), %v1444_v4  ;;  %v1450_v8 = vld [vmem:[%s1802_s13 + $0x10] ss:$8 sps:$4 sm:$0xff] (!%p497_p10)   ;;  %v1452_v10 = vld [vmem:[%s1802_s13 + $0x24] ss:$8 sps:$4 sm:$0xff] (!%p497_p10)   ;;  %v1456_v12 = vld [vmem:[%s1802_s13 + $0x20] ss:$8 sps:$4 sm:$0xff] (!%p497_p10)  }
  0x3f   : > { %1011 = vmatpush1.bf16.msra.mxu0 (!%p497_p10), %v1445_v5  ;;  %969 = vmatprep.subr.bf16.mxu1 (!%p497_p10), %v1446_v6  ;;  %v1451_v9 = vld [vmem:[%s1802_s13 + $0x110] ss:$8 sps:$4 sm:$0xff] (!%p497_p10)   ;;  %v1454_v11 = vld [vmem:[%s1802_s13 + $0x124] ss:$8 sps:$4 sm:$0xff] (!%p497_p10)   ;;  %v1457_v13 = vld [vmem:[%s1802_s13 + $0x120] ss:$8 sps:$4 sm:$0xff] (!%p497_p10)  }
  0x40   : > { %1012 = vmatprep.subr.bf16.mxu0 (!%p497_p10), %v1448_v7  ;;  %v1458_v14 = vld [vmem:[%s1802_s13 + $0x34] ss:$8 sps:$4 sm:$0xff] (!%p497_p10)   ;;  %v1462_v16 = vld [vmem:[%s1802_s13 + $0x30] ss:$8 sps:$4 sm:$0xff] (!%p497_p10)   ;;  %v1464_v18 = vld [vmem:[%s1802_s13 + $0x44] ss:$8 sps:$4 sm:$0xff] (!%p497_p10)  }
  0x41   : > { %v1460_v15 = vld [vmem:[%s1802_s13 + $0x134] ss:$8 sps:$4 sm:$0xff]   ;;  %v1463_v17 = vld [vmem:[%s1802_s13 + $0x130] ss:$8 sps:$4 sm:$0xff]   ;;  %v1466_v19 = vld [vmem:[%s1802_s13 + $0x144] ss:$8 sps:$4 sm:$0xff]  }
  0x42   : > { %970 = vmatpush1.bf16.msra.mxu1 %v1450_v8  ;;  %v1468_v20 = vld [vmem:[%s1802_s13 + $0x40] ss:$8 sps:$4 sm:$0xff]   ;;  %v1470_v22 = vld [vmem:[%s1802_s13 + $0x54] ss:$8 sps:$4 sm:$0xff]   ;;  %v1474_v24 = vld [vmem:[%s1802_s13 + $0x50] ss:$8 sps:$4 sm:$0xff]  }
  0x43   : > { %1013 = vmatpush1.bf16.msra.mxu0 %v1451_v9  ;;  %971 = vmatprep.subr.bf16.mxu1 %v1452_v10  ;;  %v1469_v21 = vld [vmem:[%s1802_s13 + $0x140] ss:$8 sps:$4 sm:$0xff]   ;;  %v1472_v23 = vld [vmem:[%s1802_s13 + $0x154] ss:$8 sps:$4 sm:$0xff]   ;;  %v1475_v25 = vld [vmem:[%s1802_s13 + $0x150] ss:$8 sps:$4 sm:$0xff]  }
  0x44   : > { %1014 = vmatprep.subr.bf16.mxu0 %v1454_v11  ;;  %v1476_v26 = vld [vmem:[%s1802_s13 + $0x64] ss:$8 sps:$4 sm:$0xff]   ;;  %v1480_v28 = vld [vmem:[%s1802_s13 + $0x60] ss:$8 sps:$4 sm:$0xff]   ;;  %v1482_v30 = vld [vmem:[%s1802_s13 + $0x74] ss:$8 sps:$4 sm:$0xff]  }
  0x45   : > { %v1478_v27 = vld [vmem:[%s1802_s13 + $0x164] ss:$8 sps:$4 sm:$0xff]   ;;  %v1481_v29 = vld [vmem:[%s1802_s13 + $0x160] ss:$8 sps:$4 sm:$0xff]   ;;  %v1484_v31 = vld [vmem:[%s1802_s13 + $0x174] ss:$8 sps:$4 sm:$0xff]  }
  0x46   : > { %972 = vmatpush1.bf16.msra.mxu1 %v1456_v12  ;;  %v1486_v32 = vld [vmem:[%s1802_s13 + $0x70] ss:$8 sps:$4 sm:$0xff]   ;;  %v1488_v34 = vld [vmem:[%s1802_s13 + $0x84] ss:$8 sps:$4 sm:$0xff]   ;;  %v1492_v36 = vld [vmem:[%s1802_s13 + $0x80] ss:$8 sps:$4 sm:$0xff]  }
  0x47   : > { %1015 = vmatpush1.bf16.msra.mxu0 %v1457_v13  ;;  %973 = vmatprep.subr.bf16.mxu1 %v1458_v14  ;;  %v1487_v33 = vld [vmem:[%s1802_s13 + $0x170] ss:$8 sps:$4 sm:$0xff]   ;;  %v1490_v35 = vld [vmem:[%s1802_s13 + $0x184] ss:$8 sps:$4 sm:$0xff]   ;;  %v1493_v37 = vld [vmem:[%s1802_s13 + $0x180] ss:$8 sps:$4 sm:$0xff]  }
  0x48   : > { %1016 = vmatprep.subr.bf16.mxu0 %v1460_v15  ;;  %v1494_v38 = vld [vmem:[%s1802_s13 + $0x94] ss:$8 sps:$4 sm:$0xff]   ;;  %v1498_v40 = vld [vmem:[%s1802_s13 + $0x90] ss:$8 sps:$4 sm:$0xff]   ;;  %v1500_v42 = vld [vmem:[%s1802_s13 + $0xa4] ss:$8 sps:$4 sm:$0xff]  }
  0x49   : > { %v1496_v39 = vld [vmem:[%s1802_s13 + $0x194] ss:$8 sps:$4 sm:$0xff]   ;;  %v1499_v41 = vld [vmem:[%s1802_s13 + $0x190] ss:$8 sps:$4 sm:$0xff]   ;;  %v1502_v43 = vld [vmem:[%s1802_s13 + $0x1a4] ss:$8 sps:$4 sm:$0xff]  }
  0x4a   : > { %974 = vmatpush1.bf16.msra.mxu1 %v1462_v16  ;;  %v1504_v44 = vld [vmem:[%s1802_s13 + $0xa0] ss:$8 sps:$4 sm:$0xff]   ;;  %v1506_v46 = vld [vmem:[%s1802_s13 + $0xb4] ss:$8 sps:$4 sm:$0xff]   ;;  %v1510_v48 = vld [vmem:[%s1802_s13 + $0xb0] ss:$8 sps:$4 sm:$0xff]  }
  0x4b   : > { %1017 = vmatpush1.bf16.msra.mxu0 %v1463_v17  ;;  %975 = vmatprep.subr.bf16.mxu1 %v1464_v18  ;;  %v1505_v45 = vld [vmem:[%s1802_s13 + $0x1a0] ss:$8 sps:$4 sm:$0xff]   ;;  %v1508_v47 = vld [vmem:[%s1802_s13 + $0x1b4] ss:$8 sps:$4 sm:$0xff]   ;;  %v1511_v49 = vld [vmem:[%s1802_s13 + $0x1b0] ss:$8 sps:$4 sm:$0xff]  }
  0x4c   : > { %1018 = vmatprep.subr.bf16.mxu0 %v1466_v19  ;;  %v1512_v50 = vld [vmem:[%s1802_s13 + $0xc4] ss:$8 sps:$4 sm:$0xff]   ;;  %v1516_v52 = vld [vmem:[%s1802_s13 + $0xc0] ss:$8 sps:$4 sm:$0xff]   ;;  %v1518_v54 = vld [vmem:[%s1802_s13 + $0xd4] ss:$8 sps:$4 sm:$0xff]  }
  0x4d   : > { %v1514_v51 = vld [vmem:[%s1802_s13 + $0x1c4] ss:$8 sps:$4 sm:$0xff]   ;;  %v1517_v53 = vld [vmem:[%s1802_s13 + $0x1c0] ss:$8 sps:$4 sm:$0xff]   ;;  %v1520_v55 = vld [vmem:[%s1802_s13 + $0x1d4] ss:$8 sps:$4 sm:$0xff]  }
  0x4e   : > { %976 = vmatpush1.bf16.msra.mxu1 %v1468_v20  ;;  %v1522_v56 = vld [vmem:[%s1802_s13 + $0xd0] ss:$8 sps:$4 sm:$0xff]   ;;  %v1524_v58 = vld [vmem:[%s1802_s13 + $0xe4] ss:$8 sps:$4 sm:$0xff]   ;;  %v1528_v60 = vld [vmem:[%s1802_s13 + $0xe0] ss:$8 sps:$4 sm:$0xff]  }
  0x4f   : > { %1019 = vmatpush1.bf16.msra.mxu0 %v1469_v21  ;;  %977 = vmatprep.subr.bf16.mxu1 %v1470_v22  ;;  %v1523_v57 = vld [vmem:[%s1802_s13 + $0x1d0] ss:$8 sps:$4 sm:$0xff]   ;;  %v1526_v59 = vld [vmem:[%s1802_s13 + $0x1e4] ss:$8 sps:$4 sm:$0xff]   ;;  %v1529_v61 = vld [vmem:[%s1802_s13 + $0x1e0] ss:$8 sps:$4 sm:$0xff]  }
  0x50   : > { %1020 = vmatprep.subr.bf16.mxu0 %v1472_v23  ;;  %v1530_v62 = vld [vmem:[%s1802_s13 + $0xf4] ss:$8 sps:$4 sm:$0xff]   ;;  %v1534_v0 = vld [vmem:[%s1802_s13 + $0xf0] ss:$8 sps:$4 sm:$0xff]   ;;  %s1941_s26 = smov (!%p549_p11, %s1315_s26), 3  ;;  %s1314_s8 = sshll.u32 %s503_s7, 4 }
  0x51   : > { %v1532_v63 = vld [vmem:[%s1802_s13 + $0x1f4] ss:$8 sps:$4 sm:$0xff]   ;;  %v1535_v1 = vld [vmem:[%s1802_s13 + $0x1f0] ss:$8 sps:$4 sm:$0xff]   ;;  %s551_s29 = scalar_lea.vmem %s1930_s2, %s1941_s26  ;;  %s556_s6 = scalar_lea.vmem %s1931_s3, %s1941_s26 }
  0x52   : > { %978 = vmatpush1.bf16.msra.mxu1 %v1474_v24  ;;  %v1536_v2 = vld [vmem:[%s1928_s0] ss:$16 sps:$4 sm:$0xff]   ;;  %v1539_v3 = vld [vmem:[%s1928_s0 + $0x8] ss:$16 sps:$4 sm:$0xff]   ;;  %s539_s9 = scalar_lea.vmem [#allocation4], %s1314_s8  ;;  %s1395_s10 = sshll.u32 (%p1646_p6), %s1576_s17, 3 }
  0x53   : > { %1021 = vmatpush1.bf16.msra.mxu0 %v1475_v25  ;;  %979 = vmatprep.subr.bf16.mxu1 %v1476_v26  ;;  %s1166_s11 = scalar_lea.vmem (%p1646_p6), %s1932_s4, %s1395_s10 }
  0x54   : > { %1022 = vmatprep.subr.bf16.mxu0 %v1478_v27 }
  0x56   : > { %980 = vmatpush1.bf16.msra.mxu1 %v1480_v28 }
  0x57   : > { %1023 = vmatpush1.bf16.msra.mxu0 %v1481_v29  ;;  %981 = vmatprep.subr.bf16.mxu1 %v1482_v30 }
  0x58   : > { %1024 = vmatprep.subr.bf16.mxu0 %v1484_v31 }
  0x5a   : > { %982 = vmatpush1.bf16.msra.mxu1 %v1486_v32 }
  0x5b   : > { %1025 = vmatpush1.bf16.msra.mxu0 %v1487_v33  ;;  %983 = vmatprep.subr.bf16.mxu1 %v1488_v34 }
  0x5c   : > { %1026 = vmatprep.subr.bf16.mxu0 %v1490_v35 }
  0x5e   : > { %984 = vmatpush1.bf16.msra.mxu1 %v1492_v36 }
  0x5f   : > { %1027 = vmatpush1.bf16.msra.mxu0 %v1493_v37  ;;  %985 = vmatprep.subr.bf16.mxu1 %v1494_v38 }
  0x60   : > { %1028 = vmatprep.subr.bf16.mxu0 %v1496_v39 }
  0x62   : > { %986 = vmatpush1.bf16.msra.mxu1 %v1498_v40 }
  0x63   : > { %1029 = vmatpush1.bf16.msra.mxu0 %v1499_v41  ;;  %987 = vmatprep.subr.bf16.mxu1 %v1500_v42 }
  0x64   : > { %1030 = vmatprep.subr.bf16.mxu0 %v1502_v43 }
  0x66   : > { %988 = vmatpush1.bf16.msra.mxu1 %v1504_v44 }
  0x67   : > { %1031 = vmatpush1.bf16.msra.mxu0 %v1505_v45  ;;  %989 = vmatprep.subr.bf16.mxu1 %v1506_v46 }
  0x68   : > { %1032 = vmatprep.subr.bf16.mxu0 %v1508_v47 }
  0x6a   : > { %990 = vmatpush1.bf16.msra.mxu1 %v1510_v48 }
  0x6b   : > { %1033 = vmatpush1.bf16.msra.mxu0 %v1511_v49  ;;  %991 = vmatprep.subr.bf16.mxu1 %v1512_v50 }
  0x6c   : > { %1034 = vmatprep.subr.bf16.mxu0 %v1514_v51 }
  0x6e   : > { %992 = vmatpush1.bf16.msra.mxu1 %v1516_v52 }
  0x6f   : > { %1035 = vmatpush1.bf16.msra.mxu0 %v1517_v53  ;;  %993 = vmatprep.subr.bf16.mxu1 %v1518_v54 }
  0x70   : > { %1036 = vmatprep.subr.bf16.mxu0 %v1520_v55 }
  0x72   : > { %994 = vmatpush1.bf16.msra.mxu1 %v1522_v56 }
  0x73   : > { %1037 = vmatpush1.bf16.msra.mxu0 %v1523_v57  ;;  %995 = vmatprep.subr.bf16.mxu1 %v1524_v58 }
  0x74   : > { %1038 = vmatprep.subr.bf16.mxu0 %v1526_v59 }
  0x76   : > { %996 = vmatpush1.bf16.msra.mxu1 %v1528_v60 }
  0x77   : > { %1039 = vmatpush1.bf16.msra.mxu0 %v1529_v61  ;;  %997 = vmatprep.subr.bf16.mxu1 %v1530_v62  ;;  %v1109_v61 = vlaneseq }
  0x78   : > { %1040 = vmatprep.subr.bf16.mxu0 %v1532_v63 }
  0x7a   : > { %998 = vmatpush1.bf16.msra.mxu1 %v1534_v0 }
  0x7b   : > { %1041 = vmatpush1.bf16.msra.mxu0 %v1535_v1  ;;  %v1110_v1 = vshrl.u32 %v1109_v61, 7 }
  0x7d   : > { %1000 = vmatmul.mubr.bf16.vlgmr.msra.gmra.mrb[0].mxu1 %v1536_v2  ;;  %v1111_v2 = vsub.s32 0, %v1110_v1 }
  0x7e   : > { %1043 = vmatmul.mubr.bf16.vlgmr.msra.gmra.mrb[0].mxu0 %v1539_v3  ;;  %v1107_v3 = vld [vmem:[%s551_s29] sm:$0x3] }
 0x150   : > { %v1001_v4 = vpop.f32.mrb[0].mxu1 }
 0x151   : > { %v1044_v5 = vpop.f32.mrb[0].mxu0  ;;  %v1003_v7 = vpop.f32.mrb[1].mxu1 }
 0x152   : > { %v1874_v6 = vadd.f32 %v1044_v5, %v1001_v4  ;;  %v1046_v8 = vpop.f32.mrb[1].mxu0  ;;  %v1005_v10 = vpop.f32.mrb[2].mxu1  ;;  %v1115_v4 = vsub.s32 1, %v1110_v1  ;;  %v1123_v5 = vld [vmem:[%s556_s6] sm:$0x3] }
 0x153   : > { %v1876_v9 = vadd.f32 %v1046_v8, %v1003_v7  ;;  %v1048_v11 = vpop.f32.mrb[2].mxu0  ;;  %v1007_v13 = vpop.f32.mrb[3].mxu1 }
 0x154   : > { %v1878_v12 = vadd.f32 %v1048_v11, %v1005_v10  ;;  %v1050_v14 = vpop.f32.mrb[3].mxu0  ;;  %v1069_v16 = vmul.f32 %v1874_v6, %v1874_v6  ;;  %v1116_v8 = vrot.slane %v1107_v3, %v1115_v4 }
 0x155   : > { %v1880_v15 = vadd.f32 %v1050_v14, %v1007_v13  ;;  %v1070_v19 = vmul.f32 %v1876_v9, %v1876_v9 }
 0x156   : > { %v1053_v17 = vadd.f32 %v1878_v12, %v1874_v6  ;;  %v1071_v18 = vmul.f32 %v1878_v12, %v1878_v12 }
 0x157   : > { %v1060_v20 = vadd.f32 %v1880_v15, %v1876_v9  ;;  %v1072_v21 = vmul.f32 %v1880_v15, %v1880_v15 }
 0x158   : > { %v1054_v22 = vrot.slane %v1053_v17, 4  ;;  %v1073_v23 = vadd.f32 %v1071_v18, %v1069_v16 }
 0x159   : > { %v1061_v24 = vrot.slane %v1060_v20, 4  ;;  %v1080_v25 = vadd.f32 %v1072_v21, %v1070_v19 }
 0x15a   : > { %v1055_v26 = vadd.f32 %v1054_v22, %v1053_v17  ;;  %v1074_v27 = vrot.slane %v1073_v23, 4 }
 0x15b   : > { %v1062_v28 = vadd.f32 %v1061_v24, %v1060_v20  ;;  %v1081_v29 = vrot.slane %v1080_v25, 4 }
 0x15c   : > { %v1056_v30 = vrot.slane %v1055_v26, 2  ;;  %v1075_v31 = vadd.f32 %v1074_v27, %v1073_v23 }
 0x15d   : > { %v1063_v32 = vrot.slane %v1062_v28, 2  ;;  %v1082_v33 = vadd.f32 %v1081_v29, %v1080_v25 }
 0x15e   : > { %v1057_v34 = vadd.f32 %v1056_v30, %v1055_v26  ;;  %v1076_v35 = vrot.slane %v1075_v31, 2 }
 0x15f   : > { %v1064_v36 = vadd.f32 %v1063_v32, %v1062_v28  ;;  %v1083_v37 = vrot.slane %v1082_v33, 2 }
 0x160   : > { %v1058_v38 = vrot.slane %v1057_v34, 1  ;;  %v1077_v39 = vadd.f32 %v1076_v35, %v1075_v31 }
 0x161   : > { %v1065_v40 = vrot.slane %v1064_v36, 1  ;;  %v1084_v41 = vadd.f32 %v1083_v37, %v1082_v33 }
 0x162   : > { %v1059_v42 = vadd.f32 %v1058_v38, %v1057_v34  ;;  %v1078_v43 = vrot.slane %v1077_v39, 1 }
 0x163   : > { %v1066_v44 = vadd.f32 %v1065_v40, %v1064_v36  ;;  %v1085_v45 = vrot.slane %v1084_v41, 1 }
 0x164   : > { %v1067_v46 = vmul.f32 0.5, %v1059_v42  ;;  %v1079_v47 = vadd.f32 %v1078_v43, %v1077_v39 }
 0x165   : > { %v1068_v48 = vmul.f32 0.5, %v1066_v44  ;;  %v1086_v49 = vadd.f32 %v1085_v45, %v1084_v41 }
 0x166   : > { %v1087_v50 = vmul.f32 0.5, %v1079_v47  ;;  %v1089_v51 = vmul.f32 %v1067_v46, %v1067_v46  ;;  %v1095_v52 = vsub.f32 %v1874_v6, %v1067_v46  ;;  %v1097_v53 = vsub.f32 %v1878_v12, %v1067_v46 }
 0x167   : > { %v1088_v54 = vmul.f32 0.5, %v1086_v49  ;;  %v1090_v55 = vmul.f32 %v1068_v48, %v1068_v48  ;;  %v1096_v56 = vsub.f32 %v1876_v9, %v1068_v48  ;;  %v1098_v57 = vsub.f32 %v1880_v15, %v1068_v48 }
 0x168   : > { %v1091_v58 = vsub.f32 %v1087_v50, %v1089_v51  ;;  %v1112_v6 = vrot.slane %v1107_v3, %v1111_v2  ;;  %v1128_v12 = vrot.slane %v1123_v5, %v1111_v2  ;;  %v1132_v15 = vrot.slane %v1123_v5, %v1115_v4 }
 0x169   : > { %v1092_v59 = vsub.f32 %v1088_v54, %v1090_v55 }
 0x16a   : > { %v1093_v60 = vmax.f32 %v1091_v58, 0.0 }
 0x16b   : > { %v1094_v62 = vmax.f32 %v1092_v59, 0.0 }
 0x16c   : > { %v1099_v63 = vadd.f32 1e-05, %v1093_v60 }
 0x16d   : > { %v1100_v0 = vadd.f32 1e-05, %v1094_v62 }
 0x16e   : > { %1542 = vrsqrt.f32 %v1099_v63 }
 0x16f   : > { %1544 = vrsqrt.f32 %v1100_v0 }
 0x178   : > { %v1543_v7 = vpop.eup %1542 }
 0x179   : > { %v1545_v9 = vpop.eup %1544  ;;  %v1103_v10 = vmul.f32 %v1543_v7, %v1095_v52  ;;  %v1105_v11 = vmul.f32 %v1543_v7, %v1097_v53 }
 0x17a   : > { %v1104_v13 = vmul.f32 %v1545_v9, %v1096_v56  ;;  %v1106_v14 = vmul.f32 %v1545_v9, %v1098_v57 }
 0x17b   : > { %v1119_v16 = vmul.f32 %v1112_v6, %v1103_v10  ;;  %v1121_v17 = vmul.f32 %v1112_v6, %v1105_v11 }
 0x17c   : > { %v1120_v18 = vmul.f32 %v1116_v8, %v1104_v13  ;;  %v1122_v19 = vmul.f32 %v1116_v8, %v1106_v14 }
 0x17d   : > { %v1135_v20 = vadd.f32 %v1128_v12, %v1119_v16  ;;  %v1137_v21 = vadd.f32 %v1128_v12, %v1121_v17 }
 0x17e   : > { %v1136_v22 = vadd.f32 %v1132_v15, %v1120_v18  ;;  %v1138_v23 = vadd.f32 %v1132_v15, %v1122_v19  ;;  %1163 = sbr.rel (!%p1646_p6) target bundleno = 397 (0x18d), region = 78 }
 0x17f   : > { %v1139_v24 = vmax.f32 %v1135_v20, 0.0  ;;  %v1141_v25 = vmax.f32 %v1137_v21, 0.0 }
 0x180   : > { %v1140_v26 = vmax.f32 %v1136_v22, 0.0  ;;  %v1142_v27 = vmax.f32 %v1138_v23, 0.0 }
 0x182   : > { %v1393_v28 = vpack.c.bf16 %v1140_v26, %v1139_v24  ;;  %v1394_v29 = vpack.c.bf16 %v1142_v27, %v1141_v25 }
 0x184   : > { %1155 = vst [vmem:[%s539_s9] sm:$0xff] %v1393_v28  ;;  %1156 = vst [vmem:[%s539_s9 + $0x8] sm:$0xff] %v1394_v29 }
 0x18b   : > { %v1196_v30 = vld [vmem:[%s539_s9] sm:$0xff]  ;;  %v1198_v31 = vld [vmem:[%s539_s9 + $0x8] sm:$0xff] }
 0x18c   : > { %1197 = vst [vmem:[%s1166_s11] sm:$0xff] %v1196_v30  ;;  %1199 = vst [vmem:[%s1166_s11 + $0x10] sm:$0xff] %v1198_v31 }
 0x18d PF: > { %s14_s19 = sadd.s32 1, %s1584_s19   ;;  %s1934_s15 = smov %s1572_s16 }
 0x18e   : > { %p11_p12 = scmp.ge.s32.totalorder %s14_s19, 4   ;;  %s1935_s16 = smov %s1651_s25 }
 0x18f   : > { %s1936_s17 = smov %s1580_s18  ;;  %s1937_s18 = smov %s1939_s20 }
 0x190   :  { %13 = sbr.rel (!%p11_p12) target bundleno = 3 (0x3), region = 156 }

// kernel: _lambda_.21
= control target key start
LH: loop header
LB: loop body
LE: loop exit
PB: predicated region body
PF: predicated region fallthrough
CT: control target
= control target key end

     0   :  { %v208_v0 = vmov 0.0   ;;  %vm209_vm0 = vmmov 0   ;;  %s263_s1 = inlined_call_operand.vmem [shape: bf16[128,128], index: 1, kind: input, shape index: {}]   ;;  %s264_s0 = inlined_call_operand.vmem [shape: bf16[16,128], index: 0, kind: input, shape index: {}]   ;;  %s265_s2 = inlined_call_operand.vmem [shape: f32[1,128], index: 2, kind: input, shape index: {}]   ;;  %s266_s3 = inlined_call_operand.vmem [shape: bf16[16,128], index: 3, kind: output, shape index: {}]  }
   0x1   :  { %177 = vmatprep.subr.bf16.mxu0 %v208_v0  ;;  %v199_v1 = vld [vmem:[%s263_s1] sm:$0xff]   ;;  %193 = vmatprep.mubr.msk.bf16.mxu0 %vm209_vm0, %v208_v0  ;;  %v200_v2 = vld [vmem:[%s263_s1 + $0x8] sm:$0xff]   ;;  %v201_v3 = vld [vmem:[%s263_s1 + $0x10] sm:$0xff]  }
   0x2   :  { %178 = vmatpush3.bf16.msra.mxu0 %v199_v1  ;;  %v202_v4 = vld [vmem:[%s263_s1 + $0x18] sm:$0xff]   ;;  %v203_v5 = vld [vmem:[%s263_s1 + $0x20] sm:$0xff]   ;;  %v204_v6 = vld [vmem:[%s263_s1 + $0x28] sm:$0xff]  }
   0x3   :  { %179 = vmatprep.subr.bf16.mxu0 %v208_v0  ;;  %v205_v7 = vld [vmem:[%s263_s1 + $0x30] sm:$0xff]   ;;  %v206_v8 = vld [vmem:[%s263_s1 + $0x38] sm:$0xff]   ;;  %v207_v9 = vld [vmem:[%s264_s0] sm:$0xff]  }
   0x4   :  { %v149_v10 = vld [vmem:[%s265_s2] ss:$0 sm:$0xff] }
   0x6   :  { %180 = vmatpush3.bf16.msra.mxu0 %v200_v2 }
   0x7   :  { %181 = vmatprep.subr.bf16.mxu0 %v208_v0 }
   0xa   :  { %182 = vmatpush3.bf16.msra.mxu0 %v201_v3 }
   0xb   :  { %183 = vmatprep.subr.bf16.mxu0 %v208_v0 }
   0xe   :  { %184 = vmatpush3.bf16.msra.mxu0 %v202_v4 }
   0xf   :  { %185 = vmatprep.subr.bf16.mxu0 %v208_v0 }
  0x12   :  { %186 = vmatpush3.bf16.msra.mxu0 %v203_v5 }
  0x13   :  { %187 = vmatprep.subr.bf16.mxu0 %v208_v0 }
  0x16   :  { %188 = vmatpush3.bf16.msra.mxu0 %v204_v6 }
  0x17   :  { %189 = vmatprep.subr.bf16.mxu0 %v208_v0 }
  0x1a   :  { %190 = vmatpush3.bf16.msra.mxu0 %v205_v7 }
  0x1b   :  { %191 = vmatprep.subr.bf16.mxu0 %v208_v0 }
  0x1e   :  { %192 = vmatpush3.bf16.msra.mxu0 %v206_v8 }
  0x21   :  { %194 = vmatmul.mubr.bf16.vlgmr.msra.gmra.mrb[0].mxu0 %v207_v9 }
  0xf4   :  { %v128_v11 = vpop.f32.mrb[0].mxu0 }
  0xf5   :  { %v195_v12 = vpop.f32.mrb[1].mxu0  ;;  %v129_v14 = vadd.f32 %v149_v10, %v128_v11 }
  0xf6   :  { %v131_v13 = vpop.f32.mrb[2].mxu0 }
  0xf7   :  { %v132_v15 = vadd.f32 %v149_v10, %v131_v13  ;;  %v196_v16 = vpop.f32.mrb[3].mxu0 }
  0xf9   :  { %v166_v17 = vpack.c.bf16 %v132_v15, %v129_v14 }
  0xfb   :  { %167 = vst [vmem:[%s266_s3] sm:$0xff] %v166_v17  }

// kernel: _lambda_.22
= control target key start
LH: loop header
LB: loop body
LE: loop exit
PB: predicated region body
PF: predicated region fallthrough
CT: control target
= control target key end

     0   :  { %s681_s1 = inlined_call_operand.vmem [shape: bf16[512,128], index: 1, kind: input, shape index: {}]   ;;  %s682_s0 = inlined_call_operand.vmem [shape: bf16[16,512], index: 0, kind: input, shape index: {}]   ;;  %s683_s2 = inlined_call_operand.vmem [shape: f32[1,128], index: 2, kind: input, shape index: {}]   ;;  %s684_s3 = inlined_call_operand.vmem [shape: bf16[16,128], index: 3, kind: input, shape index: {}]   ;;  %s685_s4 = inlined_call_operand.vmem [shape: bf16[16,128], index: 4, kind: output, shape index: {}]  }
   0x1   :  { %v501_v0 = vld [vmem:[%s681_s1 + $0x40] sm:$0xff]   ;;  %v505_v4 = vld [vmem:[%s681_s1 + $0x48] sm:$0xff]   ;;  %v509_v8 = vld [vmem:[%s681_s1 + $0x50] sm:$0xff]  }
   0x2   :  { %v502_v1 = vld [vmem:[%s681_s1 + $0xc0] sm:$0xff]   ;;  %457 = vmatprep.subr.bf16.mxu0 %v501_v0  ;;  %v506_v5 = vld [vmem:[%s681_s1 + $0xc8] sm:$0xff]   ;;  %v510_v9 = vld [vmem:[%s681_s1 + $0xd0] sm:$0xff]  }
   0x3   :  { %v503_v2 = vld [vmem:[%s681_s1] sm:$0xff]   ;;  %479 = vmatprep.subr.bf16.mxu1 %v502_v1  ;;  %v507_v6 = vld [vmem:[%s681_s1 + $0x8] sm:$0xff]   ;;  %v511_v10 = vld [vmem:[%s681_s1 + $0x10] sm:$0xff]  }
   0x4   :  { %v504_v3 = vld [vmem:[%s681_s1 + $0x80] sm:$0xff]   ;;  %458 = vmatpush3.bf16.msra.mxu0 %v503_v2  ;;  %v508_v7 = vld [vmem:[%s681_s1 + $0x88] sm:$0xff]   ;;  %v512_v11 = vld [vmem:[%s681_s1 + $0x90] sm:$0xff]  }
   0x5   :  { %480 = vmatpush3.bf16.msra.mxu1 %v504_v3  ;;  %459 = vmatprep.subr.bf16.mxu0 %v505_v4  ;;  %v513_v12 = vld [vmem:[%s681_s1 + $0x58] sm:$0xff]   ;;  %v517_v16 = vld [vmem:[%s681_s1 + $0x60] sm:$0xff]   ;;  %v521_v20 = vld [vmem:[%s681_s1 + $0x68] sm:$0xff]  }
   0x6   :  { %481 = vmatprep.subr.bf16.mxu1 %v506_v5  ;;  %v514_v13 = vld [vmem:[%s681_s1 + $0xd8] sm:$0xff]   ;;  %v518_v17 = vld [vmem:[%s681_s1 + $0xe0] sm:$0xff]   ;;  %v522_v21 = vld [vmem:[%s681_s1 + $0xe8] sm:$0xff]  }
   0x7   :  { %v515_v14 = vld [vmem:[%s681_s1 + $0x18] sm:$0xff]   ;;  %v519_v18 = vld [vmem:[%s681_s1 + $0x20] sm:$0xff]   ;;  %v523_v22 = vld [vmem:[%s681_s1 + $0x28] sm:$0xff]  }
   0x8   :  { %460 = vmatpush3.bf16.msra.mxu0 %v507_v6  ;;  %v516_v15 = vld [vmem:[%s681_s1 + $0x98] sm:$0xff]   ;;  %v520_v19 = vld [vmem:[%s681_s1 + $0xa0] sm:$0xff]   ;;  %v524_v23 = vld [vmem:[%s681_s1 + $0xa8] sm:$0xff]  }
   0x9   :  { %482 = vmatpush3.bf16.msra.mxu1 %v508_v7  ;;  %461 = vmatprep.subr.bf16.mxu0 %v509_v8  ;;  %v525_v24 = vld [vmem:[%s681_s1 + $0x70] sm:$0xff]   ;;  %v529_v28 = vld [vmem:[%s681_s1 + $0x78] sm:$0xff]   ;;  %v407_v38 = vld [vmem:[%s683_s2] ss:$0 sm:$0xff] }
   0xa   :  { %483 = vmatprep.subr.bf16.mxu1 %v510_v9  ;;  %v526_v25 = vld [vmem:[%s681_s1 + $0xf0] sm:$0xff]   ;;  %v530_v29 = vld [vmem:[%s681_s1 + $0xf8] sm:$0xff]   ;;  %v449_v44 = vld [vmem:[%s684_s3] sm:$0xff]  }
   0xb   :  { %v527_v26 = vld [vmem:[%s681_s1 + $0x30] sm:$0xff]   ;;  %v531_v30 = vld [vmem:[%s681_s1 + $0x38] sm:$0xff]   ;;  %v450_v52 = vunpack.c.l.bf16 %v449_v44  ;;  %v451_v54 = vunpack.c.h.bf16 %v449_v44 }
   0xc   :  { %462 = vmatpush3.bf16.msra.mxu0 %v511_v10  ;;  %v528_v27 = vld [vmem:[%s681_s1 + $0xb0] sm:$0xff]   ;;  %v532_v31 = vld [vmem:[%s681_s1 + $0xb8] sm:$0xff]  }
   0xd   :  { %484 = vmatpush3.bf16.msra.mxu1 %v512_v11  ;;  %463 = vmatprep.subr.bf16.mxu0 %v513_v12  ;;  %v533_v32 = vld [vmem:[%s682_s0] ss:$16 sps:$4 sm:$0xff]   ;;  %v535_v33 = vld [vmem:[%s682_s0 + $0x4] ss:$16 sps:$4 sm:$0xff]   ;;  %v536_v34 = vld [vmem:[%s682_s0 + $0x8] ss:$16 sps:$4 sm:$0xff]  }
   0xe   :  { %485 = vmatprep.subr.bf16.mxu1 %v514_v13  ;;  %v538_v35 = vld [vmem:[%s682_s0 + $0xc] ss:$16 sps:$4 sm:$0xff]   ;;  %337 = vmatprep.mubr.bf16.mxu0 %v535_v33 }
   0xf   :  { %378 = vmatprep.mubr.bf16.mxu1 %v538_v35 }
  0x10   :  { %464 = vmatpush3.bf16.msra.mxu0 %v515_v14 }
  0x11   :  { %486 = vmatpush3.bf16.msra.mxu1 %v516_v15  ;;  %465 = vmatprep.subr.bf16.mxu0 %v517_v16 }
  0x12   :  { %487 = vmatprep.subr.bf16.mxu1 %v518_v17 }
  0x14   :  { %466 = vmatpush3.bf16.msra.mxu0 %v519_v18 }
  0x15   :  { %488 = vmatpush3.bf16.msra.mxu1 %v520_v19  ;;  %467 = vmatprep.subr.bf16.mxu0 %v521_v20 }
  0x16   :  { %489 = vmatprep.subr.bf16.mxu1 %v522_v21 }
  0x18   :  { %468 = vmatpush3.bf16.msra.mxu0 %v523_v22 }
  0x19   :  { %490 = vmatpush3.bf16.msra.mxu1 %v524_v23  ;;  %469 = vmatprep.subr.bf16.mxu0 %v525_v24 }
  0x1a   :  { %491 = vmatprep.subr.bf16.mxu1 %v526_v25 }
  0x1c   :  { %470 = vmatpush3.bf16.msra.mxu0 %v527_v26 }
  0x1d   :  { %492 = vmatpush3.bf16.msra.mxu1 %v528_v27  ;;  %471 = vmatprep.subr.bf16.mxu0 %v529_v28 }
  0x1e   :  { %493 = vmatprep.subr.bf16.mxu1 %v530_v29 }
  0x20   :  { %472 = vmatpush3.bf16.msra.mxu0 %v531_v30 }
  0x21   :  { %494 = vmatpush3.bf16.msra.mxu1 %v532_v31 }
  0x23   :  { %338 = vmatmul.mubr.bf16.vlgmr.msra.gmra.mrb[0].mxu0 %v533_v32 }
  0x24   :  { %379 = vmatmul.mubr.bf16.vlgmr.msra.gmra.mrb[0].mxu1 %v536_v34 }
  0xf6   :  { %v473_v36 = vpop.f32.mrb[0].mxu0 }
  0xf7   :  { %v495_v37 = vpop.f32.mrb[0].mxu1  ;;  %v474_v39 = vpop.f32.mrb[1].mxu0 }
  0xf8   :  { %v475_v40 = vadd.f32 %v474_v39, %v473_v36  ;;  %v496_v41 = vpop.f32.mrb[1].mxu1  ;;  %v476_v42 = vpop.f32.mrb[2].mxu0 }
  0xf9   :  { %v497_v43 = vadd.f32 %v496_v41, %v495_v37  ;;  %v498_v45 = vpop.f32.mrb[2].mxu1  ;;  %v477_v46 = vpop.f32.mrb[3].mxu0 }
  0xfa   :  { %v340_v47 = vadd.f32 %v475_v40, %v407_v38  ;;  %v478_v48 = vadd.f32 %v477_v46, %v476_v42  ;;  %v499_v49 = vpop.f32.mrb[3].mxu1 }
  0xfb   :  { %v500_v50 = vadd.f32 %v499_v49, %v498_v45 }
  0xfc   :  { %v381_v51 = vadd.f32 %v497_v43, %v340_v47  ;;  %v343_v53 = vadd.f32 %v478_v48, %v407_v38 }
  0xfe   :  { %v384_v55 = vadd.f32 %v500_v50, %v343_v53  ;;  %v391_v56 = vadd.f32 %v450_v52, %v381_v51 }
 0x100   :  { %v392_v57 = vadd.f32 %v451_v54, %v384_v55 }
 0x102   :  { %v455_v58 = vpack.c.bf16 %v392_v57, %v391_v56 }
 0x104   :  { %456 = vst [vmem:[%s685_s4] sm:$0xff] %v455_v58  }

// kernel: _lambda_.23
= control target key start
LH: loop header
LB: loop body
LE: loop exit
PB: predicated region body
PF: predicated region fallthrough
CT: control target
= control target key end

     0   :  { %s304_s1 = inlined_call_operand.vmem [shape: bf16[128,128], index: 1, kind: input, shape index: {}]   ;;  %s305_s0 = inlined_call_operand.vmem [shape: bf16[32,128], index: 0, kind: input, shape index: {}]   ;;  %s306_s2 = inlined_call_operand.vmem [shape: f32[1,128], index: 2, kind: input, shape index: {}]   ;;  %s307_s3 = inlined_call_operand.vmem [shape: bf16[32,128], index: 3, kind: output, shape index: {}]  }
   0x1   :  { %v235_v0 = vld [vmem:[%s304_s1] sm:$0xff]   ;;  %v236_v1 = vld [vmem:[%s304_s1 + $0x8] sm:$0xff]   ;;  %v237_v2 = vld [vmem:[%s304_s1 + $0x10] sm:$0xff]  }
   0x2   :  { %215 = vmatprep.subr.bf16.mxu0 %v235_v0  ;;  %v238_v3 = vld [vmem:[%s304_s1 + $0x18] sm:$0xff]   ;;  %v243_v4 = vld [vmem:[%s305_s0] sm:$0xff]   ;;  %v240_v6 = vld [vmem:[%s304_s1 + $0x28] sm:$0xff]  }
   0x3   :  { %216 = vmatpush3.bf16.msra.mxu0 %v235_v0  ;;  %231 = vmatprep.mubr.bf16.mxu0 %v243_v4  ;;  %v239_v5 = vld [vmem:[%s304_s1 + $0x20] sm:$0xff]   ;;  %v241_v7 = vld [vmem:[%s304_s1 + $0x30] sm:$0xff]   ;;  %v242_v8 = vld [vmem:[%s304_s1 + $0x38] sm:$0xff]  }
   0x4   :  { %217 = vmatprep.subr.bf16.mxu0 %v236_v1  ;;  %v244_v9 = vld [vmem:[%s305_s0 + $0x8] sm:$0xff]   ;;  %v175_v11 = vld [vmem:[%s306_s2] ss:$0 sm:$0xff] }
   0x7   :  { %218 = vmatpush3.bf16.msra.mxu0 %v236_v1 }
   0x8   :  { %219 = vmatprep.subr.bf16.mxu0 %v237_v2 }
   0xb   :  { %220 = vmatpush3.bf16.msra.mxu0 %v237_v2 }
   0xc   :  { %221 = vmatprep.subr.bf16.mxu0 %v238_v3 }
   0xf   :  { %222 = vmatpush3.bf16.msra.mxu0 %v238_v3 }
  0x10   :  { %223 = vmatprep.subr.bf16.mxu0 %v239_v5 }
  0x13   :  { %224 = vmatpush3.bf16.msra.mxu0 %v239_v5 }
  0x14   :  { %225 = vmatprep.subr.bf16.mxu0 %v240_v6 }
  0x17   :  { %226 = vmatpush3.bf16.msra.mxu0 %v240_v6 }
  0x18   :  { %227 = vmatprep.subr.bf16.mxu0 %v241_v7 }
  0x1b   :  { %228 = vmatpush3.bf16.msra.mxu0 %v241_v7 }
  0x1c   :  { %229 = vmatprep.subr.bf16.mxu0 %v242_v8 }
  0x1f   :  { %230 = vmatpush3.bf16.msra.mxu0 %v242_v8 }
  0x22   :  { %232 = vmatmul.mubr.bf16.vlgmr.msra.gmra.mrb[0].mxu0 %v244_v9 }
  0xf5   :  { %v233_v10 = vpop.f32.mrb[0].mxu0 }
  0xf6   :  { %v136_v12 = vpop.f32.mrb[1].mxu0  ;;  %v145_v14 = vadd.f32 %v233_v10, %v175_v11 }
  0xf7   :  { %v234_v13 = vpop.f32.mrb[2].mxu0  ;;  %v137_v17 = vadd.f32 %v175_v11, %v136_v12 }
  0xf8   :  { %v148_v15 = vadd.f32 %v234_v13, %v175_v11  ;;  %v139_v16 = vpop.f32.mrb[3].mxu0 }
  0xf9   :  { %v140_v18 = vadd.f32 %v175_v11, %v139_v16 }
  0xfa   :  { %v202_v19 = vpack.c.bf16 %v148_v15, %v145_v14 }
  0xfb   :  { %v197_v20 = vpack.c.bf16 %v140_v18, %v137_v17 }
  0xfc   :  { %204 = vst [vmem:[%s307_s3 + $0x8] sm:$0xff] %v202_v19  }
  0xfd   :  { %198 = vst [vmem:[%s307_s3] sm:$0xff] %v197_v20  }

// kernel: _lambda_.24
= control target key start
LH: loop header
LB: loop body
LE: loop exit
PB: predicated region body
PF: predicated region fallthrough
CT: control target
= control target key end

     0   :  { %s477_s1 = inlined_call_operand.vmem [shape: bf16[256,128], index: 1, kind: input, shape index: {}]   ;;  %s478_s0 = inlined_call_operand.vmem [shape: bf16[32,256], index: 0, kind: input, shape index: {}]   ;;  %s479_s3 = inlined_call_operand.vmem [shape: bf16[32,128], index: 3, kind: input, shape index: {}]   ;;  %s480_s2 = inlined_call_operand.vmem [shape: f32[1,128], index: 2, kind: input, shape index: {}]   ;;  %s481_s4 = inlined_call_operand.vmem [shape: bf16[32,128], index: 4, kind: output, shape index: {}]  }
   0x1   :  { %v355_v0 = vld [vmem:[%s477_s1 + $0x40] sm:$0xff]   ;;  %v357_v2 = vld [vmem:[%s477_s1 + $0x48] sm:$0xff]   ;;  %v359_v4 = vld [vmem:[%s477_s1 + $0x50] sm:$0xff]  }
   0x2   :  { %v356_v1 = vld [vmem:[%s477_s1] sm:$0xff]   ;;  %311 = vmatprep.subr.bf16.mxu0 %v355_v0  ;;  %339 = vmatprep.subr.bf16.mxu1 %v355_v0  ;;  %v358_v3 = vld [vmem:[%s477_s1 + $0x8] sm:$0xff]   ;;  %v360_v5 = vld [vmem:[%s477_s1 + $0x10] sm:$0xff]  }
   0x3   :  { %312 = vmatpush3.bf16.msra.mxu0 %v356_v1  ;;  %347 = vmatpush3.bf16.msra.mxu1 %v356_v1  ;;  %v361_v6 = vld [vmem:[%s477_s1 + $0x58] sm:$0xff]   ;;  %v363_v8 = vld [vmem:[%s477_s1 + $0x60] sm:$0xff]   ;;  %v365_v10 = vld [vmem:[%s477_s1 + $0x68] sm:$0xff]  }
   0x4   :  { %313 = vmatprep.subr.bf16.mxu0 %v357_v2  ;;  %340 = vmatprep.subr.bf16.mxu1 %v357_v2  ;;  %v362_v7 = vld [vmem:[%s477_s1 + $0x18] sm:$0xff]   ;;  %v364_v9 = vld [vmem:[%s477_s1 + $0x20] sm:$0xff]   ;;  %v366_v13 = vld [vmem:[%s477_s1 + $0x28] sm:$0xff]  }
   0x5   :  { %v373_v11 = vld [vmem:[%s478_s0 + $0x4] ss:$8 sps:$4 sm:$0xff]   ;;  %v376_v12 = vld [vmem:[%s478_s0 + $0x14] ss:$8 sps:$4 sm:$0xff]   ;;  %v371_v18 = vld [vmem:[%s478_s0] ss:$8 sps:$4 sm:$0xff]  }
   0x6   :  { %v367_v14 = vld [vmem:[%s477_s1 + $0x70] sm:$0xff]   ;;  %209 = vmatprep.mubr.bf16.mxu0 %v373_v11  ;;  %217 = vmatprep.mubr.bf16.mxu1 %v376_v12  ;;  %v369_v16 = vld [vmem:[%s477_s1 + $0x78] sm:$0xff]   ;;  %v292_v22 = vld [vmem:[%s479_s3] sm:$0xff]  }
   0x7   :  { %314 = vmatpush3.bf16.msra.mxu0 %v358_v3  ;;  %348 = vmatpush3.bf16.msra.mxu1 %v358_v3  ;;  %v368_v15 = vld [vmem:[%s477_s1 + $0x30] sm:$0xff]   ;;  %v370_v17 = vld [vmem:[%s477_s1 + $0x38] sm:$0xff]   ;;  %v309_v23 = vld [vmem:[%s479_s3 + $0x8] sm:$0xff]   ;;  %v293_v31 = vunpack.c.l.bf16 %v292_v22  ;;  %v294_v34 = vunpack.c.h.bf16 %v292_v22 }
   0x8   :  { %315 = vmatprep.subr.bf16.mxu0 %v359_v4  ;;  %341 = vmatprep.subr.bf16.mxu1 %v359_v4  ;;  %v374_v19 = vld [vmem:[%s478_s0 + $0x10] ss:$8 sps:$4 sm:$0xff]   ;;  %v262_v24 = vld [vmem:[%s480_s2] ss:$0 sm:$0xff]  ;;  %v297_v32 = vunpack.c.l.bf16 %v309_v23  ;;  %v298_v36 = vunpack.c.h.bf16 %v309_v23 }
   0xb   :  { %316 = vmatpush3.bf16.msra.mxu0 %v360_v5  ;;  %349 = vmatpush3.bf16.msra.mxu1 %v360_v5 }
   0xc   :  { %317 = vmatprep.subr.bf16.mxu0 %v361_v6  ;;  %342 = vmatprep.subr.bf16.mxu1 %v361_v6 }
   0xf   :  { %318 = vmatpush3.bf16.msra.mxu0 %v362_v7  ;;  %350 = vmatpush3.bf16.msra.mxu1 %v362_v7 }
  0x10   :  { %319 = vmatprep.subr.bf16.mxu0 %v363_v8  ;;  %343 = vmatprep.subr.bf16.mxu1 %v363_v8 }
  0x13   :  { %320 = vmatpush3.bf16.msra.mxu0 %v364_v9  ;;  %351 = vmatpush3.bf16.msra.mxu1 %v364_v9 }
  0x14   :  { %321 = vmatprep.subr.bf16.mxu0 %v365_v10  ;;  %344 = vmatprep.subr.bf16.mxu1 %v365_v10 }
  0x17   :  { %322 = vmatpush3.bf16.msra.mxu0 %v366_v13  ;;  %352 = vmatpush3.bf16.msra.mxu1 %v366_v13 }
  0x18   :  { %323 = vmatprep.subr.bf16.mxu0 %v367_v14  ;;  %345 = vmatprep.subr.bf16.mxu1 %v367_v14 }
  0x1b   :  { %324 = vmatpush3.bf16.msra.mxu0 %v368_v15  ;;  %353 = vmatpush3.bf16.msra.mxu1 %v368_v15 }
  0x1c   :  { %325 = vmatprep.subr.bf16.mxu0 %v369_v16  ;;  %346 = vmatprep.subr.bf16.mxu1 %v369_v16 }
  0x1f   :  { %326 = vmatpush3.bf16.msra.mxu0 %v370_v17  ;;  %354 = vmatpush3.bf16.msra.mxu1 %v370_v17 }
  0x22   :  { %210 = vmatmul.mubr.bf16.vlgmr.msra.gmra.mrb[0].mxu0 %v371_v18  ;;  %218 = vmatmul.mubr.bf16.vlgmr.msra.gmra.mrb[0].mxu1 %v374_v19 }
  0xf5   :  { %v327_v20 = vpop.f32.mrb[0].mxu0  ;;  %v333_v21 = vpop.f32.mrb[0].mxu1 }
  0xf6   :  { %v328_v25 = vpop.f32.mrb[1].mxu0  ;;  %v334_v26 = vpop.f32.mrb[1].mxu1 }
  0xf7   :  { %v329_v27 = vadd.f32 %v328_v25, %v327_v20  ;;  %v335_v28 = vadd.f32 %v334_v26, %v333_v21  ;;  %v330_v29 = vpop.f32.mrb[2].mxu0  ;;  %v336_v30 = vpop.f32.mrb[2].mxu1 }
  0xf8   :  { %v331_v33 = vpop.f32.mrb[3].mxu0  ;;  %v337_v35 = vpop.f32.mrb[3].mxu1 }
  0xf9   :  { %v212_v37 = vadd.f32 %v329_v27, %v262_v24  ;;  %v220_v38 = vadd.f32 %v335_v28, %v262_v24  ;;  %v332_v39 = vadd.f32 %v331_v33, %v330_v29  ;;  %v338_v40 = vadd.f32 %v337_v35, %v336_v30 }
  0xfb   :  { %v215_v41 = vadd.f32 %v332_v39, %v262_v24  ;;  %v223_v42 = vadd.f32 %v338_v40, %v262_v24  ;;  %v234_v43 = vadd.f32 %v293_v31, %v212_v37  ;;  %v236_v44 = vadd.f32 %v297_v32, %v220_v38 }
  0xfd   :  { %v235_v45 = vadd.f32 %v294_v34, %v215_v41  ;;  %v237_v46 = vadd.f32 %v298_v36, %v223_v42 }
  0xff   :  { %v302_v47 = vpack.c.bf16 %v235_v45, %v234_v43  ;;  %v307_v48 = vpack.c.bf16 %v237_v46, %v236_v44 }
 0x101   :  { %303 = vst [vmem:[%s481_s4] sm:$0xff] %v302_v47   ;;  %310 = vst [vmem:[%s481_s4 + $0x8] sm:$0xff] %v307_v48  }

// kernel: _lambda_.25
= control target key start
LH: loop header
LB: loop body
LE: loop exit
PB: predicated region body
PF: predicated region fallthrough
CT: control target
= control target key end

     0   :  { %s867_s12 = smov 0   ;;  %s869_s13 = smov 0   ;;  %s1006_s0 = inlined_call_operand.vmem [shape: bf16[64,128], index: 0, kind: input, shape index: {}]   ;;  %s1007_s1 = inlined_call_operand.vmem [shape: bf16[128,256], index: 1, kind: input, shape index: {}]   ;;  %s1008_s2 = inlined_call_operand.vmem [shape: f32[1,256], index: 2, kind: input, shape index: {}]   ;;  %s1009_s3 = inlined_call_operand.vmem [shape: f32[64,256], index: 3, kind: output, shape index: {}]  }
   0x1   :  { %s871_s14 = smov 0   ;;  %s873_s15 = smov 0  }
   0x2   :  { %s875_s16 = smov 0  }
   0x3 LB: > { %s25_s17 = sadd.s32 1, %s841_s15  ;;  %s660_s18 = sadd.s32 4294967295, %s845_s16   ;;  %s845_s16 = sphi %s875_s16, %s13_s16   ;;  %s841_s15 = sphi %s873_s15, %s1014_s15   ;;  %s837_s14 = sphi %s871_s14, %s1013_s14   ;;  %s833_s13 = sphi %s869_s13, %s1012_s13   ;;  %s829_s12 = sphi %s867_s12, %s1011_s12  }
   0x4   : > { %p27_p0 = scmp.ge.s32.totalorder %s25_s17, 2  ;;  %p67_p1 = scmp.ne.s32.totalorder %s833_s13, %s829_s12 }
   0x5   : > { %p68_p2 = scmp.eq.s32.totalorder %s845_s16, 0  ;;  %p123_p4 = scmp.eq.s32.totalorder %s660_s18, 1 }
   0x6   : > { %s1016_s17 = smov (%p27_p0, %s25_s17), 0  ;;  %s60_s20 = sadd.s32 1, %s833_s13 }
   0x7   : > { %p69_p3 = por %p68_p2, %p67_p1  ;;  %s56_s19 = ssub.s32 %s841_s15, %s1016_s17 }
   0x8   : > { %p58_p5 = scmp.eq.s32.totalorder %s56_s19, 0  ;;  %p902_p6 = por %p123_p4, %p67_p1 }
   0x9   : > { %p664_p7 = scmp.ge.s32.totalorder %s845_s16, 2 }
   0xa   : > { %s907_s22 = scalar_select %p58_p5, %s833_s13, %s60_s20  }
   0xb   : > { %152 = sbr.rel (%p664_p7) target bundleno = 32 (0x20), region = 20 }
  0x12   : > { %155 = sbr.rel (!%p69_p3) target bundleno = 32 (0x20), region = 24  ;;  %s157_s23 = sand.u32 (%p69_p3), 1, %s833_s13  }
  0x13   : > { %s666_s24 = sshll.u32 (%p69_p3), %s841_s15, 2  ;;  %s665_s25 = sshll.u32 (%p69_p3), %s157_s23, 6 }
  0x14   : > { %s915_s28 = scalar_lea.vmem (%p69_p3), %s1007_s1, %s666_s24  ;;  %s159_s29 = scalar_lea.vmem (%p69_p3), [#allocation3], %s665_s25 }
  0x15   : > { %v180_v0 = vld [vmem:[%s915_s28] sm:$0xf] (%p69_p3)  ;;  %v182_v1 = vld [vmem:[%s915_s28 + $0x8] sm:$0xf] (%p69_p3)  ;;  %v184_v2 = vld [vmem:[%s915_s28 + $0x10] sm:$0xf] (%p69_p3) }
  0x16   : > { %181 = vst [vmem:[%s159_s29] sm:$0xf] (%p69_p3), %v180_v0  ;;  %183 = vst [vmem:[%s159_s29 + $0x4] sm:$0xf] (%p69_p3), %v182_v1  ;;  %v186_v3 = vld [vmem:[%s915_s28 + $0x18] sm:$0xf] (%p69_p3) }
  0x17   : > { %v188_v4 = vld [vmem:[%s915_s28 + $0x20] sm:$0xf] (%p69_p3)  ;;  %185 = vst [vmem:[%s159_s29 + $0x8] sm:$0xf] (%p69_p3), %v184_v2  ;;  %187 = vst [vmem:[%s159_s29 + $0xc] sm:$0xf] (%p69_p3), %v186_v3 }
  0x18   : > { %189 = vst [vmem:[%s159_s29 + $0x10] sm:$0xf] (%p69_p3), %v188_v4  ;;  %v190_v5 = vld [vmem:[%s915_s28 + $0x28] sm:$0xf] (%p69_p3)  ;;  %v192_v6 = vld [vmem:[%s915_s28 + $0x30] sm:$0xf] (%p69_p3) }
  0x19   : > { %v194_v7 = vld [vmem:[%s915_s28 + $0x38] sm:$0xf]  ;;  %191 = vst [vmem:[%s159_s29 + $0x14] sm:$0xf] %v190_v5  ;;  %193 = vst [vmem:[%s159_s29 + $0x18] sm:$0xf] %v192_v6 }
  0x1a   : > { %195 = vst [vmem:[%s159_s29 + $0x1c] sm:$0xf] %v194_v7  ;;  %v196_v8 = vld [vmem:[%s915_s28 + $0x40] sm:$0xf]  ;;  %v198_v9 = vld [vmem:[%s915_s28 + $0x48] sm:$0xf] }
  0x1b   : > { %v200_v10 = vld [vmem:[%s915_s28 + $0x50] sm:$0xf]  ;;  %197 = vst [vmem:[%s159_s29 + $0x20] sm:$0xf] %v196_v8  ;;  %199 = vst [vmem:[%s159_s29 + $0x24] sm:$0xf] %v198_v9 }
  0x1c   : > { %201 = vst [vmem:[%s159_s29 + $0x28] sm:$0xf] %v200_v10  ;;  %v202_v11 = vld [vmem:[%s915_s28 + $0x58] sm:$0xf]  ;;  %v204_v12 = vld [vmem:[%s915_s28 + $0x60] sm:$0xf] }
  0x1d   : > { %v206_v13 = vld [vmem:[%s915_s28 + $0x68] sm:$0xf]  ;;  %203 = vst [vmem:[%s159_s29 + $0x2c] sm:$0xf] %v202_v11  ;;  %205 = vst [vmem:[%s159_s29 + $0x30] sm:$0xf] %v204_v12 }
  0x1e   : > { %207 = vst [vmem:[%s159_s29 + $0x34] sm:$0xf] %v206_v13  ;;  %v208_v14 = vld [vmem:[%s915_s28 + $0x70] sm:$0xf]  ;;  %v210_v15 = vld [vmem:[%s915_s28 + $0x78] sm:$0xf] }
  0x1f   : > { %209 = vst [vmem:[%s159_s29 + $0x38] sm:$0xf] %v208_v14  ;;  %211 = vst [vmem:[%s159_s29 + $0x3c] sm:$0xf] %v210_v15 }
  0x20 PF: > { %p667_p8 = scmp.ge.s32.totalorder %s845_s16, 1  ;;  %p271_p9 = scmp.lt.s32.totalorder %s845_s16, 3 }
  0x22   : > { %p272_p10 = pnand %p667_p8, %p271_p9 }
  0x23   : > { %s278_s30 = sand.u32 (!%p272_p10), 1, %s829_s12   ;;  %v787_v16 = vld [vmem:[%s1006_s0] sm:$0xff] (!%p272_p10)   ;;  %v788_v17 = vld [vmem:[%s1006_s0 + $0x10] sm:$0xff] (!%p272_p10)   ;;  %v789_v26 = vld [vmem:[%s1006_s0 + $0x8] sm:$0xff] (!%p272_p10)   ;;  %p312_p11 = scmp.lt.s32.totalorder (!%p272_p10), %s837_s14, 1 }
  0x24   : > { %275 = sbr.rel (%p272_p10) target bundleno = 312 (0x138), region = 69  ;;  %s939_s6 = sshll.u32 (!%p272_p10), %s278_s30, 6  ;;  %715 = vmatprep.mubr.bf16.mxu0 (!%p272_p10), %v787_v16  ;;  %719 = vmatprep.mubr.bf16.mxu1 (!%p272_p10), %v788_v17  ;;  %v790_v27 = vld [vmem:[%s1006_s0 + $0x18] sm:$0xff] (!%p272_p10)  }
  0x25   : > { %s945_s9 = scalar_lea.vmem (!%p272_p10), [#allocation3], %s939_s6  ;;  %s967_s25 = scalar_lea.vmem (!%p272_p10), [#allocation4], %s939_s6 }
  0x26   : > { %v779_v18 = vld [vmem:[%s945_s9] sm:$0xff] (!%p272_p10)   ;;  %v780_v19 = vld [vmem:[%s945_s9 + $0x8] sm:$0xff] (!%p272_p10)   ;;  %v781_v20 = vld [vmem:[%s945_s9 + $0x10] sm:$0xff] (!%p272_p10)  }
  0x27   : > { %699 = vmatprep.subr.bf16.mxu0 (!%p272_p10), %v779_v18  ;;  %723 = vmatprep.subr.bf16.mxu1 (!%p272_p10), %v779_v18  ;;  %v782_v21 = vld [vmem:[%s945_s9 + $0x18] sm:$0xff] (!%p272_p10)   ;;  %v783_v22 = vld [vmem:[%s945_s9 + $0x20] sm:$0xff] (!%p272_p10)   ;;  %v784_v23 = vld [vmem:[%s945_s9 + $0x28] sm:$0xff] (!%p272_p10)  }
  0x28   : > { %700 = vmatpush3.bf16.msra.mxu0 (!%p272_p10), %v779_v18  ;;  %731 = vmatpush3.bf16.msra.mxu1 (!%p272_p10), %v779_v18  ;;  %v785_v24 = vld [vmem:[%s945_s9 + $0x30] sm:$0xff] (!%p272_p10)   ;;  %v786_v25 = vld [vmem:[%s945_s9 + $0x38] sm:$0xff] (!%p272_p10)  }
  0x29   : > { %701 = vmatprep.subr.bf16.mxu0 (!%p272_p10), %v780_v19  ;;  %724 = vmatprep.subr.bf16.mxu1 (!%p272_p10), %v780_v19 }
  0x2b   : > { %s313_s19 = scalar_select %p312_p11, %s837_s14, 1 }
  0x2c   : > { %702 = vmatpush3.bf16.msra.mxu0 %v780_v19  ;;  %732 = vmatpush3.bf16.msra.mxu1 %v780_v19  ;;  %s684_s26 = sshll.u32 (%p902_p6), %s837_s14, 3 }
  0x2d   : > { %703 = vmatprep.subr.bf16.mxu0 %v781_v20  ;;  %725 = vmatprep.subr.bf16.mxu1 %v781_v20  ;;  %s314_s24 = scalar_lea.vmem %s1008_s2, %s313_s19  ;;  %s508_s29 = scalar_lea.vmem (%p902_p6), %s1009_s3, %s684_s26 }
  0x2e   : > { %v670_v28 = vld [vmem:[%s314_s24] ss:$0 sm:$0xff] }
  0x30   : > { %704 = vmatpush3.bf16.msra.mxu0 %v781_v20  ;;  %733 = vmatpush3.bf16.msra.mxu1 %v781_v20 }
  0x31   : > { %705 = vmatprep.subr.bf16.mxu0 %v782_v21  ;;  %726 = vmatprep.subr.bf16.mxu1 %v782_v21 }
  0x34   : > { %706 = vmatpush3.bf16.msra.mxu0 %v782_v21  ;;  %734 = vmatpush3.bf16.msra.mxu1 %v782_v21 }
  0x35   : > { %707 = vmatprep.subr.bf16.mxu0 %v783_v22  ;;  %727 = vmatprep.subr.bf16.mxu1 %v783_v22 }
  0x38   : > { %708 = vmatpush3.bf16.msra.mxu0 %v783_v22  ;;  %735 = vmatpush3.bf16.msra.mxu1 %v783_v22 }
  0x39   : > { %709 = vmatprep.subr.bf16.mxu0 %v784_v23  ;;  %728 = vmatprep.subr.bf16.mxu1 %v784_v23 }
  0x3c   : > { %710 = vmatpush3.bf16.msra.mxu0 %v784_v23  ;;  %736 = vmatpush3.bf16.msra.mxu1 %v784_v23 }
  0x3d   : > { %711 = vmatprep.subr.bf16.mxu0 %v785_v24  ;;  %729 = vmatprep.subr.bf16.mxu1 %v785_v24 }
  0x40   : > { %712 = vmatpush3.bf16.msra.mxu0 %v785_v24  ;;  %737 = vmatpush3.bf16.msra.mxu1 %v785_v24 }
  0x41   : > { %713 = vmatprep.subr.bf16.mxu0 %v786_v25  ;;  %730 = vmatprep.subr.bf16.mxu1 %v786_v25 }
  0x44   : > { %714 = vmatpush3.bf16.msra.mxu0 %v786_v25  ;;  %738 = vmatpush3.bf16.msra.mxu1 %v786_v25 }
  0x47   : > { %716 = vmatmul.mubr.bf16.vlgmr.msra.gmra.mrb[0].mxu0 %v789_v26  ;;  %720 = vmatmul.mubr.bf16.vlgmr.msra.gmra.mrb[0].mxu1 %v790_v27 }
 0x11a   : > { %v717_v29 = vpop.f32.mrb[0].mxu0  ;;  %v721_v30 = vpop.f32.mrb[0].mxu1 }
 0x11b   : > { %v462_v31 = vadd.f32 %v717_v29, %v670_v28  ;;  %v478_v32 = vadd.f32 %v721_v30, %v670_v28  ;;  %v453_v33 = vpop.f32.mrb[1].mxu0  ;;  %v469_v34 = vpop.f32.mrb[1].mxu1 }
 0x11c   : > { %v454_v35 = vadd.f32 %v670_v28, %v453_v33  ;;  %v470_v36 = vadd.f32 %v670_v28, %v469_v34  ;;  %v718_v37 = vpop.f32.mrb[2].mxu0  ;;  %v722_v38 = vpop.f32.mrb[2].mxu1 }
 0x11d   : > { %791 = vtanh.f32 %v462_v31  ;;  %v465_v39 = vadd.f32 %v718_v37, %v670_v28  ;;  %v456_v40 = vpop.f32.mrb[3].mxu0  ;;  %v472_v41 = vpop.f32.mrb[3].mxu1  ;;  %v481_v42 = vadd.f32 %v722_v38, %v670_v28 }
 0x11e   : > { %793 = vtanh.f32 %v478_v32  ;;  %v457_v43 = vadd.f32 %v670_v28, %v456_v40  ;;  %v473_v44 = vadd.f32 %v670_v28, %v472_v41 }
 0x11f   : > { %795 = vtanh.f32 %v454_v35 }
 0x120   : > { %797 = vtanh.f32 %v470_v36 }
 0x121   : > { %799 = vtanh.f32 %v465_v39 }
 0x122   : > { %801 = vtanh.f32 %v481_v42 }
 0x123   : > { %803 = vtanh.f32 %v457_v43 }
 0x124   : > { %805 = vtanh.f32 %v473_v44 }
 0x127   : > { %v792_v45 = vpop.eup %791 }
 0x128   : > { %v794_v46 = vpop.eup %793  ;;  %494 = vst [vmem:[%s967_s25 + $0x10] sm:$0xff] %v792_v45 }
 0x129   : > { %v796_v47 = vpop.eup %795  ;;  %498 = vst [vmem:[%s967_s25 + $0x30] sm:$0xff] %v794_v46  ;;  %506 = sbr.rel (!%p902_p6) target bundleno = 312 (0x138), region = 77 }
 0x12a   : > { %v798_v48 = vpop.eup %797  ;;  %492 = vst [vmem:[%s967_s25] sm:$0xff] %v796_v47 }
 0x12b   : > { %v800_v49 = vpop.eup %799  ;;  %496 = vst [vmem:[%s967_s25 + $0x20] sm:$0xff] %v798_v48 }
 0x12c   : > { %v802_v50 = vpop.eup %801  ;;  %495 = vst [vmem:[%s967_s25 + $0x18] sm:$0xff] %v800_v49 }
 0x12d   : > { %v804_v51 = vpop.eup %803  ;;  %499 = vst [vmem:[%s967_s25 + $0x38] sm:$0xff] %v802_v50 }
 0x12e   : > { %v806_v52 = vpop.eup %805  ;;  %493 = vst [vmem:[%s967_s25 + $0x8] sm:$0xff] %v804_v51 }
 0x12f   : > { %497 = vst [vmem:[%s967_s25 + $0x28] sm:$0xff] %v806_v52  ;;  %v554_v55 = vld [vmem:[%s967_s25 + $0x10] sm:$0xff] (%p902_p6) }
 0x130   : > { %555 = vst [vmem:[%s508_s29 + $0x20] sm:$0xff] %v554_v55  ;;  %v562_v59 = vld [vmem:[%s967_s25 + $0x30] sm:$0xff] }
 0x131   : > { %v550_v53 = vld [vmem:[%s967_s25] sm:$0xff]  ;;  %563 = vst [vmem:[%s508_s29 + $0x60] sm:$0xff] %v562_v59 }
 0x132   : > { %v558_v57 = vld [vmem:[%s967_s25 + $0x20] sm:$0xff]  ;;  %551 = vst [vmem:[%s508_s29] sm:$0xff] %v550_v53 }
 0x133   : > { %v556_v56 = vld [vmem:[%s967_s25 + $0x18] sm:$0xff]  ;;  %559 = vst [vmem:[%s508_s29 + $0x40] sm:$0xff] %v558_v57 }
 0x134   : > { %557 = vst [vmem:[%s508_s29 + $0x30] sm:$0xff] %v556_v56  ;;  %v564_v60 = vld [vmem:[%s967_s25 + $0x38] sm:$0xff] }
 0x135   : > { %v552_v54 = vld [vmem:[%s967_s25 + $0x8] sm:$0xff]  ;;  %565 = vst [vmem:[%s508_s29 + $0x70] sm:$0xff] %v564_v60 }
 0x136   : > { %v560_v58 = vld [vmem:[%s967_s25 + $0x28] sm:$0xff]  ;;  %553 = vst [vmem:[%s508_s29 + $0x10] sm:$0xff] %v552_v54 }
 0x137   : > { %561 = vst [vmem:[%s508_s29 + $0x50] sm:$0xff] %v560_v58 }
 0x138 PF: > { %s13_s16 = sadd.s32 1, %s845_s16   ;;  %s1011_s12 = smov %s833_s13 }
 0x139   : > { %p10_p12 = scmp.ge.s32.totalorder %s13_s16, 4   ;;  %s1012_s13 = smov %s907_s22 }
 0x13a   : > { %s1013_s14 = smov %s841_s15  ;;  %s1014_s15 = smov %s1016_s17 }
 0x13b   :  { %12 = sbr.rel (!%p10_p12) target bundleno = 3 (0x3), region = 152 }

</bundles_post_ra>
